<compile_context>
chip_gen: v7x
topology: tpu7x:2x2x1
jax: 0.10.0
libtpu: 0.0.40
codegen_flags: <defaults>
</compile_context>

<pallas_src>
import functools

import jax
import jax.numpy as jnp
from jax.experimental import pallas as pl
from jax.experimental.pallas import tpu as pltpu


def _round_up(x, m):
    return ((x + m - 1) // m) * m


def _num_tensorcores():
    """Best-effort count of TensorCores sharing the grid (megacore / v7x)."""
    try:
        kind = (jax.devices()[0].device_kind or "").lower()
    except Exception:
        return 1
    if any(tag in kind for tag in ("v7", "7x", "v4", "v5p")):
        return 2
    return 1


def _choose_tile_n(N, d_m, d_s, *, vmem_budget_bytes=8 << 20):
    """Row tile: divides N, multiple of 8, fits a conservative VMEM budget.

    Single-TC chips (v5e/v6e): as few grid steps as possible (per-step
    overhead ~0.35us dominates this kernel).  Dual-TC chips (v7x): even grid
    with >= 2 steps per TensorCore so the 'parallel' axis load-balances.
    """
    num_tc = _num_tensorcores()
    # Double-buffered streamed blocks (X + S + mask + out), f32-conservative.
    bytes_per_row = 2 * (d_m + 2 * d_s + 1) * 4
    max_rows = max(8, vmem_budget_bytes // bytes_per_row)
    min_steps = 2 * num_tc if num_tc > 1 else 1

    for t in (8192, 4096, 2048, 1024, 512, 256, 128, 64, 32, 16, 8):
        if t > max_rows or N % t != 0:
            continue
        steps = N // t
        if steps < min_steps:
            continue
        if num_tc > 1 and steps % num_tc != 0:
            continue
        return t
    # Fallback (should not trigger at these sizes).
    return 8 if N % 8 == 0 else N


def gru_update_kernel(x_ref, h_ref, mask_ref,
                      w_ih_ref, w_hh_ref, b_i_ref, b_hn_ref,
                      out_ref, *, d_s, d_s_p):
    """One row-tile of the masked GRUCell update (fused-gate formulation)."""
    h = h_ref[...].astype(jnp.float32)                    # [tN, d_s] f32 for the blend
    x_b = x_ref[...].astype(jnp.bfloat16)                 # [tN, d_m] (no-op if X already bf16)
    h_b = h_ref[...].astype(jnp.bfloat16)                 # [tN, d_s]

    # Two fused matmuls over all three gates; gate columns padded to
    # 3*d_s_p = multiple of 128 so the MXU output is lane-aligned.
    gi = jnp.dot(x_b, w_ih_ref[...],
                 preferred_element_type=jnp.float32) + b_i_ref[...]   # [tN, 3*d_s_p]
    gh = jnp.dot(h_b, w_hh_ref[...],
                 preferred_element_type=jnp.float32)                  # [tN, 3*d_s_p]

    # Static slices: 128-lane-aligned starts, real d_s width (gate order r, z, n).
    gi_r = gi[:, 0 * d_s_p:0 * d_s_p + d_s]     # includes b_ir + b_hr
    gi_z = gi[:, 1 * d_s_p:1 * d_s_p + d_s]     # includes b_iz + b_hz
    gi_n = gi[:, 2 * d_s_p:2 * d_s_p + d_s]     # includes b_in
    gh_r = gh[:, 0 * d_s_p:0 * d_s_p + d_s]
    gh_z = gh[:, 1 * d_s_p:1 * d_s_p + d_s]
    gh_n = gh[:, 2 * d_s_p:2 * d_s_p + d_s] + b_hn_ref[...]

    r = jax.nn.sigmoid(gi_r + gh_r)
    z = jax.nn.sigmoid(gi_z + gh_z)
    n = jnp.tanh(gi_n + r * gh_n)
    h_new = (1.0 - z) * n + z * h                          # [tN, d_s] f32

    # Rows not in `am` are 1.0 — matches torch.ones_like(S). Mask is strictly 0/1.
    mask = mask_ref[...]                                   # [tN, 1] broadcasts over lanes
    out_ref[...] = jnp.where(mask > 0.0, h_new, jnp.ones_like(h_new)).astype(out_ref.dtype)


def memory_updater_pallas(X, S, mask, packed_params, *, tile_n=None):
    """X: [N, d_m] dense messages, S: [N, d_s] memory, mask: [N, 1]."""
    N, d_m = X.shape
    _, d_s = S.shape
    w_ih_p, w_hh_p, b_i_p, b_hn_p = packed_params
    d_s_p = w_ih_p.shape[1] // 3
    assert w_ih_p.shape == (d_m, 3 * d_s_p)
    assert w_hh_p.shape == (d_s, 3 * d_s_p)
    assert b_hn_p.shape == (1, d_s)

    if tile_n is None:
        tile_n = _choose_tile_n(N, d_m, d_s)
    assert N % tile_n == 0 and tile_n % 8 == 0, (N, tile_n)

    return pl.pallas_call(
        functools.partial(gru_update_kernel, d_s=d_s, d_s_p=d_s_p),
        out_shape=jax.ShapeDtypeStruct((N, d_s), S.dtype),
        grid_spec=pltpu.PrefetchScalarGridSpec(
            num_scalar_prefetch=0,
            grid=(N // tile_n,),
            in_specs=[
                pl.BlockSpec((tile_n, d_m), lambda i: (i, 0)),        # X tile (bf16)
                pl.BlockSpec((tile_n, d_s), lambda i: (i, 0)),        # S tile (unpadded)
                pl.BlockSpec((tile_n, 1), lambda i: (i, 0)),          # mask tile
                # Grid-invariant packed weights / biases (constant index_map:
                # fetched once, not re-DMA'd across grid steps).
                pl.BlockSpec((d_m, 3 * d_s_p), lambda i: (0, 0)),     # W_ih packed (bf16)
                pl.BlockSpec((d_s, 3 * d_s_p), lambda i: (0, 0)),     # W_hh packed (bf16)
                pl.BlockSpec((1, 3 * d_s_p), lambda i: (0, 0)),       # b_i packed (r,z pre-summed)
                pl.BlockSpec((1, d_s), lambda i: (0, 0)),             # b_hn (unpadded)
            ],
            out_specs=pl.BlockSpec((tile_n, d_s), lambda i: (i, 0)),  # unpadded output
        ),
        compiler_params=pltpu.CompilerParams(
            dimension_semantics=("parallel",),   # row grid -> megacore shard on dual-TC chips
        ),
    )(X, S, mask, w_ih_p, w_hh_p, b_i_p, b_hn_p)


def init_gru_params(key, d_m, d_s, dtype=jnp.float32):
    """Deterministic nn.GRUCell parameters in PyTorch layout (gate order r,z,n)."""
    k = 1.0 / (d_s ** 0.5)
    k_ih, k_hh, k_bih, k_bhh = jax.random.split(key, 4)
    weight_ih = jax.random.uniform(k_ih, (3 * d_s, d_m), dtype, -k, k)
    weight_hh = jax.random.uniform(k_hh, (3 * d_s, d_s), dtype, -k, k)
    bias_ih = jax.random.uniform(k_bih, (3 * d_s,), dtype, -k, k)
    bias_hh = jax.random.uniform(k_bhh, (3 * d_s,), dtype, -k, k)
    return weight_ih, weight_hh, bias_ih, bias_hh


def pack_gru_params(weight_ih, weight_hh, bias_ih, bias_hh, *, w_dtype=jnp.bfloat16):
    """Pack PyTorch-layout GRUCell params into kernel layout:
       W_ih: [d_m, 3*d_s_p] bf16, W_hh: [d_s, 3*d_s_p] bf16 (no zero-row pad),
       b_i:  [1, 3*d_s_p]  f32 (r,z biases pre-summed; n keeps b_in),
       b_hn: [1, d_s]      f32 (unpadded; added after gate slicing).
       d_s_p = d_s rounded up to 128 so gate slices start on lane-tile bounds."""
    d3, d_m = weight_ih.shape
    d_s = d3 // 3
    d_s_p = _round_up(d_s, 128)

    def gate(w, g):                     # -> [in, d_s] in "x @ W" orientation
        return w[g * d_s:(g + 1) * d_s, :].T

    def pad_cols(w):                    # [in, d_s] -> [in, d_s_p]
        return jnp.pad(w, ((0, 0), (0, d_s_p - d_s)))

    w_ih_p = jnp.concatenate([pad_cols(gate(weight_ih, g)) for g in range(3)],
                             axis=1).astype(w_dtype)                       # [d_m, 3*d_s_p]
    w_hh_p = jnp.concatenate([pad_cols(gate(weight_hh, g)) for g in range(3)],
                             axis=1).astype(w_dtype)                       # [d_s, 3*d_s_p]

    def pad_b(b):                       # [d_s] -> [1, d_s_p]
        return jnp.pad(b, (0, d_s_p - d_s)).reshape(1, d_s_p)

    b_ir, b_iz, b_in = (bias_ih[g * d_s:(g + 1) * d_s] for g in range(3))
    b_hr, b_hz, b_hn = (bias_hh[g * d_s:(g + 1) * d_s] for g in range(3))
    b_i_p = jnp.concatenate([pad_b(b_ir + b_hr), pad_b(b_iz + b_hz), pad_b(b_in)],
                            axis=1).astype(jnp.float32)                    # [1, 3*d_s_p]
    b_hn_p = b_hn.reshape(1, d_s).astype(jnp.float32)                      # [1, d_s]
    return w_ih_p, w_hh_p, b_i_p, b_hn_p


def memory_updater_ref(X, S, mask, weight_ih, weight_hh, bias_ih, bias_hh):
    """Pure-JAX f32 reference implementing the PyTorch GRUCell math exactly."""
    d_s = S.shape[1]
    w_ir, w_iz, w_in = (weight_ih[g * d_s:(g + 1) * d_s].T for g in range(3))
    w_hr, w_hz, w_hn = (weight_hh[g * d_s:(g + 1) * d_s].T for g in range(3))
    b_ir, b_iz, b_in = (bias_ih[g * d_s:(g + 1) * d_s] for g in range(3))
    b_hr, b_hz, b_hn = (bias_hh[g * d_s:(g + 1) * d_s] for g in range(3))
    r = jax.nn.sigmoid(X @ w_ir + b_ir + S @ w_hr + b_hr)
    z = jax.nn.sigmoid(X @ w_iz + b_iz + S @ w_hz + b_hz)
    n = jnp.tanh(X @ w_in + b_in + r * (S @ w_hn + b_hn))
    h_new = (1.0 - z) * n + z * S
    return jnp.where(mask > 0.0, h_new, jnp.ones_like(h_new))


if __name__ == "__main__":
    N, d_m, d_s = 1024, 16, 32   # N memory rows, message dim, state dim

    key = jax.random.PRNGKey(0)
    k_w, k_s, k_msg = jax.random.split(key, 3)

    weight_ih, weight_hh, bias_ih, bias_hh = init_gru_params(k_w, d_m, d_s)
    S = jax.random.normal(k_s, (N, d_s), jnp.float32)

    # `am` as a dict {node_index: message}: deterministic sparse subset of nodes.
    am_idx = jnp.arange(0, N, 7, dtype=jnp.int32)
    am_vals = jax.random.normal(k_msg, (am_idx.shape[0], d_m), jnp.float32)

    # Densify the dict into X + mask (plain-JAX glue around the kernel).
    # X is built directly in bf16 (the MXU operand dtype) -> half the X DMA.
    X = jnp.zeros((N, d_m), jnp.bfloat16).at[am_idx].set(am_vals.astype(jnp.bfloat16))
    mask = jnp.zeros((N, 1), jnp.float32).at[am_idx].set(1.0)

    packed = pack_gru_params(weight_ih, weight_hh, bias_ih, bias_hh)

    out = memory_updater_pallas(X, S, mask, packed)
    out = jax.block_until_ready(out)

    ref = memory_updater_ref(X.astype(jnp.float32), S, mask,
                             weight_ih, weight_hh, bias_ih, bias_hh)

    # bf16 MXU operands vs f32 reference -> relaxed tolerance.
    assert out.shape == ref.shape
    assert jnp.allclose(out, ref, atol=5e-2, rtol=5e-2), "mismatch vs reference"

    print("KERNEL_OK")
</pallas_src>

<mosaic_0001>
module attributes {stable_mosaic.version = 11 : i64} {
  func.func @gru_update_kernel(%arg0: i32, %arg1: memref<1024x16xbf16, #tpu.memory_space<vmem>>, %arg2: memref<1024x32xf32, #tpu.memory_space<vmem>>, %arg3: memref<1024x1xf32, #tpu.memory_space<vmem>>, %arg4: memref<16x384xbf16, #tpu.memory_space<vmem>>, %arg5: memref<32x384xbf16, #tpu.memory_space<vmem>>, %arg6: memref<1x384xf32, #tpu.memory_space<vmem>>, %arg7: memref<1x32xf32, #tpu.memory_space<vmem>>, %arg8: memref<1024x32xf32, #tpu.memory_space<vmem>>) attributes {dimension_semantics = [#tpu.dimension_semantics<parallel>], iteration_bounds = array<i64: 1>, scalar_prefetch = 0 : i64, scratch_operands = 0 : i64, tpu.core_type = #tpu.core_type<tc>, window_params = [{transform_indices = @transform_0, window_bounds = array<i64: 1024, 16>}, {transform_indices = @transform_1, window_bounds = array<i64: 1024, 32>}, {transform_indices = @transform_2, window_bounds = array<i64: 1024, 1>}, {pipeline_mode = #tpu.pipeline_mode<synchronous>, transform_indices = @transform_3, window_bounds = array<i64: 16, 384>}, {pipeline_mode = #tpu.pipeline_mode<synchronous>, transform_indices = @transform_4, window_bounds = array<i64: 32, 384>}, {pipeline_mode = #tpu.pipeline_mode<synchronous>, transform_indices = @transform_5, window_bounds = array<i64: 1, 384>}, {pipeline_mode = #tpu.pipeline_mode<synchronous>, transform_indices = @transform_6, window_bounds = array<i64: 1, 32>}, {transform_indices = @transform_7, window_bounds = array<i64: 1024, 32>}]} {
    %c0 = arith.constant 0 : index
    %c0_0 = arith.constant 0 : index
    %0 = vector.load %arg2[%c0, %c0_0] : memref<1024x32xf32, #tpu.memory_space<vmem>>, vector<1024x32xf32>
    %c0_1 = arith.constant 0 : index
    %c0_2 = arith.constant 0 : index
    %1 = vector.load %arg1[%c0_1, %c0_2] : memref<1024x16xbf16, #tpu.memory_space<vmem>>, vector<1024x16xbf16>
    %c0_3 = arith.constant 0 : index
    %c0_4 = arith.constant 0 : index
    %2 = vector.load %arg2[%c0_3, %c0_4] : memref<1024x32xf32, #tpu.memory_space<vmem>>, vector<1024x32xf32>
    %3 = arith.truncf %2 : vector<1024x32xf32> to vector<1024x32xbf16>
    %c0_5 = arith.constant 0 : index
    %c0_6 = arith.constant 0 : index
    %4 = vector.load %arg4[%c0_5, %c0_6] : memref<16x384xbf16, #tpu.memory_space<vmem>>, vector<16x384xbf16>
    %cst = arith.constant dense<0.000000e+00> : vector<1024x384xf32>
    %5 = tpu.matmul %1, %4, %cst {dimension_numbers = #tpu.dot_dimension_numbers<[1], [0], [0], [1], [0, 0, 1, 1], [], []>} : vector<1024x16xbf16>, vector<16x384xbf16>, vector<1024x384xf32> -> vector<1024x384xf32>
    %c0_7 = arith.constant 0 : index
    %c0_8 = arith.constant 0 : index
    %6 = vector.load %arg6[%c0_7, %c0_8] : memref<1x384xf32, #tpu.memory_space<vmem>>, vector<1x384xf32>
    %7 = vector.broadcast %6 : vector<1x384xf32> to vector<1024x384xf32>
    %8 = arith.addf %5, %7 : vector<1024x384xf32>
    %c0_9 = arith.constant 0 : index
    %c0_10 = arith.constant 0 : index
    %9 = vector.load %arg5[%c0_9, %c0_10] : memref<32x384xbf16, #tpu.memory_space<vmem>>, vector<32x384xbf16>
    %cst_11 = arith.constant dense<0.000000e+00> : vector<1024x384xf32>
    %10 = tpu.matmul %3, %9, %cst_11 {dimension_numbers = #tpu.dot_dimension_numbers<[1], [0], [0], [1], [0, 0, 1, 1], [], []>} : vector<1024x32xbf16>, vector<32x384xbf16>, vector<1024x384xf32> -> vector<1024x384xf32>
    %11 = vector.extract_strided_slice %8 {offsets = [0, 0], sizes = [1024, 32], strides = [1, 1]} : vector<1024x384xf32> to vector<1024x32xf32>
    %12 = vector.extract_strided_slice %8 {offsets = [0, 128], sizes = [1024, 32], strides = [1, 1]} : vector<1024x384xf32> to vector<1024x32xf32>
    %13 = vector.extract_strided_slice %8 {offsets = [0, 256], sizes = [1024, 32], strides = [1, 1]} : vector<1024x384xf32> to vector<1024x32xf32>
    %14 = vector.extract_strided_slice %10 {offsets = [0, 0], sizes = [1024, 32], strides = [1, 1]} : vector<1024x384xf32> to vector<1024x32xf32>
    %15 = vector.extract_strided_slice %10 {offsets = [0, 128], sizes = [1024, 32], strides = [1, 1]} : vector<1024x384xf32> to vector<1024x32xf32>
    %16 = vector.extract_strided_slice %10 {offsets = [0, 256], sizes = [1024, 32], strides = [1, 1]} : vector<1024x384xf32> to vector<1024x32xf32>
    %c0_12 = arith.constant 0 : index
    %c0_13 = arith.constant 0 : index
    %17 = vector.load %arg7[%c0_12, %c0_13] : memref<1x32xf32, #tpu.memory_space<vmem>>, vector<1x32xf32>
    %18 = vector.broadcast %17 : vector<1x32xf32> to vector<1024x32xf32>
    %19 = arith.addf %16, %18 : vector<1024x32xf32>
    %20 = arith.addf %11, %14 : vector<1024x32xf32>
    %21 = arith.negf %20 : vector<1024x32xf32>
    %22 = math.exp %21 : vector<1024x32xf32>
    %cst_14 = arith.constant 1.000000e+00 : f32
    %23 = vector.broadcast %cst_14 : f32 to vector<1024x32xf32>
    %24 = arith.addf %23, %22 : vector<1024x32xf32>
    %25 = arith.divf %23, %24 : vector<1024x32xf32>
    %26 = arith.addf %12, %15 : vector<1024x32xf32>
    %27 = arith.negf %26 : vector<1024x32xf32>
    %28 = math.exp %27 : vector<1024x32xf32>
    %cst_15 = arith.constant 1.000000e+00 : f32
    %29 = vector.broadcast %cst_15 : f32 to vector<1024x32xf32>
    %30 = arith.addf %29, %28 : vector<1024x32xf32>
    %31 = arith.divf %29, %30 : vector<1024x32xf32>
    %32 = arith.mulf %25, %19 : vector<1024x32xf32>
    %33 = arith.addf %13, %32 : vector<1024x32xf32>
    %34 = math.tanh %33 : vector<1024x32xf32>
    %cst_16 = arith.constant 1.000000e+00 : f32
    %35 = vector.broadcast %cst_16 : f32 to vector<1024x32xf32>
    %36 = arith.subf %35, %31 : vector<1024x32xf32>
    %37 = arith.mulf %36, %34 : vector<1024x32xf32>
    %38 = arith.mulf %31, %0 : vector<1024x32xf32>
    %39 = arith.addf %37, %38 : vector<1024x32xf32>
    %c0_17 = arith.constant 0 : index
    %c0_18 = arith.constant 0 : index
    %40 = vector.load %arg3[%c0_17, %c0_18] : memref<1024x1xf32, #tpu.memory_space<vmem>>, vector<1024x1xf32>
    %cst_19 = arith.constant 0.000000e+00 : f32
    %41 = vector.broadcast %cst_19 : f32 to vector<1024x1xf32>
    %42 = arith.cmpf ogt, %40, %41 : vector<1024x1xf32>
    %cst_20 = arith.constant 1.000000e+00 : f32
    %43 = vector.broadcast %cst_20 : f32 to vector<1024x32xf32>
    %44 = vector.shape_cast %42 : vector<1024x1xi1> to vector<1024x1xi1>
    %45 = vector.broadcast %44 : vector<1024x1xi1> to vector<1024x32xi1>
    %46 = arith.select %45, %39, %43 : vector<1024x32xi1>, vector<1024x32xf32>
    %c0_21 = arith.constant 0 : index
    %c0_22 = arith.constant 0 : index
    %47 = vector.load %arg8[%c0_21, %c0_22] : memref<1024x32xf32, #tpu.memory_space<vmem>>, vector<1024x32xf32>
    tpu.vector_store %arg8[%c0_21, %c0_22], %46 {strides = array<i32>} : memref<1024x32xf32, #tpu.memory_space<vmem>>, vector<1024x32xf32>,
    return
  }
  func.func @transform_0(%arg0: i32) -> (i32, i32) {
    %c0_i32 = arith.constant 0 : i32
    %c0_i32_0 = arith.constant 0 : i32
    return %arg0, %c0_i32 : i32, i32
  }
  func.func @transform_1(%arg0: i32) -> (i32, i32) {
    %c0_i32 = arith.constant 0 : i32
    %c0_i32_0 = arith.constant 0 : i32
    return %arg0, %c0_i32 : i32, i32
  }
  func.func @transform_2(%arg0: i32) -> (i32, i32) {
    %c0_i32 = arith.constant 0 : i32
    %c0_i32_0 = arith.constant 0 : i32
    return %arg0, %c0_i32 : i32, i32
  }
  func.func @transform_3(%arg0: i32) -> (i32, i32) {
    %c0_i32 = arith.constant 0 : i32
    %c0_i32_0 = arith.constant 0 : i32
    %c0_i32_1 = arith.constant 0 : i32
    return %c0_i32, %c0_i32_0 : i32, i32
  }
  func.func @transform_4(%arg0: i32) -> (i32, i32) {
    %c0_i32 = arith.constant 0 : i32
    %c0_i32_0 = arith.constant 0 : i32
    %c0_i32_1 = arith.constant 0 : i32
    return %c0_i32, %c0_i32_0 : i32, i32
  }
  func.func @transform_5(%arg0: i32) -> (i32, i32) {
    %c0_i32 = arith.constant 0 : i32
    %c0_i32_0 = arith.constant 0 : i32
    %c0_i32_1 = arith.constant 0 : i32
    return %c0_i32, %c0_i32_0 : i32, i32
  }
  func.func @transform_6(%arg0: i32) -> (i32, i32) {
    %c0_i32 = arith.constant 0 : i32
    %c0_i32_0 = arith.constant 0 : i32
    %c0_i32_1 = arith.constant 0 : i32
    return %c0_i32, %c0_i32_0 : i32, i32
  }
  func.func @transform_7(%arg0: i32) -> (i32, i32) {
    %c0_i32 = arith.constant 0 : i32
    %c0_i32_0 = arith.constant 0 : i32
    return %arg0, %c0_i32 : i32, i32
  }
}

</mosaic_0001>

<bundles_post_ra>
// kernel: tpu_custom_call.1
= control target key start
LH: loop header
LB: loop body
LE: loop exit
PB: predicated region body
PF: predicated region fallthrough
CT: control target
= control target key end

     0   :  { %v18317_v1 = vmov 0   ;;  %vm704_vm0 = vcmask 130048   ;;  %vm2155_vm1 = vcmask 261120   ;;  %s18287_s3 = inlined_call_operand.vmem [shape: bf16[16,384], index: 3, kind: input, shape index: {}]   ;;  %s18288_s0 = inlined_call_operand.vmem [shape: bf16[1024,16], index: 0, kind: input, shape index: {}]   ;;  %s18289_s4 = inlined_call_operand.vmem [shape: bf16[32,384], index: 4, kind: input, shape index: {}]   ;;  %s18290_s1 = inlined_call_operand.vmem [shape: f32[1024,32], index: 1, kind: input, shape index: {}]   ;;  %s18291_s2 = inlined_call_operand.vmem [shape: f32[1024,1], index: 2, kind: input, shape index: {}]   ;;  %s18292_s5 = inlined_call_operand.vmem [shape: f32[1,384], index: 5, kind: input, shape index: {}]   ;;  %s18293_s6 = inlined_call_operand.vmem [shape: f32[1,32], index: 6, kind: input, shape index: {}]   ;;  %s18294_s7 = inlined_call_operand.vmem [shape: f32[1024,32], index: 7, kind: output, shape index: {}]  }
   0x1   :  { %v9041_v0 = vld [vmem:[%s18287_s3 + $0x4] ss:$12 sps:$4 sm:$0xff]   ;;  %929 = vmatprep.mubr.bf16.mxu0 %v18317_v1  ;;  %1249 = vmatprep.mubr.bf16.mxu1 %v18317_v1  ;;  %v9043_v2 = vld [vmem:[%s18287_s3] ss:$12 sps:$4 sm:$0xff]   ;;  %v9055_v9 = vld [vmem:[%s18287_s3 + $0x8] ss:$12 sps:$4 sm:$0xff]  }
   0x2   :  { %9040 = vset.pattern.permute.xlu1 %v18317_v1  ;;  %9039 = vset.pattern.permute.xlu0 %v18317_v1  ;;  %v10616_v3 = vld [vmem:[%s18288_s0] sm:$0xff]   ;;  %v10635_v7 = vld [vmem:[%s18288_s0 + $0x8] sm:$0xff]   ;;  %v10651_v10 = vld [vmem:[%s18288_s0 + $0x10] sm:$0xff]  }
   0x3   :  { %897 = vmatprep.subr.bf16.mxu0 %v9041_v0  ;;  %8524 = vmatprep.subr.bf16.mxu1 %v9041_v0  ;;  %v9045_v4 = vld [vmem:[%s18288_s0 + $0x100] sm:$0xff]   ;;  %v9050_v8 = vld [vmem:[%s18288_s0 + $0x108] sm:$0xff]   ;;  %v9052_v11 = vld [vmem:[%s18288_s0 + $0x110] sm:$0xff]  }
   0x4   :  { %898 = vmatpush1.bf16.msra.mxu0 %v9043_v2  ;;  %8525 = vmatpush1.bf16.msra.mxu1 %v9043_v2  ;;  %v9046_v5 = vld [vmem:[%s18289_s4] ss:$12 sps:$4 sm:$0xff]   ;;  %v9048_v6 = vld [vmem:[%s18289_s4 + $0x4] ss:$12 sps:$4 sm:$0xff]   ;;  %v10664_v12 = vld [vmem:[%s18288_s0 + $0x18] sm:$0xff]  }
   0x5   :  { %2348 = vmatprep.subr.bf16.mxu0 %v9048_v6  ;;  %8262 = vmatprep.subr.bf16.mxu1 %v9055_v9  ;;  %v9054_v13 = vld [vmem:[%s18288_s0 + $0x118] sm:$0xff]   ;;  %v10677_v14 = vld [vmem:[%s18288_s0 + $0x20] sm:$0xff]   ;;  %v10696_v18 = vld [vmem:[%s18288_s0 + $0x28] sm:$0xff]  }
   0x6   :  { %v9057_v15 = vld [vmem:[%s18288_s0 + $0x120] sm:$0xff]   ;;  %v9084_v17 = vld [vmem:[%s18289_s4 + $0x1c] ss:$12 sps:$4 sm:$0xff]   ;;  %v10709_v20 = vld [vmem:[%s18288_s0 + $0x30] sm:$0xff]  }
   0x7   :  { %7612 = vmatmul.mubr.msk.bf16.vlgmr.msra.gmra.mrb[0].mxu0 %vm704_vm0, %v10616_v3  ;;  %7644 = vmatmul.mubr.msk.bf16.vlgmr.msra.gmra.mrb[0].mxu1 %vm704_vm0, %v9045_v4  ;;  %v9082_v16 = vld [vmem:[%s18289_s4 + $0x18] ss:$12 sps:$4 sm:$0xff]   ;;  %v9059_v19 = vld [vmem:[%s18288_s0 + $0x128] sm:$0xff]   ;;  %v9061_v21 = vld [vmem:[%s18288_s0 + $0x130] sm:$0xff]  }
   0x8   :  { %939 = vmatprep.mubr.bf16.mxu0 %v18317_v1  ;;  %2349 = vmatpush1.bf16.msra.mxu0 %v9046_v5  ;;  %v10722_v22 = vld [vmem:[%s18288_s0 + $0x38] sm:$0xff]   ;;  %v10735_v24 = vld [vmem:[%s18288_s0 + $0x40] sm:$0xff]   ;;  %v10748_v26 = vld [vmem:[%s18288_s0 + $0x48] sm:$0xff]  }
   0x9   :  { %1259 = vmatprep.mubr.bf16.mxu1 %v18317_v1  ;;  %8263 = vmatpush3.bf16.msra.mxu1 %v9055_v9  ;;  %v9063_v23 = vld [vmem:[%s18288_s0 + $0x138] sm:$0xff]   ;;  %v9065_v25 = vld [vmem:[%s18288_s0 + $0x140] sm:$0xff]   ;;  %v9067_v27 = vld [vmem:[%s18288_s0 + $0x148] sm:$0xff]  }
   0xa   :  { %2350 = vmatprep.subr.bf16.mxu0 %v9084_v17  ;;  %v10761_v28 = vld [vmem:[%s18288_s0 + $0x50] sm:$0xff]   ;;  %v10774_v30 = vld [vmem:[%s18288_s0 + $0x58] sm:$0xff]   ;;  %v10787_v32 = vld [vmem:[%s18288_s0 + $0x60] sm:$0xff]  }
   0xb   :  { %v9069_v29 = vld [vmem:[%s18288_s0 + $0x150] sm:$0xff]   ;;  %v9071_v31 = vld [vmem:[%s18288_s0 + $0x158] sm:$0xff]   ;;  %v9073_v33 = vld [vmem:[%s18288_s0 + $0x160] sm:$0xff]  }
   0xc   :  { %2351 = vmatpush1.bf16.msra.mxu0 %v9082_v16  ;;  %v10800_v34 = vld [vmem:[%s18288_s0 + $0x68] sm:$0xff]   ;;  %v10813_v36 = vld [vmem:[%s18288_s0 + $0x70] sm:$0xff]   ;;  %v10826_v38 = vld [vmem:[%s18288_s0 + $0x78] sm:$0xff]  }
   0xd   :  { %v9075_v35 = vld [vmem:[%s18288_s0 + $0x168] sm:$0xff]   ;;  %v9077_v37 = vld [vmem:[%s18288_s0 + $0x170] sm:$0xff]   ;;  %v9079_v39 = vld [vmem:[%s18288_s0 + $0x178] sm:$0xff]  }
   0xe   :  { %v10839_v40 = vld [vmem:[%s18288_s0 + $0x80] sm:$0xff]   ;;  %v10852_v42 = vld [vmem:[%s18288_s0 + $0x88] sm:$0xff]   ;;  %v10865_v44 = vld [vmem:[%s18288_s0 + $0x90] sm:$0xff]  }
   0xf   :  { %7613 = vmatmul.mubr.msk.bf16.gmra.mrb[4].mxu0 %vm704_vm0, %v10635_v7  ;;  %7645 = vmatmul.mubr.msk.bf16.gmra.mrb[4].mxu1 %vm704_vm0, %v9050_v8  ;;  %v9081_v41 = vld [vmem:[%s18288_s0 + $0x180] sm:$0xff]   ;;  %v9086_v43 = vld [vmem:[%s18288_s0 + $0x188] sm:$0xff]   ;;  %v9088_v45 = vld [vmem:[%s18288_s0 + $0x190] sm:$0xff]  }
  0x10   :  { %949 = vmatprep.mubr.bf16.mxu0 %v18317_v1  ;;  %1269 = vmatprep.mubr.bf16.mxu1 %v18317_v1  ;;  %v10878_v46 = vld [vmem:[%s18288_s0 + $0x98] sm:$0xff]   ;;  %v10889_v48 = vld [vmem:[%s18289_s4 + $0x8] ss:$12 sps:$4 sm:$0xff]   ;;  %v10897_v49 = vld [vmem:[%s18288_s0 + $0xa0] sm:$0xff]  }
  0x11   :  { %v9090_v47 = vld [vmem:[%s18288_s0 + $0x198] sm:$0xff]   ;;  %8392 = vmatprep.subr.bf16.mxu1 %v10889_v48  ;;  %v9092_v50 = vld [vmem:[%s18288_s0 + $0x1a0] sm:$0xff]   ;;  %v10910_v51 = vld [vmem:[%s18288_s0 + $0xa8] sm:$0xff]  }
  0x12   :  { %v9094_v52 = vld [vmem:[%s18288_s0 + $0x1a8] sm:$0xff]   ;;  %v10923_v53 = vld [vmem:[%s18288_s0 + $0xb0] sm:$0xff]   ;;  %v10936_v55 = vld [vmem:[%s18288_s0 + $0xb8] sm:$0xff]  }
  0x13   :  { %v9096_v54 = vld [vmem:[%s18288_s0 + $0x1b0] sm:$0xff]   ;;  %v9098_v56 = vld [vmem:[%s18288_s0 + $0x1b8] sm:$0xff]   ;;  %v10949_v57 = vld [vmem:[%s18288_s0 + $0xc0] sm:$0xff]  }
  0x14   :  { %v9100_v58 = vld [vmem:[%s18288_s0 + $0x1c0] sm:$0xff]   ;;  %v10962_v59 = vld [vmem:[%s18288_s0 + $0xc8] sm:$0xff]   ;;  %v10975_v61 = vld [vmem:[%s18288_s0 + $0xd0] sm:$0xff]  }
  0x15   :  { %v9102_v60 = vld [vmem:[%s18288_s0 + $0x1c8] sm:$0xff]   ;;  %v9104_v62 = vld [vmem:[%s18288_s0 + $0x1d0] sm:$0xff]   ;;  %v10990_v0 = vld [vmem:[%s18288_s0 + $0xd8] sm:$0xff]  }
  0x16   :  { %v9106_v2 = vld [vmem:[%s18288_s0 + $0x1d8] sm:$0xff]   ;;  %v11011_v9 = vld [vmem:[%s18288_s0 + $0xe0] sm:$0xff]  }
  0x17   :  { %7614 = vmatmul.mubr.msk.bf16.gmra.mrb[8].mxu0 %vm704_vm0, %v10651_v10  ;;  %7646 = vmatmul.mubr.msk.bf16.gmra.mrb[8].mxu1 %vm704_vm0, %v9052_v11  ;;  %v9108_v11 = vld [vmem:[%s18288_s0 + $0x1e0] sm:$0xff]  }
  0x18   :  { %959 = vmatprep.mubr.bf16.mxu0 %v18317_v1  ;;  %1279 = vmatprep.mubr.bf16.mxu1 %v18317_v1 }
  0x1f   :  { %7615 = vmatmul.mubr.msk.bf16.gmra.mrb[12].mxu0 %vm704_vm0, %v10664_v12  ;;  %7647 = vmatmul.mubr.msk.bf16.gmra.mrb[12].mxu1 %vm704_vm0, %v9054_v13 }
  0x20   :  { %969 = vmatprep.mubr.bf16.mxu0 %v18317_v1  ;;  %1289 = vmatprep.mubr.bf16.mxu1 %v18317_v1 }
  0x27   :  { %7616 = vmatmul.mubr.msk.bf16.gmra.mrb[16].mxu0 %vm704_vm0, %v10677_v14  ;;  %7648 = vmatmul.mubr.msk.bf16.gmra.mrb[16].mxu1 %vm704_vm0, %v9057_v15 }
  0x28   :  { %979 = vmatprep.mubr.bf16.mxu0 %v18317_v1  ;;  %1299 = vmatprep.mubr.bf16.mxu1 %v18317_v1 }
  0x2f   :  { %7617 = vmatmul.mubr.msk.bf16.gmra.mrb[20].mxu0 %vm704_vm0, %v10696_v18  ;;  %7649 = vmatmul.mubr.msk.bf16.gmra.mrb[20].mxu1 %vm704_vm0, %v9059_v19  ;;  %v11032_v19 = vld [vmem:[%s18288_s0 + $0xe8] sm:$0xff]  }
  0x30   :  { %989 = vmatprep.mubr.bf16.mxu0 %v18317_v1  ;;  %1309 = vmatprep.mubr.bf16.mxu1 %v18317_v1 }
  0x37   :  { %7618 = vmatmul.mubr.msk.bf16.gmra.mrb[24].mxu0 %vm704_vm0, %v10709_v20  ;;  %7650 = vmatmul.mubr.msk.bf16.gmra.mrb[24].mxu1 %vm704_vm0, %v9061_v21  ;;  %v9110_v21 = vld [vmem:[%s18288_s0 + $0x1e8] sm:$0xff]  }
  0x38   :  { %999 = vmatprep.mubr.bf16.mxu0 %v18317_v1  ;;  %1319 = vmatprep.mubr.bf16.mxu1 %v18317_v1 }
  0x3f   :  { %7619 = vmatmul.mubr.msk.bf16.gmra.mrb[28].mxu0 %vm704_vm0, %v10722_v22  ;;  %7651 = vmatmul.mubr.msk.bf16.gmra.mrb[28].mxu1 %vm704_vm0, %v9063_v23 }
  0x40   :  { %1009 = vmatprep.mubr.bf16.mxu0 %v18317_v1  ;;  %1329 = vmatprep.mubr.bf16.mxu1 %v18317_v1 }
  0x47   :  { %7620 = vmatmul.mubr.msk.bf16.gmra.mrb[32].mxu0 %vm704_vm0, %v10735_v24  ;;  %7652 = vmatmul.mubr.msk.bf16.gmra.mrb[32].mxu1 %vm704_vm0, %v9065_v25 }
  0x48   :  { %1019 = vmatprep.mubr.bf16.mxu0 %v18317_v1  ;;  %1339 = vmatprep.mubr.bf16.mxu1 %v18317_v1 }
  0x4f   :  { %7621 = vmatmul.mubr.msk.bf16.gmra.mrb[36].mxu0 %vm704_vm0, %v10748_v26  ;;  %7653 = vmatmul.mubr.msk.bf16.gmra.mrb[36].mxu1 %vm704_vm0, %v9067_v27 }
  0x50   :  { %1029 = vmatprep.mubr.bf16.mxu0 %v18317_v1  ;;  %1349 = vmatprep.mubr.bf16.mxu1 %v18317_v1 }
  0x57   :  { %7622 = vmatmul.mubr.msk.bf16.gmra.mrb[40].mxu0 %vm704_vm0, %v10761_v28  ;;  %7654 = vmatmul.mubr.msk.bf16.gmra.mrb[40].mxu1 %vm704_vm0, %v9069_v29 }
  0x58   :  { %1039 = vmatprep.mubr.bf16.mxu0 %v18317_v1  ;;  %1359 = vmatprep.mubr.bf16.mxu1 %v18317_v1 }
  0x5f   :  { %7623 = vmatmul.mubr.msk.bf16.gmra.mrb[44].mxu0 %vm704_vm0, %v10774_v30  ;;  %7655 = vmatmul.mubr.msk.bf16.gmra.mrb[44].mxu1 %vm704_vm0, %v9071_v31  ;;  %v11053_v31 = vld [vmem:[%s18288_s0 + $0xf0] sm:$0xff]  }
  0x60   :  { %1049 = vmatprep.mubr.bf16.mxu0 %v18317_v1  ;;  %1369 = vmatprep.mubr.bf16.mxu1 %v18317_v1 }
  0x67   :  { %7624 = vmatmul.mubr.msk.bf16.gmra.mrb[48].mxu0 %vm704_vm0, %v10787_v32  ;;  %7656 = vmatmul.mubr.msk.bf16.gmra.mrb[48].mxu1 %vm704_vm0, %v9073_v33  ;;  %v9112_v33 = vld [vmem:[%s18288_s0 + $0x1f0] sm:$0xff]  }
  0x68   :  { %1059 = vmatprep.mubr.bf16.mxu0 %v18317_v1  ;;  %1379 = vmatprep.mubr.bf16.mxu1 %v18317_v1 }
  0x6f   :  { %7625 = vmatmul.mubr.msk.bf16.gmra.mrb[52].mxu0 %vm704_vm0, %v10800_v34  ;;  %7657 = vmatmul.mubr.msk.bf16.gmra.mrb[52].mxu1 %vm704_vm0, %v9075_v35 }
  0x70   :  { %1069 = vmatprep.mubr.bf16.mxu0 %v18317_v1  ;;  %1389 = vmatprep.mubr.bf16.mxu1 %v18317_v1 }
  0x77   :  { %7626 = vmatmul.mubr.msk.bf16.gmra.mrb[56].mxu0 %vm704_vm0, %v10813_v36  ;;  %7658 = vmatmul.mubr.msk.bf16.gmra.mrb[56].mxu1 %vm704_vm0, %v9077_v37 }
  0x78   :  { %1079 = vmatprep.mubr.bf16.mxu0 %v18317_v1  ;;  %1399 = vmatprep.mubr.bf16.mxu1 %v18317_v1 }
  0x7f   :  { %7627 = vmatmul.mubr.msk.bf16.gmra.mrb[60].mxu0 %vm704_vm0, %v10826_v38  ;;  %7659 = vmatmul.mubr.msk.bf16.gmra.mrb[60].mxu1 %vm704_vm0, %v9079_v39 }
  0x80   :  { %1089 = vmatprep.mubr.bf16.mxu0 %v18317_v1  ;;  %1409 = vmatprep.mubr.bf16.mxu1 %v18317_v1 }
  0x87   :  { %7628 = vmatmul.mubr.msk.bf16.gmra.mrb[64].mxu0 %vm704_vm0, %v10839_v40  ;;  %7660 = vmatmul.mubr.msk.bf16.gmra.mrb[64].mxu1 %vm704_vm0, %v9081_v41 }
  0x88   :  { %1099 = vmatprep.mubr.bf16.mxu0 %v18317_v1  ;;  %1419 = vmatprep.mubr.bf16.mxu1 %v18317_v1 }
  0x8f   :  { %7629 = vmatmul.mubr.msk.bf16.gmra.mrb[68].mxu0 %vm704_vm0, %v10852_v42  ;;  %7661 = vmatmul.mubr.msk.bf16.gmra.mrb[68].mxu1 %vm704_vm0, %v9086_v43  ;;  %v11074_v43 = vld [vmem:[%s18288_s0 + $0xf8] sm:$0xff]  }
  0x90   :  { %1109 = vmatprep.mubr.bf16.mxu0 %v18317_v1  ;;  %1429 = vmatprep.mubr.bf16.mxu1 %v18317_v1 }
  0x97   :  { %7630 = vmatmul.mubr.msk.bf16.gmra.mrb[72].mxu0 %vm704_vm0, %v10865_v44  ;;  %7662 = vmatmul.mubr.msk.bf16.gmra.mrb[72].mxu1 %vm704_vm0, %v9088_v45  ;;  %v9114_v45 = vld [vmem:[%s18288_s0 + $0x1f8] sm:$0xff]  }
  0x98   :  { %1119 = vmatprep.mubr.bf16.mxu0 %v18317_v1  ;;  %1439 = vmatprep.mubr.bf16.mxu1 %v18317_v1 }
  0x9f   :  { %7631 = vmatmul.mubr.msk.bf16.gmra.mrb[76].mxu0 %vm704_vm0, %v10878_v46  ;;  %7663 = vmatmul.mubr.msk.bf16.gmra.mrb[76].mxu1 %vm704_vm0, %v9090_v47 }
  0xa0   :  { %1129 = vmatprep.mubr.bf16.mxu0 %v18317_v1  ;;  %1449 = vmatprep.mubr.bf16.mxu1 %v18317_v1 }
  0xa7   :  { %7632 = vmatmul.mubr.msk.bf16.gmra.mrb[80].mxu0 %vm704_vm0, %v10897_v49  ;;  %7664 = vmatmul.mubr.msk.bf16.gmra.mrb[80].mxu1 %vm704_vm0, %v9092_v50 }
  0xa8   :  { %1139 = vmatprep.mubr.bf16.mxu0 %v18317_v1  ;;  %1459 = vmatprep.mubr.bf16.mxu1 %v18317_v1 }
  0xaf   :  { %7633 = vmatmul.mubr.msk.bf16.gmra.mrb[84].mxu0 %vm704_vm0, %v10910_v51  ;;  %7665 = vmatmul.mubr.msk.bf16.gmra.mrb[84].mxu1 %vm704_vm0, %v9094_v52 }
  0xb0   :  { %1149 = vmatprep.mubr.bf16.mxu0 %v18317_v1  ;;  %1469 = vmatprep.mubr.bf16.mxu1 %v18317_v1 }
  0xb7   :  { %7634 = vmatmul.mubr.msk.bf16.gmra.mrb[88].mxu0 %vm704_vm0, %v10923_v53  ;;  %7666 = vmatmul.mubr.msk.bf16.gmra.mrb[88].mxu1 %vm704_vm0, %v9096_v54  ;;  %v27_v54 = vld [vmem:[%s18290_s1] sm:$0xff] }
  0xb8   :  { %1159 = vmatprep.mubr.bf16.mxu0 %v18317_v1  ;;  %1479 = vmatprep.mubr.bf16.mxu1 %v18317_v1 }
  0xbf   :  { %7635 = vmatmul.mubr.msk.bf16.gmra.mrb[92].mxu0 %vm704_vm0, %v10936_v55  ;;  %7667 = vmatmul.mubr.msk.bf16.gmra.mrb[92].mxu1 %vm704_vm0, %v9098_v56  ;;  %v28_v56 = vld [vmem:[%s18290_s1 + $0x8] sm:$0xff] }
  0xc0   :  { %1169 = vmatprep.mubr.bf16.mxu0 %v18317_v1  ;;  %1489 = vmatprep.mubr.bf16.mxu1 %v18317_v1 }
  0xc7   :  { %7636 = vmatmul.mubr.msk.bf16.gmra.mrb[96].mxu0 %vm704_vm0, %v10949_v57  ;;  %7668 = vmatmul.mubr.msk.bf16.gmra.mrb[96].mxu1 %vm704_vm0, %v9100_v58 }
  0xc8   :  { %1179 = vmatprep.mubr.bf16.mxu0 %v18317_v1  ;;  %1499 = vmatprep.mubr.bf16.mxu1 %v18317_v1 }
  0xcf   :  { %7637 = vmatmul.mubr.msk.bf16.gmra.mrb[100].mxu0 %vm704_vm0, %v10962_v59  ;;  %7669 = vmatmul.mubr.msk.bf16.gmra.mrb[100].mxu1 %vm704_vm0, %v9102_v60  ;;  %v11099_v60 = vpack.c.bf16 %v28_v56, %v27_v54 }
  0xd0   :  { %1189 = vmatprep.mubr.bf16.mxu0 %v18317_v1  ;;  %1509 = vmatprep.mubr.bf16.mxu1 %v18317_v1 }
  0xd1   :  { %18473 = vst [vmem:[#allocation2_spill] sm:$0xff] %v11099_v60 }
  0xd7   :  { %7638 = vmatmul.mubr.msk.bf16.gmra.mrb[104].mxu0 %vm704_vm0, %v10975_v61  ;;  %7670 = vmatmul.mubr.msk.bf16.gmra.mrb[104].mxu1 %vm704_vm0, %v9104_v62 }
  0xd8   :  { %1199 = vmatprep.mubr.bf16.mxu0 %v18317_v1  ;;  %1519 = vmatprep.mubr.bf16.mxu1 %v18317_v1 }
  0xda   :  { %v10985_v63 = vpop.f32.mrb[0].mxu1 }
  0xdb   :  { %v10995_v4 = vpop.f32.mrb[1].mxu1 }
  0xdc   :  { %v10997_v5 = vpop.f32.mrb[2].mxu1 }
  0xdd   :  { %v10999_v6 = vpop.f32.mrb[3].mxu1 }
  0xdf   :  { %7639 = vmatmul.mubr.msk.bf16.gmra.mrb[108].mxu0 %vm704_vm0, %v10990_v0  ;;  %7671 = vmatmul.mubr.msk.bf16.gmra.mrb[108].mxu1 %vm704_vm0, %v9106_v2 }
  0xe0   :  { %1209 = vmatprep.mubr.bf16.mxu0 %v18317_v1  ;;  %1529 = vmatprep.mubr.bf16.mxu1 %v18317_v1 }
  0xe2   :  { %v11006_v8 = vpop.f32.mrb[4].mxu1 }
  0xe3   :  { %v11016_v13 = vpop.f32.mrb[5].mxu1 }
  0xe4   :  { %v11018_v15 = vpop.f32.mrb[6].mxu1 }
  0xe5   :  { %v11020_v16 = vpop.f32.mrb[7].mxu1 }
  0xe7   :  { %7640 = vmatmul.mubr.msk.bf16.gmra.mrb[112].mxu0 %vm704_vm0, %v11011_v9  ;;  %7672 = vmatmul.mubr.msk.bf16.gmra.mrb[112].mxu1 %vm704_vm0, %v9108_v11  ;;  %v29_v11 = vld [vmem:[%s18290_s1 + $0x10] sm:$0xff] }
  0xe8   :  { %1219 = vmatprep.mubr.bf16.mxu0 %v18317_v1  ;;  %1539 = vmatprep.mubr.bf16.mxu1 %v18317_v1 }
  0xea   :  { %v11027_v17 = vpop.f32.mrb[8].mxu1 }
  0xeb   :  { %v11037_v23 = vpop.f32.mrb[9].mxu1 }
  0xec   :  { %v11039_v25 = vpop.f32.mrb[10].mxu1 }
  0xed   :  { %v11041_v27 = vpop.f32.mrb[11].mxu1 }
  0xef   :  { %7641 = vmatmul.mubr.msk.bf16.gmra.mrb[116].mxu0 %vm704_vm0, %v11032_v19  ;;  %7673 = vmatmul.mubr.msk.bf16.gmra.mrb[116].mxu1 %vm704_vm0, %v9110_v21  ;;  %v30_v21 = vld [vmem:[%s18290_s1 + $0x18] sm:$0xff] }
  0xf0   :  { %1229 = vmatprep.mubr.bf16.mxu0 %v18317_v1  ;;  %1549 = vmatprep.mubr.bf16.mxu1 %v18317_v1  ;;  %v11131_v56 = vpack.c.bf16 %v30_v21, %v29_v11 }
  0xf2   :  { %v11048_v29 = vpop.f32.mrb[12].mxu1  ;;  %18476 = vst [vmem:[#allocation5_spill] sm:$0xff] %v11131_v56 }
  0xf3   :  { %v11058_v35 = vpop.f32.mrb[13].mxu1 }
  0xf4   :  { %v11060_v37 = vpop.f32.mrb[14].mxu1 }
  0xf5   :  { %v11062_v39 = vpop.f32.mrb[15].mxu1 }
  0xf7   :  { %7642 = vmatmul.mubr.msk.bf16.gmra.mrb[120].mxu0 %vm704_vm0, %v11053_v31  ;;  %7674 = vmatmul.mubr.msk.bf16.gmra.mrb[120].mxu1 %vm704_vm0, %v9112_v33  ;;  %v6389_v33 = vld [vmem:[%s18291_s2] sm:$0xff] }
  0xf8   :  { %1239 = vmatprep.mubr.bf16.mxu0 %v18317_v1  ;;  %1559 = vmatprep.mubr.bf16.mxu1 %v18317_v1  ;;  %vm6517_vm3 = vcmp.gt.f32.partialorder %v6389_v33, 0.0  ;;  %v6390_v33 = vld [vmem:[%s18291_s2 + $0x8] sm:$0xff] }
  0xf9   :  { %v6645_v54 = vsel %vm6517_vm3, 1, %v18317_v1  ;;  %vm6518_vm5 = vcmp.gt.f32.partialorder %v6390_v33, 0.0 }
  0xfa   :  { %v11069_v41 = vpop.f32.mrb[16].mxu1  ;;  %6774 = vperm.xlu0 %9039, %v6645_v54   ;;  %v6646_v21 = vsel %vm6518_vm5, 1, %v18317_v1  ;;  %v6393_v54 = vld [vmem:[%s18291_s2 + $0x20] sm:$0xff] }
  0xfb   :  { %v11079_v47 = vpop.f32.mrb[17].mxu1  ;;  %vm6521_vm7 = vcmp.gt.f32.partialorder %v6393_v54, 0.0 }
  0xfc   :  { %v11081_v50 = vpop.f32.mrb[18].mxu1 }
  0xfd   :  { %v11083_v52 = vpop.f32.mrb[19].mxu1 }
  0xfe   :  { %6777 = vperm.xlu0 %9039, %v6646_v21  }
  0xff   :  { %7643 = vmatmul.mubr.msk.bf16.gmra.mrb[124].mxu0 %vm704_vm0, %v11074_v43  ;;  %7675 = vmatmul.mubr.msk.bf16.gmra.mrb[124].mxu1 %vm704_vm0, %v9114_v45 }
 0x100   :  { %8264 = vmatprep.mubr.msk.bf16.mxu1 %vm704_vm0, %v10616_v3  ;;  %2380 = vmatprep.mubr.bf16.mxu0 %v18317_v1 }
 0x102   :  { %v11097_v58 = vpop.f32.mrb[20].mxu1 }
 0x103   :  { %v11101_v62 = vpop.f32.mrb[21].mxu1 }
 0x104   :  { %v11103_v2 = vpop.f32.mrb[22].mxu1 }
 0x105   :  { %v11105_v3 = vpop.f32.mrb[23].mxu1 }
 0x106   :  { %18474 = vst [vmem:[#allocation3_spill] sm:$0xff] %v11105_v3 }
 0x107   :  { %8265 = vmatmul.mubr.msk.bf16.vlgmr.msra.gmra.mrb[128].mxu1 %vm704_vm0, %v10635_v7  ;;  %7746 = vmatmul.mubr.msk.bf16.vlgmr.msra.gmra.mrb[0].mxu0 %vm2155_vm1, %v11099_v60  ;;  %v6391_v7 = vld [vmem:[%s18291_s2 + $0x10] sm:$0xff] }
 0x108   :  { %8268 = vmatprep.mubr.msk.bf16.mxu1 %vm704_vm0, %v10651_v10  ;;  %2390 = vmatprep.mubr.bf16.mxu0 %v18317_v1  ;;  %vm6519_vm2 = vcmp.gt.f32.partialorder %v6391_v7, 0.0 }
 0x109   :  { %8393 = vmatpush3.bf16.msra.mxu1 %v10889_v48  ;;  %v6647_v10 = vsel %vm6519_vm2, 1, %v18317_v1  ;;  %v6392_v48 = vld [vmem:[%s18291_s2 + $0x18] sm:$0xff] }
 0x10a   :  { %v11127_v45 = vpop.f32.mrb[24].mxu1  ;;  %6780 = vperm.xlu1 %9040, %v6647_v10   ;;  %vm6520_vm4 = vcmp.gt.f32.partialorder %v6392_v48, 0.0  ;;  %v6394_v10 = vld [vmem:[%s18291_s2 + $0x28] sm:$0xff] }
 0x10b   :  { %18475 = vst [vmem:[#allocation4_spill] sm:$0xff] %v11127_v45  ;;  %v11133_v60 = vpop.f32.mrb[25].mxu1  ;;  %v6648_v11 = vsel %vm6520_vm4, 1, %v18317_v1  ;;  %v32_v48 = vld [vmem:[%s18290_s1 + $0x28] sm:$0xff]  ;;  %vm6522_vm6 = vcmp.gt.f32.partialorder %v6394_v10, 0.0  ;;  %v6396_v45 = vld [vmem:[%s18291_s2 + $0x38] sm:$0xff] }
 0x10c   :  { %18477 = vst [vmem:[#allocation6_spill] sm:$0xff] %v11133_v60  ;;  %v11135_v3 = vpop.f32.mrb[26].mxu1  ;;  %vm6524_vm8 = vcmp.gt.f32.partialorder %v6396_v45, 0.0  ;;  %v6397_v45 = vld [vmem:[%s18291_s2 + $0x40] sm:$0xff] }
 0x10d   :  { %18478 = vst [vmem:[#allocation7_spill] sm:$0xff] %v11135_v3  ;;  %v11140_v7 = vpop.f32.mrb[27].mxu1  ;;  %v6652_v21 = vsel %vm6524_vm8, 1, %v18317_v1  ;;  %vm6525_vm11 = vcmp.gt.f32.partialorder %v6397_v45, 0.0 }
 0x10e   :  { %18479 = vst [vmem:[#allocation8_spill] sm:$0xff] %v11140_v7  ;;  %6783 = vperm.xlu1 %9040, %v6648_v11   ;;  %v6395_v11 = vld [vmem:[%s18291_s2 + $0x30] sm:$0xff] }
 0x10f   :  { %8269 = vmatmul.mubr.msk.bf16.gmra.mrb[132].mxu1 %vm704_vm0, %v10664_v12  ;;  %7747 = vmatmul.mubr.msk.bf16.gmra.mrb[4].mxu0 %vm2155_vm1, %v11131_v56  ;;  %v31_v12 = vld [vmem:[%s18290_s1 + $0x20] sm:$0xff]  ;;  %v6650_v56 = vsel %vm6522_vm6, 1, %v18317_v1  ;;  %vm6523_vm9 = vcmp.gt.f32.partialorder %v6395_v11, 0.0 }
 0x110   :  { %8272 = vmatprep.mubr.msk.bf16.mxu1 %vm704_vm0, %v10677_v14  ;;  %2400 = vmatprep.mubr.bf16.mxu0 %v18317_v1  ;;  %v6649_v14 = vsel %vm6521_vm7, 1, %v18317_v1  ;;  %v11170_v7 = vpack.c.bf16 %v32_v48, %v31_v12  ;;  %v6651_v54 = vsel %vm6523_vm9, 1, %v18317_v1  ;;  %v34_v12 = vld [vmem:[%s18290_s1 + $0x38] sm:$0xff] }
 0x111   :  { %6786 = vperm.xlu0 %9039, %v6649_v14  }
 0x112   :  { %v11166_v33 = vpop.f32.mrb[28].mxu1  ;;  %18480 = vst [vmem:[#allocation9_spill] sm:$0xff] %v11170_v7  ;;  %6789 = vperm.xlu1 %9040, %v6650_v56   ;;  %v6398_v56 = vld [vmem:[%s18291_s2 + $0x48] sm:$0xff] }
 0x113   :  { %v11172_v3 = vpop.f32.mrb[29].mxu1  ;;  %vm6526_vm10 = vcmp.gt.f32.partialorder %v6398_v56, 0.0 }
 0x114   :  { %v11174_v60 = vpop.f32.mrb[30].mxu1  ;;  %v6654_v14 = vsel %vm6526_vm10, 1, %v18317_v1 }
 0x115   :  { %18481 = vst [vmem:[#allocation10_spill] sm:$0xff] %v11174_v60  ;;  %v11179_v10 = vpop.f32.mrb[31].mxu1  ;;  %6792 = vperm.xlu0 %9039, %v6651_v54   ;;  %v6400_v60 = vld [vmem:[%s18291_s2 + $0x58] sm:$0xff] }
 0x116   :  { %18482 = vst [vmem:[#allocation11_spill] sm:$0xff] %v11179_v10  ;;  %6795 = vperm.xlu1 %9040, %v6652_v21   ;;  %vm6528_vm12 = vcmp.gt.f32.partialorder %v6400_v60, 0.0  ;;  %v6399_v21 = vld [vmem:[%s18291_s2 + $0x50] sm:$0xff]  ;;  %v6402_v60 = vld [vmem:[%s18291_s2 + $0x68] sm:$0xff] }
 0x117   :  { %8273 = vmatmul.mubr.msk.bf16.gmra.mrb[136].mxu1 %vm704_vm0, %v10696_v18  ;;  %7748 = vmatmul.mubr.msk.bf16.gmra.mrb[8].mxu0 %vm2155_vm1, %v11170_v7  ;;  %v33_v18 = vld [vmem:[%s18290_s1 + $0x30] sm:$0xff]  ;;  %v6656_v54 = vsel %vm6528_vm12, 1, %v18317_v1  ;;  %vm6527_vm13 = vcmp.gt.f32.partialorder %v6399_v21, 0.0  ;;  %vm6530_vm14 = vcmp.gt.f32.partialorder %v6402_v60, 0.0  ;;  %v6404_v60 = vld [vmem:[%s18291_s2 + $0x78] sm:$0xff] }
 0x118   :  { %8276 = vmatprep.mubr.msk.bf16.mxu1 %vm704_vm0, %v10709_v20  ;;  %2410 = vmatprep.mubr.bf16.mxu0 %v18317_v1  ;;  %v6653_v20 = vsel %vm6525_vm11, 1, %v18317_v1  ;;  %v11209_v11 = vpack.c.bf16 %v34_v12, %v33_v18  ;;  %v6655_v45 = vsel %vm6527_vm13, 1, %v18317_v1  ;;  %v9116_v18 = vld [vmem:[%s18289_s4 + $0x20] ss:$12 sps:$4 sm:$0xff]   ;;  %v6658_v21 = vsel %vm6530_vm14, 1, %v18317_v1 }
 0x119   :  { %6798 = vperm.xlu0 %9039, %v6653_v20   ;;  %v6401_v12 = vld [vmem:[%s18291_s2 + $0x60] sm:$0xff]  ;;  %8394 = vmatprep.subr.bf16.mxu1 %v9116_v18  ;;  %vm6532_vm2 = vcmp.gt.f32.partialorder %v6404_v60, 0.0 }
 0x11a   :  { %v11205_v48 = vpop.f32.mrb[32].mxu1  ;;  %18483 = vst [vmem:[#allocation12_spill] sm:$0xff] %v11209_v11  ;;  %6801 = vperm.xlu1 %9040, %v6654_v14   ;;  %v36_v14 = vld [vmem:[%s18290_s1 + $0x48] sm:$0xff]  ;;  %vm6529_vm15 = vcmp.gt.f32.partialorder %v6401_v12, 0.0  ;;  %8395 = vmatpush3.bf16.msra.mxu1 %v9116_v18  ;;  %v6660_v12 = vsel %vm6532_vm2, 1, %v18317_v1 }
 0x11b   :  { %v11211_v7 = vpop.f32.mrb[33].mxu1 }
 0x11c   :  { %v11213_v10 = vpop.f32.mrb[34].mxu1 }
 0x11d   :  { %18484 = vst [vmem:[#allocation13_spill] sm:$0xff] %v11213_v10  ;;  %v11218_v56 = vpop.f32.mrb[35].mxu1  ;;  %6804 = vperm.xlu0 %9039, %v6655_v45   ;;  %v6403_v45 = vld [vmem:[%s18291_s2 + $0x70] sm:$0xff] }
 0x11e   :  { %18485 = vst [vmem:[#allocation14_spill] sm:$0xff] %v11218_v56  ;;  %6807 = vperm.xlu1 %9040, %v6656_v54   ;;  %vm6531_vm3 = vcmp.gt.f32.partialorder %v6403_v45, 0.0 }
 0x11f   :  { %8277 = vmatmul.mubr.msk.bf16.gmra.mrb[140].mxu1 %vm704_vm0, %v10722_v22  ;;  %7749 = vmatmul.mubr.msk.bf16.gmra.mrb[12].mxu0 %vm2155_vm1, %v11209_v11  ;;  %v35_v22 = vld [vmem:[%s18290_s1 + $0x40] sm:$0xff]  ;;  %v6659_v18 = vsel %vm6531_vm3, 1, %v18317_v1 }
 0x120   :  { %8280 = vmatprep.mubr.msk.bf16.mxu1 %vm704_vm0, %v10735_v24  ;;  %2420 = vmatprep.mubr.bf16.mxu0 %v18317_v1  ;;  %v6657_v24 = vsel %vm6529_vm15, 1, %v18317_v1  ;;  %v11251_v11 = vpack.c.bf16 %v36_v14, %v35_v22  ;;  %v6406_v22 = vld [vmem:[%s18291_s2 + $0x88] sm:$0xff]  ;;  %v6405_v14 = vld [vmem:[%s18291_s2 + $0x80] sm:$0xff] }
 0x121   :  { %6810 = vperm.xlu0 %9039, %v6657_v24   ;;  %vm6534_vm4 = vcmp.gt.f32.partialorder %v6406_v22, 0.0  ;;  %vm6533_vm5 = vcmp.gt.f32.partialorder %v6405_v14, 0.0 }
 0x122   :  { %v11247_v20 = vpop.f32.mrb[36].mxu1  ;;  %18486 = vst [vmem:[#allocation15_spill] sm:$0xff] %v11251_v11  ;;  %6813 = vperm.xlu1 %9040, %v6658_v21   ;;  %v38_v21 = vld [vmem:[%s18290_s1 + $0x58] sm:$0xff]  ;;  %v6662_v60 = vsel %vm6534_vm4, 1, %v18317_v1 }
 0x123   :  { %v11253_v56 = vpop.f32.mrb[37].mxu1 }
 0x124   :  { %v11255_v10 = vpop.f32.mrb[38].mxu1 }
 0x125   :  { %18487 = vst [vmem:[#allocation16_spill] sm:$0xff] %v11255_v10  ;;  %v11260_v54 = vpop.f32.mrb[39].mxu1  ;;  %6816 = vperm.xlu0 %9039, %v6659_v18   ;;  %v6408_v10 = vld [vmem:[%s18291_s2 + $0x98] sm:$0xff] }
 0x126   :  { %18488 = vst [vmem:[#allocation17_spill] sm:$0xff] %v11260_v54  ;;  %6819 = vperm.xlu1 %9040, %v6660_v12   ;;  %vm6536_vm6 = vcmp.gt.f32.partialorder %v6408_v10, 0.0  ;;  %v6407_v12 = vld [vmem:[%s18291_s2 + $0x90] sm:$0xff]  ;;  %v6409_v10 = vld [vmem:[%s18291_s2 + $0xa0] sm:$0xff] }
 0x127   :  { %8281 = vmatmul.mubr.msk.bf16.gmra.mrb[144].mxu1 %vm704_vm0, %v10748_v26  ;;  %7750 = vmatmul.mubr.msk.bf16.gmra.mrb[16].mxu0 %vm2155_vm1, %v11251_v11  ;;  %v37_v26 = vld [vmem:[%s18290_s1 + $0x50] sm:$0xff]  ;;  %v6664_v18 = vsel %vm6536_vm6, 1, %v18317_v1  ;;  %vm6535_vm7 = vcmp.gt.f32.partialorder %v6407_v12, 0.0  ;;  %vm6537_vm9 = vcmp.gt.f32.partialorder %v6409_v10, 0.0 }
 0x128   :  { %8284 = vmatprep.mubr.msk.bf16.mxu1 %vm704_vm0, %v10761_v28  ;;  %2430 = vmatprep.mubr.bf16.mxu0 %v18317_v1  ;;  %v6661_v28 = vsel %vm6533_vm5, 1, %v18317_v1  ;;  %v11290_v45 = vpack.c.bf16 %v38_v21, %v37_v26  ;;  %v6663_v14 = vsel %vm6535_vm7, 1, %v18317_v1  ;;  %v6410_v26 = vld [vmem:[%s18291_s2 + $0xa8] sm:$0xff] }
 0x129   :  { %6822 = vperm.xlu0 %9039, %v6661_v28   ;;  %v40_v21 = vld [vmem:[%s18290_s1 + $0x68] sm:$0xff]  ;;  %vm6538_vm8 = vcmp.gt.f32.partialorder %v6410_v26, 0.0 }
 0x12a   :  { %v11286_v24 = vpop.f32.mrb[40].mxu1  ;;  %18489 = vst [vmem:[#allocation18_spill] sm:$0xff] %v11290_v45  ;;  %6825 = vperm.xlu1 %9040, %v6662_v60   ;;  %v6666_v28 = vsel %vm6538_vm8, 1, %v18317_v1 }
 0x12b   :  { %v11292_v11 = vpop.f32.mrb[41].mxu1 }
 0x12c   :  { %v11294_v54 = vpop.f32.mrb[42].mxu1 }
 0x12d   :  { %18490 = vst [vmem:[#allocation19_spill] sm:$0xff] %v11294_v54  ;;  %v11299_v22 = vpop.f32.mrb[43].mxu1  ;;  %6828 = vperm.xlu0 %9039, %v6663_v14   ;;  %v6412_v54 = vld [vmem:[%s18291_s2 + $0xb8] sm:$0xff] }
 0x12e   :  { %18491 = vst [vmem:[#allocation20_spill] sm:$0xff] %v11299_v22  ;;  %6831 = vperm.xlu1 %9040, %v6664_v18   ;;  %vm6540_vm10 = vcmp.gt.f32.partialorder %v6412_v54, 0.0  ;;  %v6411_v18 = vld [vmem:[%s18291_s2 + $0xb0] sm:$0xff]  ;;  %v6413_v54 = vld [vmem:[%s18291_s2 + $0xc0] sm:$0xff] }
 0x12f   :  { %8285 = vmatmul.mubr.msk.bf16.gmra.mrb[148].mxu1 %vm704_vm0, %v10774_v30  ;;  %7751 = vmatmul.mubr.msk.bf16.gmra.mrb[20].mxu0 %vm2155_vm1, %v11290_v45  ;;  %v39_v30 = vld [vmem:[%s18290_s1 + $0x60] sm:$0xff]  ;;  %v6668_v14 = vsel %vm6540_vm10, 1, %v18317_v1  ;;  %vm6539_vm11 = vcmp.gt.f32.partialorder %v6411_v18, 0.0  ;;  %vm6541_vm13 = vcmp.gt.f32.partialorder %v6413_v54, 0.0 }
 0x130   :  { %8288 = vmatprep.mubr.msk.bf16.mxu1 %vm704_vm0, %v10787_v32  ;;  %2440 = vmatprep.mubr.bf16.mxu0 %v18317_v1  ;;  %v6665_v32 = vsel %vm6537_vm9, 1, %v18317_v1  ;;  %v11329_v12 = vpack.c.bf16 %v40_v21, %v39_v30  ;;  %v6667_v10 = vsel %vm6539_vm11, 1, %v18317_v1  ;;  %v6414_v30 = vld [vmem:[%s18291_s2 + $0xc8] sm:$0xff]  ;;  %v42_v21 = vld [vmem:[%s18290_s1 + $0x78] sm:$0xff] }
 0x131   :  { %6834 = vperm.xlu0 %9039, %v6665_v32   ;;  %vm6542_vm12 = vcmp.gt.f32.partialorder %v6414_v30, 0.0 }
 0x132   :  { %v11325_v60 = vpop.f32.mrb[44].mxu1  ;;  %18492 = vst [vmem:[#allocation21_spill] sm:$0xff] %v11329_v12  ;;  %6837 = vperm.xlu1 %9040, %v6666_v28   ;;  %v6670_v32 = vsel %vm6542_vm12, 1, %v18317_v1 }
 0x133   :  { %v11331_v45 = vpop.f32.mrb[45].mxu1 }
 0x134   :  { %v11333_v22 = vpop.f32.mrb[46].mxu1 }
 0x135   :  { %18493 = vst [vmem:[#allocation22_spill] sm:$0xff] %v11333_v22  ;;  %v11338_v26 = vpop.f32.mrb[47].mxu1  ;;  %6840 = vperm.xlu0 %9039, %v6667_v10   ;;  %v6416_v22 = vld [vmem:[%s18291_s2 + $0xd8] sm:$0xff] }
 0x136   :  { %18494 = vst [vmem:[#allocation23_spill] sm:$0xff] %v11338_v26  ;;  %6843 = vperm.xlu1 %9040, %v6668_v14   ;;  %vm6544_vm14 = vcmp.gt.f32.partialorder %v6416_v22, 0.0  ;;  %v6415_v14 = vld [vmem:[%s18291_s2 + $0xd0] sm:$0xff]  ;;  %v6417_v22 = vld [vmem:[%s18291_s2 + $0xe0] sm:$0xff] }
 0x137   :  { %8289 = vmatmul.mubr.msk.bf16.gmra.mrb[152].mxu1 %vm704_vm0, %v10800_v34  ;;  %7752 = vmatmul.mubr.msk.bf16.gmra.mrb[24].mxu0 %vm2155_vm1, %v11329_v12  ;;  %v41_v34 = vld [vmem:[%s18290_s1 + $0x70] sm:$0xff]  ;;  %v6672_v10 = vsel %vm6544_vm14, 1, %v18317_v1  ;;  %vm6543_vm15 = vcmp.gt.f32.partialorder %v6415_v14, 0.0  ;;  %vm6545_vm3 = vcmp.gt.f32.partialorder %v6417_v22, 0.0 }
 0x138   :  { %8292 = vmatprep.mubr.msk.bf16.mxu1 %vm704_vm0, %v10813_v36  ;;  %2450 = vmatprep.mubr.bf16.mxu0 %v18317_v1  ;;  %v6669_v36 = vsel %vm6541_vm13, 1, %v18317_v1  ;;  %v11368_v18 = vpack.c.bf16 %v42_v21, %v41_v34  ;;  %v6671_v54 = vsel %vm6543_vm15, 1, %v18317_v1  ;;  %v6418_v34 = vld [vmem:[%s18291_s2 + $0xe8] sm:$0xff] }
 0x139   :  { %6846 = vperm.xlu0 %9039, %v6669_v36   ;;  %v44_v21 = vld [vmem:[%s18290_s1 + $0x88] sm:$0xff]  ;;  %vm6546_vm2 = vcmp.gt.f32.partialorder %v6418_v34, 0.0 }
 0x13a   :  { %v11364_v28 = vpop.f32.mrb[48].mxu1  ;;  %18495 = vst [vmem:[#allocation24_spill] sm:$0xff] %v11368_v18  ;;  %6849 = vperm.xlu1 %9040, %v6670_v32   ;;  %v6674_v36 = vsel %vm6546_vm2, 1, %v18317_v1 }
 0x13b   :  { %v11370_v12 = vpop.f32.mrb[49].mxu1 }
 0x13c   :  { %v11372_v26 = vpop.f32.mrb[50].mxu1 }
 0x13d   :  { %18496 = vst [vmem:[#allocation25_spill] sm:$0xff] %v11372_v26  ;;  %v11377_v30 = vpop.f32.mrb[51].mxu1  ;;  %6852 = vperm.xlu0 %9039, %v6671_v54   ;;  %v6420_v26 = vld [vmem:[%s18291_s2 + $0xf8] sm:$0xff] }
 0x13e   :  { %18497 = vst [vmem:[#allocation26_spill] sm:$0xff] %v11377_v30  ;;  %6855 = vperm.xlu1 %9040, %v6672_v10   ;;  %vm6548_vm4 = vcmp.gt.f32.partialorder %v6420_v26, 0.0  ;;  %v6419_v10 = vld [vmem:[%s18291_s2 + $0xf0] sm:$0xff]  ;;  %v6421_v26 = vld [vmem:[%s18291_s2 + $0x100] sm:$0xff] }
 0x13f   :  { %8293 = vmatmul.mubr.msk.bf16.gmra.mrb[156].mxu1 %vm704_vm0, %v10826_v38  ;;  %7753 = vmatmul.mubr.msk.bf16.gmra.mrb[28].mxu0 %vm2155_vm1, %v11368_v18  ;;  %v43_v38 = vld [vmem:[%s18290_s1 + $0x80] sm:$0xff]  ;;  %v6676_v54 = vsel %vm6548_vm4, 1, %v18317_v1  ;;  %vm6547_vm5 = vcmp.gt.f32.partialorder %v6419_v10, 0.0  ;;  %vm6549_vm7 = vcmp.gt.f32.partialorder %v6421_v26, 0.0 }
 0x140   :  { %8296 = vmatprep.mubr.msk.bf16.mxu1 %vm704_vm0, %v10839_v40  ;;  %2460 = vmatprep.mubr.bf16.mxu0 %v18317_v1  ;;  %v6673_v40 = vsel %vm6545_vm3, 1, %v18317_v1  ;;  %v11407_v14 = vpack.c.bf16 %v44_v21, %v43_v38  ;;  %v6675_v22 = vsel %vm6547_vm5, 1, %v18317_v1  ;;  %v6422_v38 = vld [vmem:[%s18291_s2 + $0x108] sm:$0xff]  ;;  %v46_v21 = vld [vmem:[%s18290_s1 + $0x98] sm:$0xff] }
 0x141   :  { %6858 = vperm.xlu0 %9039, %v6673_v40   ;;  %vm6550_vm6 = vcmp.gt.f32.partialorder %v6422_v38, 0.0 }
 0x142   :  { %v11403_v32 = vpop.f32.mrb[52].mxu1  ;;  %18498 = vst [vmem:[#allocation27_spill] sm:$0xff] %v11407_v14  ;;  %6861 = vperm.xlu1 %9040, %v6674_v36   ;;  %v6678_v40 = vsel %vm6550_vm6, 1, %v18317_v1 }
 0x143   :  { %v11409_v18 = vpop.f32.mrb[53].mxu1 }
 0x144   :  { %v11411_v30 = vpop.f32.mrb[54].mxu1 }
 0x145   :  { %18499 = vst [vmem:[#allocation28_spill] sm:$0xff] %v11411_v30  ;;  %v11416_v34 = vpop.f32.mrb[55].mxu1  ;;  %6864 = vperm.xlu0 %9039, %v6675_v22   ;;  %v6424_v30 = vld [vmem:[%s18291_s2 + $0x118] sm:$0xff] }
 0x146   :  { %18500 = vst [vmem:[#allocation29_spill] sm:$0xff] %v11416_v34  ;;  %6867 = vperm.xlu1 %9040, %v6676_v54   ;;  %vm6552_vm8 = vcmp.gt.f32.partialorder %v6424_v30, 0.0  ;;  %v6423_v54 = vld [vmem:[%s18291_s2 + $0x110] sm:$0xff]  ;;  %v6425_v30 = vld [vmem:[%s18291_s2 + $0x120] sm:$0xff] }
 0x147   :  { %8297 = vmatmul.mubr.msk.bf16.gmra.mrb[160].mxu1 %vm704_vm0, %v10852_v42  ;;  %7754 = vmatmul.mubr.msk.bf16.gmra.mrb[32].mxu0 %vm2155_vm1, %v11407_v14  ;;  %v45_v42 = vld [vmem:[%s18290_s1 + $0x90] sm:$0xff]  ;;  %v6680_v22 = vsel %vm6552_vm8, 1, %v18317_v1  ;;  %vm6551_vm9 = vcmp.gt.f32.partialorder %v6423_v54, 0.0  ;;  %vm6553_vm11 = vcmp.gt.f32.partialorder %v6425_v30, 0.0 }
 0x148   :  { %8300 = vmatprep.mubr.msk.bf16.mxu1 %vm704_vm0, %v10865_v44  ;;  %2470 = vmatprep.mubr.bf16.mxu0 %v18317_v1  ;;  %v6677_v44 = vsel %vm6549_vm7, 1, %v18317_v1  ;;  %v11446_v10 = vpack.c.bf16 %v46_v21, %v45_v42  ;;  %v6679_v26 = vsel %vm6551_vm9, 1, %v18317_v1  ;;  %v6426_v42 = vld [vmem:[%s18291_s2 + $0x128] sm:$0xff]  ;;  %v49_v30 = vld [vmem:[%s18290_s1 + $0xb0] sm:$0xff] }
 0x149   :  { %6870 = vperm.xlu0 %9039, %v6677_v44   ;;  %v48_v21 = vld [vmem:[%s18290_s1 + $0xa8] sm:$0xff]  ;;  %vm6554_vm10 = vcmp.gt.f32.partialorder %v6426_v42, 0.0 }
 0x14a   :  { %v11442_v36 = vpop.f32.mrb[56].mxu1  ;;  %18501 = vst [vmem:[#allocation30_spill] sm:$0xff] %v11446_v10  ;;  %6873 = vperm.xlu1 %9040, %v6678_v40   ;;  %v6682_v44 = vsel %vm6554_vm10, 1, %v18317_v1 }
 0x14b   :  { %v11448_v14 = vpop.f32.mrb[57].mxu1 }
 0x14c   :  { %v11450_v34 = vpop.f32.mrb[58].mxu1 }
 0x14d   :  { %18502 = vst [vmem:[#allocation31_spill] sm:$0xff] %v11450_v34  ;;  %v11455_v38 = vpop.f32.mrb[59].mxu1  ;;  %6876 = vperm.xlu0 %9039, %v6679_v26   ;;  %v6428_v34 = vld [vmem:[%s18291_s2 + $0x138] sm:$0xff] }
 0x14e   :  { %18503 = vst [vmem:[#allocation32_spill] sm:$0xff] %v11455_v38  ;;  %6879 = vperm.xlu1 %9040, %v6680_v22   ;;  %vm6556_vm12 = vcmp.gt.f32.partialorder %v6428_v34, 0.0  ;;  %v6427_v22 = vld [vmem:[%s18291_s2 + $0x130] sm:$0xff]  ;;  %v50_v34 = vld [vmem:[%s18290_s1 + $0xb8] sm:$0xff] }
 0x14f   :  { %8301 = vmatmul.mubr.msk.bf16.gmra.mrb[164].mxu1 %vm704_vm0, %v10878_v46  ;;  %7755 = vmatmul.mubr.msk.bf16.gmra.mrb[36].mxu0 %vm2155_vm1, %v11446_v10  ;;  %v47_v46 = vld [vmem:[%s18290_s1 + $0xa0] sm:$0xff]  ;;  %v6684_v26 = vsel %vm6556_vm12, 1, %v18317_v1  ;;  %vm6555_vm13 = vcmp.gt.f32.partialorder %v6427_v22, 0.0  ;;  %v11524_v22 = vpack.c.bf16 %v50_v34, %v49_v30 }
 0x150   :  { %8304 = vmatprep.mubr.msk.bf16.mxu1 %vm704_vm0, %v10897_v49  ;;  %2480 = vmatprep.mubr.bf16.mxu0 %v18317_v1  ;;  %v6681_v49 = vsel %vm6553_vm11, 1, %v18317_v1  ;;  %v11485_v54 = vpack.c.bf16 %v48_v21, %v47_v46  ;;  %v6683_v46 = vsel %vm6555_vm13, 1, %v18317_v1  ;;  %v6429_v21 = vld [vmem:[%s18291_s2 + $0x140] sm:$0xff] }
 0x151   :  { %6882 = vperm.xlu0 %9039, %v6681_v49   ;;  %vm6557_vm15 = vcmp.gt.f32.partialorder %v6429_v21, 0.0  ;;  %18507 = vst [vmem:[#allocation36_spill] sm:$0xff] %v11524_v22  ;;  %v51_v34 = vld [vmem:[%s18290_s1 + $0xc0] sm:$0xff] }
 0x152   :  { %v11481_v40 = vpop.f32.mrb[60].mxu1  ;;  %18504 = vst [vmem:[#allocation33_spill] sm:$0xff] %v11485_v54  ;;  %6885 = vperm.xlu1 %9040, %v6682_v44   ;;  %v6685_v49 = vsel %vm6557_vm15, 1, %v18317_v1  ;;  %v6433_v21 = vld [vmem:[%s18291_s2 + $0x160] sm:$0xff] }
 0x153   :  { %v11487_v10 = vpop.f32.mrb[61].mxu1  ;;  %vm6561_vm5 = vcmp.gt.f32.partialorder %v6433_v21, 0.0 }
 0x154   :  { %v11489_v38 = vpop.f32.mrb[62].mxu1 }
 0x155   :  { %18505 = vst [vmem:[#allocation34_spill] sm:$0xff] %v11489_v38  ;;  %v11494_v42 = vpop.f32.mrb[63].mxu1  ;;  %6888 = vperm.xlu0 %9039, %v6683_v46   ;;  %v6432_v38 = vld [vmem:[%s18291_s2 + $0x158] sm:$0xff]  ;;  %v6431_v46 = vld [vmem:[%s18291_s2 + $0x150] sm:$0xff] }
 0x156   :  { %18506 = vst [vmem:[#allocation35_spill] sm:$0xff] %v11494_v42  ;;  %6891 = vperm.xlu1 %9040, %v6684_v26   ;;  %vm6560_vm2 = vcmp.gt.f32.partialorder %v6432_v38, 0.0  ;;  %vm6559_vm3 = vcmp.gt.f32.partialorder %v6431_v46, 0.0  ;;  %v52_v38 = vld [vmem:[%s18290_s1 + $0xc8] sm:$0xff] }
 0x157   :  { %8305 = vmatmul.mubr.msk.bf16.gmra.mrb[168].mxu1 %vm704_vm0, %v10910_v51  ;;  %7756 = vmatmul.mubr.msk.bf16.gmra.mrb[40].mxu0 %vm2155_vm1, %v11485_v54  ;;  %v6430_v51 = vld [vmem:[%s18291_s2 + $0x148] sm:$0xff]  ;;  %v6688_v30 = vsel %vm6560_vm2, 1, %v18317_v1  ;;  %v11563_v46 = vpack.c.bf16 %v52_v38, %v51_v34 }
 0x158   :  { %8308 = vmatprep.mubr.msk.bf16.mxu1 %vm704_vm0, %v10923_v53  ;;  %2490 = vmatprep.mubr.bf16.mxu0 %v18317_v1  ;;  %vm6558_vm14 = vcmp.gt.f32.partialorder %v6430_v51, 0.0  ;;  %v6687_v51 = vsel %vm6559_vm3, 1, %v18317_v1 }
 0x159   :  { %v6686_v53 = vsel %vm6558_vm14, 1, %v18317_v1  ;;  %6894 = vperm.xlu0 %9039, %v6685_v49   ;;  %v6689_v49 = vsel %vm6561_vm5, 1, %v18317_v1  ;;  %18510 = vst [vmem:[#allocation39_spill] sm:$0xff] %v11563_v46 }
 0x15a   :  { %v11520_v44 = vpop.f32.mrb[64].mxu1  ;;  %6897 = vperm.xlu1 %9040, %v6686_v53  }
 0x15b   :  { %v11526_v54 = vpop.f32.mrb[65].mxu1 }
 0x15c   :  { %v11528_v42 = vpop.f32.mrb[66].mxu1 }
 0x15d   :  { %18508 = vst [vmem:[#allocation37_spill] sm:$0xff] %v11528_v42  ;;  %v11533_v26 = vpop.f32.mrb[67].mxu1  ;;  %6900 = vperm.xlu0 %9039, %v6687_v51   ;;  %v6436_v42 = vld [vmem:[%s18291_s2 + $0x178] sm:$0xff]  ;;  %v6435_v51 = vld [vmem:[%s18291_s2 + $0x170] sm:$0xff] }
 0x15e   :  { %18509 = vst [vmem:[#allocation38_spill] sm:$0xff] %v11533_v26  ;;  %6903 = vperm.xlu1 %9040, %v6688_v30   ;;  %vm6564_vm6 = vcmp.gt.f32.partialorder %v6436_v42, 0.0  ;;  %vm6563_vm7 = vcmp.gt.f32.partialorder %v6435_v51, 0.0  ;;  %v53_v42 = vld [vmem:[%s18290_s1 + $0xd0] sm:$0xff] }
 0x15f   :  { %8309 = vmatmul.mubr.msk.bf16.gmra.mrb[172].mxu1 %vm704_vm0, %v10936_v55  ;;  %7757 = vmatmul.mubr.msk.bf16.gmra.mrb[44].mxu0 %vm2155_vm1, %v11524_v22  ;;  %v6434_v55 = vld [vmem:[%s18291_s2 + $0x168] sm:$0xff]  ;;  %v6692_v34 = vsel %vm6564_vm6, 1, %v18317_v1  ;;  %v6691_v38 = vsel %vm6563_vm7, 1, %v18317_v1 }
 0x160   :  { %8312 = vmatprep.mubr.msk.bf16.mxu1 %vm704_vm0, %v10949_v57  ;;  %2500 = vmatprep.mubr.bf16.mxu0 %v18317_v1  ;;  %vm6562_vm4 = vcmp.gt.f32.partialorder %v6434_v55, 0.0  ;;  %v54_v55 = vld [vmem:[%s18290_s1 + $0xd8] sm:$0xff] }
 0x161   :  { %v6690_v57 = vsel %vm6562_vm4, 1, %v18317_v1  ;;  %6906 = vperm.xlu0 %9039, %v6689_v49  }
 0x162   :  { %v11559_v53 = vpop.f32.mrb[68].mxu1  ;;  %6909 = vperm.xlu1 %9040, %v6690_v57   ;;  %v11600_v57 = vpack.c.bf16 %v54_v55, %v53_v42  ;;  %v6439_v42 = vld [vmem:[%s18291_s2 + $0x190] sm:$0xff] }
 0x163   :  { %v11565_v22 = vpop.f32.mrb[69].mxu1  ;;  %vm6567_vm11 = vcmp.gt.f32.partialorder %v6439_v42, 0.0 }
 0x164   :  { %v11567_v26 = vpop.f32.mrb[70].mxu1  ;;  %18512 = vst [vmem:[#allocation41_spill] sm:$0xff] %v11600_v57 }
 0x165   :  { %v11572_v30 = vpop.f32.mrb[71].mxu1  ;;  %6912 = vperm.xlu0 %9039, %v6691_v38  }
 0x166   :  { %6915 = vperm.xlu1 %9040, %v6692_v34  }
 0x167   :  { %8313 = vmatmul.mubr.msk.bf16.gmra.mrb[176].mxu1 %vm704_vm0, %v10962_v59  ;;  %7758 = vmatmul.mubr.msk.bf16.gmra.mrb[48].mxu0 %vm2155_vm1, %v11563_v46  ;;  %v6438_v59 = vld [vmem:[%s18291_s2 + $0x188] sm:$0xff] }
 0x168   :  { %8316 = vmatprep.mubr.msk.bf16.mxu1 %vm704_vm0, %v10975_v61  ;;  %2510 = vmatprep.mubr.bf16.mxu0 %v18317_v1  ;;  %v6437_v61 = vld [vmem:[%s18291_s2 + $0x180] sm:$0xff]  ;;  %vm6566_vm8 = vcmp.gt.f32.partialorder %v6438_v59, 0.0 }
 0x169   :  { %vm6565_vm9 = vcmp.gt.f32.partialorder %v6437_v61, 0.0  ;;  %v6694_v51 = vsel %vm6566_vm8, 1, %v18317_v1  ;;  %v55_v59 = vld [vmem:[%s18290_s1 + $0xe0] sm:$0xff]  ;;  %v56_v61 = vld [vmem:[%s18290_s1 + $0xe8] sm:$0xff] }
 0x16a   :  { %v11598_v21 = vpop.f32.mrb[72].mxu1  ;;  %v6693_v34 = vsel %vm6565_vm9, 1, %v18317_v1  ;;  %6921 = vperm.xlu1 %9040, %v6694_v51  }
 0x16b   :  { %18511 = vst [vmem:[#allocation40_spill] sm:$0xff] %v11598_v21  ;;  %v11602_v49 = vpop.f32.mrb[73].mxu1  ;;  %6918 = vperm.xlu0 %9039, %v6693_v34   ;;  %v6440_v21 = vld [vmem:[%s18291_s2 + $0x198] sm:$0xff]  ;;  %v11639_v34 = vpack.c.bf16 %v56_v61, %v55_v59  ;;  %v6443_v59 = vld [vmem:[%s18291_s2 + $0x1b0] sm:$0xff] }
 0x16c   :  { %v11606_v38 = vpop.f32.mrb[74].mxu1  ;;  %vm6568_vm10 = vcmp.gt.f32.partialorder %v6440_v21, 0.0  ;;  %v6442_v21 = vld [vmem:[%s18291_s2 + $0x1a8] sm:$0xff]  ;;  %vm6571_vm15 = vcmp.gt.f32.partialorder %v6443_v59, 0.0 }
 0x16d   :  { %18513 = vst [vmem:[#allocation42_spill] sm:$0xff] %v11606_v38  ;;  %v11608_v46 = vpop.f32.mrb[75].mxu1  ;;  %v6696_v55 = vsel %vm6568_vm10, 1, %v18317_v1  ;;  %vm6570_vm12 = vcmp.gt.f32.partialorder %v6442_v21, 0.0  ;;  %18516 = vst [vmem:[#allocation45_spill] sm:$0xff] %v11639_v34  ;;  %v58_v21 = vld [vmem:[%s18290_s1 + $0xf8] sm:$0xff] }
 0x16e   :  { %18514 = vst [vmem:[#allocation43_spill] sm:$0xff] %v11608_v46  ;;  %6927 = vperm.xlu1 %9040, %v6696_v55  }
 0x16f   :  { %8317 = vmatmul.mubr.msk.bf16.gmra.mrb[180].mxu1 %vm704_vm0, %v10990_v0  ;;  %7759 = vmatmul.mubr.msk.bf16.gmra.mrb[52].mxu0 %vm2155_vm1, %v11600_v57  ;;  %v6695_v0 = vsel %vm6567_vm11, 1, %v18317_v1  ;;  %v6698_v57 = vsel %vm6570_vm12, 1, %v18317_v1 }
 0x170   :  { %8320 = vmatprep.mubr.msk.bf16.mxu1 %vm704_vm0, %v11011_v9  ;;  %2520 = vmatprep.mubr.bf16.mxu0 %v18317_v1  ;;  %v6441_v9 = vld [vmem:[%s18291_s2 + $0x1a0] sm:$0xff] }
 0x171   :  { %6924 = vperm.xlu0 %9039, %v6695_v0   ;;  %vm6569_vm13 = vcmp.gt.f32.partialorder %v6441_v9, 0.0 }
 0x172   :  { %v11637_v51 = vpop.f32.mrb[76].mxu1  ;;  %v6697_v55 = vsel %vm6569_vm13, 1, %v18317_v1  ;;  %6933 = vperm.xlu1 %9040, %v6698_v57   ;;  %v57_v57 = vld [vmem:[%s18290_s1 + $0xf0] sm:$0xff] }
 0x173   :  { %18515 = vst [vmem:[#allocation44_spill] sm:$0xff] %v11637_v51  ;;  %v11641_v42 = vpop.f32.mrb[77].mxu1  ;;  %v6444_v51 = vld [vmem:[%s18291_s2 + $0x1b8] sm:$0xff] }
 0x174   :  { %18517 = vst [vmem:[#allocation46_spill] sm:$0xff] %v11641_v42  ;;  %v11645_v0 = vpop.f32.mrb[78].mxu1  ;;  %vm6572_vm14 = vcmp.gt.f32.partialorder %v6444_v51, 0.0  ;;  %v6445_v51 = vld [vmem:[%s18291_s2 + $0x1c0] sm:$0xff] }
 0x175   :  { %18518 = vst [vmem:[#allocation47_spill] sm:$0xff] %v11645_v0  ;;  %v11647_v46 = vpop.f32.mrb[79].mxu1  ;;  %6930 = vperm.xlu0 %9039, %v6697_v55   ;;  %v6700_v61 = vsel %vm6572_vm14, 1, %v18317_v1  ;;  %v11678_v55 = vpack.c.bf16 %v58_v21, %v57_v57  ;;  %vm6573_vm3 = vcmp.gt.f32.partialorder %v6445_v51, 0.0  ;;  %v6447_v57 = vld [vmem:[%s18291_s2 + $0x1d0] sm:$0xff]  ;;  %v10397_v21 = vld [vmem:[%s18288_s0 + $0x100] sm:$0xff]  }
 0x176   :  { %18519 = vst [vmem:[#allocation48_spill] sm:$0xff] %v11647_v46  ;;  %6939 = vperm.xlu1 %9040, %v6700_v61   ;;  %v6448_v46 = vld [vmem:[%s18291_s2 + $0x1d8] sm:$0xff]  ;;  %vm6575_vm5 = vcmp.gt.f32.partialorder %v6447_v57, 0.0 }
 0x177   :  { %8321 = vmatmul.mubr.msk.bf16.gmra.mrb[184].mxu1 %vm704_vm0, %v11032_v19  ;;  %7760 = vmatmul.mubr.msk.bf16.gmra.mrb[56].mxu0 %vm2155_vm1, %v11639_v34  ;;  %v6699_v19 = vsel %vm6571_vm15, 1, %v18317_v1  ;;  %18521 = vst [vmem:[#allocation50_spill] sm:$0xff] %v11678_v55  ;;  %vm6576_vm4 = vcmp.gt.f32.partialorder %v6448_v46, 0.0  ;;  %v60_v46 = vld [vmem:[%s18290_s1 + $0x108] sm:$0xff]  ;;  %v6703_v51 = vsel %vm6575_vm5, 1, %v18317_v1 }
 0x178   :  { %8324 = vmatprep.mubr.msk.bf16.mxu1 %vm704_vm0, %v11053_v31  ;;  %2530 = vmatprep.mubr.bf16.mxu0 %v18317_v1  ;;  %v6446_v31 = vld [vmem:[%s18291_s2 + $0x1c8] sm:$0xff] }
 0x179   :  { %6936 = vperm.xlu0 %9039, %v6699_v19   ;;  %vm6574_vm2 = vcmp.gt.f32.partialorder %v6446_v31, 0.0  ;;  %v6701_v19 = vsel %vm6573_vm3, 1, %v18317_v1  ;;  %v6704_v31 = vsel %vm6576_vm4, 1, %v18317_v1 }
 0x17a   :  { %v11670_v9 = vpop.f32.mrb[80].mxu1  ;;  %v6702_v61 = vsel %vm6574_vm2, 1, %v18317_v1 }
 0x17b   :  { %18520 = vst [vmem:[#allocation49_spill] sm:$0xff] %v11670_v9  ;;  %v11680_v59 = vpop.f32.mrb[81].mxu1  ;;  %6945 = vperm.xlu1 %9040, %v6702_v61  }
 0x17c   :  { %18522 = vst [vmem:[#allocation51_spill] sm:$0xff] %v11680_v59  ;;  %v11682_v34 = vpop.f32.mrb[82].mxu1 }
 0x17d   :  { %18523 = vst [vmem:[#allocation52_spill] sm:$0xff] %v11682_v34  ;;  %v11686_v9 = vpop.f32.mrb[83].mxu1  ;;  %6942 = vperm.xlu0 %9039, %v6701_v19   ;;  %v6450_v19 = vld [vmem:[%s18291_s2 + $0x1e8] sm:$0xff]  ;;  %v6452_v34 = vld [vmem:[%s18291_s2 + $0x1f8] sm:$0xff] }
 0x17e   :  { %18524 = vst [vmem:[#allocation53_spill] sm:$0xff] %v11686_v9  ;;  %vm6578_vm6 = vcmp.gt.f32.partialorder %v6450_v19, 0.0  ;;  %vm6580_vm8 = vcmp.gt.f32.partialorder %v6452_v34, 0.0  ;;  %v10399_v19 = vld [vmem:[%s18288_s0 + $0x110] sm:$0xff]   ;;  %v62_v34 = vld [vmem:[%s18290_s1 + $0x118] sm:$0xff] }
 0x17f   :  { %8325 = vmatmul.mubr.msk.bf16.gmra.mrb[188].mxu1 %vm704_vm0, %v11074_v43  ;;  %7761 = vmatmul.mubr.msk.bf16.gmra.mrb[60].mxu0 %vm2155_vm1, %v11678_v55  ;;  %v59_v43 = vld [vmem:[%s18290_s1 + $0x100] sm:$0xff] }
 0x180   :  { %8328 = vmatprep.mubr.msk.bf16.mxu1 %vm704_vm0, %v10397_v21  ;;  %2540 = vmatprep.mubr.bf16.mxu0 %v18317_v1  ;;  %v6449_v21 = vld [vmem:[%s18291_s2 + $0x1e0] sm:$0xff]  ;;  %v11719_v55 = vpack.c.bf16 %v60_v46, %v59_v43  ;;  %v10398_v43 = vld [vmem:[%s18288_s0 + $0x108] sm:$0xff]   ;;  %v6451_v46 = vld [vmem:[%s18291_s2 + $0x1f0] sm:$0xff] }
 0x181   :  { %6951 = vperm.xlu1 %9040, %v6704_v31   ;;  %6948 = vperm.xlu0 %9039, %v6703_v51   ;;  %vm6577_vm7 = vcmp.gt.f32.partialorder %v6449_v21, 0.0  ;;  %v6706_v31 = vsel %vm6578_vm6, 1, %v18317_v1  ;;  %v61_v21 = vld [vmem:[%s18290_s1 + $0x110] sm:$0xff]  ;;  %vm6579_vm9 = vcmp.gt.f32.partialorder %v6451_v46, 0.0 }
 0x182   :  { %v11711_v61 = vpop.f32.mrb[84].mxu1  ;;  %18526 = vst [vmem:[#allocation55_spill] sm:$0xff] %v11719_v55  ;;  %v6705_v51 = vsel %vm6577_vm7, 1, %v18317_v1 }
 0x183   :  { %18525 = vst [vmem:[#allocation54_spill] sm:$0xff] %v11711_v61  ;;  %v11721_v9 = vpop.f32.mrb[85].mxu1 }
 0x184   :  { %18527 = vst [vmem:[#allocation56_spill] sm:$0xff] %v11721_v9  ;;  %v11723_v57 = vpop.f32.mrb[86].mxu1 }
 0x185   :  { %18528 = vst [vmem:[#allocation57_spill] sm:$0xff] %v11723_v57  ;;  %v11727_v61 = vpop.f32.mrb[87].mxu1  ;;  %6957 = vperm.xlu1 %9040, %v6706_v31   ;;  %6954 = vperm.xlu0 %9039, %v6705_v51   ;;  %v6708_v31 = vsel %vm6580_vm8, 1, %v18317_v1  ;;  %v6707_v51 = vsel %vm6579_vm9, 1, %v18317_v1  ;;  %v6453_v57 = vld [vmem:[%s18291_s2 + $0x200] sm:$0xff] }
 0x186   :  { %18529 = vst [vmem:[#allocation58_spill] sm:$0xff] %v11727_v61  ;;  %v6454_v61 = vld [vmem:[%s18291_s2 + $0x208] sm:$0xff]  ;;  %vm6581_vm11 = vcmp.gt.f32.partialorder %v6453_v57, 0.0  ;;  %v10401_v57 = vld [vmem:[%s18288_s0 + $0x120] sm:$0xff]  }
 0x187   :  { %8329 = vmatmul.mubr.msk.bf16.gmra.mrb[192].mxu1 %vm704_vm0, %v10398_v43  ;;  %7762 = vmatmul.mubr.msk.bf16.gmra.mrb[64].mxu0 %vm2155_vm1, %v11719_v55  ;;  %vm6582_vm10 = vcmp.gt.f32.partialorder %v6454_v61, 0.0  ;;  %v6456_v61 = vld [vmem:[%s18291_s2 + $0x218] sm:$0xff] }
 0x188   :  { %8332 = vmatprep.mubr.msk.bf16.mxu1 %vm704_vm0, %v10399_v19  ;;  %2550 = vmatprep.mubr.bf16.mxu0 %v18317_v1  ;;  %v11756_v19 = vpack.c.bf16 %v62_v34, %v61_v21  ;;  %v6709_v21 = vsel %vm6581_vm11, 1, %v18317_v1  ;;  %v10400_v34 = vld [vmem:[%s18288_s0 + $0x118] sm:$0xff]   ;;  %vm6584_vm12 = vcmp.gt.f32.partialorder %v6456_v61, 0.0  ;;  %v6458_v61 = vld [vmem:[%s18291_s2 + $0x228] sm:$0xff] }
 0x189   :  { %6963 = vperm.xlu1 %9040, %v6708_v31   ;;  %6960 = vperm.xlu0 %9039, %v6707_v51   ;;  %v6710_v31 = vsel %vm6582_vm10, 1, %v18317_v1  ;;  %v63_v51 = vld [vmem:[%s18290_s1 + $0x120] sm:$0xff]  ;;  %vm6586_vm14 = vcmp.gt.f32.partialorder %v6458_v61, 0.0  ;;  %v65_v61 = vld [vmem:[%s18290_s1 + $0x130] sm:$0xff] }
 0x18a   :  { %v11754_v43 = vpop.f32.mrb[88].mxu1  ;;  %18531 = vst [vmem:[#allocation60_spill] sm:$0xff] %v11756_v19 }
 0x18b   :  { %18530 = vst [vmem:[#allocation59_spill] sm:$0xff] %v11754_v43  ;;  %v11758_v55 = vpop.f32.mrb[89].mxu1 }
 0x18c   :  { %18532 = vst [vmem:[#allocation61_spill] sm:$0xff] %v11758_v55  ;;  %v11766_v9 = vpop.f32.mrb[90].mxu1  ;;  %v6457_v55 = vld [vmem:[%s18291_s2 + $0x220] sm:$0xff] }
 0x18d   :  { %18533 = vst [vmem:[#allocation62_spill] sm:$0xff] %v11766_v9  ;;  %v11768_v46 = vpop.f32.mrb[91].mxu1  ;;  %6969 = vperm.xlu1 %9040, %v6710_v31   ;;  %6966 = vperm.xlu0 %9039, %v6709_v21   ;;  %v64_v31 = vld [vmem:[%s18290_s1 + $0x128] sm:$0xff]  ;;  %v6455_v21 = vld [vmem:[%s18291_s2 + $0x210] sm:$0xff]  ;;  %vm6585_vm15 = vcmp.gt.f32.partialorder %v6457_v55, 0.0  ;;  %v6460_v55 = vld [vmem:[%s18291_s2 + $0x238] sm:$0xff] }
 0x18e   :  { %18534 = vst [vmem:[#allocation63_spill] sm:$0xff] %v11768_v46  ;;  %vm6583_vm13 = vcmp.gt.f32.partialorder %v6455_v21, 0.0  ;;  %v11799_v46 = vpack.c.bf16 %v64_v31, %v63_v51  ;;  %v6714_v51 = vsel %vm6586_vm14, 1, %v18317_v1  ;;  %v6713_v31 = vsel %vm6585_vm15, 1, %v18317_v1 }
 0x18f   :  { %8333 = vmatmul.mubr.msk.bf16.gmra.mrb[196].mxu1 %vm704_vm0, %v10400_v34  ;;  %7763 = vmatmul.mubr.msk.bf16.gmra.mrb[68].mxu0 %vm2155_vm1, %v11756_v19  ;;  %v6712_v34 = vsel %vm6584_vm12, 1, %v18317_v1  ;;  %vm6588_vm2 = vcmp.gt.f32.partialorder %v6460_v55, 0.0  ;;  %v6462_v55 = vld [vmem:[%s18291_s2 + $0x248] sm:$0xff] }
 0x190   :  { %8336 = vmatprep.mubr.msk.bf16.mxu1 %vm704_vm0, %v10401_v57  ;;  %2560 = vmatprep.mubr.bf16.mxu0 %v18317_v1  ;;  %v6711_v57 = vsel %vm6583_vm13, 1, %v18317_v1  ;;  %18536 = vst [vmem:[#allocation65_spill] sm:$0xff] %v11799_v46  ;;  %vm6590_vm4 = vcmp.gt.f32.partialorder %v6462_v55, 0.0  ;;  %v68_v55 = vld [vmem:[%s18290_s1 + $0x148] sm:$0xff] }
 0x191   :  { %6975 = vperm.xlu1 %9040, %v6712_v34   ;;  %6972 = vperm.xlu0 %9039, %v6711_v57   ;;  %v10402_v34 = vld [vmem:[%s18288_s0 + $0x128] sm:$0xff]   ;;  %v10403_v57 = vld [vmem:[%s18288_s0 + $0x130] sm:$0xff]  }
 0x192   :  { %v11796_v19 = vpop.f32.mrb[92].mxu1 }
 0x193   :  { %18535 = vst [vmem:[#allocation64_spill] sm:$0xff] %v11796_v19  ;;  %v11801_v9 = vpop.f32.mrb[93].mxu1 }
 0x194   :  { %18537 = vst [vmem:[#allocation66_spill] sm:$0xff] %v11801_v9  ;;  %v11809_v43 = vpop.f32.mrb[94].mxu1 }
 0x195   :  { %18538 = vst [vmem:[#allocation67_spill] sm:$0xff] %v11809_v43  ;;  %v11811_v21 = vpop.f32.mrb[95].mxu1  ;;  %6981 = vperm.xlu1 %9040, %v6714_v51   ;;  %v66_v51 = vld [vmem:[%s18290_s1 + $0x138] sm:$0xff]  ;;  %6978 = vperm.xlu0 %9039, %v6713_v31   ;;  %v6461_v31 = vld [vmem:[%s18291_s2 + $0x240] sm:$0xff] }
 0x196   :  { %18539 = vst [vmem:[#allocation68_spill] sm:$0xff] %v11811_v21  ;;  %v11842_v43 = vpack.c.bf16 %v66_v51, %v65_v61  ;;  %vm6589_vm5 = vcmp.gt.f32.partialorder %v6461_v31, 0.0  ;;  %v10404_v51 = vld [vmem:[%s18288_s0 + $0x138] sm:$0xff]  }
 0x197   :  { %8337 = vmatmul.mubr.msk.bf16.gmra.mrb[200].mxu1 %vm704_vm0, %v10402_v34  ;;  %7764 = vmatmul.mubr.msk.bf16.gmra.mrb[72].mxu0 %vm2155_vm1, %v11799_v46  ;;  %v6459_v34 = vld [vmem:[%s18291_s2 + $0x230] sm:$0xff]  ;;  %v6716_v46 = vsel %vm6588_vm2, 1, %v18317_v1  ;;  %v6717_v61 = vsel %vm6589_vm5, 1, %v18317_v1  ;;  %v6464_v31 = vld [vmem:[%s18291_s2 + $0x258] sm:$0xff] }
 0x198   :  { %8340 = vmatprep.mubr.msk.bf16.mxu1 %vm704_vm0, %v10403_v57  ;;  %2570 = vmatprep.mubr.bf16.mxu0 %v18317_v1  ;;  %vm6587_vm3 = vcmp.gt.f32.partialorder %v6459_v34, 0.0  ;;  %18541 = vst [vmem:[#allocation70_spill] sm:$0xff] %v11842_v43  ;;  %vm6592_vm6 = vcmp.gt.f32.partialorder %v6464_v31, 0.0 }
 0x199   :  { %6987 = vperm.xlu1 %9040, %v6716_v46   ;;  %v6715_v21 = vsel %vm6587_vm3, 1, %v18317_v1  ;;  %v6718_v46 = vsel %vm6590_vm4, 1, %v18317_v1 }
 0x19a   :  { %v11839_v57 = vpop.f32.mrb[96].mxu1  ;;  %6984 = vperm.xlu0 %9039, %v6715_v21   ;;  %v67_v21 = vld [vmem:[%s18290_s1 + $0x140] sm:$0xff] }
 0x19b   :  { %18540 = vst [vmem:[#allocation69_spill] sm:$0xff] %v11839_v57  ;;  %v11844_v9 = vpop.f32.mrb[97].mxu1 }
 0x19c   :  { %18542 = vst [vmem:[#allocation71_spill] sm:$0xff] %v11844_v9  ;;  %v11846_v19 = vpop.f32.mrb[98].mxu1 }
 0x19d   :  { %18543 = vst [vmem:[#allocation72_spill] sm:$0xff] %v11846_v19  ;;  %v11854_v34 = vpop.f32.mrb[99].mxu1  ;;  %6993 = vperm.xlu1 %9040, %v6718_v46   ;;  %v11884_v19 = vpack.c.bf16 %v68_v55, %v67_v21  ;;  %v6466_v46 = vld [vmem:[%s18291_s2 + $0x268] sm:$0xff] }
 0x19e   :  { %18544 = vst [vmem:[#allocation73_spill] sm:$0xff] %v11854_v34  ;;  %v10405_v34 = vld [vmem:[%s18288_s0 + $0x140] sm:$0xff]   ;;  %6990 = vperm.xlu0 %9039, %v6717_v61   ;;  %vm6594_vm8 = vcmp.gt.f32.partialorder %v6466_v46, 0.0  ;;  %v70_v46 = vld [vmem:[%s18290_s1 + $0x158] sm:$0xff] }
 0x19f   :  { %8341 = vmatmul.mubr.msk.bf16.gmra.mrb[204].mxu1 %vm704_vm0, %v10404_v51  ;;  %7765 = vmatmul.mubr.msk.bf16.gmra.mrb[76].mxu0 %vm2155_vm1, %v11842_v43  ;;  %v6720_v43 = vsel %vm6592_vm6, 1, %v18317_v1  ;;  %18546 = vst [vmem:[#allocation75_spill] sm:$0xff] %v11884_v19  ;;  %v6465_v61 = vld [vmem:[%s18291_s2 + $0x260] sm:$0xff]  ;;  %v6722_v21 = vsel %vm6594_vm8, 1, %v18317_v1 }
 0x1a0   :  { %8344 = vmatprep.mubr.msk.bf16.mxu1 %vm704_vm0, %v10405_v34  ;;  %2580 = vmatprep.mubr.bf16.mxu0 %v18317_v1  ;;  %v6463_v34 = vld [vmem:[%s18291_s2 + $0x250] sm:$0xff]  ;;  %vm6593_vm9 = vcmp.gt.f32.partialorder %v6465_v61, 0.0  ;;  %v6468_v61 = vld [vmem:[%s18291_s2 + $0x278] sm:$0xff] }
 0x1a1   :  { %vm6591_vm7 = vcmp.gt.f32.partialorder %v6463_v34, 0.0  ;;  %6999 = vperm.xlu1 %9040, %v6720_v43   ;;  %v6721_v55 = vsel %vm6593_vm9, 1, %v18317_v1  ;;  %v10406_v34 = vld [vmem:[%s18288_s0 + $0x148] sm:$0xff]   ;;  %v10407_v43 = vld [vmem:[%s18288_s0 + $0x150] sm:$0xff]   ;;  %vm6596_vm10 = vcmp.gt.f32.partialorder %v6468_v61, 0.0 }
 0x1a2   :  { %v11881_v51 = vpop.f32.mrb[100].mxu1  ;;  %v6719_v57 = vsel %vm6591_vm7, 1, %v18317_v1 }
 0x1a3   :  { %18545 = vst [vmem:[#allocation74_spill] sm:$0xff] %v11881_v51  ;;  %v11886_v9 = vpop.f32.mrb[101].mxu1  ;;  %6996 = vperm.xlu0 %9039, %v6719_v57   ;;  %v69_v57 = vld [vmem:[%s18290_s1 + $0x150] sm:$0xff] }
 0x1a4   :  { %18547 = vst [vmem:[#allocation76_spill] sm:$0xff] %v11886_v9  ;;  %v11889_v59 = vpop.f32.mrb[102].mxu1 }
 0x1a5   :  { %18548 = vst [vmem:[#allocation77_spill] sm:$0xff] %v11889_v59  ;;  %v11897_v31 = vpop.f32.mrb[103].mxu1  ;;  %7005 = vperm.xlu1 %9040, %v6722_v21   ;;  %v6470_v21 = vld [vmem:[%s18291_s2 + $0x288] sm:$0xff] }
 0x1a6   :  { %18549 = vst [vmem:[#allocation78_spill] sm:$0xff] %v11897_v31  ;;  %v11927_v31 = vpack.c.bf16 %v70_v46, %v69_v57  ;;  %vm6598_vm12 = vcmp.gt.f32.partialorder %v6470_v21, 0.0  ;;  %v10408_v57 = vld [vmem:[%s18288_s0 + $0x158] sm:$0xff]   ;;  %v72_v21 = vld [vmem:[%s18290_s1 + $0x168] sm:$0xff] }
 0x1a7   :  { %8345 = vmatmul.mubr.msk.bf16.gmra.mrb[208].mxu1 %vm704_vm0, %v10406_v34  ;;  %7766 = vmatmul.mubr.msk.bf16.gmra.mrb[80].mxu0 %vm2155_vm1, %v11884_v19  ;;  %v6467_v34 = vld [vmem:[%s18291_s2 + $0x270] sm:$0xff]  ;;  %v6724_v19 = vsel %vm6596_vm10, 1, %v18317_v1  ;;  %v6726_v46 = vsel %vm6598_vm12, 1, %v18317_v1 }
 0x1a8   :  { %8348 = vmatprep.mubr.msk.bf16.mxu1 %vm704_vm0, %v10407_v43  ;;  %2590 = vmatprep.mubr.bf16.mxu0 %v18317_v1  ;;  %vm6595_vm11 = vcmp.gt.f32.partialorder %v6467_v34, 0.0  ;;  %18551 = vst [vmem:[#allocation80_spill] sm:$0xff] %v11927_v31 }
 0x1a9   :  { %7002 = vperm.xlu0 %9039, %v6721_v55   ;;  %v6723_v9 = vsel %vm6595_vm11, 1, %v18317_v1  ;;  %v6469_v55 = vld [vmem:[%s18291_s2 + $0x280] sm:$0xff]  ;;  %7011 = vperm.xlu1 %9040, %v6724_v19  }
 0x1aa   :  { %v11924_v43 = vpop.f32.mrb[104].mxu1  ;;  %vm6597_vm13 = vcmp.gt.f32.partialorder %v6469_v55, 0.0  ;;  %v10409_v19 = vld [vmem:[%s18288_s0 + $0x160] sm:$0xff]   ;;  %v6472_v55 = vld [vmem:[%s18291_s2 + $0x298] sm:$0xff] }
 0x1ab   :  { %18550 = vst [vmem:[#allocation79_spill] sm:$0xff] %v11924_v43  ;;  %v11929_v59 = vpop.f32.mrb[105].mxu1  ;;  %v6725_v34 = vsel %vm6597_vm13, 1, %v18317_v1  ;;  %vm6600_vm14 = vcmp.gt.f32.partialorder %v6472_v55, 0.0  ;;  %v6473_v55 = vld [vmem:[%s18291_s2 + $0x2a0] sm:$0xff] }
 0x1ac   :  { %18552 = vst [vmem:[#allocation81_spill] sm:$0xff] %v11929_v59  ;;  %v11932_v51 = vpop.f32.mrb[106].mxu1  ;;  %vm6601_vm3 = vcmp.gt.f32.partialorder %v6473_v55, 0.0  ;;  %v6476_v55 = vld [vmem:[%s18291_s2 + $0x2b8] sm:$0xff] }
 0x1ad   :  { %18553 = vst [vmem:[#allocation82_spill] sm:$0xff] %v11932_v51  ;;  %v11940_v61 = vpop.f32.mrb[107].mxu1  ;;  %7008 = vperm.xlu0 %9039, %v6723_v9   ;;  %v71_v9 = vld [vmem:[%s18290_s1 + $0x160] sm:$0xff]  ;;  %7017 = vperm.xlu1 %9040, %v6726_v46   ;;  %vm6604_vm4 = vcmp.gt.f32.partialorder %v6476_v55, 0.0  ;;  %v6478_v55 = vld [vmem:[%s18291_s2 + $0x2c8] sm:$0xff] }
 0x1ae   :  { %18554 = vst [vmem:[#allocation83_spill] sm:$0xff] %v11940_v61  ;;  %v11970_v61 = vpack.c.bf16 %v72_v21, %v71_v9  ;;  %v10410_v9 = vld [vmem:[%s18288_s0 + $0x168] sm:$0xff]   ;;  %v10411_v21 = vld [vmem:[%s18288_s0 + $0x170] sm:$0xff]   ;;  %vm6606_vm6 = vcmp.gt.f32.partialorder %v6478_v55, 0.0 }
 0x1af   :  { %8349 = vmatmul.mubr.msk.bf16.gmra.mrb[212].mxu1 %vm704_vm0, %v10408_v57  ;;  %7767 = vmatmul.mubr.msk.bf16.gmra.mrb[84].mxu0 %vm2155_vm1, %v11927_v31  ;;  %v6471_v57 = vld [vmem:[%s18291_s2 + $0x290] sm:$0xff]  ;;  %v6728_v31 = vsel %vm6600_vm14, 1, %v18317_v1 }
 0x1b0   :  { %8352 = vmatprep.mubr.msk.bf16.mxu1 %vm704_vm0, %v10409_v19  ;;  %2600 = vmatprep.mubr.bf16.mxu0 %v18317_v1  ;;  %vm6599_vm15 = vcmp.gt.f32.partialorder %v6471_v57, 0.0  ;;  %18556 = vst [vmem:[#allocation85_spill] sm:$0xff] %v11970_v61  ;;  %v73_v57 = vld [vmem:[%s18290_s1 + $0x170] sm:$0xff] }
 0x1b1   :  { %7014 = vperm.xlu0 %9039, %v6725_v34   ;;  %v6727_v59 = vsel %vm6599_vm15, 1, %v18317_v1  ;;  %7023 = vperm.xlu1 %9040, %v6728_v31   ;;  %v6474_v34 = vld [vmem:[%s18291_s2 + $0x2a8] sm:$0xff]  ;;  %v6729_v31 = vsel %vm6601_vm3, 1, %v18317_v1 }
 0x1b2   :  { %v11967_v19 = vpop.f32.mrb[108].mxu1  ;;  %vm6602_vm2 = vcmp.gt.f32.partialorder %v6474_v34, 0.0  ;;  %v74_v34 = vld [vmem:[%s18290_s1 + $0x178] sm:$0xff] }
 0x1b3   :  { %18555 = vst [vmem:[#allocation84_spill] sm:$0xff] %v11967_v19  ;;  %v11972_v51 = vpop.f32.mrb[109].mxu1 }
 0x1b4   :  { %18557 = vst [vmem:[#allocation86_spill] sm:$0xff] %v11972_v51  ;;  %v11975_v43 = vpop.f32.mrb[110].mxu1 }
 0x1b5   :  { %18558 = vst [vmem:[#allocation87_spill] sm:$0xff] %v11975_v43  ;;  %v11977_v46 = vpop.f32.mrb[111].mxu1  ;;  %7020 = vperm.xlu0 %9039, %v6727_v59   ;;  %v6730_v59 = vsel %vm6602_vm2, 1, %v18317_v1 }
 0x1b6   :  { %18559 = vst [vmem:[#allocation88_spill] sm:$0xff] %v11977_v46  ;;  %7029 = vperm.xlu1 %9040, %v6730_v59   ;;  %v18563_v46 = vmov 0  }
 0x1b7   :  { %8353 = vmatmul.mubr.msk.bf16.gmra.mrb[216].mxu1 %vm704_vm0, %v10410_v9  ;;  %7768 = vmatmul.mubr.msk.bf16.gmra.mrb[88].mxu0 %vm2155_vm1, %v11970_v61  ;;  %v6732_v43 = vsel %vm6604_vm4, 1, %v18563_v46 }
 0x1b8   :  { %8356 = vmatprep.mubr.msk.bf16.mxu1 %vm704_vm0, %v10411_v21  ;;  %2610 = vmatprep.mubr.bf16.mxu0 %v18317_v1  ;;  %v6475_v21 = vld [vmem:[%s18291_s2 + $0x2b0] sm:$0xff]  ;;  %v12012_v1 = vpack.c.bf16 %v74_v34, %v73_v57  ;;  %v6477_v57 = vld [vmem:[%s18291_s2 + $0x2c0] sm:$0xff]  ;;  %v10412_v34 = vld [vmem:[%s18288_s0 + $0x178] sm:$0xff]  }
 0x1b9   :  { %7026 = vperm.xlu0 %9039, %v6729_v31   ;;  %vm6603_vm5 = vcmp.gt.f32.partialorder %v6475_v21, 0.0  ;;  %vm6605_vm7 = vcmp.gt.f32.partialorder %v6477_v57, 0.0  ;;  %v75_v21 = vld [vmem:[%s18290_s1 + $0x180] sm:$0xff]  ;;  %v6480_v57 = vld [vmem:[%s18291_s2 + $0x2d8] sm:$0xff] }
 0x1ba   :  { %v12007_v9 = vpop.f32.mrb[112].mxu1  ;;  %18561 = vst [vmem:[#allocation90_spill] sm:$0xff] %v12012_v1  ;;  %v6731_v31 = vsel %vm6603_vm5, 1, %v18563_v46  ;;  %7035 = vperm.xlu1 %9040, %v6732_v43   ;;  %v10413_v43 = vld [vmem:[%s18288_s0 + $0x180] sm:$0xff]   ;;  %v6733_v55 = vsel %vm6605_vm7, 1, %v18563_v46  ;;  %vm6608_vm8 = vcmp.gt.f32.partialorder %v6480_v57, 0.0 }
 0x1bb   :  { %18560 = vst [vmem:[#allocation89_spill] sm:$0xff] %v12007_v9  ;;  %v12014_v61 = vpop.f32.mrb[113].mxu1  ;;  %v6736_v9 = vsel %vm6608_vm8, 1, %v18563_v46  ;;  %v6482_v57 = vld [vmem:[%s18291_s2 + $0x2e8] sm:$0xff] }
 0x1bc   :  { %18562 = vst [vmem:[#allocation91_spill] sm:$0xff] %v12014_v61  ;;  %v12017_v59 = vpop.f32.mrb[114].mxu1  ;;  %vm6610_vm10 = vcmp.gt.f32.partialorder %v6482_v57, 0.0 }
 0x1bd   :  { %18564 = vst [vmem:[#allocation92_spill] sm:$0xff] %v12017_v59  ;;  %v12020_v51 = vpop.f32.mrb[115].mxu1  ;;  %7032 = vperm.xlu0 %9039, %v6731_v31   ;;  %v76_v31 = vld [vmem:[%s18290_s1 + $0x188] sm:$0xff] }
 0x1be   :  { %18565 = vst [vmem:[#allocation93_spill] sm:$0xff] %v12020_v51  ;;  %v6479_v51 = vld [vmem:[%s18291_s2 + $0x2d0] sm:$0xff]  ;;  %v12055_v59 = vpack.c.bf16 %v76_v31, %v75_v21  ;;  %v6481_v21 = vld [vmem:[%s18291_s2 + $0x2e0] sm:$0xff] }
 0x1bf   :  { %8357 = vmatmul.mubr.msk.bf16.gmra.mrb[220].mxu1 %vm704_vm0, %v10412_v34  ;;  %7769 = vmatmul.mubr.msk.bf16.gmra.mrb[92].mxu0 %vm2155_vm1, %v12012_v1  ;;  %v6734_v34 = vsel %vm6606_vm6, 1, %v18563_v46  ;;  %vm6607_vm9 = vcmp.gt.f32.partialorder %v6479_v51, 0.0  ;;  %v10414_v51 = vld [vmem:[%s18288_s0 + $0x188] sm:$0xff]   ;;  %vm6609_vm11 = vcmp.gt.f32.partialorder %v6481_v21, 0.0  ;;  %v6484_v21 = vld [vmem:[%s18291_s2 + $0x2f8] sm:$0xff] }
 0x1c0   :  { %8360 = vmatprep.mubr.msk.bf16.mxu1 %vm704_vm0, %v10413_v43  ;;  %2620 = vmatprep.mubr.bf16.mxu0 %v18563_v46  ;;  %v353_v43 = vlaneseq  ;;  %18567 = vst [vmem:[#allocation95_spill] sm:$0xff] %v12055_v59  ;;  %v6737_v57 = vsel %vm6609_vm11, 1, %v18563_v46  ;;  %vm6612_vm12 = vcmp.gt.f32.partialorder %v6484_v21, 0.0 }
 0x1c1   :  { %7041 = vperm.xlu1 %9040, %v6734_v34   ;;  %7038 = vperm.xlu0 %9039, %v6733_v55   ;;  %v6735_v55 = vsel %vm6607_vm9, 1, %v18563_v46 }
 0x1c2   :  { %v12050_v1 = vpop.f32.mrb[116].mxu1  ;;  %v12071_v31 = vshrl.u32 %v353_v43, 7  ;;  %v10415_v43 = vld [vmem:[%s18288_s0 + $0x190] sm:$0xff]  }
 0x1c3   :  { %18566 = vst [vmem:[#allocation94_spill] sm:$0xff] %v12050_v1  ;;  %v12057_v61 = vpop.f32.mrb[117].mxu1  ;;  %v6740_v1 = vsel %vm6612_vm12, 1, %v18563_v46 }
 0x1c4   :  { %18568 = vst [vmem:[#allocation96_spill] sm:$0xff] %v12057_v61  ;;  %v12060_v34 = vpop.f32.mrb[118].mxu1  ;;  %v12073_v61 = vpop.permute.xlu1 %6780 }
 0x1c5   :  { %18569 = vst [vmem:[#allocation97_spill] sm:$0xff] %v12060_v34  ;;  %v12063_v19 = vpop.f32.mrb[119].mxu1  ;;  %7047 = vperm.xlu1 %9040, %v6736_v9   ;;  %7044 = vperm.xlu0 %9039, %v6735_v55   ;;  %18571 = vst [vmem:[#allocation99_spill] sm:$0xff] %v12073_v61  ;;  %v12081_v9 = vpop.permute.xlu0 %6774  ;;  %v77_v55 = vld [vmem:[%s18290_s1 + $0x190] sm:$0xff]  ;;  %v359_v61 = vsub.s32 1, %v12071_v31 }
 0x1c6   :  { %18570 = vst [vmem:[#allocation98_spill] sm:$0xff] %v12063_v19  ;;  %18572 = vst [vmem:[#allocation100_spill] sm:$0xff] %v12081_v9  ;;  %v6738_v9 = vsel %vm6610_vm10, 1, %v18563_v46  ;;  %v6483_v19 = vld [vmem:[%s18291_s2 + $0x2f0] sm:$0xff] }
 0x1c7   :  { %8361 = vmatmul.mubr.msk.bf16.gmra.mrb[224].mxu1 %vm704_vm0, %v10414_v51  ;;  %7770 = vmatmul.mubr.msk.bf16.gmra.mrb[96].mxu0 %vm2155_vm1, %v12055_v59  ;;  %v78_v51 = vld [vmem:[%s18290_s1 + $0x198] sm:$0xff]  ;;  %vm6611_vm13 = vcmp.gt.f32.partialorder %v6483_v19, 0.0  ;;  %v6485_v19 = vld [vmem:[%s18291_s2 + $0x300] sm:$0xff] }
 0x1c8   :  { %8364 = vmatprep.mubr.msk.bf16.mxu1 %vm704_vm0, %v10415_v43  ;;  %2630 = vmatprep.mubr.bf16.mxu0 %v18563_v46  ;;  %v355_v43 = vsub.s32 0, %v12071_v31  ;;  %v6739_v21 = vsel %vm6611_vm13, 1, %v18563_v46  ;;  %vm6613_vm15 = vcmp.gt.f32.partialorder %v6485_v19, 0.0 }
 0x1c9   :  { %7053 = vperm.xlu1 %9040, %v6738_v9   ;;  %7050 = vperm.xlu0 %9039, %v6737_v57   ;;  %v12109_v9 = vld [vmem:[%s18292_s5] sm:$0x7]  ;;  %v12111_v57 = vpack.c.bf16 %v78_v51, %v77_v55  ;;  %v12123_v38 = vpop.permute.xlu0 %6777  ;;  %v6486_v55 = vld [vmem:[%s18291_s2 + $0x308] sm:$0xff] }
 0x1ca   :  { %v12101_v59 = vpop.f32.mrb[120].mxu1  ;;  %18577 = vst [vmem:[#allocation105_spill] sm:$0xff] %v12123_v38  ;;  %v12132_v51 = vrot.slane %v12109_v9, %v355_v43  ;;  %v10416_v38 = vld [vmem:[%s18288_s0 + $0x198] sm:$0xff]   ;;  %vm6614_vm14 = vcmp.gt.f32.partialorder %v6486_v55, 0.0 }
 0x1cb   :  { %18573 = vst [vmem:[#allocation101_spill] sm:$0xff] %v12101_v59  ;;  %18574 = vst [vmem:[#allocation102_spill] sm:$0xff] %v12111_v57  ;;  %v12113_v34 = vpop.f32.mrb[121].mxu1  ;;  %v12118_v59 = vpop.permute.xlu1 %6783  ;;  %v6742_v43 = vsel %vm6614_vm14, 1, %v18563_v46 }
 0x1cc   :  { %v12116_v0 = vpop.f32.mrb[122].mxu1  ;;  %18575 = vst [vmem:[#allocation103_spill] sm:$0xff] %v12118_v59  ;;  %v12135_v59 = vrot.slane %v12109_v9, %v359_v61  ;;  %v79_v61 = vld [vmem:[%s18290_s1 + $0x1a0] sm:$0xff]  ;;  %v12158_v55 = vadd.f32 %v10985_v63, %v12132_v51 }
 0x1cd   :  { %v12121_v42 = vpop.f32.mrb[123].mxu1  ;;  %7059 = vperm.xlu1 %9040, %v6740_v1   ;;  %7056 = vperm.xlu0 %9039, %v6739_v21   ;;  %v10417_v1 = vld [vmem:[%s18288_s0 + $0x1a0] sm:$0xff]   ;;  %v6741_v21 = vsel %vm6613_vm15, 1, %v18563_v46 }
 0x1ce   :  { %18576 = vst [vmem:[#allocation104_spill] sm:$0xff] %v12121_v42  ;;  %18578 = vst [vmem:[#allocation106_spill] sm:$0xff] %v12158_v55  ;;  %v12162_v19 = vadd.f32 %v10995_v4, %v12135_v59  ;;  %v12177_v63 = vadd.f32 %v10999_v6, %v12135_v59  ;;  %v12181_v4 = vadd.f32 %v11006_v8, %v12132_v51 }
 0x1cf   :  { %8365 = vmatmul.mubr.msk.bf16.gmra.mrb[228].mxu1 %vm704_vm0, %v10416_v38  ;;  %7771 = vmatmul.mubr.msk.bf16.gmra.mrb[100].mxu0 %vm2155_vm1, %v12111_v57  ;;  %v80_v38 = vld [vmem:[%s18290_s1 + $0x1a8] sm:$0xff]  ;;  %v12170_v42 = vpop.permute.xlu1 %6789  ;;  %v12198_v6 = vadd.f32 %v11018_v15, %v12132_v51 }
 0x1d0   :  { %8368 = vmatprep.mubr.msk.bf16.mxu1 %vm704_vm0, %v10417_v1  ;;  %2640 = vmatprep.mubr.bf16.mxu0 %v18563_v46  ;;  %18579 = vst [vmem:[#allocation107_spill] sm:$0xff] %v12162_v19  ;;  %v12166_v1 = vadd.f32 %v10997_v5, %v12132_v51  ;;  %18581 = vst [vmem:[#allocation109_spill] sm:$0xff] %v12170_v42  ;;  %v6487_v42 = vld [vmem:[%s18291_s2 + $0x310] sm:$0xff]  ;;  %v12194_v19 = vadd.f32 %v11016_v13, %v12135_v59 }
 0x1d1   :  { %7065 = vperm.xlu1 %9040, %v6742_v43   ;;  %7062 = vperm.xlu0 %9039, %v6741_v21   ;;  %v6488_v43 = vld [vmem:[%s18291_s2 + $0x318] sm:$0xff]  ;;  %18582 = vst [vmem:[#allocation110_spill] sm:$0xff] %v12177_v63  ;;  %18583 = vst [vmem:[#allocation111_spill] sm:$0xff] %v12181_v4  ;;  %v12183_v21 = vpack.c.bf16 %v80_v38, %v79_v61  ;;  %vm6615_vm3 = vcmp.gt.f32.partialorder %v6487_v42, 0.0  ;;  %v12205_v38 = vadd.f32 %v11020_v16, %v12135_v59 }
 0x1d2   :  { %18580 = vst [vmem:[#allocation108_spill] sm:$0xff] %v12166_v1  ;;  %v12168_v57 = vpop.f32.mrb[124].mxu1  ;;  %v12187_v1 = vpop.permute.xlu0 %6786  ;;  %vm6616_vm2 = vcmp.gt.f32.partialorder %v6488_v43, 0.0  ;;  %18586 = vst [vmem:[#allocation114_spill] sm:$0xff] %v12194_v19  ;;  %v12209_v43 = vadd.f32 %v11027_v17, %v12132_v51  ;;  %v12213_v13 = vadd.f32 %v11037_v23, %v12135_v59  ;;  %v6743_v15 = vsel %vm6615_vm3, 1, %v18563_v46 }
 0x1d3   :  { %18584 = vst [vmem:[#allocation112_spill] sm:$0xff] %v12183_v21  ;;  %v12185_v5 = vpop.f32.mrb[125].mxu1  ;;  %18585 = vst [vmem:[#allocation113_spill] sm:$0xff] %v12187_v1  ;;  %v6744_v61 = vsel %vm6616_vm2, 1, %v18563_v46  ;;  %v12220_v42 = vadd.f32 %v11039_v25, %v12132_v51  ;;  %v12224_v16 = vadd.f32 %v11041_v27, %v12135_v59  ;;  %v12228_v17 = vadd.f32 %v11048_v29, %v12132_v51  ;;  %v6489_v25 = vld [vmem:[%s18291_s2 + $0x320] sm:$0xff] }
 0x1d4   :  { %18587 = vst [vmem:[#allocation115_spill] sm:$0xff] %v12198_v6  ;;  %v12200_v8 = vpop.f32.mrb[126].mxu1  ;;  %18588 = vst [vmem:[#allocation116_spill] sm:$0xff] %v12205_v38  ;;  %v12232_v23 = vadd.f32 %v11058_v35, %v12135_v59  ;;  %v12242_v27 = vadd.f32 %v11060_v37, %v12132_v51  ;;  %v12246_v29 = vadd.f32 %v11062_v39, %v12135_v59  ;;  %vm6617_vm5 = vcmp.gt.f32.partialorder %v6489_v25, 0.0  ;;  %v18606_v25 = vld [vmem:[#allocation3_spill] sm:$0xff] }
 0x1d5   :  { %18589 = vst [vmem:[#allocation117_spill] sm:$0xff] %v12209_v43  ;;  %18590 = vst [vmem:[#allocation118_spill] sm:$0xff] %v12213_v13  ;;  %v12215_v1 = vpop.f32.mrb[127].mxu1  ;;  %7071 = vperm.xlu1 %9040, %v6744_v61   ;;  %7068 = vperm.xlu0 %9039, %v6743_v15   ;;  %v6490_v61 = vld [vmem:[%s18291_s2 + $0x328] sm:$0xff]  ;;  %v12250_v35 = vadd.f32 %v11069_v41, %v12132_v51  ;;  %v12260_v37 = vadd.f32 %v11079_v47, %v12135_v59  ;;  %v10419_v41 = vld [vmem:[%s18288_s0 + $0x1b0] sm:$0xff]  }
 0x1d6   :  { %18591 = vst [vmem:[#allocation119_spill] sm:$0xff] %v12220_v42  ;;  %18592 = vst [vmem:[#allocation120_spill] sm:$0xff] %v12224_v16  ;;  %v10418_v15 = vld [vmem:[%s18288_s0 + $0x1a8] sm:$0xff]   ;;  %v12264_v39 = vadd.f32 %v11081_v50, %v12132_v51  ;;  %v82_v47 = vld [vmem:[%s18290_s1 + $0x1b8] sm:$0xff]  ;;  %vm6618_vm4 = vcmp.gt.f32.partialorder %v6490_v61, 0.0  ;;  %v12279_v50 = vadd.f32 %v11083_v52, %v12135_v59  ;;  %v12293_v61 = vadd.f32 %v11101_v62, %v12135_v59 }
 0x1d7   :  { %18593 = vst [vmem:[#allocation121_spill] sm:$0xff] %v12228_v17  ;;  %18594 = vst [vmem:[#allocation122_spill] sm:$0xff] %v12232_v23  ;;  %8369 = vmatmul.mubr.msk.bf16.gmra.mrb[232].mxu1 %vm704_vm0, %v10418_v15  ;;  %7772 = vmatmul.mubr.msk.bf16.gmra.mrb[104].mxu0 %vm2155_vm1, %v12183_v21  ;;  %v81_v15 = vld [vmem:[%s18290_s1 + $0x1b0] sm:$0xff]  ;;  %v12297_v52 = vadd.f32 %v11103_v2, %v12132_v51  ;;  %v12342_v13 = vadd.f32 %v11166_v33, %v12132_v51  ;;  %v18621_v33 = vld [vmem:[#allocation11_spill] sm:$0xff] }
 0x1d8   :  { %18595 = vst [vmem:[#allocation123_spill] sm:$0xff] %v12242_v27  ;;  %18596 = vst [vmem:[#allocation124_spill] sm:$0xff] %v12246_v29  ;;  %8372 = vmatprep.mubr.msk.bf16.mxu1 %vm704_vm0, %v10419_v41  ;;  %2650 = vmatprep.mubr.bf16.mxu0 %v18563_v46  ;;  %v12285_v41 = vpop.permute.xlu1 %6795  ;;  %v6745_v29 = vsel %vm6617_vm5, 1, %v18563_v46  ;;  %v6492_v27 = vld [vmem:[%s18291_s2 + $0x338] sm:$0xff]  ;;  %v18608_v62 = vld [vmem:[#allocation4_spill] sm:$0xff]  ;;  %v12313_v23 = vpack.c.bf16 %v82_v47, %v81_v15 }
 0x1d9   :  { %18597 = vst [vmem:[#allocation125_spill] sm:$0xff] %v12250_v35  ;;  %18598 = vst [vmem:[#allocation126_spill] sm:$0xff] %v12260_v37  ;;  %v12287_v37 = vpop.permute.xlu0 %6792  ;;  %v6746_v35 = vsel %vm6618_vm4, 1, %v18563_v46  ;;  %7074 = vperm.xlu0 %9039, %v6745_v29   ;;  %vm6620_vm6 = vcmp.gt.f32.partialorder %v6492_v27, 0.0  ;;  %v6491_v29 = vld [vmem:[%s18291_s2 + $0x330] sm:$0xff]  ;;  %v18613_v15 = vld [vmem:[#allocation7_spill] sm:$0xff] }
 0x1da   :  { %18599 = vst [vmem:[#allocation127_spill] sm:$0xff] %v12264_v39  ;;  %18600 = vst [vmem:[#allocation128_spill] sm:$0xff] %v12279_v50  ;;  %v12283_v39 = vadd.f32 %v11097_v58, %v12132_v51  ;;  %v12301_v58 = vadd.f32 %v18606_v25, %v12135_v59  ;;  %v12303_v50 = vpop.f32.mrb[128].mxu1  ;;  %7077 = vperm.xlu1 %9040, %v6746_v35   ;;  %v18611_v35 = vld [vmem:[#allocation6_spill] sm:$0xff]  ;;  %vm6619_vm7 = vcmp.gt.f32.partialorder %v6491_v29, 0.0 }
 0x1db   :  { %18602 = vst [vmem:[#allocation130_spill] sm:$0xff] %v12285_v41  ;;  %18603 = vst [vmem:[#allocation131_spill] sm:$0xff] %v12287_v37  ;;  %v12315_v25 = vpop.f32.mrb[129].mxu1  ;;  %v12330_v47 = vadd.f32 %v18613_v15, %v12132_v51  ;;  %v12346_v29 = vadd.f32 %v11172_v3, %v12135_v59  ;;  %v18619_v15 = vld [vmem:[#allocation10_spill] sm:$0xff] }
 0x1dc   :  { %18601 = vst [vmem:[#allocation129_spill] sm:$0xff] %v12283_v39  ;;  %18604 = vst [vmem:[#allocation132_spill] sm:$0xff] %v12293_v61  ;;  %v2382_v39 = vpop.f32.mrb[0].mxu0  ;;  %v12310_v61 = vadd.f32 %v18608_v62, %v12132_v51 }
 0x1dd   :  { %18605 = vst [vmem:[#allocation133_spill] sm:$0xff] %v12297_v52  ;;  %18607 = vst [vmem:[#allocation3_spill] sm:$0xff] %v12301_v58  ;;  %v8526_v2 = vadd.f32 %v2382_v39, %v12132_v51  ;;  %v2384_v52 = vpop.f32.mrb[1].mxu0  ;;  %v12322_v58 = vadd.f32 %v18611_v35, %v12135_v59  ;;  %v6748_v39 = vsel %vm6620_vm6, 1, %v18563_v46  ;;  %v6747_v35 = vsel %vm6619_vm7, 1, %v18563_v46 }
 0x1de   :  { %18609 = vst [vmem:[#allocation4_spill] sm:$0xff] %v12310_v61  ;;  %18610 = vst [vmem:[#allocation134_spill] sm:$0xff] %v12313_v23  ;;  %v8527_v17 = vadd.f32 %v2384_v52, %v12135_v59  ;;  %v2386_v62 = vpop.f32.mrb[2].mxu0  ;;  %v12325_v61 = vpop.f32.mrb[130].mxu1  ;;  %v18615_v52 = vld [vmem:[#allocation8_spill] sm:$0xff]  ;;  %7083 = vperm.xlu1 %9040, %v6748_v39   ;;  %7080 = vperm.xlu0 %9039, %v6747_v35   ;;  %v10420_v35 = vld [vmem:[%s18288_s0 + $0x1b8] sm:$0xff]  }
 0x1df   :  { %18612 = vst [vmem:[#allocation6_spill] sm:$0xff] %v12322_v58  ;;  %18614 = vst [vmem:[#allocation7_spill] sm:$0xff] %v12330_v47  ;;  %v7875_v27 = vmul.f32 -1.442695, %v8526_v2  ;;  %v8528_v16 = vadd.f32 %v2386_v62, %v12132_v51  ;;  %v2388_v41 = vpop.f32.mrb[3].mxu0  ;;  %v12333_v42 = vpop.f32.mrb[131].mxu1  ;;  %v12338_v58 = vadd.f32 %v18615_v52, %v12135_v59  ;;  %v12356_v52 = vadd.f32 %v18619_v15, %v12132_v51 }
 0x1e0   :  { %18617 = vst [vmem:[#allocation135_spill] sm:$0xff] %v12342_v13  ;;  %18618 = vst [vmem:[#allocation136_spill] sm:$0xff] %v12346_v29  ;;  %v6494_v2 = vld [vmem:[%s18291_s2 + $0x348] sm:$0xff]  ;;  %v6493_v62 = vld [vmem:[%s18291_s2 + $0x340] sm:$0xff]  ;;  %v12360_v13 = vadd.f32 %v18621_v33, %v12135_v59  ;;  %v8003_v3 = vmul.f32 -1.442695, %v8527_v17  ;;  %v8529_v39 = vadd.f32 %v2388_v41, %v12135_v59  ;;  %8373 = vmatmul.mubr.msk.bf16.gmra.mrb[236].mxu1 %vm704_vm0, %v10420_v35  ;;  %7773 = vmatmul.mubr.msk.bf16.gmra.mrb[108].mxu0 %vm2155_vm1, %v12313_v23 }
 0x1e1   :  { %18616 = vst [vmem:[#allocation8_spill] sm:$0xff] %v12338_v58  ;;  %18620 = vst [vmem:[#allocation10_spill] sm:$0xff] %v12356_v52  ;;  %v12371_v15 = vadd.f32 %v11205_v48, %v12132_v51  ;;  %v12375_v33 = vadd.f32 %v11211_v7, %v12135_v59  ;;  %v18625_v17 = vld [vmem:[#allocation13_spill] sm:$0xff]  ;;  %2660 = vmatprep.mubr.bf16.mxu0 %v18563_v46  ;;  %v83_v48 = vld [vmem:[%s18290_s1 + $0x1c0] sm:$0xff]  ;;  %9117 = vpow2.f32 %v7875_v27  ;;  %v7876_v35 = vmul.f32 -1.442695, %v8528_v16 }
 0x1e2   :  { %18622 = vst [vmem:[#allocation11_spill] sm:$0xff] %v12360_v13  ;;  %v12379_v41 = vadd.f32 %v18625_v17, %v12132_v51  ;;  %v10421_v13 = vld [vmem:[%s18288_s0 + $0x1c0] sm:$0xff]   ;;  %v84_v7 = vld [vmem:[%s18290_s1 + $0x1c8] sm:$0xff]  ;;  %v12392_v17 = vpop.permute.xlu1 %6801  ;;  %vm6622_vm8 = vcmp.gt.f32.partialorder %v6494_v2, 0.0  ;;  %vm6621_vm9 = vcmp.gt.f32.partialorder %v6493_v62, 0.0  ;;  %v2392_v52 = vpop.f32.mrb[4].mxu0  ;;  %9119 = vpow2.f32 %v8003_v3 }
 0x1e3   :  { %18623 = vst [vmem:[#allocation137_spill] sm:$0xff] %v12371_v15  ;;  %18624 = vst [vmem:[#allocation138_spill] sm:$0xff] %v12375_v33  ;;  %8376 = vmatprep.mubr.msk.bf16.mxu1 %vm704_vm0, %v10421_v13  ;;  %v18629_v13 = vld [vmem:[#allocation14_spill] sm:$0xff]  ;;  %v12402_v15 = vadd.f32 %v11247_v20, %v12132_v51  ;;  %v12404_v29 = vpop.f32.mrb[132].mxu1  ;;  %v6750_v27 = vsel %vm6622_vm8, 1, %v18563_v46  ;;  %v6749_v16 = vsel %vm6621_vm9, 1, %v18563_v46  ;;  %v8530_v2 = vadd.f32 %v2392_v52, %v12132_v51 }
 0x1e4   :  { %18626 = vst [vmem:[#allocation13_spill] sm:$0xff] %v12379_v41  ;;  %18627 = vst [vmem:[#allocation139_spill] sm:$0xff] %v12392_v17  ;;  %v12394_v41 = vpop.permute.xlu0 %6798  ;;  %v12398_v33 = vadd.f32 %v18629_v13, %v12135_v59  ;;  %v8004_v58 = vmul.f32 -1.442695, %v8529_v39  ;;  %v2394_v62 = vpop.f32.mrb[5].mxu0  ;;  %v12409_v47 = vpack.c.bf16 %v84_v7, %v83_v48  ;;  %7089 = vperm.xlu1 %9040, %v6750_v27   ;;  %7086 = vperm.xlu0 %9039, %v6749_v16   ;;  %v6496_v20 = vld [vmem:[%s18291_s2 + $0x358] sm:$0xff] }
 0x1e5   :  { %18628 = vst [vmem:[#allocation140_spill] sm:$0xff] %v12394_v41  ;;  %18631 = vst [vmem:[#allocation141_spill] sm:$0xff] %v12402_v15  ;;  %v12411_v13 = vpop.f32.mrb[133].mxu1  ;;  %v6495_v15 = vld [vmem:[%s18291_s2 + $0x350] sm:$0xff]  ;;  %v12421_v3 = vadd.f32 %v11253_v56, %v12135_v59  ;;  %v8531_v52 = vadd.f32 %v2394_v62, %v12135_v59  ;;  %v2396_v39 = vpop.f32.mrb[6].mxu0  ;;  %vm6624_vm10 = vcmp.gt.f32.partialorder %v6496_v20, 0.0  ;;  %9121 = vpow2.f32 %v7876_v35 }
 0x1e6   :  { %18630 = vst [vmem:[#allocation14_spill] sm:$0xff] %v12398_v33  ;;  %18632 = vst [vmem:[#allocation142_spill] sm:$0xff] %v12409_v47  ;;  %v12424_v48 = vpop.f32.mrb[134].mxu1  ;;  %vm6623_vm11 = vcmp.gt.f32.partialorder %v6495_v15, 0.0  ;;  %v18634_v7 = vld [vmem:[#allocation16_spill] sm:$0xff]  ;;  %v8532_v33 = vadd.f32 %v2396_v39, %v12132_v51  ;;  %v2398_v17 = vpop.f32.mrb[7].mxu0  ;;  %v12439_v62 = vadd.f32 %v11286_v24, %v12132_v51  ;;  %v12451_v39 = vadd.f32 %v11292_v11, %v12135_v59 }
 0x1e7   :  { %18633 = vst [vmem:[#allocation143_spill] sm:$0xff] %v12421_v3  ;;  %v12428_v27 = vadd.f32 %v18634_v7, %v12132_v51  ;;  %v7877_v16 = vmul.f32 -1.442695, %v8530_v2  ;;  %v12431_v41 = vpop.f32.mrb[135].mxu1  ;;  %v18636_v56 = vld [vmem:[#allocation17_spill] sm:$0xff]  ;;  %v6752_v15 = vsel %vm6624_vm10, 1, %v18563_v46  ;;  %9123 = vpow2.f32 %v8004_v58 }
 0x1e8   :  { %v12435_v3 = vadd.f32 %v18636_v56, %v12135_v59  ;;  %18638 = vst [vmem:[#allocation144_spill] sm:$0xff] %v12439_v62  ;;  %v6751_v20 = vsel %vm6623_vm11, 1, %v18563_v46  ;;  %v6498_v35 = vld [vmem:[%s18291_s2 + $0x368] sm:$0xff]  ;;  %v6497_v2 = vld [vmem:[%s18291_s2 + $0x360] sm:$0xff]  ;;  %18639 = vst [vmem:[#allocation145_spill] sm:$0xff] %v12451_v39  ;;  %v8533_v24 = vadd.f32 %v2398_v17, %v12135_v59  ;;  %7774 = vmatmul.mubr.msk.bf16.gmra.mrb[112].mxu0 %vm2155_vm1, %v12409_v47  ;;  %7095 = vperm.xlu1 %9040, %v6752_v15  }
 0x1e9   :  { %18635 = vst [vmem:[#allocation16_spill] sm:$0xff] %v12428_v27  ;;  %v8005_v7 = vmul.f32 -1.442695, %v8531_v52  ;;  %v10422_v56 = vld [vmem:[%s18288_s0 + $0x1c8] sm:$0xff]   ;;  %v18642_v11 = vld [vmem:[#allocation20_spill] sm:$0xff]  ;;  %v12470_v58 = vadd.f32 %v11325_v60, %v12132_v51  ;;  %2670 = vmatprep.mubr.bf16.mxu0 %v18563_v46  ;;  %9125 = vpow2.f32 %v7877_v16  ;;  %v12483_v60 = vpop.permute.xlu1 %6807  ;;  %7092 = vperm.xlu0 %9039, %v6751_v20   ;;  %vm6626_vm12 = vcmp.gt.f32.partialorder %v6498_v35, 0.0 }
 0x1ea   :  { %18637 = vst [vmem:[#allocation17_spill] sm:$0xff] %v12435_v3  ;;  %8377 = vmatmul.mubr.msk.bf16.gmra.mrb[240].mxu1 %vm704_vm0, %v10422_v56  ;;  %v18640_v62 = vld [vmem:[#allocation19_spill] sm:$0xff]  ;;  %v12466_v39 = vadd.f32 %v18642_v11, %v12135_v59  ;;  %v10423_v17 = vld [vmem:[%s18288_s0 + $0x1d0] sm:$0xff]   ;;  %v7878_v56 = vmul.f32 -1.442695, %v8532_v33  ;;  %18645 = vst [vmem:[#allocation147_spill] sm:$0xff] %v12483_v60  ;;  %v12485_v11 = vpop.permute.xlu0 %6804 }
 0x1eb   :  { %v12462_v3 = vadd.f32 %v18640_v62, %v12132_v51  ;;  %18644 = vst [vmem:[#allocation146_spill] sm:$0xff] %v12470_v58  ;;  %8380 = vmatprep.mubr.msk.bf16.mxu1 %vm704_vm0, %v10423_v17  ;;  %v85_v52 = vld [vmem:[%s18290_s1 + $0x1d0] sm:$0xff]  ;;  %v86_v62 = vld [vmem:[%s18290_s1 + $0x1d8] sm:$0xff]  ;;  %18646 = vst [vmem:[#allocation148_spill] sm:$0xff] %v12485_v11  ;;  %vm6625_vm13 = vcmp.gt.f32.partialorder %v6497_v2, 0.0  ;;  %v12489_v17 = vadd.f32 %v11331_v45, %v12135_v59  ;;  %v12495_v27 = vpop.f32.mrb[136].mxu1  ;;  %v9118_v60 = vpop.eup %9117  ;;  %9127 = vpow2.f32 %v8005_v7 }
 0x1ec   :  { %18643 = vst [vmem:[#allocation20_spill] sm:$0xff] %v12466_v39  ;;  %v18648_v58 = vld [vmem:[#allocation22_spill] sm:$0xff]  ;;  %v6754_v33 = vsel %vm6626_vm12, 1, %v18563_v46  ;;  %v6753_v16 = vsel %vm6625_vm13, 1, %v18563_v46  ;;  %v8006_v15 = vmul.f32 -1.442695, %v8533_v24  ;;  %v12500_v2 = vpack.c.bf16 %v86_v62, %v85_v52  ;;  %v9120_v52 = vpop.eup %9119 }
 0x1ed   :  { %18641 = vst [vmem:[#allocation19_spill] sm:$0xff] %v12462_v3  ;;  %18647 = vst [vmem:[#allocation149_spill] sm:$0xff] %v12489_v17  ;;  %v12493_v39 = vadd.f32 %v18648_v58, %v12132_v51  ;;  %v2402_v3 = vpop.f32.mrb[8].mxu0  ;;  %v12502_v45 = vpop.f32.mrb[137].mxu1  ;;  %v18651_v58 = vld [vmem:[#allocation23_spill] sm:$0xff]  ;;  %v12510_v17 = vadd.f32 %v11364_v28, %v12132_v51  ;;  %v12514_v11 = vadd.f32 %v11370_v12, %v12135_v59  ;;  %v18655_v62 = vld [vmem:[#allocation25_spill] sm:$0xff]  ;;  %9129 = vpow2.f32 %v7878_v56 }
 0x1ee   :  { %v8534_v20 = vadd.f32 %v2402_v3, %v12132_v51  ;;  %v2404_v35 = vpop.f32.mrb[9].mxu0  ;;  %18650 = vst [vmem:[#allocation150_spill] sm:$0xff] %v12500_v2  ;;  %v12517_v24 = vpop.f32.mrb[138].mxu1  ;;  %v12521_v37 = vadd.f32 %v18655_v62, %v12132_v51  ;;  %7101 = vperm.xlu1 %9040, %v6754_v33   ;;  %7098 = vperm.xlu0 %9039, %v6753_v16   ;;  %v18657_v12 = vld [vmem:[#allocation26_spill] sm:$0xff]  ;;  %v4213_v56 = vadd.f32 1.0, %v9118_v60  ;;  %v18661_v33 = vld [vmem:[#allocation28_spill] sm:$0xff]  ;;  %9131 = vpow2.f32 %v8006_v15 }
 0x1ef   :  { %18649 = vst [vmem:[#allocation22_spill] sm:$0xff] %v12493_v39  ;;  %v12506_v39 = vadd.f32 %v18651_v58, %v12135_v59  ;;  %18653 = vst [vmem:[#allocation151_spill] sm:$0xff] %v12510_v17  ;;  %v8535_v7 = vadd.f32 %v2404_v35, %v12135_v59  ;;  %v2406_v3 = vpop.f32.mrb[10].mxu0  ;;  %v12524_v17 = vpop.f32.mrb[139].mxu1  ;;  %v12528_v35 = vadd.f32 %v18657_v12, %v12135_v59 }
 0x1f0   :  { %18654 = vst [vmem:[#allocation152_spill] sm:$0xff] %v12514_v11  ;;  %18656 = vst [vmem:[#allocation25_spill] sm:$0xff] %v12521_v37  ;;  %v7879_v58 = vmul.f32 -1.442695, %v8534_v20  ;;  %v2408_v28 = vpop.f32.mrb[11].mxu0  ;;  %v12532_v11 = vadd.f32 %v11403_v32, %v12132_v51  ;;  %v12536_v62 = vadd.f32 %v11409_v18, %v12135_v59  ;;  %v6500_v20 = vld [vmem:[%s18291_s2 + $0x378] sm:$0xff]  ;;  %v12543_v16 = vadd.f32 %v18661_v33, %v12132_v51 }
 0x1f1   :  { %18652 = vst [vmem:[#allocation23_spill] sm:$0xff] %v12506_v39  ;;  %v8536_v39 = vadd.f32 %v2406_v3, %v12132_v51  ;;  %18658 = vst [vmem:[#allocation26_spill] sm:$0xff] %v12528_v35  ;;  %v9122_v3 = vpop.eup %9121  ;;  %v8007_v12 = vmul.f32 -1.442695, %v8535_v7  ;;  %v8537_v35 = vadd.f32 %v2408_v28, %v12135_v59  ;;  %v10424_v32 = vld [vmem:[%s18288_s0 + $0x1d8] sm:$0xff]   ;;  %7775 = vmatmul.mubr.msk.bf16.gmra.mrb[116].mxu0 %vm2155_vm1, %v12500_v2  ;;  %v5109_v7 = vadd.f32 1.0, %v9120_v52 }
 0x1f2   :  { %18659 = vst [vmem:[#allocation153_spill] sm:$0xff] %v12532_v11  ;;  %18660 = vst [vmem:[#allocation154_spill] sm:$0xff] %v12536_v62  ;;  %8381 = vmatmul.mubr.msk.bf16.gmra.mrb[244].mxu1 %vm704_vm0, %v10424_v32  ;;  %v18663_v18 = vld [vmem:[#allocation29_spill] sm:$0xff]  ;;  %v12558_v33 = vadd.f32 %v11442_v36, %v12132_v51  ;;  %v12562_v15 = vadd.f32 %v11448_v14, %v12135_v59  ;;  %v10425_v28 = vld [vmem:[%s18288_s0 + $0x1e0] sm:$0xff]   ;;  %2680 = vmatprep.mubr.bf16.mxu0 %v18563_v46  ;;  %9133 = vpow2.f32 %v7879_v58  ;;  %v2412_v11 = vpop.f32.mrb[12].mxu0  ;;  %v12588_v37 = vpop.f32.mrb[140].mxu1 }
 0x1f3   :  { %18662 = vst [vmem:[#allocation28_spill] sm:$0xff] %v12543_v16  ;;  %v12554_v60 = vadd.f32 %v18663_v18, %v12135_v59  ;;  %8384 = vmatprep.mubr.msk.bf16.mxu1 %vm704_vm0, %v10425_v28  ;;  %v87_v32 = vld [vmem:[%s18290_s1 + $0x1e0] sm:$0xff]  ;;  %v88_v36 = vld [vmem:[%s18290_s1 + $0x1e8] sm:$0xff]  ;;  %v9124_v18 = vpop.eup %9123  ;;  %vm6628_vm14 = vcmp.gt.f32.partialorder %v6500_v20, 0.0  ;;  %v6499_v28 = vld [vmem:[%s18291_s2 + $0x370] sm:$0xff]  ;;  %9135 = vrcp.f32 %v4213_v56  ;;  %v4214_v62 = vadd.f32 1.0, %v9122_v3 }
 0x1f4   :  { %18665 = vst [vmem:[#allocation155_spill] sm:$0xff] %v12558_v33  ;;  %18666 = vst [vmem:[#allocation156_spill] sm:$0xff] %v12562_v15  ;;  %v18667_v14 = vld [vmem:[#allocation31_spill] sm:$0xff]  ;;  %v7880_v15 = vmul.f32 -1.442695, %v8536_v39  ;;  %v12579_v33 = vpop.permute.xlu1 %6813  ;;  %v9126_v58 = vpop.eup %9125  ;;  %9137 = vpow2.f32 %v8007_v12  ;;  %v8538_v20 = vadd.f32 %v2412_v11, %v12132_v51  ;;  %vm6627_vm15 = vcmp.gt.f32.partialorder %v6499_v28, 0.0 }
 0x1f5   :  { %18664 = vst [vmem:[#allocation29_spill] sm:$0xff] %v12554_v60  ;;  %v12577_v52 = vadd.f32 %v18667_v14, %v12132_v51  ;;  %18669 = vst [vmem:[#allocation157_spill] sm:$0xff] %v12579_v33  ;;  %v18670_v60 = vld [vmem:[#allocation32_spill] sm:$0xff]  ;;  %v6756_v14 = vsel %vm6628_vm14, 1, %v18563_v46  ;;  %v8008_v39 = vmul.f32 -1.442695, %v8537_v35  ;;  %v12592_v33 = vpack.c.bf16 %v88_v36, %v87_v32  ;;  %v9128_v38 = vpop.eup %9127 }
 0x1f6   :  { %v12586_v16 = vadd.f32 %v18670_v60, %v12135_v59  ;;  %v12594_v43 = vpop.f32.mrb[141].mxu1  ;;  %7107 = vperm.xlu1 %9040, %v6756_v14   ;;  %9139 = vrcp.f32 %v5109_v7  ;;  %v5110_v60 = vadd.f32 1.0, %v9124_v18  ;;  %v12601_v35 = vadd.f32 %v11481_v40, %v12132_v51  ;;  %v18675_v18 = vld [vmem:[#allocation34_spill] sm:$0xff]  ;;  %v89_v28 = vld [vmem:[%s18290_s1 + $0x1f0] sm:$0xff] }
 0x1f7   :  { %18668 = vst [vmem:[#allocation31_spill] sm:$0xff] %v12577_v52  ;;  %v2414_v52 = vpop.f32.mrb[13].mxu0  ;;  %18672 = vst [vmem:[#allocation158_spill] sm:$0xff] %v12592_v33  ;;  %9141 = vpow2.f32 %v7880_v15  ;;  %v7881_v11 = vmul.f32 -1.442695, %v8538_v20  ;;  %v12608_v7 = vadd.f32 %v11487_v10, %v12135_v59  ;;  %v4215_v14 = vadd.f32 1.0, %v9126_v58  ;;  %v9130_v6 = vpop.eup %9129 }
 0x1f8   :  { %18671 = vst [vmem:[#allocation32_spill] sm:$0xff] %v12586_v16  ;;  %v8539_v56 = vadd.f32 %v2414_v52, %v12135_v59  ;;  %v2416_v3 = vpop.f32.mrb[14].mxu0  ;;  %v12597_v16 = vpop.f32.mrb[142].mxu1  ;;  %18673 = vst [vmem:[#allocation159_spill] sm:$0xff] %v12601_v35  ;;  %v12612_v52 = vadd.f32 %v18675_v18, %v12132_v51  ;;  %9143 = vrcp.f32 %v4214_v62  ;;  %v10426_v20 = vld [vmem:[%s18288_s0 + $0x1e8] sm:$0xff]   ;;  %v6755_v10 = vsel %vm6627_vm15, 1, %v18563_v46 }
 0x1f9   :  { %v8540_v12 = vadd.f32 %v2416_v3, %v12132_v51  ;;  %v2418_v32 = vpop.f32.mrb[15].mxu0  ;;  %v12604_v36 = vpop.f32.mrb[143].mxu1  ;;  %18674 = vst [vmem:[#allocation160_spill] sm:$0xff] %v12608_v7  ;;  %9145 = vpow2.f32 %v8008_v39  ;;  %7776 = vmatmul.mubr.msk.bf16.gmra.mrb[120].mxu0 %vm2155_vm1, %v12592_v33  ;;  %v18677_v62 = vld [vmem:[#allocation35_spill] sm:$0xff]  ;;  %v12629_v39 = vadd.f32 %v11520_v44, %v12132_v51  ;;  %v10427_v3 = vld [vmem:[%s18288_s0 + $0x1f0] sm:$0xff]  }
 0x1fa   :  { %18676 = vst [vmem:[#allocation34_spill] sm:$0xff] %v12612_v52  ;;  %v8009_v40 = vmul.f32 -1.442695, %v8539_v56  ;;  %v8541_v15 = vadd.f32 %v2418_v32, %v12135_v59  ;;  %8385 = vmatmul.mubr.msk.bf16.gmra.mrb[248].mxu1 %vm704_vm0, %v10426_v20  ;;  %v12625_v58 = vadd.f32 %v18677_v62, %v12135_v59  ;;  %9147 = vrcp.f32 %v5110_v60  ;;  %2690 = vmatprep.mubr.bf16.mxu0 %v18563_v46  ;;  %v90_v32 = vld [vmem:[%s18290_s1 + $0x1f8] sm:$0xff]  ;;  %v9132_v44 = vpop.eup %9131  ;;  %v12650_v62 = vpop.permute.xlu0 %6810 }
 0x1fb   :  { %18679 = vst [vmem:[#allocation161_spill] sm:$0xff] %v12629_v39  ;;  %v5111_v56 = vadd.f32 1.0, %v9128_v38  ;;  %8388 = vmatprep.mubr.msk.bf16.mxu1 %vm704_vm0, %v10427_v3  ;;  %v12644_v38 = vadd.f32 %v11526_v54, %v12135_v59  ;;  %v18681_v60 = vld [vmem:[#allocation37_spill] sm:$0xff]  ;;  %9149 = vpow2.f32 %v7881_v11  ;;  %v7882_v20 = vmul.f32 -1.442695, %v8540_v12  ;;  %18683 = vst [vmem:[#allocation163_spill] sm:$0xff] %v12650_v62  ;;  %7104 = vperm.xlu0 %9039, %v6755_v10  }
 0x1fc   :  { %18678 = vst [vmem:[#allocation35_spill] sm:$0xff] %v12625_v58  ;;  %v12648_v18 = vadd.f32 %v18681_v60, %v12132_v51  ;;  %v18684_v3 = vld [vmem:[#allocation38_spill] sm:$0xff]  ;;  %v12658_v58 = vadd.f32 %v11559_v53, %v12132_v51  ;;  %9151 = vrcp.f32 %v4215_v14  ;;  %v4216_v54 = vadd.f32 1.0, %v9130_v6  ;;  %v12660_v52 = vpop.f32.mrb[144].mxu1  ;;  %v9134_v60 = vpop.eup %9133 }
 0x1fd   :  { %18680 = vst [vmem:[#allocation162_spill] sm:$0xff] %v12644_v38  ;;  %v12654_v39 = vadd.f32 %v18684_v3, %v12135_v59  ;;  %v2422_v38 = vpop.f32.mrb[16].mxu0  ;;  %9153 = vpow2.f32 %v8009_v40  ;;  %v8010_v11 = vmul.f32 -1.442695, %v8541_v15  ;;  %v12663_v10 = vpack.c.bf16 %v90_v32, %v89_v28  ;;  %v12665_v7 = vpop.f32.mrb[145].mxu1 }
 0x1fe   :  { %18682 = vst [vmem:[#allocation37_spill] sm:$0xff] %v12648_v18  ;;  %18686 = vst [vmem:[#allocation164_spill] sm:$0xff] %v12658_v58  ;;  %v8542_v12 = vadd.f32 %v2422_v38, %v12132_v51  ;;  %v2424_v18 = vpop.f32.mrb[17].mxu0  ;;  %v12667_v3 = vpop.eup %9135  ;;  %v12671_v53 = vadd.f32 %v11565_v22, %v12135_v59  ;;  %9155 = vrcp.f32 %v5111_v56  ;;  %v5112_v6 = vadd.f32 1.0, %v9132_v44 }
 0x1ff   :  { %18685 = vst [vmem:[#allocation38_spill] sm:$0xff] %v12654_v39  ;;  %18687 = vst [vmem:[#allocation165_spill] sm:$0xff] %v12663_v10  ;;  %v8543_v14 = vadd.f32 %v2424_v18, %v12135_v59  ;;  %v2426_v58 = vpop.f32.mrb[18].mxu0  ;;  %v12674_v40 = vpop.f32.mrb[146].mxu1  ;;  %v12678_v28 = vadd.f32 %v11567_v26, %v12132_v51  ;;  %9157 = vpow2.f32 %v7882_v20  ;;  %v12687_v56 = vadd.f32 %v11572_v30, %v12135_v59  ;;  %v18693_v26 = vld [vmem:[#allocation40_spill] sm:$0xff] }
 0x200   :  { %18688 = vst [vmem:[#allocation166_spill] sm:$0xff] %v12667_v3  ;;  %18689 = vst [vmem:[#allocation167_spill] sm:$0xff] %v12671_v53  ;;  %v9138_v15 = vpop.eup %9137  ;;  %v7883_v32 = vmul.f32 -1.442695, %v8542_v12  ;;  %v8544_v38 = vadd.f32 %v2426_v58, %v12132_v51  ;;  %v2428_v39 = vpop.f32.mrb[19].mxu0  ;;  %9159 = vrcp.f32 %v4216_v54  ;;  %v4217_v44 = vadd.f32 1.0, %v9134_v60 }
 0x201   :  { %18690 = vst [vmem:[#allocation168_spill] sm:$0xff] %v12678_v28  ;;  %v12681_v35 = vpop.f32.mrb[147].mxu1  ;;  %v12683_v22 = vpop.eup %9139  ;;  %18692 = vst [vmem:[#allocation170_spill] sm:$0xff] %v12687_v56  ;;  %v363_v18 = vsub.s32 2, %v12071_v31  ;;  %v12692_v20 = vadd.f32 %v18693_v26, %v12132_v51  ;;  %9161 = vpow2.f32 %v8010_v11  ;;  %v8011_v58 = vmul.f32 -1.442695, %v8543_v14  ;;  %7777 = vmatmul.mubr.msk.bf16.gmra.mrb[124].mxu0 %vm2155_vm1, %v12663_v10 }
 0x202   :  { %18691 = vst [vmem:[#allocation169_spill] sm:$0xff] %v12683_v22  ;;  %v9142_v53 = vpop.eup %9141  ;;  %v8545_v12 = vadd.f32 %v2428_v39, %v12135_v59  ;;  %v10428_v28 = vld [vmem:[%s18288_s0 + $0x1f8] sm:$0xff]   ;;  %v12705_v31 = vadd.f32 %v11602_v49, %v12135_v59  ;;  %v18697_v54 = vld [vmem:[#allocation42_spill] sm:$0xff]  ;;  %9163 = vrcp.f32 %v5112_v6  ;;  %v5113_v39 = vadd.f32 1.0, %v9138_v15  ;;  %2700 = vmatprep.mubr.bf16.mxu0 %v18563_v46  ;;  %v92_v49 = vld [vmem:[%s18290_s1 + $0x208] sm:$0xff]  ;;  %v2432_v19 = vpop.f32.mrb[20].mxu0 }
 0x203   :  { %18694 = vst [vmem:[#allocation40_spill] sm:$0xff] %v12692_v20  ;;  %8389 = vmatmul.mubr.msk.bf16.gmra.mrb[252].mxu1 %vm704_vm0, %v10428_v28  ;;  %v12701_v30 = vpop.eup %9143  ;;  %v12709_v60 = vadd.f32 %v18697_v54, %v12132_v51  ;;  %v18699_v11 = vld [vmem:[#allocation2_spill] sm:$0xff]  ;;  %v18700_v26 = vld [vmem:[#allocation43_spill] sm:$0xff]  ;;  %v18702_v6 = vld [vmem:[#allocation44_spill] sm:$0xff]  ;;  %9165 = vpow2.f32 %v7883_v32  ;;  %v4218_v56 = vadd.f32 1.0, %v9142_v53  ;;  %v12735_v62 = vrot.slane %v12109_v9, %v363_v18 }
 0x204   :  { %18695 = vst [vmem:[#allocation171_spill] sm:$0xff] %v12701_v30  ;;  %18696 = vst [vmem:[#allocation172_spill] sm:$0xff] %v12705_v31  ;;  %8396 = vmatprep.mubr.msk.bf16.mxu1 %vm2155_vm1, %v18699_v11  ;;  %v91_v14 = vld [vmem:[%s18290_s1 + $0x200] sm:$0xff]  ;;  %v9146_v28 = vpop.eup %9145  ;;  %v12722_v54 = vadd.f32 %v18700_v26, %v12135_v59  ;;  %v12726_v15 = vadd.f32 %v18702_v6, %v12132_v51  ;;  %9167 = vrcp.f32 %v4217_v44  ;;  %v12737_v26 = vpop.f32.mrb[148].mxu1  ;;  %v6502_v6 = vld [vmem:[%s18291_s2 + $0x388] sm:$0xff] }
 0x205   :  { %18698 = vst [vmem:[#allocation42_spill] sm:$0xff] %v12709_v60  ;;  %v7884_v60 = vmul.f32 -1.442695, %v8544_v38  ;;  %v12728_v11 = vpop.eup %9147  ;;  %v18705_v31 = vld [vmem:[#allocation46_spill] sm:$0xff]  ;;  %18707 = vst [vmem:[#allocation173_spill] sm:$0xff] %v12735_v62  ;;  %9169 = vpow2.f32 %v8011_v58  ;;  %v12745_v44 = vpop.f32.mrb[149].mxu1 }
 0x206   :  { %18701 = vst [vmem:[#allocation2_spill] sm:$0xff] %v12722_v54  ;;  %18703 = vst [vmem:[#allocation43_spill] sm:$0xff] %v12726_v15  ;;  %v12732_v20 = vadd.f32 %v18705_v31, %v12135_v59  ;;  %v9150_v32 = vpop.eup %9149  ;;  %v8012_v38 = vmul.f32 -1.442695, %v8545_v12  ;;  %v8546_v15 = vadd.f32 %v2432_v19, %v12132_v51  ;;  %v2434_v54 = vpop.f32.mrb[21].mxu0  ;;  %v12743_v31 = vpack.c.bf16 %v92_v49, %v91_v14  ;;  %v18710_v9 = vld [vmem:[#allocation47_spill] sm:$0xff] }
 0x207   :  { %18704 = vst [vmem:[#allocation44_spill] sm:$0xff] %v12728_v11  ;;  %v12747_v53 = vpop.eup %9151  ;;  %v12751_v18 = vadd.f32 %v18710_v9, %v12132_v51  ;;  %9171 = vrcp.f32 %v5113_v39  ;;  %v8547_v4 = vadd.f32 %v2434_v54, %v12135_v59  ;;  %v2436_v30 = vpop.f32.mrb[22].mxu0  ;;  %vm6630_vm0 = vcmp.gt.f32.partialorder %v6502_v6, 0.0  ;;  %v18714_v9 = vld [vmem:[#allocation48_spill] sm:$0xff] }
 0x208   :  { %18706 = vst [vmem:[#allocation46_spill] sm:$0xff] %v12732_v20  ;;  %18708 = vst [vmem:[#allocation174_spill] sm:$0xff] %v12743_v31  ;;  %v5114_v20 = vadd.f32 1.0, %v9146_v28  ;;  %v12754_v58 = vpop.f32.mrb[150].mxu1  ;;  %v9154_v12 = vpop.eup %9153  ;;  %9173 = vpow2.f32 %v7884_v60  ;;  %v7885_v19 = vmul.f32 -1.442695, %v8546_v15  ;;  %v8548_v14 = vadd.f32 %v2436_v30, %v12132_v51 }
 0x209   :  { %18709 = vst [vmem:[#allocation175_spill] sm:$0xff] %v12747_v53  ;;  %18711 = vst [vmem:[#allocation47_spill] sm:$0xff] %v12751_v18  ;;  %v2438_v49 = vpop.f32.mrb[23].mxu0  ;;  %v12757_v63 = vpop.f32.mrb[151].mxu1  ;;  %v12763_v39 = vadd.f32 %v18714_v9, %v12135_v59  ;;  %v18716_v28 = vld [vmem:[#allocation49_spill] sm:$0xff]  ;;  %9175 = vrcp.f32 %v4218_v56  ;;  %v4219_v18 = vadd.f32 1.0, %v9150_v32  ;;  %7778 = vmatmul.mubr.msk.bf16.gmra.mrb[128].mxu0 %vm2155_vm1, %v12743_v31 }
 0x20a   :  { %18712 = vst [vmem:[#allocation176_spill] sm:$0xff] %v12757_v63  ;;  %v12759_v3 = vpop.eup %9155  ;;  %v12767_v54 = vadd.f32 %v18716_v28, %v12132_v51  ;;  %v18718_v15 = vld [vmem:[#allocation51_spill] sm:$0xff]  ;;  %9177 = vpow2.f32 %v8012_v38  ;;  %v8013_v53 = vmul.f32 -1.442695, %v8547_v4  ;;  %v8549_v55 = vadd.f32 %v2438_v49, %v12135_v59  ;;  %v18720_v9 = vld [vmem:[#allocation5_spill] sm:$0xff]  ;;  %v18722_v56 = vld [vmem:[#allocation52_spill] sm:$0xff]  ;;  %2710 = vmatprep.mubr.bf16.mxu0 %v18563_v46 }
 0x20b   :  { %18713 = vst [vmem:[#allocation177_spill] sm:$0xff] %v12759_v3  ;;  %18715 = vst [vmem:[#allocation48_spill] sm:$0xff] %v12763_v39  ;;  %v9158_v60 = vpop.eup %9157  ;;  %v12771_v30 = vadd.f32 %v18718_v15, %v12135_v59  ;;  %8397 = vmatmul.mubr.msk.bf16.vlgmr.msra.gmra.mrb[128].mxu1 %vm2155_vm1, %v18720_v9  ;;  %v12782_v32 = vadd.f32 %v18722_v56, %v12132_v51  ;;  %9179 = vrcp.f32 %v5114_v20  ;;  %v5115_v28 = vadd.f32 1.0, %v9154_v12  ;;  %v18724_v38 = vld [vmem:[#allocation9_spill] sm:$0xff]  ;;  %v93_v4 = vld [vmem:[%s18290_s1 + $0x210] sm:$0xff] }
 0x20c   :  { %18717 = vst [vmem:[#allocation49_spill] sm:$0xff] %v12767_v54  ;;  %v12778_v39 = vpop.eup %9159  ;;  %8400 = vmatprep.mubr.msk.bf16.mxu1 %vm2155_vm1, %v18724_v38  ;;  %v94_v49 = vld [vmem:[%s18290_s1 + $0x218] sm:$0xff]  ;;  %v6758_v15 = vsel %vm6630_vm0, 1, %v18563_v46  ;;  %v18727_v56 = vld [vmem:[#allocation54_spill] sm:$0xff]  ;;  %9181 = vpow2.f32 %v7885_v19  ;;  %v7886_v38 = vmul.f32 -1.442695, %v8548_v14 }
 0x20d   :  { %18719 = vst [vmem:[#allocation51_spill] sm:$0xff] %v12771_v30  ;;  %18721 = vst [vmem:[#allocation5_spill] sm:$0xff] %v12778_v39  ;;  %v9162_v9 = vpop.eup %9161  ;;  %v18725_v20 = vld [vmem:[#allocation53_spill] sm:$0xff]  ;;  %v12803_v30 = vpop.permute.xlu1 %6819  ;;  %7113 = vperm.xlu1 %9040, %v6758_v15   ;;  %v18731_v39 = vld [vmem:[#allocation56_spill] sm:$0xff]  ;;  %9183 = vrcp.f32 %v4219_v18  ;;  %v8014_v15 = vmul.f32 -1.442695, %v8549_v55 }
 0x20e   :  { %18723 = vst [vmem:[#allocation52_spill] sm:$0xff] %v12782_v32  ;;  %v12797_v12 = vadd.f32 %v18725_v20, %v12135_v59  ;;  %v12801_v32 = vadd.f32 %v18727_v56, %v12132_v51  ;;  %18729 = vst [vmem:[#allocation54_spill] sm:$0xff] %v12803_v30  ;;  %v12805_v54 = vpop.eup %9163  ;;  %v12809_v6 = vadd.f32 %v18731_v39, %v12135_v59  ;;  %v18733_v31 = vld [vmem:[#allocation57_spill] sm:$0xff]  ;;  %v4220_v20 = vadd.f32 1.0, %v9158_v60  ;;  %v12815_v56 = vpop.f32.mrb[152].mxu1  ;;  %v6501_v19 = vld [vmem:[%s18291_s2 + $0x380] sm:$0xff] }
 0x20f   :  { %18730 = vst [vmem:[#allocation178_spill] sm:$0xff] %v12805_v54  ;;  %v12813_v10 = vadd.f32 %v18733_v31, %v12132_v51  ;;  %18735 = vst [vmem:[#allocation179_spill] sm:$0xff] %v12815_v56  ;;  %v9166_v14 = vpop.eup %9165  ;;  %9185 = vpow2.f32 %v8013_v53  ;;  %v12823_v30 = vpop.f32.mrb[153].mxu1  ;;  %v18739_v18 = vld [vmem:[#allocation58_spill] sm:$0xff]  ;;  %vm6629_vm2 = vcmp.gt.f32.partialorder %v6501_v19, 0.0 }
 0x210   :  { %18726 = vst [vmem:[#allocation9_spill] sm:$0xff] %v12797_v12  ;;  %18728 = vst [vmem:[#allocation53_spill] sm:$0xff] %v12801_v32  ;;  %v2442_v12 = vpop.f32.mrb[24].mxu0  ;;  %v12825_v31 = vpop.eup %9167  ;;  %v12829_v60 = vadd.f32 %v18739_v18, %v12135_v59  ;;  %9187 = vrcp.f32 %v5115_v28  ;;  %v18744_v18 = vld [vmem:[#allocation59_spill] sm:$0xff] }
 0x211   :  { %18732 = vst [vmem:[#allocation56_spill] sm:$0xff] %v12809_v6  ;;  %18734 = vst [vmem:[#allocation57_spill] sm:$0xff] %v12813_v10  ;;  %v8550_v32 = vadd.f32 %v2442_v12, %v12132_v51  ;;  %v2444_v39 = vpop.f32.mrb[25].mxu0  ;;  %v12821_v6 = vpack.c.bf16 %v94_v49, %v93_v4  ;;  %v5116_v10 = vadd.f32 1.0, %v9162_v9  ;;  %v12832_v53 = vpop.f32.mrb[154].mxu1  ;;  %v4221_v12 = vadd.f32 1.0, %v9166_v14 }
 0x212   :  { %18737 = vst [vmem:[#allocation181_spill] sm:$0xff] %v12823_v30  ;;  %18738 = vst [vmem:[#allocation182_spill] sm:$0xff] %v12825_v31  ;;  %v8551_v33 = vadd.f32 %v2444_v39, %v12135_v59  ;;  %v2446_v2 = vpop.f32.mrb[26].mxu0  ;;  %v9170_v55 = vpop.eup %9169  ;;  %9189 = vpow2.f32 %v7886_v38  ;;  %v12841_v28 = vadd.f32 %v18744_v18, %v12132_v51  ;;  %v18746_v9 = vld [vmem:[#allocation61_spill] sm:$0xff]  ;;  %v18748_v38 = vld [vmem:[#allocation62_spill] sm:$0xff] }
 0x213   :  { %18736 = vst [vmem:[#allocation180_spill] sm:$0xff] %v12821_v6  ;;  %18740 = vst [vmem:[#allocation58_spill] sm:$0xff] %v12829_v60  ;;  %v8552_v4 = vadd.f32 %v2446_v2, %v12132_v51  ;;  %v2448_v49 = vpop.f32.mrb[27].mxu0  ;;  %v12835_v47 = vpop.f32.mrb[155].mxu1  ;;  %v12845_v39 = vadd.f32 %v18746_v9, %v12135_v59  ;;  %9191 = vrcp.f32 %v4220_v20  ;;  %v7887_v60 = vmul.f32 -1.442695, %v8550_v32  ;;  %7779 = vmatmul.mubr.msk.bf16.gmra.mrb[132].mxu0 %vm2155_vm1, %v12821_v6 }
 0x214   :  { %18741 = vst [vmem:[#allocation183_spill] sm:$0xff] %v12832_v53  ;;  %18742 = vst [vmem:[#allocation184_spill] sm:$0xff] %v12835_v47  ;;  %v12837_v31 = vpop.eup %9171  ;;  %v12849_v2 = vadd.f32 %v18748_v38, %v12132_v51  ;;  %9193 = vpow2.f32 %v8014_v15  ;;  %v8015_v23 = vmul.f32 -1.442695, %v8551_v33  ;;  %v8553_v21 = vadd.f32 %v2448_v49, %v12135_v59  ;;  %v18750_v18 = vld [vmem:[#allocation12_spill] sm:$0xff]  ;;  %v18752_v20 = vld [vmem:[#allocation63_spill] sm:$0xff]  ;;  %2720 = vmatprep.mubr.bf16.mxu0 %v18563_v46 }
 0x215   :  { %18743 = vst [vmem:[#allocation185_spill] sm:$0xff] %v12837_v31  ;;  %18745 = vst [vmem:[#allocation59_spill] sm:$0xff] %v12841_v28  ;;  %v9174_v14 = vpop.eup %9173  ;;  %8401 = vmatmul.mubr.msk.bf16.gmra.mrb[132].mxu1 %vm2155_vm1, %v18750_v18  ;;  %v12860_v32 = vadd.f32 %v18752_v20, %v12135_v59  ;;  %9195 = vrcp.f32 %v5116_v10  ;;  %v5117_v9 = vadd.f32 1.0, %v9170_v55  ;;  %v18754_v15 = vld [vmem:[#allocation15_spill] sm:$0xff]  ;;  %v95_v33 = vld [vmem:[%s18290_s1 + $0x220] sm:$0xff]  ;;  %v6757_v38 = vsel %vm6629_vm2, 1, %v18563_v46 }
 0x216   :  { %18747 = vst [vmem:[#allocation61_spill] sm:$0xff] %v12845_v39  ;;  %18749 = vst [vmem:[#allocation62_spill] sm:$0xff] %v12849_v2  ;;  %v12856_v28 = vpop.eup %9175  ;;  %8404 = vmatprep.mubr.msk.bf16.mxu1 %vm2155_vm1, %v18754_v15  ;;  %v96_v49 = vld [vmem:[%s18290_s1 + $0x228] sm:$0xff]  ;;  %v18755_v10 = vld [vmem:[#allocation64_spill] sm:$0xff]  ;;  %9197 = vrcp.f32 %v4221_v12  ;;  %v7888_v15 = vmul.f32 -1.442695, %v8552_v4  ;;  %v12881_v2 = vpop.permute.xlu0 %6816  ;;  %7110 = vperm.xlu0 %9039, %v6757_v38  }
 0x217   :  { %18751 = vst [vmem:[#allocation12_spill] sm:$0xff] %v12856_v28  ;;  %18753 = vst [vmem:[#allocation63_spill] sm:$0xff] %v12860_v32  ;;  %v9178_v18 = vpop.eup %9177  ;;  %v12875_v55 = vadd.f32 %v18755_v10, %v12132_v51  ;;  %v18757_v20 = vld [vmem:[#allocation66_spill] sm:$0xff]  ;;  %v18761_v28 = vld [vmem:[#allocation67_spill] sm:$0xff]  ;;  %v4222_v10 = vadd.f32 1.0, %v9174_v14  ;;  %9199 = vpow2.f32 %v7887_v60 }
 0x218   :  { %v12879_v32 = vadd.f32 %v18757_v20, %v12135_v59  ;;  %18759 = vst [vmem:[#allocation66_spill] sm:$0xff] %v12881_v2  ;;  %v12883_v39 = vpop.eup %9179  ;;  %v12887_v19 = vadd.f32 %v18761_v28, %v12132_v51  ;;  %v18763_v6 = vld [vmem:[#allocation68_spill] sm:$0xff]  ;;  %v12893_v20 = vpop.f32.mrb[156].mxu1  ;;  %9201 = vpow2.f32 %v8015_v23  ;;  %v8016_v4 = vmul.f32 -1.442695, %v8553_v21  ;;  %v18769_v60 = vld [vmem:[#allocation69_spill] sm:$0xff] }
 0x219   :  { %18756 = vst [vmem:[#allocation15_spill] sm:$0xff] %v12875_v55  ;;  %18760 = vst [vmem:[#allocation186_spill] sm:$0xff] %v12883_v39  ;;  %v12891_v47 = vadd.f32 %v18763_v6, %v12135_v59  ;;  %v2452_v55 = vpop.f32.mrb[28].mxu0  ;;  %v9182_v12 = vpop.eup %9181  ;;  %v12896_v2 = vpack.c.bf16 %v96_v49, %v95_v33  ;;  %v6504_v6 = vld [vmem:[%s18291_s2 + $0x398] sm:$0xff]  ;;  %v12907_v14 = vadd.f32 %v18769_v60, %v12132_v51  ;;  %9203 = vrcp.f32 %v5117_v9  ;;  %v18772_v49 = vld [vmem:[#allocation71_spill] sm:$0xff] }
 0x21a   :  { %18758 = vst [vmem:[#allocation64_spill] sm:$0xff] %v12879_v32  ;;  %18762 = vst [vmem:[#allocation67_spill] sm:$0xff] %v12887_v19  ;;  %v8554_v38 = vadd.f32 %v2452_v55, %v12132_v51  ;;  %v2454_v32 = vpop.f32.mrb[29].mxu0  ;;  %v12898_v53 = vpop.f32.mrb[157].mxu1  ;;  %v5118_v23 = vadd.f32 1.0, %v9178_v18  ;;  %v12914_v19 = vadd.f32 %v18772_v49, %v12135_v59  ;;  %9205 = vpow2.f32 %v7888_v15  ;;  %v97_v9 = vld [vmem:[%s18290_s1 + $0x230] sm:$0xff] }
 0x21b   :  { %18764 = vst [vmem:[#allocation68_spill] sm:$0xff] %v12891_v47  ;;  %18765 = vst [vmem:[#allocation187_spill] sm:$0xff] %v12893_v20  ;;  %v12903_v28 = vpop.eup %9183  ;;  %v8555_v21 = vadd.f32 %v2454_v32, %v12135_v59  ;;  %v2456_v55 = vpop.f32.mrb[30].mxu0  ;;  %v98_v32 = vld [vmem:[%s18290_s1 + $0x238] sm:$0xff]  ;;  %v18776_v49 = vld [vmem:[#allocation72_spill] sm:$0xff]  ;;  %9207 = vrcp.f32 %v4222_v10  ;;  %vm6632_vm3 = vcmp.gt.f32.partialorder %v6504_v6, 0.0  ;;  %7780 = vmatmul.mubr.msk.bf16.gmra.mrb[136].mxu0 %vm2155_vm1, %v12896_v2 }
 0x21c   :  { %18766 = vst [vmem:[#allocation188_spill] sm:$0xff] %v12896_v2  ;;  %18767 = vst [vmem:[#allocation189_spill] sm:$0xff] %v12898_v53  ;;  %v12910_v47 = vpop.f32.mrb[158].mxu1  ;;  %v9186_v33 = vpop.eup %9185  ;;  %v4223_v53 = vadd.f32 1.0, %v9182_v12  ;;  %v7889_v15 = vmul.f32 -1.442695, %v8554_v38  ;;  %9209 = vpow2.f32 %v8016_v4  ;;  %2730 = vmatprep.mubr.bf16.mxu0 %v18563_v46 }
 0x21d   :  { %18768 = vst [vmem:[#allocation190_spill] sm:$0xff] %v12903_v28  ;;  %18770 = vst [vmem:[#allocation69_spill] sm:$0xff] %v12907_v14  ;;  %v8556_v28 = vadd.f32 %v2456_v55, %v12132_v51  ;;  %v2458_v20 = vpop.f32.mrb[31].mxu0  ;;  %v12923_v18 = vpop.f32.mrb[159].mxu1  ;;  %v6503_v12 = vld [vmem:[%s18291_s2 + $0x390] sm:$0xff]  ;;  %v18778_v14 = vld [vmem:[#allocation73_spill] sm:$0xff]  ;;  %9211 = vrcp.f32 %v5118_v23 }
 0x21e   :  { %18771 = vst [vmem:[#allocation191_spill] sm:$0xff] %v12910_v47  ;;  %18773 = vst [vmem:[#allocation71_spill] sm:$0xff] %v12914_v19  ;;  %v12925_v60 = vpop.eup %9187  ;;  %v12929_v19 = vadd.f32 %v18776_v49, %v12132_v51  ;;  %v12936_v47 = vadd.f32 %v18778_v14, %v12135_v59  ;;  %v18780_v49 = vld [vmem:[#allocation18_spill] sm:$0xff]  ;;  %v5119_v30 = vadd.f32 1.0, %v9186_v33  ;;  %v18784_v4 = vld [vmem:[#allocation21_spill] sm:$0xff]  ;;  %9213 = vrcp.f32 %v4223_v53  ;;  %v12972_v6 = vpop.f32.mrb[160].mxu1 }
 0x21f   :  { %18774 = vst [vmem:[#allocation192_spill] sm:$0xff] %v12923_v18  ;;  %18775 = vst [vmem:[#allocation193_spill] sm:$0xff] %v12925_v60  ;;  %v9190_v55 = vpop.eup %9189  ;;  %v8017_v18 = vmul.f32 -1.442695, %v8555_v21  ;;  %v8557_v60 = vadd.f32 %v2458_v20, %v12135_v59  ;;  %8405 = vmatmul.mubr.msk.bf16.gmra.mrb[136].mxu1 %vm2155_vm1, %v18780_v49  ;;  %v18782_v38 = vld [vmem:[#allocation74_spill] sm:$0xff]  ;;  %v12952_v20 = vpack.c.bf16 %v98_v32, %v97_v9  ;;  %v12956_v49 = vpop.permute.xlu0 %6822  ;;  %vm6631_vm4 = vcmp.gt.f32.partialorder %v6503_v12, 0.0 }
 0x220   :  { %18777 = vst [vmem:[#allocation72_spill] sm:$0xff] %v12929_v19  ;;  %18779 = vst [vmem:[#allocation73_spill] sm:$0xff] %v12936_v47  ;;  %v12943_v10 = vpop.eup %9191  ;;  %v12947_v19 = vadd.f32 %v18782_v38, %v12132_v51  ;;  %8408 = vmatprep.mubr.msk.bf16.mxu1 %vm2155_vm1, %v18784_v4  ;;  %v7890_v21 = vmul.f32 -1.442695, %v8556_v28  ;;  %v12954_v47 = vpop.permute.xlu1 %6825  ;;  %v6760_v38 = vsel %vm6632_vm3, 1, %v18563_v46  ;;  %v18789_v33 = vld [vmem:[#allocation76_spill] sm:$0xff]  ;;  %9215 = vpow2.f32 %v7889_v15 }
 0x221   :  { %18781 = vst [vmem:[#allocation18_spill] sm:$0xff] %v12943_v10  ;;  %18785 = vst [vmem:[#allocation21_spill] sm:$0xff] %v12952_v20  ;;  %v9194_v14 = vpop.eup %9193  ;;  %v4224_v4 = vadd.f32 1.0, %v9190_v55  ;;  %v2462_v9 = vpop.f32.mrb[32].mxu0  ;;  %v99_v53 = vld [vmem:[%s18290_s1 + $0x240] sm:$0xff]  ;;  %v100_v28 = vld [vmem:[%s18290_s1 + $0x248] sm:$0xff]  ;;  %7119 = vperm.xlu1 %9040, %v6760_v38   ;;  %9217 = vpow2.f32 %v8017_v18 }
 0x222   :  { %18783 = vst [vmem:[#allocation74_spill] sm:$0xff] %v12947_v19  ;;  %18786 = vst [vmem:[#allocation194_spill] sm:$0xff] %v12954_v47  ;;  %v12960_v23 = vpop.eup %9195  ;;  %v12964_v19 = vadd.f32 %v18789_v33, %v12135_v59  ;;  %v6759_v32 = vsel %vm6631_vm4, 1, %v18563_v46  ;;  %v18793_v33 = vld [vmem:[#allocation77_spill] sm:$0xff]  ;;  %v8018_v15 = vmul.f32 -1.442695, %v8557_v60  ;;  %9219 = vrcp.f32 %v5119_v30 }
 0x223   :  { %18787 = vst [vmem:[#allocation195_spill] sm:$0xff] %v12956_v49  ;;  %18788 = vst [vmem:[#allocation196_spill] sm:$0xff] %v12960_v23  ;;  %v12975_v12 = vpop.eup %9197  ;;  %v12979_v55 = vadd.f32 %v18793_v33, %v12132_v51  ;;  %v2464_v47 = vpop.f32.mrb[33].mxu0  ;;  %7116 = vperm.xlu0 %9039, %v6759_v32   ;;  %v18796_v2 = vld [vmem:[#allocation78_spill] sm:$0xff]  ;;  %9221 = vpow2.f32 %v7890_v21  ;;  %v102_v30 = vld [vmem:[%s18290_s1 + $0x258] sm:$0xff]  ;;  %7781 = vmatmul.mubr.msk.bf16.gmra.mrb[140].mxu0 %vm2155_vm1, %v12952_v20 }
 0x224   :  { %18790 = vst [vmem:[#allocation76_spill] sm:$0xff] %v12964_v19  ;;  %18791 = vst [vmem:[#allocation197_spill] sm:$0xff] %v12972_v6  ;;  %v8558_v19 = vadd.f32 %v2462_v9, %v12132_v51  ;;  %v12982_v49 = vpop.f32.mrb[161].mxu1  ;;  %v9200_v10 = vpop.eup %9199  ;;  %v12986_v38 = vadd.f32 %v18796_v2, %v12135_v59  ;;  %v5120_v6 = vadd.f32 1.0, %v9194_v14  ;;  %v101_v2 = vld [vmem:[%s18290_s1 + $0x250] sm:$0xff]  ;;  %9223 = vrcp.f32 %v4224_v4  ;;  %v6506_v32 = vld [vmem:[%s18291_s2 + $0x3a8] sm:$0xff]  ;;  %2740 = vmatprep.mubr.bf16.mxu0 %v18563_v46 }
 0x225   :  { %18792 = vst [vmem:[#allocation198_spill] sm:$0xff] %v12975_v12  ;;  %18794 = vst [vmem:[#allocation77_spill] sm:$0xff] %v12979_v55  ;;  %v8559_v12 = vadd.f32 %v2464_v47, %v12135_v59  ;;  %v2466_v23 = vpop.f32.mrb[34].mxu0  ;;  %v12989_v33 = vpop.f32.mrb[162].mxu1  ;;  %v4225_v60 = vadd.f32 1.0, %v9200_v10  ;;  %v18802_v10 = vld [vmem:[#allocation79_spill] sm:$0xff]  ;;  %9225 = vpow2.f32 %v8018_v15 }
 0x226   :  { %18795 = vst [vmem:[#allocation199_spill] sm:$0xff] %v12982_v49  ;;  %18797 = vst [vmem:[#allocation78_spill] sm:$0xff] %v12986_v38  ;;  %v9202_v18 = vpop.eup %9201  ;;  %v8560_v9 = vadd.f32 %v2466_v23, %v12132_v51  ;;  %v2468_v55 = vpop.f32.mrb[35].mxu0  ;;  %v12992_v49 = vpack.c.bf16 %v100_v28, %v99_v53  ;;  %v13006_v21 = vadd.f32 %v18802_v10, %v12132_v51  ;;  %v18804_v23 = vld [vmem:[#allocation81_spill] sm:$0xff]  ;;  %v6505_v38 = vld [vmem:[%s18291_s2 + $0x3a0] sm:$0xff]  ;;  %9227 = vrcp.f32 %v5120_v6 }
 0x227   :  { %18798 = vst [vmem:[#allocation200_spill] sm:$0xff] %v12989_v33  ;;  %v13000_v47 = vpop.f32.mrb[163].mxu1  ;;  %v13002_v14 = vpop.eup %9203  ;;  %v13010_v53 = vadd.f32 %v18804_v23, %v12135_v59  ;;  %v5121_v28 = vadd.f32 1.0, %v9202_v18  ;;  %v18806_v33 = vld [vmem:[#allocation82_spill] sm:$0xff]  ;;  %v7891_v10 = vmul.f32 -1.442695, %v8558_v19  ;;  %v8561_v23 = vadd.f32 %v2468_v55, %v12135_v59 }
 0x228   :  { %18799 = vst [vmem:[#allocation201_spill] sm:$0xff] %v12992_v49  ;;  %18800 = vst [vmem:[#allocation202_spill] sm:$0xff] %v13000_v47  ;;  %v9206_v47 = vpop.eup %9205  ;;  %v18808_v4 = vld [vmem:[#allocation24_spill] sm:$0xff]  ;;  %v8019_v56 = vmul.f32 -1.442695, %v8559_v12  ;;  %v18812_v15 = vld [vmem:[#allocation27_spill] sm:$0xff]  ;;  %v13036_v19 = vpack.c.bf16 %v102_v30, %v101_v2  ;;  %9229 = vrcp.f32 %v4225_v60 }
 0x229   :  { %18801 = vst [vmem:[#allocation203_spill] sm:$0xff] %v13002_v14  ;;  %18803 = vst [vmem:[#allocation79_spill] sm:$0xff] %v13006_v21  ;;  %v13020_v14 = vadd.f32 %v18806_v33, %v12132_v51  ;;  %8409 = vmatmul.mubr.msk.bf16.gmra.mrb[140].mxu1 %vm2155_vm1, %v18808_v4  ;;  %v13027_v18 = vpop.eup %9207  ;;  %v7892_v33 = vmul.f32 -1.442695, %v8560_v9  ;;  %v13040_v4 = vpop.permute.xlu0 %6828  ;;  %vm6634_vm5 = vcmp.gt.f32.partialorder %v6506_v32, 0.0  ;;  %vm6633_vm6 = vcmp.gt.f32.partialorder %v6505_v38, 0.0 }
 0x22a   :  { %18805 = vst [vmem:[#allocation81_spill] sm:$0xff] %v13010_v53  ;;  %18809 = vst [vmem:[#allocation24_spill] sm:$0xff] %v13027_v18  ;;  %v18810_v53 = vld [vmem:[#allocation83_spill] sm:$0xff]  ;;  %8412 = vmatprep.mubr.msk.bf16.mxu1 %vm2155_vm1, %v18812_v15  ;;  %v9210_v55 = vpop.eup %9209  ;;  %v18817_v6 = vld [vmem:[#allocation84_spill] sm:$0xff]  ;;  %9231 = vrcp.f32 %v5121_v28  ;;  %v2472_v15 = vpop.f32.mrb[36].mxu0  ;;  %v6762_v2 = vsel %vm6634_vm5, 1, %v18563_v46 }
 0x22b   :  { %18807 = vst [vmem:[#allocation82_spill] sm:$0xff] %v13020_v14  ;;  %v13031_v21 = vadd.f32 %v18810_v53, %v12135_v59  ;;  %18813 = vst [vmem:[#allocation27_spill] sm:$0xff] %v13036_v19  ;;  %v13038_v14 = vpop.permute.xlu1 %6831  ;;  %v13042_v53 = vpop.eup %9211  ;;  %v13046_v12 = vadd.f32 %v18817_v6, %v12132_v51  ;;  %v103_v60 = vld [vmem:[%s18290_s1 + $0x260] sm:$0xff]  ;;  %9233 = vpow2.f32 %v7891_v10  ;;  %v8020_v32 = vmul.f32 -1.442695, %v8561_v23  ;;  %7125 = vperm.xlu1 %9040, %v6762_v2  }
 0x22c   :  { %18814 = vst [vmem:[#allocation204_spill] sm:$0xff] %v13038_v14  ;;  %18815 = vst [vmem:[#allocation205_spill] sm:$0xff] %v13040_v4  ;;  %v13051_v9 = vpop.f32.mrb[164].mxu1  ;;  %v13054_v30 = vpop.eup %9213  ;;  %v8562_v14 = vadd.f32 %v2472_v15, %v12132_v51  ;;  %v6761_v6 = vsel %vm6633_vm6, 1, %v18563_v46  ;;  %v18822_v18 = vld [vmem:[#allocation86_spill] sm:$0xff]  ;;  %v5122_v10 = vadd.f32 1.0, %v9210_v55  ;;  %9235 = vpow2.f32 %v8019_v56  ;;  %7782 = vmatmul.mubr.msk.bf16.gmra.mrb[144].mxu0 %vm2155_vm1, %v12992_v49 }
 0x22d   :  { %18811 = vst [vmem:[#allocation83_spill] sm:$0xff] %v13031_v21  ;;  %18816 = vst [vmem:[#allocation206_spill] sm:$0xff] %v13042_v53  ;;  %v4226_v21 = vadd.f32 1.0, %v9206_v47  ;;  %v2474_v4 = vpop.f32.mrb[37].mxu0  ;;  %v104_v47 = vld [vmem:[%s18290_s1 + $0x268] sm:$0xff]  ;;  %v13060_v28 = vpop.f32.mrb[165].mxu1  ;;  %v13066_v20 = vadd.f32 %v18822_v18, %v12135_v59  ;;  %7122 = vperm.xlu0 %9039, %v6761_v6   ;;  %9237 = vpow2.f32 %v7892_v33  ;;  %2750 = vmatprep.mubr.bf16.mxu0 %v18563_v46 }
 0x22e   :  { %18818 = vst [vmem:[#allocation84_spill] sm:$0xff] %v13046_v12  ;;  %18819 = vst [vmem:[#allocation207_spill] sm:$0xff] %v13051_v9  ;;  %v9216_v12 = vpop.eup %9215  ;;  %v8563_v23 = vadd.f32 %v2474_v4, %v12135_v59  ;;  %v2476_v15 = vpop.f32.mrb[38].mxu0  ;;  %v18829_v56 = vld [vmem:[#allocation88_spill] sm:$0xff]  ;;  %v106_v33 = vld [vmem:[%s18290_s1 + $0x278] sm:$0xff] }
 0x22f   :  { %18820 = vst [vmem:[#allocation208_spill] sm:$0xff] %v13054_v30  ;;  %18821 = vst [vmem:[#allocation209_spill] sm:$0xff] %v13060_v28  ;;  %v13069_v30 = vpop.f32.mrb[166].mxu1  ;;  %v9218_v9 = vpop.eup %9217  ;;  %v18825_v28 = vld [vmem:[#allocation87_spill] sm:$0xff]  ;;  %v4227_v38 = vadd.f32 1.0, %v9216_v12  ;;  %v8564_v53 = vadd.f32 %v2476_v15, %v12132_v51  ;;  %v13082_v4 = vadd.f32 %v18829_v56, %v12135_v59  ;;  %9239 = vrcp.f32 %v4226_v21  ;;  %v105_v12 = vld [vmem:[%s18290_s1 + $0x270] sm:$0xff] }
 0x230   :  { %18823 = vst [vmem:[#allocation86_spill] sm:$0xff] %v13066_v20  ;;  %18824 = vst [vmem:[#allocation210_spill] sm:$0xff] %v13069_v30  ;;  %v13073_v2 = vadd.f32 %v18825_v28, %v12132_v51  ;;  %v2478_v39 = vpop.f32.mrb[39].mxu0  ;;  %v13076_v18 = vpop.f32.mrb[167].mxu1  ;;  %v5123_v6 = vadd.f32 1.0, %v9218_v9  ;;  %v13084_v20 = vpack.c.bf16 %v104_v47, %v103_v60  ;;  %v18832_v15 = vld [vmem:[#allocation89_spill] sm:$0xff]  ;;  %9241 = vpow2.f32 %v8020_v32 }
 0x231   :  { %18827 = vst [vmem:[#allocation211_spill] sm:$0xff] %v13076_v18  ;;  %v13078_v55 = vpop.eup %9219  ;;  %18830 = vst [vmem:[#allocation88_spill] sm:$0xff] %v13082_v4  ;;  %v7893_v56 = vmul.f32 -1.442695, %v8562_v14  ;;  %v8565_v21 = vadd.f32 %v2478_v39, %v12135_v59  ;;  %v18834_v60 = vld [vmem:[#allocation30_spill] sm:$0xff]  ;;  %v18836_v47 = vld [vmem:[#allocation91_spill] sm:$0xff]  ;;  %9243 = vrcp.f32 %v5122_v10 }
 0x232   :  { %18826 = vst [vmem:[#allocation87_spill] sm:$0xff] %v13073_v2  ;;  %18828 = vst [vmem:[#allocation212_spill] sm:$0xff] %v13078_v55  ;;  %v9222_v28 = vpop.eup %9221  ;;  %v13094_v2 = vadd.f32 %v18832_v15, %v12132_v51  ;;  %8413 = vmatmul.mubr.msk.bf16.gmra.mrb[144].mxu1 %vm2155_vm1, %v18834_v60  ;;  %v13105_v4 = vadd.f32 %v18836_v47, %v12135_v59  ;;  %v18838_v18 = vld [vmem:[#allocation92_spill] sm:$0xff]  ;;  %v8021_v14 = vmul.f32 -1.442695, %v8563_v23  ;;  %v18840_v39 = vld [vmem:[#allocation33_spill] sm:$0xff]  ;;  %9245 = vrcp.f32 %v4227_v38 }
 0x233   :  { %18831 = vst [vmem:[#allocation213_spill] sm:$0xff] %v13084_v20  ;;  %v13101_v9 = vpop.eup %9223  ;;  %v13109_v15 = vadd.f32 %v18838_v18, %v12132_v51  ;;  %8416 = vmatprep.mubr.msk.bf16.mxu1 %vm2155_vm1, %v18840_v39  ;;  %v18841_v60 = vld [vmem:[#allocation93_spill] sm:$0xff]  ;;  %v13118_v47 = vpack.c.bf16 %v106_v33, %v105_v12  ;;  %v18845_v18 = vld [vmem:[#allocation94_spill] sm:$0xff]  ;;  %v18847_v23 = vld [vmem:[#allocation96_spill] sm:$0xff]  ;;  %9247 = vrcp.f32 %v5123_v6  ;;  %v4228_v39 = vadd.f32 1.0, %v9222_v28  ;;  %v2482_v49 = vpop.f32.mrb[40].mxu0 }
 0x234   :  { %18833 = vst [vmem:[#allocation89_spill] sm:$0xff] %v13094_v2  ;;  %18835 = vst [vmem:[#allocation30_spill] sm:$0xff] %v13101_v9  ;;  %v9226_v32 = vpop.eup %9225  ;;  %v13116_v2 = vadd.f32 %v18841_v60, %v12135_v59  ;;  %v7894_v9 = vmul.f32 -1.442695, %v8564_v53  ;;  %v13124_v10 = vadd.f32 %v18845_v18, %v12132_v51  ;;  %v13130_v30 = vpop.f32.mrb[168].mxu1  ;;  %v107_v53 = vld [vmem:[%s18290_s1 + $0x280] sm:$0xff]  ;;  %9249 = vpow2.f32 %v7893_v56  ;;  %7783 = vmatmul.mubr.msk.bf16.gmra.mrb[148].mxu0 %vm2155_vm1, %v13036_v19 }
 0x235   :  { %18837 = vst [vmem:[#allocation91_spill] sm:$0xff] %v13105_v4  ;;  %18839 = vst [vmem:[#allocation92_spill] sm:$0xff] %v13109_v15  ;;  %v13120_v4 = vpop.eup %9227  ;;  %v13128_v15 = vadd.f32 %v18847_v23, %v12135_v59  ;;  %v108_v38 = vld [vmem:[%s18290_s1 + $0x288] sm:$0xff]  ;;  %v18851_v33 = vld [vmem:[#allocation97_spill] sm:$0xff]  ;;  %v8022_v6 = vmul.f32 -1.442695, %v8565_v21  ;;  %v8566_v28 = vadd.f32 %v2482_v49, %v12132_v51  ;;  %9251 = vpow2.f32 %v8021_v14  ;;  %2760 = vmatprep.mubr.bf16.mxu0 %v18563_v46 }
 0x236   :  { %18842 = vst [vmem:[#allocation33_spill] sm:$0xff] %v13116_v2  ;;  %18843 = vst [vmem:[#allocation93_spill] sm:$0xff] %v13118_v47  ;;  %v13138_v12 = vpop.eup %9229  ;;  %v13142_v60 = vadd.f32 %v18851_v33, %v12132_v51  ;;  %v2484_v18 = vpop.f32.mrb[41].mxu0  ;;  %v18855_v2 = vld [vmem:[#allocation98_spill] sm:$0xff]  ;;  %v6507_v49 = vld [vmem:[%s18291_s2 + $0x3b0] sm:$0xff]  ;;  %9253 = vpow2.f32 %v7894_v9  ;;  %v13168_v14 = vpack.c.bf16 %v108_v38, %v107_v53  ;;  %v13184_v38 = vadd.f32 %v12116_v0, %v12132_v51 }
 0x237   :  { %18844 = vst [vmem:[#allocation214_spill] sm:$0xff] %v13120_v4  ;;  %18846 = vst [vmem:[#allocation94_spill] sm:$0xff] %v13124_v10  ;;  %v13145_v23 = vpop.f32.mrb[169].mxu1  ;;  %v13150_v10 = vpop.eup %9231  ;;  %v8567_v56 = vadd.f32 %v2484_v18, %v12135_v59  ;;  %9255 = vrcp.f32 %v4228_v39  ;;  %v18861_v9 = vld [vmem:[#allocation36_spill] sm:$0xff]  ;;  %vm6635_vm8 = vcmp.gt.f32.partialorder %v6507_v49, 0.0  ;;  %v13180_v39 = vadd.f32 %v12113_v34, %v12135_v59  ;;  %v110_v34 = vld [vmem:[%s18290_s1 + $0x298] sm:$0xff] }
 0x238   :  { %18848 = vst [vmem:[#allocation96_spill] sm:$0xff] %v13128_v15  ;;  %18849 = vst [vmem:[#allocation215_spill] sm:$0xff] %v13130_v30  ;;  %v6508_v15 = vld [vmem:[%s18291_s2 + $0x3b8] sm:$0xff]  ;;  %v5124_v30 = vadd.f32 1.0, %v9226_v32  ;;  %v2486_v21 = vpop.f32.mrb[42].mxu0  ;;  %v13157_v33 = vpop.f32.mrb[170].mxu1  ;;  %9257 = vpow2.f32 %v8022_v6  ;;  %v13229_v49 = vadd.f32 %v12185_v5, %v12135_v59 }
 0x239   :  { %18850 = vst [vmem:[#allocation216_spill] sm:$0xff] %v13138_v12  ;;  %18852 = vst [vmem:[#allocation97_spill] sm:$0xff] %v13142_v60  ;;  %v13154_v12 = vadd.f32 %v18855_v2, %v12135_v59  ;;  %v9234_v60 = vpop.eup %9233  ;;  %v2488_v2 = vpop.f32.mrb[43].mxu0  ;;  %vm6636_vm7 = vcmp.gt.f32.partialorder %v6508_v15, 0.0  ;;  %v18865_v6 = vld [vmem:[#allocation39_spill] sm:$0xff] }
 0x23a   :  { %18853 = vst [vmem:[#allocation217_spill] sm:$0xff] %v13145_v23  ;;  %18854 = vst [vmem:[#allocation218_spill] sm:$0xff] %v13150_v10  ;;  %v18858_v23 = vld [vmem:[#allocation101_spill] sm:$0xff]  ;;  %v7895_v10 = vmul.f32 -1.442695, %v8566_v28  ;;  %v9236_v32 = vpop.eup %9235  ;;  %v4229_v18 = vadd.f32 1.0, %v9234_v60  ;;  %v8569_v63 = vadd.f32 %v2488_v2, %v12135_v59  ;;  %8417 = vmatmul.mubr.msk.bf16.gmra.mrb[148].mxu1 %vm2155_vm1, %v18861_v9  ;;  %9259 = vrcp.f32 %v5124_v30  ;;  %v13201_v2 = vpop.permute.xlu0 %6834 }
 0x23b   :  { %18856 = vst [vmem:[#allocation98_spill] sm:$0xff] %v13154_v12  ;;  %18857 = vst [vmem:[#allocation219_spill] sm:$0xff] %v13157_v33  ;;  %v13164_v4 = vadd.f32 %v18858_v23, %v12132_v51  ;;  %v13166_v12 = vpop.f32.mrb[171].mxu1  ;;  %v8568_v33 = vadd.f32 %v2486_v21, %v12132_v51  ;;  %v9238_v55 = vpop.eup %9237  ;;  %v5125_v31 = vadd.f32 1.0, %v9236_v32  ;;  %v8023_v60 = vmul.f32 -1.442695, %v8567_v56  ;;  %8420 = vmatprep.mubr.msk.bf16.mxu1 %vm2155_vm1, %v18865_v6 }
 0x23c   :  { %18860 = vst [vmem:[#allocation220_spill] sm:$0xff] %v13168_v14  ;;  %v13176_v53 = vpop.eup %9239  ;;  %18863 = vst [vmem:[#allocation221_spill] sm:$0xff] %v13180_v39  ;;  %v109_v28 = vld [vmem:[%s18290_s1 + $0x290] sm:$0xff]  ;;  %9261 = vpow2.f32 %v7895_v10  ;;  %v13199_v56 = vpop.permute.xlu1 %6837  ;;  %v6764_v32 = vsel %vm6636_vm7, 1, %v18563_v46  ;;  %v13209_v6 = vadd.f32 %v12168_v57, %v12132_v51  ;;  %v6763_v10 = vsel %vm6635_vm8, 1, %v18563_v46  ;;  %7784 = vmatmul.mubr.msk.bf16.gmra.mrb[152].mxu0 %vm2155_vm1, %v13084_v20  ;;  %v18965_v20 = vld [vmem:[#allocation187_spill] sm:$0xff] }
 0x23d   :  { %18859 = vst [vmem:[#allocation101_spill] sm:$0xff] %v13164_v4  ;;  %18862 = vst [vmem:[#allocation36_spill] sm:$0xff] %v13176_v53  ;;  %v9242_v23 = vpop.eup %9241  ;;  %v18866_v21 = vld [vmem:[#allocation104_spill] sm:$0xff]  ;;  %v7896_v30 = vmul.f32 -1.442695, %v8568_v33  ;;  %9263 = vrcp.f32 %v4229_v18  ;;  %v2492_v39 = vpop.f32.mrb[44].mxu0  ;;  %7131 = vperm.xlu1 %9040, %v6764_v32   ;;  %v13220_v57 = vpack.c.bf16 %v110_v34, %v109_v28  ;;  %7128 = vperm.xlu0 %9039, %v6763_v10  }
 0x23e   :  { %18864 = vst [vmem:[#allocation222_spill] sm:$0xff] %v13184_v38  ;;  %v13197_v0 = vadd.f32 %v18866_v21, %v12135_v59  ;;  %18868 = vst [vmem:[#allocation104_spill] sm:$0xff] %v13199_v56  ;;  %v13205_v9 = vpop.eup %9243  ;;  %v4230_v38 = vadd.f32 1.0, %v9238_v55  ;;  %v13211_v21 = vpop.f32.mrb[172].mxu1  ;;  %9265 = vrcp.f32 %v5125_v31  ;;  %v8024_v15 = vmul.f32 -1.442695, %v8569_v63  ;;  %2770 = vmatprep.mubr.bf16.mxu0 %v18563_v46 }
 0x23f   :  { %18869 = vst [vmem:[#allocation223_spill] sm:$0xff] %v13201_v2  ;;  %18870 = vst [vmem:[#allocation224_spill] sm:$0xff] %v13205_v9  ;;  %v13215_v33 = vpop.eup %9245  ;;  %v2494_v4 = vpop.f32.mrb[45].mxu0  ;;  %v6510_v55 = vld [vmem:[%s18291_s2 + $0x3c8] sm:$0xff]  ;;  %v13233_v63 = vadd.f32 %v12200_v8, %v12132_v51  ;;  %v5126_v31 = vadd.f32 1.0, %v9242_v23  ;;  %9267 = vpow2.f32 %v8023_v60  ;;  %v13239_v32 = vadd.f32 %v12215_v1, %v12135_v59  ;;  %v111_v8 = vld [vmem:[%s18290_s1 + $0x2a0] sm:$0xff] }
 0x240   :  { %18867 = vst [vmem:[#allocation39_spill] sm:$0xff] %v13197_v0  ;;  %18871 = vst [vmem:[#allocation225_spill] sm:$0xff] %v13209_v6  ;;  %v8570_v0 = vadd.f32 %v2492_v39, %v12132_v51  ;;  %v13218_v56 = vpop.f32.mrb[173].mxu1  ;;  %v13225_v18 = vpop.eup %9247  ;;  %9269 = vpow2.f32 %v7896_v30  ;;  %v8571_v6 = vadd.f32 %v2494_v4, %v12135_v59  ;;  %v112_v60 = vld [vmem:[%s18290_s1 + $0x2a8] sm:$0xff]  ;;  %vm6638_vm9 = vcmp.gt.f32.partialorder %v6510_v55, 0.0  ;;  %v18879_v2 = vld [vmem:[#allocation41_spill] sm:$0xff] }
 0x241   :  { %18872 = vst [vmem:[#allocation226_spill] sm:$0xff] %v13215_v33  ;;  %18873 = vst [vmem:[#allocation227_spill] sm:$0xff] %v13220_v57  ;;  %v2496_v39 = vpop.f32.mrb[46].mxu0  ;;  %v13235_v28 = vpop.f32.mrb[174].mxu1  ;;  %9271 = vrcp.f32 %v4230_v38  ;;  %v13253_v4 = vadd.f32 %v12303_v50, %v12735_v62  ;;  %v6509_v38 = vld [vmem:[%s18291_s2 + $0x3c0] sm:$0xff]  ;;  %v13267_v50 = vadd.f32 %v12315_v25, %v12735_v62  ;;  %v13622_v19 = vadd.f32 %v18965_v20, %v12735_v62 }
 0x242   :  { %18874 = vst [vmem:[#allocation228_spill] sm:$0xff] %v13225_v18  ;;  %18875 = vst [vmem:[#allocation229_spill] sm:$0xff] %v13229_v49  ;;  %v9250_v34 = vpop.eup %9249  ;;  %v7897_v10 = vmul.f32 -1.442695, %v8570_v0  ;;  %v2498_v5 = vpop.f32.mrb[47].mxu0  ;;  %v8572_v1 = vadd.f32 %v2496_v39, %v12132_v51  ;;  %9273 = vpow2.f32 %v8024_v15  ;;  %8421 = vmatmul.mubr.msk.bf16.gmra.mrb[152].mxu1 %vm2155_vm1, %v18879_v2  ;;  %vm6637_vm10 = vcmp.gt.f32.partialorder %v6509_v38, 0.0 }
 0x243   :  { %18876 = vst [vmem:[#allocation230_spill] sm:$0xff] %v13233_v63  ;;  %18877 = vst [vmem:[#allocation231_spill] sm:$0xff] %v13239_v32  ;;  %v13242_v49 = vpop.f32.mrb[175].mxu1  ;;  %v9252_v23 = vpop.eup %9251  ;;  %v4231_v63 = vadd.f32 1.0, %v9250_v34  ;;  %v8573_v32 = vadd.f32 %v2498_v5, %v12135_v59  ;;  %9275 = vrcp.f32 %v5126_v31  ;;  %v18882_v34 = vld [vmem:[#allocation45_spill] sm:$0xff]  ;;  %v13272_v5 = vpack.c.bf16 %v112_v60, %v111_v8  ;;  %v113_v31 = vld [vmem:[%s18290_s1 + $0x2b0] sm:$0xff] }
 0x244   :  { %v9254_v0 = vpop.eup %9253  ;;  %18878 = vst [vmem:[#allocation232_spill] sm:$0xff] %v13253_v4  ;;  %v5127_v30 = vadd.f32 1.0, %v9252_v23  ;;  %18881 = vst [vmem:[#allocation233_spill] sm:$0xff] %v13267_v50  ;;  %8424 = vmatprep.mubr.msk.bf16.mxu1 %vm2155_vm1, %v18882_v34  ;;  %v13276_v23 = vadd.f32 %v12325_v61, %v12735_v62  ;;  %9277 = vpow2.f32 %v7897_v10  ;;  %v8025_v53 = vmul.f32 -1.442695, %v8571_v6  ;;  %v13280_v25 = vpop.permute.xlu0 %6840  ;;  %v114_v8 = vld [vmem:[%s18290_s1 + $0x2b8] sm:$0xff]  ;;  %7785 = vmatmul.mubr.msk.bf16.gmra.mrb[156].mxu0 %vm2155_vm1, %v13118_v47 }
 0x245   :  { %v13263_v39 = vpop.eup %9255  ;;  %v4232_v15 = vadd.f32 1.0, %v9254_v0  ;;  %18883 = vst [vmem:[#allocation45_spill] sm:$0xff] %v13272_v5  ;;  %18886 = vst [vmem:[#allocation236_spill] sm:$0xff] %v13280_v25  ;;  %v6766_v60 = vsel %vm6638_vm9, 1, %v18563_v46  ;;  %v13294_v61 = vadd.f32 %v12333_v42, %v12735_v62  ;;  %9279 = vrcp.f32 %v4231_v63  ;;  %v2502_v10 = vpop.f32.mrb[48].mxu0  ;;  %2780 = vmatprep.mubr.bf16.mxu0 %v18563_v46 }
 0x246   :  { %18880 = vst [vmem:[#allocation41_spill] sm:$0xff] %v13263_v39  ;;  %v9258_v2 = vpop.eup %9257  ;;  %18884 = vst [vmem:[#allocation234_spill] sm:$0xff] %v13276_v23  ;;  %v13278_v39 = vpop.permute.xlu1 %6843  ;;  %v7898_v6 = vmul.f32 -1.442695, %v8572_v1  ;;  %7137 = vperm.xlu1 %9040, %v6766_v60   ;;  %9281 = vrcp.f32 %v5127_v30  ;;  %v8026_v25 = vmul.f32 -1.442695, %v8573_v32  ;;  %v8574_v33 = vadd.f32 %v2502_v10, %v12132_v51 }
 0x247   :  { %18885 = vst [vmem:[#allocation235_spill] sm:$0xff] %v13278_v39  ;;  %v13290_v0 = vpop.eup %9259  ;;  %18888 = vst [vmem:[#allocation238_spill] sm:$0xff] %v13294_v61  ;;  %v13296_v34 = vpop.f32.mrb[176].mxu1  ;;  %v6765_v50 = vsel %vm6637_vm10, 1, %v18563_v46  ;;  %v13306_v42 = vadd.f32 %v12404_v29, %v12735_v62  ;;  %9283 = vrcp.f32 %v4232_v15  ;;  %v5128_v63 = vadd.f32 1.0, %v9258_v2 }
 0x248   :  { %18887 = vst [vmem:[#allocation237_spill] sm:$0xff] %v13290_v0  ;;  %v9262_v39 = vpop.eup %9261  ;;  %v2504_v55 = vpop.f32.mrb[49].mxu0  ;;  %v13310_v30 = vpack.c.bf16 %v114_v8, %v113_v31  ;;  %7134 = vperm.xlu0 %9039, %v6765_v50   ;;  %v13316_v60 = vadd.f32 %v12411_v13, %v12735_v62  ;;  %9285 = vpow2.f32 %v8025_v53  ;;  %v7899_v10 = vmul.f32 -1.442695, %v8574_v33  ;;  %18966 = vst [vmem:[#allocation187_spill] sm:$0xff] %v13622_v19 }
 0x249   :  { %v13299_v23 = vpop.f32.mrb[177].mxu1  ;;  %v13302_v4 = vpop.eup %9263  ;;  %18890 = vst [vmem:[#allocation240_spill] sm:$0xff] %v13306_v42  ;;  %v13323_v2 = vadd.f32 %v12424_v48, %v12735_v62  ;;  %v4233_v31 = vadd.f32 1.0, %v9262_v39  ;;  %9287 = vpow2.f32 %v7898_v6  ;;  %v13328_v13 = vadd.f32 %v12431_v41, %v12735_v62  ;;  %v115_v48 = vld [vmem:[%s18290_s1 + $0x2c0] sm:$0xff]  ;;  %v116_v39 = vld [vmem:[%s18290_s1 + $0x2c8] sm:$0xff]  ;;  %v6512_v41 = vld [vmem:[%s18291_s2 + $0x3d8] sm:$0xff] }
 0x24a   :  { %18889 = vst [vmem:[#allocation239_spill] sm:$0xff] %v13302_v4  ;;  %v2506_v1 = vpop.f32.mrb[50].mxu0  ;;  %v13308_v38 = vpop.f32.mrb[178].mxu1  ;;  %18891 = vst [vmem:[#allocation241_spill] sm:$0xff] %v13310_v30  ;;  %v8575_v4 = vadd.f32 %v2504_v55, %v12135_v59  ;;  %9289 = vpow2.f32 %v8026_v25  ;;  %v18896_v55 = vld [vmem:[#allocation50_spill] sm:$0xff]  ;;  %v13348_v6 = vadd.f32 %v12495_v27, %v12735_v62  ;;  %v13363_v27 = vadd.f32 %v12524_v17, %v12735_v62 }
 0x24b   :  { %v13312_v32 = vpop.eup %9265  ;;  %18893 = vst [vmem:[#allocation243_spill] sm:$0xff] %v13316_v60  ;;  %v2508_v29 = vpop.f32.mrb[51].mxu0  ;;  %18894 = vst [vmem:[#allocation244_spill] sm:$0xff] %v13323_v2  ;;  %v8576_v50 = vadd.f32 %v2506_v1, %v12132_v51  ;;  %8425 = vmatmul.mubr.msk.bf16.gmra.mrb[156].mxu1 %vm2155_vm1, %v18896_v55  ;;  %v13352_v1 = vadd.f32 %v12502_v45, %v12735_v62  ;;  %9291 = vrcp.f32 %v5128_v63  ;;  %vm6640_vm11 = vcmp.gt.f32.partialorder %v6512_v41, 0.0 }
 0x24c   :  { %18892 = vst [vmem:[#allocation242_spill] sm:$0xff] %v13312_v32  ;;  %v13319_v42 = vpop.f32.mrb[179].mxu1  ;;  %v9268_v15 = vpop.eup %9267  ;;  %18895 = vst [vmem:[#allocation245_spill] sm:$0xff] %v13328_v13  ;;  %v8577_v33 = vadd.f32 %v2508_v29, %v12135_v59  ;;  %v13359_v13 = vadd.f32 %v12517_v24, %v12735_v62  ;;  %9293 = vpow2.f32 %v7899_v10  ;;  %v8027_v45 = vmul.f32 -1.442695, %v8575_v4  ;;  %7786 = vmatmul.mubr.msk.bf16.gmra.mrb[160].mxu0 %vm2155_vm1, %v13168_v14 }
 0x24d   :  { %v9270_v8 = vpop.eup %9269  ;;  %v5129_v53 = vadd.f32 1.0, %v9268_v15  ;;  %18898 = vst [vmem:[#allocation246_spill] sm:$0xff] %v13348_v6  ;;  %18899 = vst [vmem:[#allocation247_spill] sm:$0xff] %v13352_v1  ;;  %v18900_v15 = vld [vmem:[#allocation55_spill] sm:$0xff]  ;;  %9295 = vrcp.f32 %v4233_v31  ;;  %v2512_v1 = vpop.f32.mrb[52].mxu0  ;;  %v6768_v4 = vsel %vm6640_vm11, 1, %v18563_v46  ;;  %v13381_v31 = vadd.f32 %v12588_v37, %v12735_v62  ;;  %2790 = vmatprep.mubr.bf16.mxu0 %v18563_v46 }
 0x24e   :  { %v13344_v25 = vpop.eup %9271  ;;  %v4234_v29 = vadd.f32 1.0, %v9270_v8  ;;  %8428 = vmatprep.mubr.msk.bf16.mxu1 %vm2155_vm1, %v18900_v15  ;;  %18901 = vst [vmem:[#allocation55_spill] sm:$0xff] %v13359_v13  ;;  %18902 = vst [vmem:[#allocation248_spill] sm:$0xff] %v13363_v27  ;;  %v7900_v8 = vmul.f32 -1.442695, %v8576_v50  ;;  %v13369_v6 = vpop.f32.mrb[180].mxu1  ;;  %v13371_v15 = vpack.c.bf16 %v116_v39, %v115_v48  ;;  %v8578_v17 = vadd.f32 %v2512_v1, %v12132_v51 }
 0x24f   :  { %18897 = vst [vmem:[#allocation50_spill] sm:$0xff] %v13344_v25  ;;  %v9274_v55 = vpop.eup %9273  ;;  %v13365_v25 = vpop.permute.xlu1 %6849  ;;  %9297 = vrcp.f32 %v5129_v53  ;;  %v8028_v13 = vmul.f32 -1.442695, %v8577_v33  ;;  %18907 = vst [vmem:[#allocation253_spill] sm:$0xff] %v13381_v31  ;;  %7143 = vperm.xlu1 %9040, %v6768_v4   ;;  %v13390_v41 = vadd.f32 %v12594_v43, %v12735_v62  ;;  %v13394_v1 = vadd.f32 %v12597_v16, %v12735_v62  ;;  %v18913_v31 = vld [vmem:[#allocation60_spill] sm:$0xff] }
 0x250   :  { %18903 = vst [vmem:[#allocation249_spill] sm:$0xff] %v13365_v25  ;;  %v13367_v63 = vpop.eup %9275  ;;  %18905 = vst [vmem:[#allocation251_spill] sm:$0xff] %v13371_v15  ;;  %v2514_v27 = vpop.f32.mrb[53].mxu0  ;;  %9299 = vrcp.f32 %v4234_v29  ;;  %v5130_v50 = vadd.f32 1.0, %v9274_v55  ;;  %v7901_v37 = vmul.f32 -1.442695, %v8578_v17 }
 0x251   :  { %18904 = vst [vmem:[#allocation250_spill] sm:$0xff] %v13367_v63  ;;  %v9278_v24 = vpop.eup %9277  ;;  %v13374_v10 = vpop.f32.mrb[181].mxu1  ;;  %v8579_v48 = vadd.f32 %v2514_v27, %v12135_v59  ;;  %18909 = vst [vmem:[#allocation255_spill] sm:$0xff] %v13390_v41  ;;  %9301 = vpow2.f32 %v8027_v45  ;;  %v6511_v27 = vld [vmem:[%s18291_s2 + $0x3d0] sm:$0xff] }
 0x252   :  { %v13377_v25 = vpop.eup %9279  ;;  %v2516_v39 = vpop.f32.mrb[54].mxu0  ;;  %18910 = vst [vmem:[#allocation256_spill] sm:$0xff] %v13394_v1  ;;  %v4235_v43 = vadd.f32 1.0, %v9278_v24  ;;  %9303 = vpow2.f32 %v7900_v8  ;;  %vm6639_vm12 = vcmp.gt.f32.partialorder %v6511_v27, 0.0  ;;  %v13437_v27 = vadd.f32 %v12660_v52, %v12735_v62 }
 0x253   :  { %18906 = vst [vmem:[#allocation252_spill] sm:$0xff] %v13377_v25  ;;  %v13384_v53 = vpop.f32.mrb[182].mxu1  ;;  %v13386_v33 = vpop.eup %9281  ;;  %v13405_v25 = vadd.f32 %v12604_v36, %v12735_v62  ;;  %v8580_v16 = vadd.f32 %v2516_v39, %v12132_v51  ;;  %9305 = vpow2.f32 %v8028_v13  ;;  %v8029_v17 = vmul.f32 -1.442695, %v8579_v48  ;;  %8429 = vmatmul.mubr.msk.bf16.gmra.mrb[160].mxu1 %vm2155_vm1, %v18913_v31  ;;  %v10429_v36 = vld [vmem:[%s18290_s1] sm:$0xff]  ;;  %v18915_v13 = vld [vmem:[#allocation65_spill] sm:$0xff] }
 0x254   :  { %18908 = vst [vmem:[#allocation254_spill] sm:$0xff] %v13386_v33  ;;  %v2518_v29 = vpop.f32.mrb[55].mxu0  ;;  %v13396_v55 = vpop.f32.mrb[183].mxu1  ;;  %v13418_v8 = vmul.f32 %v10429_v36, %v12683_v22  ;;  %9307 = vrcp.f32 %v5130_v50  ;;  %8432 = vmatprep.mubr.msk.bf16.mxu1 %vm2155_vm1, %v18915_v13  ;;  %v6767_v45 = vsel %vm6639_vm12, 1, %v18563_v46  ;;  %v10430_v50 = vld [vmem:[%s18290_s1 + $0x8] sm:$0xff]  ;;  %18919 = vst [vmem:[#allocation261_spill] sm:$0xff] %v13437_v27  ;;  %v13443_v39 = vadd.f32 %v12665_v7, %v12735_v62 }
 0x255   :  { %v13401_v4 = vpop.eup %9283  ;;  %18912 = vst [vmem:[#allocation258_spill] sm:$0xff] %v13405_v25  ;;  %v8581_v41 = vadd.f32 %v2518_v29, %v12135_v59  ;;  %v13424_v29 = vpop.permute.xlu0 %6846  ;;  %9309 = vpow2.f32 %v7901_v37  ;;  %7140 = vperm.xlu0 %9039, %v6767_v45   ;;  %7787 = vmatmul.mubr.msk.bf16.gmra.mrb[164].mxu0 %vm2155_vm1, %v13220_v57  ;;  %v18929_v22 = vld [vmem:[#allocation75_spill] sm:$0xff] }
 0x256   :  { %18911 = vst [vmem:[#allocation257_spill] sm:$0xff] %v13401_v4  ;;  %v9286_v1 = vpop.eup %9285  ;;  %18914 = vst [vmem:[#allocation60_spill] sm:$0xff] %v13418_v8  ;;  %9311 = vrcp.f32 %v4235_v43  ;;  %v2522_v36 = vpop.f32.mrb[56].mxu0  ;;  %v13452_v43 = vadd.f32 %v12674_v40, %v12735_v62  ;;  %2800 = vmatprep.mubr.bf16.mxu0 %v18563_v46 }
 0x257   :  { %v9288_v4 = vpop.eup %9287  ;;  %v5131_v24 = vadd.f32 1.0, %v9286_v1  ;;  %18916 = vst [vmem:[#allocation65_spill] sm:$0xff] %v13424_v29  ;;  %v13433_v1 = vmul.f32 %v10430_v50, %v12728_v11  ;;  %v13439_v13 = vpop.f32.mrb[184].mxu1  ;;  %18920 = vst [vmem:[#allocation262_spill] sm:$0xff] %v13443_v39  ;;  %9313 = vpow2.f32 %v8029_v17  ;;  %v8030_v29 = vmul.f32 -1.442695, %v8581_v41 }
 0x258   :  { %v9290_v48 = vpop.eup %9289  ;;  %v4236_v31 = vadd.f32 1.0, %v9288_v4  ;;  %v7902_v4 = vmul.f32 -1.442695, %v8580_v16  ;;  %v8582_v50 = vadd.f32 %v2522_v36, %v12132_v51  ;;  %v13446_v11 = vpop.f32.mrb[185].mxu1  ;;  %18922 = vst [vmem:[#allocation264_spill] sm:$0xff] %v13452_v43  ;;  %v13462_v36 = vadd.f32 %v12681_v35, %v12735_v62 }
 0x259   :  { %v13427_v25 = vpop.eup %9291  ;;  %18918 = vst [vmem:[#allocation260_spill] sm:$0xff] %v13433_v1  ;;  %v2524_v1 = vpop.f32.mrb[57].mxu0  ;;  %9315 = vrcp.f32 %v5131_v24  ;;  %v5132_v16 = vadd.f32 1.0, %v9290_v48  ;;  %v6514_v24 = vld [vmem:[%s18291_s2 + $0x3e8] sm:$0xff] }
 0x25a   :  { %18917 = vst [vmem:[#allocation259_spill] sm:$0xff] %v13427_v25  ;;  %v9294_v37 = vpop.eup %9293  ;;  %v8583_v45 = vadd.f32 %v2524_v1, %v12135_v59  ;;  %v2526_v27 = vpop.f32.mrb[58].mxu0  ;;  %18924 = vst [vmem:[#allocation266_spill] sm:$0xff] %v13462_v36  ;;  %9317 = vrcp.f32 %v4236_v31  ;;  %v10431_v1 = vld [vmem:[%s18290_s1 + $0x10] sm:$0xff]  ;;  %v10432_v36 = vld [vmem:[%s18290_s1 + $0x18] sm:$0xff]  ;;  %vm6642_vm13 = vcmp.gt.f32.partialorder %v6514_v24, 0.0 }
 0x25b   :  { %v13448_v52 = vpop.eup %9295  ;;  %v13455_v7 = vpop.f32.mrb[186].mxu1  ;;  %v13475_v41 = vmul.f32 %v10431_v1, %v12759_v3  ;;  %v4237_v31 = vadd.f32 1.0, %v9294_v37  ;;  %9319 = vpow2.f32 %v7902_v4  ;;  %v13482_v43 = vmul.f32 %v10432_v36, %v12805_v54  ;;  %v18928_v1 = vld [vmem:[#allocation70_spill] sm:$0xff] }
 0x25c   :  { %18921 = vst [vmem:[#allocation263_spill] sm:$0xff] %v13448_v52  ;;  %v13457_v17 = vpop.eup %9297  ;;  %v7903_v52 = vmul.f32 -1.442695, %v8582_v50  ;;  %v2528_v39 = vpop.f32.mrb[59].mxu0  ;;  %9321 = vpow2.f32 %v8030_v29  ;;  %v8584_v8 = vadd.f32 %v2526_v27, %v12132_v51  ;;  %8433 = vmatmul.mubr.msk.bf16.gmra.mrb[164].mxu1 %vm2155_vm1, %v18928_v1  ;;  %v13495_v27 = vadd.f32 %v12737_v26, %v12735_v62 }
 0x25d   :  { %18923 = vst [vmem:[#allocation265_spill] sm:$0xff] %v13457_v17  ;;  %v13464_v40 = vpop.f32.mrb[187].mxu1  ;;  %v13469_v48 = vpop.eup %9299  ;;  %18926 = vst [vmem:[#allocation268_spill] sm:$0xff] %v13475_v41  ;;  %9323 = vrcp.f32 %v5132_v16  ;;  %v8585_v35 = vadd.f32 %v2528_v39, %v12135_v59  ;;  %8436 = vmatprep.mubr.msk.bf16.mxu1 %vm2155_vm1, %v18929_v22  ;;  %v6770_v16 = vsel %vm6642_vm13, 1, %v18563_v46  ;;  %v13504_v39 = vadd.f32 %v12745_v44, %v12735_v62  ;;  %v18940_v41 = vld [vmem:[#allocation186_spill] sm:$0xff] }
 0x25e   :  { %18925 = vst [vmem:[#allocation267_spill] sm:$0xff] %v13469_v48  ;;  %v9302_v50 = vpop.eup %9301  ;;  %18927 = vst [vmem:[#allocation269_spill] sm:$0xff] %v13482_v43  ;;  %v8031_v48 = vmul.f32 -1.442695, %v8583_v45  ;;  %v13497_v36 = vpop.permute.xlu1 %6855  ;;  %9325 = vpow2.f32 %v7903_v52  ;;  %v13508_v22 = vadd.f32 %v12754_v58, %v12735_v62  ;;  %7149 = vperm.xlu1 %9040, %v6770_v16   ;;  %v18935_v52 = vld [vmem:[#allocation176_spill] sm:$0xff]  ;;  %v6513_v58 = vld [vmem:[%s18291_s2 + $0x3e0] sm:$0xff]  ;;  %7788 = vmatmul.mubr.msk.bf16.gmra.mrb[168].mxu0 %vm2155_vm1, %v13272_v5 }
 0x25f   :  { %v9304_v37 = vpop.eup %9303  ;;  %v5133_v4 = vadd.f32 1.0, %v9302_v50  ;;  %18930 = vst [vmem:[#allocation70_spill] sm:$0xff] %v13495_v27  ;;  %18931 = vst [vmem:[#allocation75_spill] sm:$0xff] %v13497_v36  ;;  %9327 = vrcp.f32 %v4237_v31  ;;  %v2532_v26 = vpop.f32.mrb[60].mxu0  ;;  %v13514_v36 = vadd.f32 %v18935_v52, %v12735_v62  ;;  %v7904_v27 = vmul.f32 -1.442695, %v8584_v8  ;;  %2810 = vmatprep.mubr.bf16.mxu0 %v18563_v46 }
 0x260   :  { %v9306_v29 = vpop.eup %9305  ;;  %v4238_v45 = vadd.f32 1.0, %v9304_v37  ;;  %18933 = vst [vmem:[#allocation271_spill] sm:$0xff] %v13504_v39  ;;  %18934 = vst [vmem:[#allocation272_spill] sm:$0xff] %v13508_v22  ;;  %v13510_v1 = vpop.f32.mrb[188].mxu1  ;;  %9329 = vpow2.f32 %v8031_v48  ;;  %v8586_v44 = vadd.f32 %v2532_v26, %v12132_v51  ;;  %v8032_v22 = vmul.f32 -1.442695, %v8585_v35 }
 0x261   :  { %v13500_v50 = vpop.eup %9307  ;;  %v5134_v24 = vadd.f32 1.0, %v9306_v29  ;;  %18936 = vst [vmem:[#allocation176_spill] sm:$0xff] %v13514_v36  ;;  %v2534_v39 = vpop.f32.mrb[61].mxu0  ;;  %v18938_v29 = vld [vmem:[#allocation185_spill] sm:$0xff]  ;;  %9331 = vrcp.f32 %v5133_v4  ;;  %v10433_v26 = vld [vmem:[%s18290_s1 + $0x20] sm:$0xff]  ;;  %vm6641_vm14 = vcmp.gt.f32.partialorder %v6513_v58, 0.0 }
 0x262   :  { %18932 = vst [vmem:[#allocation270_spill] sm:$0xff] %v13500_v50  ;;  %v9310_v37 = vpop.eup %9309  ;;  %v13517_v43 = vpop.f32.mrb[189].mxu1  ;;  %v8587_v52 = vadd.f32 %v2534_v39, %v12135_v59  ;;  %v13532_v54 = vmul.f32 %v10433_v26, %v18938_v29  ;;  %9333 = vrcp.f32 %v4238_v45  ;;  %v10434_v39 = vld [vmem:[%s18290_s1 + $0x28] sm:$0xff]  ;;  %v18946_v29 = vld [vmem:[#allocation80_spill] sm:$0xff] }
 0x263   :  { %v13522_v31 = vpop.eup %9311  ;;  %v2536_v36 = vpop.f32.mrb[62].mxu0  ;;  %v13543_v3 = vmul.f32 %v10434_v39, %v18940_v41  ;;  %9335 = vrcp.f32 %v5134_v24  ;;  %v4239_v60 = vadd.f32 1.0, %v9310_v37  ;;  %v18944_v45 = vld [vmem:[#allocation179_spill] sm:$0xff]  ;;  %v18947_v24 = vld [vmem:[#allocation181_spill] sm:$0xff]  ;;  %v10435_v58 = vld [vmem:[%s18290_s1 + $0x30] sm:$0xff] }
 0x264   :  { %18937 = vst [vmem:[#allocation273_spill] sm:$0xff] %v13522_v31  ;;  %v13526_v48 = vpop.f32.mrb[190].mxu1  ;;  %v9314_v8 = vpop.eup %9313  ;;  %18939 = vst [vmem:[#allocation274_spill] sm:$0xff] %v13532_v54  ;;  %v7905_v31 = vmul.f32 -1.442695, %v8586_v44  ;;  %v13549_v44 = vadd.f32 %v18944_v45, %v12735_v62  ;;  %9337 = vpow2.f32 %v7904_v27  ;;  %v8588_v54 = vadd.f32 %v2536_v36, %v12132_v51  ;;  %8437 = vmatmul.mubr.msk.bf16.gmra.mrb[168].mxu1 %vm2155_vm1, %v18946_v29  ;;  %v18949_v27 = vld [vmem:[#allocation85_spill] sm:$0xff] }
 0x265   :  { %v2538_v16 = vpop.f32.mrb[63].mxu0  ;;  %v13535_v4 = vpop.f32.mrb[191].mxu1  ;;  %18942 = vst [vmem:[#allocation276_spill] sm:$0xff] %v13543_v3  ;;  %v8033_v2 = vmul.f32 -1.442695, %v8587_v52  ;;  %v13558_v37 = vadd.f32 %v18947_v24, %v12735_v62  ;;  %9339 = vpow2.f32 %v8032_v22  ;;  %8440 = vmatprep.mubr.msk.bf16.mxu1 %vm2155_vm1, %v18949_v27  ;;  %v18950_v52 = vld [vmem:[#allocation183_spill] sm:$0xff] }
 0x266   :  { %v13537_v35 = vpop.eup %9315  ;;  %18945 = vst [vmem:[#allocation179_spill] sm:$0xff] %v13549_v44  ;;  %v8589_v45 = vadd.f32 %v2538_v16, %v12135_v59  ;;  %v13566_v44 = vadd.f32 %v18950_v52, %v12735_v62  ;;  %v13568_v29 = vpop.permute.xlu0 %6852  ;;  %9341 = vpow2.f32 %v7905_v31  ;;  %v117_v22 = vld [vmem:[%s18290_s1 + $0x2d0] sm:$0xff]  ;;  %v118_v16 = vld [vmem:[%s18290_s1 + $0x2d8] sm:$0xff]  ;;  %v7906_v52 = vmul.f32 -1.442695, %v8588_v54  ;;  %7789 = vmatmul.mubr.msk.bf16.gmra.mrb[172].mxu0 %vm2155_vm1, %v13310_v30 }
 0x267   :  { %18941 = vst [vmem:[#allocation275_spill] sm:$0xff] %v13537_v35  ;;  %v13545_v26 = vpop.eup %9317  ;;  %18948 = vst [vmem:[#allocation80_spill] sm:$0xff] %v13558_v37  ;;  %v18954_v27 = vld [vmem:[#allocation193_spill] sm:$0xff]  ;;  %9343 = vrcp.f32 %v4239_v60  ;;  %v13585_v37 = vpop.f32.mrb[192].mxu1  ;;  %2820 = vmatprep.mubr.bf16.mxu0 %v18563_v46 }
 0x268   :  { %18943 = vst [vmem:[#allocation277_spill] sm:$0xff] %v13545_v26  ;;  %v9320_v39 = vpop.eup %9319  ;;  %v5135_v26 = vadd.f32 1.0, %v9314_v8  ;;  %18951 = vst [vmem:[#allocation181_spill] sm:$0xff] %v13566_v44  ;;  %v6769_v8 = vsel %vm6641_vm14, 1, %v18563_v46  ;;  %v18955_v44 = vld [vmem:[#allocation184_spill] sm:$0xff]  ;;  %v13591_v61 = vmul.f32 %v10435_v58, %v18954_v27  ;;  %9345 = vpow2.f32 %v8033_v2  ;;  %v6516_v60 = vld [vmem:[%s18291_s2 + $0x3f8] sm:$0xff] }
 0x269   :  { %v9322_v36 = vpop.eup %9321  ;;  %18952 = vst [vmem:[#allocation85_spill] sm:$0xff] %v13568_v29  ;;  %v4240_v3 = vadd.f32 1.0, %v9320_v39  ;;  %v13583_v29 = vadd.f32 %v18955_v44, %v12735_v62  ;;  %v2542_v39 = vpop.f32.mrb[64].mxu0  ;;  %7146 = vperm.xlu0 %9039, %v6769_v8   ;;  %v8034_v8 = vmul.f32 -1.442695, %v8589_v45  ;;  %v13602_v58 = vpack.c.bf16 %v118_v16, %v117_v22  ;;  %v10436_v27 = vld [vmem:[%s18290_s1 + $0x38] sm:$0xff] }
 0x26a   :  { %v13578_v24 = vpop.eup %9323  ;;  %v5136_v31 = vadd.f32 1.0, %v9322_v36  ;;  %18957 = vst [vmem:[#allocation278_spill] sm:$0xff] %v13591_v61  ;;  %v8590_v5 = vadd.f32 %v2542_v39, %v12132_v51  ;;  %v2544_v44 = vpop.f32.mrb[65].mxu0  ;;  %9347 = vrcp.f32 %v5135_v26  ;;  %v18960_v39 = vld [vmem:[#allocation196_spill] sm:$0xff]  ;;  %vm6644_vm15 = vcmp.gt.f32.partialorder %v6516_v60, 0.0 }
 0x26b   :  { %18953 = vst [vmem:[#allocation183_spill] sm:$0xff] %v13578_v24  ;;  %18956 = vst [vmem:[#allocation184_spill] sm:$0xff] %v13583_v29  ;;  %v9326_v41 = vpop.eup %9325  ;;  %v13594_v29 = vpop.f32.mrb[193].mxu1  ;;  %v8591_v57 = vadd.f32 %v2544_v44, %v12135_v59  ;;  %v13611_v47 = vmul.f32 %v10436_v27, %v18960_v39  ;;  %9349 = vrcp.f32 %v4240_v3  ;;  %v18967_v27 = vld [vmem:[#allocation189_spill] sm:$0xff]  ;;  %v6515_v60 = vld [vmem:[%s18291_s2 + $0x3f0] sm:$0xff] }
 0x26c   :  { %v13599_v36 = vpop.eup %9327  ;;  %v2546_v14 = vpop.f32.mrb[66].mxu0  ;;  %v7907_v26 = vmul.f32 -1.442695, %v8590_v5  ;;  %9351 = vrcp.f32 %v5136_v31  ;;  %v4241_v22 = vadd.f32 1.0, %v9326_v41  ;;  %v13626_v3 = vadd.f32 %v18967_v27, %v12735_v62  ;;  %v18969_v31 = vld [vmem:[#allocation90_spill] sm:$0xff]  ;;  %v18971_v41 = vld [vmem:[#allocation191_spill] sm:$0xff] }
 0x26d   :  { %18958 = vst [vmem:[#allocation279_spill] sm:$0xff] %v13599_v36  ;;  %v13604_v2 = vpop.f32.mrb[194].mxu1  ;;  %v9330_v54 = vpop.eup %9329  ;;  %18961 = vst [vmem:[#allocation281_spill] sm:$0xff] %v13611_v47  ;;  %v8592_v16 = vadd.f32 %v2546_v14, %v12132_v51  ;;  %9353 = vpow2.f32 %v7906_v52  ;;  %v8035_v5 = vmul.f32 -1.442695, %v8591_v57  ;;  %8441 = vmatmul.mubr.msk.bf16.gmra.mrb[172].mxu1 %vm2155_vm1, %v18969_v31  ;;  %v18973_v52 = vld [vmem:[#allocation95_spill] sm:$0xff] }
 0x26e   :  { %18959 = vst [vmem:[#allocation280_spill] sm:$0xff] %v13604_v2  ;;  %v2548_v45 = vpop.f32.mrb[67].mxu0  ;;  %v13613_v36 = vpop.f32.mrb[195].mxu1  ;;  %18968 = vst [vmem:[#allocation189_spill] sm:$0xff] %v13626_v3  ;;  %v5137_v20 = vadd.f32 1.0, %v9330_v54  ;;  %9355 = vpow2.f32 %v8034_v8  ;;  %8444 = vmatprep.mubr.msk.bf16.mxu1 %vm2155_vm1, %v18973_v52  ;;  %v18974_v27 = vld [vmem:[#allocation192_spill] sm:$0xff]  ;;  %7790 = vmatmul.mubr.msk.bf16.gmra.mrb[176].mxu0 %vm2155_vm1, %v13371_v15 }
 0x26f   :  { %18962 = vst [vmem:[#allocation282_spill] sm:$0xff] %v13613_v36  ;;  %v13615_v44 = vpop.eup %9331  ;;  %v8593_v19 = vadd.f32 %v2548_v45, %v12135_v59  ;;  %v13644_v3 = vadd.f32 %v18974_v27, %v12735_v62  ;;  %v13646_v31 = vpop.permute.xlu1 %6861  ;;  %9357 = vpow2.f32 %v7907_v26  ;;  %v7908_v47 = vmul.f32 -1.442695, %v8592_v16  ;;  %v18980_v16 = vld [vmem:[#allocation197_spill] sm:$0xff]  ;;  %2830 = vmatprep.mubr.bf16.mxu0 %v18563_v46 }
 0x270   :  { %18963 = vst [vmem:[#allocation283_spill] sm:$0xff] %v13615_v44  ;;  %v13618_v61 = vpop.eup %9333  ;;  %18976 = vst [vmem:[#allocation192_spill] sm:$0xff] %v13646_v31  ;;  %v6772_v54 = vsel %vm6644_vm15, 1, %v18563_v46  ;;  %9359 = vrcp.f32 %v4241_v22  ;;  %v13657_v39 = vpop.f32.mrb[196].mxu1  ;;  %v13664_v45 = vadd.f32 %v18980_v16, %v12735_v62  ;;  %vm6643_vm0 = vcmp.gt.f32.partialorder %v6515_v60, 0.0  ;;  %v19003_v60 = vld [vmem:[#allocation207_spill] sm:$0xff] }
 0x271   :  { %18964 = vst [vmem:[#allocation284_spill] sm:$0xff] %v13618_v61  ;;  %v13632_v14 = vpop.eup %9335  ;;  %v13636_v61 = vadd.f32 %v18971_v41, %v12735_v62  ;;  %18975 = vst [vmem:[#allocation95_spill] sm:$0xff] %v13644_v3  ;;  %v18977_v41 = vld [vmem:[#allocation203_spill] sm:$0xff]  ;;  %v2552_v3 = vpop.f32.mrb[68].mxu0  ;;  %7155 = vperm.xlu1 %9040, %v6772_v54   ;;  %9361 = vpow2.f32 %v8035_v5  ;;  %v8036_v30 = vmul.f32 -1.442695, %v8593_v19 }
 0x272   :  { %18970 = vst [vmem:[#allocation90_spill] sm:$0xff] %v13632_v14  ;;  %v9338_v57 = vpop.eup %9337  ;;  %18979 = vst [vmem:[#allocation286_spill] sm:$0xff] %v13657_v39  ;;  %v13667_v22 = vpop.f32.mrb[197].mxu1  ;;  %9363 = vrcp.f32 %v5137_v20  ;;  %v10438_v19 = vld [vmem:[%s18290_s1 + $0x48] sm:$0xff] }
 0x273   :  { %18972 = vst [vmem:[#allocation191_spill] sm:$0xff] %v13636_v61  ;;  %v9340_v8 = vpop.eup %9339  ;;  %v10437_v61 = vld [vmem:[%s18290_s1 + $0x40] sm:$0xff]  ;;  %v4242_v27 = vadd.f32 1.0, %v9338_v57  ;;  %18981 = vst [vmem:[#allocation197_spill] sm:$0xff] %v13664_v45  ;;  %v13673_v2 = vpop.f32.mrb[198].mxu1  ;;  %9365 = vpow2.f32 %v7908_v47 }
 0x274   :  { %v13655_v52 = vmul.f32 %v10437_v61, %v18977_v41  ;;  %v9342_v26 = vpop.eup %9341  ;;  %v5138_v31 = vadd.f32 1.0, %v9340_v8  ;;  %v8594_v61 = vadd.f32 %v2552_v3, %v12132_v51  ;;  %18982 = vst [vmem:[#allocation287_spill] sm:$0xff] %v13667_v22  ;;  %v18984_v41 = vld [vmem:[#allocation206_spill] sm:$0xff]  ;;  %18985 = vst [vmem:[#allocation289_spill] sm:$0xff] %v13673_v2  ;;  %v13676_v45 = vpop.f32.mrb[199].mxu1 }
 0x275   :  { %v13669_v57 = vpop.eup %9343  ;;  %18986 = vst [vmem:[#allocation290_spill] sm:$0xff] %v13676_v45  ;;  %v13684_v20 = vmul.f32 %v10438_v19, %v18984_v41  ;;  %9367 = vrcp.f32 %v4242_v27  ;;  %v4243_v47 = vadd.f32 1.0, %v9342_v26  ;;  %v18994_v45 = vld [vmem:[#allocation202_spill] sm:$0xff]  ;;  %v18998_v26 = vld [vmem:[#allocation212_spill] sm:$0xff]  ;;  %v13726_v15 = vpop.f32.mrb[200].mxu1 }
 0x276   :  { %18978 = vst [vmem:[#allocation285_spill] sm:$0xff] %v13655_v52  ;;  %v2554_v52 = vpop.f32.mrb[69].mxu0  ;;  %18983 = vst [vmem:[#allocation288_spill] sm:$0xff] %v13669_v57  ;;  %v9346_v16 = vpop.eup %9345  ;;  %v7909_v8 = vmul.f32 -1.442695, %v8594_v61  ;;  %v18992_v61 = vld [vmem:[#allocation200_spill] sm:$0xff]  ;;  %v13698_v2 = vadd.f32 %v18994_v45, %v12735_v62  ;;  %9369 = vrcp.f32 %v5138_v31  ;;  %7791 = vmatmul.mubr.msk.bf16.gmra.mrb[180].mxu0 %vm2155_vm1, %v13602_v58 }
 0x277   :  { %v8595_v39 = vadd.f32 %v2554_v52, %v12135_v59  ;;  %v2556_v36 = vpop.f32.mrb[70].mxu0  ;;  %v13678_v22 = vpop.eup %9347  ;;  %18988 = vst [vmem:[#allocation292_spill] sm:$0xff] %v13684_v20  ;;  %v18989_v52 = vld [vmem:[#allocation199_spill] sm:$0xff]  ;;  %v13694_v57 = vadd.f32 %v18992_v61, %v12735_v62  ;;  %v18996_v19 = vld [vmem:[#allocation102_spill] sm:$0xff]  ;;  %9371 = vpow2.f32 %v8036_v30  ;;  %v18999_v61 = vld [vmem:[#allocation112_spill] sm:$0xff]  ;;  %2840 = vmatprep.mubr.bf16.mxu0 %v18563_v46 }
 0x278   :  { %v8596_v5 = vadd.f32 %v2556_v36, %v12132_v51  ;;  %v2558_v3 = vpop.f32.mrb[71].mxu0  ;;  %18987 = vst [vmem:[#allocation291_spill] sm:$0xff] %v13678_v22  ;;  %v13688_v54 = vadd.f32 %v18989_v52, %v12735_v62  ;;  %v13690_v36 = vpop.eup %9349  ;;  %18995 = vst [vmem:[#allocation202_spill] sm:$0xff] %v13698_v2  ;;  %8445 = vmatmul.mubr.msk.bf16.gmra.mrb[176].mxu1 %vm2155_vm1, %v18996_v19  ;;  %v10439_v45 = vld [vmem:[%s18290_s1 + $0x50] sm:$0xff]  ;;  %9373 = vpow2.f32 %v7909_v8  ;;  %v10440_v8 = vld [vmem:[%s18290_s1 + $0x58] sm:$0xff] }
 0x279   :  { %18991 = vst [vmem:[#allocation293_spill] sm:$0xff] %v13690_v36  ;;  %18993 = vst [vmem:[#allocation200_spill] sm:$0xff] %v13694_v57  ;;  %v8037_v22 = vmul.f32 -1.442695, %v8595_v39  ;;  %v13704_v27 = vpop.eup %9351  ;;  %8448 = vmatprep.mubr.msk.bf16.mxu1 %vm2155_vm1, %v18999_v61  ;;  %v6771_v39 = vsel %vm6643_vm0, 1, %v18563_v46  ;;  %v13716_v19 = vmul.f32 %v10439_v45, %v18998_v26  ;;  %v13718_v2 = vpop.permute.xlu0 %6858  ;;  %v19002_v61 = vld [vmem:[#allocation214_spill] sm:$0xff]  ;;  %v13724_v36 = vadd.f32 %v19003_v60, %v12735_v62 }
 0x27a   :  { %18990 = vst [vmem:[#allocation199_spill] sm:$0xff] %v13688_v54  ;;  %18997 = vst [vmem:[#allocation102_spill] sm:$0xff] %v13704_v27  ;;  %v5139_v54 = vadd.f32 1.0, %v9346_v16  ;;  %v9354_v31 = vpop.eup %9353  ;;  %v7910_v30 = vmul.f32 -1.442695, %v8596_v5  ;;  %v8597_v16 = vadd.f32 %v2558_v3, %v12135_v59  ;;  %7152 = vperm.xlu0 %9039, %v6771_v39   ;;  %9375 = vrcp.f32 %v4243_v47  ;;  %v2562_v41 = vpop.f32.mrb[72].mxu0 }
 0x27b   :  { %19000 = vst [vmem:[#allocation112_spill] sm:$0xff] %v13716_v19  ;;  %19001 = vst [vmem:[#allocation294_spill] sm:$0xff] %v13718_v2  ;;  %v9356_v52 = vpop.eup %9355  ;;  %v4244_v20 = vadd.f32 1.0, %v9354_v31  ;;  %v13732_v5 = vmul.f32 %v10440_v8, %v19002_v61  ;;  %9377 = vpow2.f32 %v8037_v22  ;;  %v8598_v39 = vadd.f32 %v2562_v41, %v12132_v51  ;;  %v2564_v57 = vpop.f32.mrb[73].mxu0  ;;  %v119_v47 = vld [vmem:[%s18290_s1 + $0x2e0] sm:$0xff]  ;;  %v120_v31 = vld [vmem:[%s18290_s1 + $0x2e8] sm:$0xff] }
 0x27c   :  { %19004 = vst [vmem:[#allocation207_spill] sm:$0xff] %v13724_v36  ;;  %19005 = vst [vmem:[#allocation295_spill] sm:$0xff] %v13726_v15  ;;  %v9358_v45 = vpop.eup %9357  ;;  %v5140_v3 = vadd.f32 1.0, %v9356_v52  ;;  %v13741_v60 = vpop.f32.mrb[201].mxu1  ;;  %v19009_v8 = vld [vmem:[#allocation209_spill] sm:$0xff]  ;;  %9379 = vrcp.f32 %v5139_v54  ;;  %v8599_v41 = vadd.f32 %v2564_v57, %v12135_v59  ;;  %v19012_v19 = vld [vmem:[#allocation210_spill] sm:$0xff] }
 0x27d   :  { %19006 = vst [vmem:[#allocation296_spill] sm:$0xff] %v13732_v5  ;;  %19007 = vst [vmem:[#allocation297_spill] sm:$0xff] %v13741_v60  ;;  %v13743_v36 = vpop.eup %9359  ;;  %v13747_v2 = vadd.f32 %v19009_v8, %v12735_v62  ;;  %v4245_v22 = vadd.f32 1.0, %v9358_v45  ;;  %v2566_v52 = vpop.f32.mrb[74].mxu0  ;;  %v13754_v26 = vadd.f32 %v19012_v19, %v12735_v62  ;;  %9381 = vpow2.f32 %v7910_v30  ;;  %v19015_v54 = vld [vmem:[#allocation211_spill] sm:$0xff]  ;;  %v19017_v19 = vld [vmem:[#allocation218_spill] sm:$0xff] }
 0x27e   :  { %19008 = vst [vmem:[#allocation298_spill] sm:$0xff] %v13743_v36  ;;  %v13750_v5 = vpop.f32.mrb[202].mxu1  ;;  %v9362_v61 = vpop.eup %9361  ;;  %v8038_v60 = vmul.f32 -1.442695, %v8597_v16  ;;  %v8600_v36 = vadd.f32 %v2566_v52, %v12132_v51  ;;  %v13763_v57 = vadd.f32 %v19015_v54, %v12735_v62  ;;  %9383 = vrcp.f32 %v4244_v20  ;;  %v10441_v30 = vld [vmem:[%s18290_s1 + $0x60] sm:$0xff] }
 0x27f   :  { %19010 = vst [vmem:[#allocation209_spill] sm:$0xff] %v13747_v2  ;;  %19011 = vst [vmem:[#allocation299_spill] sm:$0xff] %v13750_v5  ;;  %v2568_v15 = vpop.f32.mrb[75].mxu0  ;;  %v13757_v27 = vpop.f32.mrb[203].mxu1  ;;  %v7911_v45 = vmul.f32 -1.442695, %v8598_v39  ;;  %v13765_v2 = vpack.c.bf16 %v120_v31, %v119_v47  ;;  %v13772_v16 = vmul.f32 %v10441_v30, %v19017_v19  ;;  %9385 = vrcp.f32 %v5140_v3 }
 0x280   :  { %19013 = vst [vmem:[#allocation210_spill] sm:$0xff] %v13754_v26  ;;  %v13759_v8 = vpop.eup %9363  ;;  %19016 = vst [vmem:[#allocation211_spill] sm:$0xff] %v13763_v57  ;;  %v8039_v52 = vmul.f32 -1.442695, %v8599_v41  ;;  %v19019_v54 = vld [vmem:[#allocation134_spill] sm:$0xff]  ;;  %v19021_v39 = vld [vmem:[#allocation215_spill] sm:$0xff]  ;;  %9387 = vrcp.f32 %v4245_v22 }
 0x281   :  { %19014 = vst [vmem:[#allocation300_spill] sm:$0xff] %v13759_v8  ;;  %v9366_v5 = vpop.eup %9365  ;;  %19018 = vst [vmem:[#allocation301_spill] sm:$0xff] %v13772_v16  ;;  %8449 = vmatmul.mubr.msk.bf16.gmra.mrb[180].mxu1 %vm2155_vm1, %v19019_v54  ;;  %v13782_v47 = vadd.f32 %v19021_v39, %v12735_v62  ;;  %v19023_v31 = vld [vmem:[#allocation217_spill] sm:$0xff]  ;;  %v5141_v30 = vadd.f32 1.0, %v9362_v61  ;;  %v19025_v3 = vld [vmem:[#allocation142_spill] sm:$0xff]  ;;  %9389 = vpow2.f32 %v8038_v60  ;;  %v8601_v39 = vadd.f32 %v2568_v15, %v12135_v59  ;;  %v13805_v54 = vpop.f32.mrb[204].mxu1 }
 0x282   :  { %v13778_v20 = vpop.eup %9367  ;;  %v13786_v26 = vadd.f32 %v19023_v31, %v12735_v62  ;;  %8452 = vmatprep.mubr.msk.bf16.mxu1 %vm2155_vm1, %v19025_v3  ;;  %v7912_v57 = vmul.f32 -1.442695, %v8600_v36  ;;  %v10442_v31 = vld [vmem:[%s18290_s1 + $0x68] sm:$0xff]  ;;  %v4246_v3 = vadd.f32 1.0, %v9366_v5  ;;  %9391 = vpow2.f32 %v7911_v45  ;;  %7792 = vmatmul.mubr.msk.bf16.gmra.mrb[184].mxu0 %vm2155_vm1, %v13765_v2 }
 0x283   :  { %19020 = vst [vmem:[#allocation134_spill] sm:$0xff] %v13778_v20  ;;  %19022 = vst [vmem:[#allocation215_spill] sm:$0xff] %v13782_v47  ;;  %v13791_v41 = vpop.eup %9369  ;;  %v13799_v61 = vmul.f32 %v10442_v31, %v13205_v9  ;;  %v19028_v22 = vld [vmem:[#allocation219_spill] sm:$0xff]  ;;  %v2572_v20 = vpop.f32.mrb[76].mxu0  ;;  %v13809_v15 = vadd.f32 %v13166_v12, %v12735_v62  ;;  %9393 = vpow2.f32 %v8039_v52  ;;  %v10443_v52 = vld [vmem:[%s18290_s1 + $0x70] sm:$0xff]  ;;  %2850 = vmatprep.mubr.bf16.mxu0 %v18563_v46 }
 0x284   :  { %19024 = vst [vmem:[#allocation217_spill] sm:$0xff] %v13786_v26  ;;  %19026 = vst [vmem:[#allocation142_spill] sm:$0xff] %v13791_v41  ;;  %v9372_v47 = vpop.eup %9371  ;;  %v13803_v26 = vadd.f32 %v19028_v22, %v12735_v62  ;;  %v8602_v16 = vadd.f32 %v2572_v20, %v12132_v51  ;;  %v2574_v31 = vpop.f32.mrb[77].mxu0  ;;  %9395 = vrcp.f32 %v5141_v30  ;;  %v13824_v20 = vmul.f32 %v10443_v52, %v13225_v18  ;;  %v19035_v18 = vld [vmem:[#allocation150_spill] sm:$0xff] }
 0x285   :  { %19027 = vst [vmem:[#allocation302_spill] sm:$0xff] %v13799_v61  ;;  %v9374_v36 = vpop.eup %9373  ;;  %19030 = vst [vmem:[#allocation303_spill] sm:$0xff] %v13809_v15  ;;  %v5142_v60 = vadd.f32 1.0, %v9372_v47  ;;  %v13812_v61 = vpop.f32.mrb[205].mxu1  ;;  %v8603_v22 = vadd.f32 %v2574_v31, %v12135_v59  ;;  %9397 = vpow2.f32 %v7912_v57  ;;  %v8040_v47 = vmul.f32 -1.442695, %v8601_v39 }
 0x286   :  { %19029 = vst [vmem:[#allocation219_spill] sm:$0xff] %v13803_v26  ;;  %v13814_v9 = vpop.eup %9375  ;;  %v4247_v45 = vadd.f32 1.0, %v9374_v36  ;;  %v2576_v26 = vpop.f32.mrb[78].mxu0  ;;  %19032 = vst [vmem:[#allocation305_spill] sm:$0xff] %v13824_v20  ;;  %v13833_v31 = vadd.f32 %v13211_v21, %v12735_v62  ;;  %9399 = vrcp.f32 %v4246_v3  ;;  %v7913_v52 = vmul.f32 -1.442695, %v8602_v16 }
 0x287   :  { %19031 = vst [vmem:[#allocation304_spill] sm:$0xff] %v13814_v9  ;;  %v13818_v19 = vpop.f32.mrb[206].mxu1  ;;  %v9378_v12 = vpop.eup %9377  ;;  %v8604_v15 = vadd.f32 %v2576_v26, %v12132_v51  ;;  %v13837_v9 = vadd.f32 %v13218_v56, %v12735_v62  ;;  %9401 = vrcp.f32 %v5142_v60  ;;  %v8041_v26 = vmul.f32 -1.442695, %v8603_v22  ;;  %v10444_v56 = vld [vmem:[%s18290_s1 + $0x78] sm:$0xff] }
 0x288   :  { %v2578_v5 = vpop.f32.mrb[79].mxu0  ;;  %v13827_v30 = vpop.f32.mrb[207].mxu1  ;;  %19033 = vst [vmem:[#allocation306_spill] sm:$0xff] %v13833_v31  ;;  %v13851_v16 = vmul.f32 %v10444_v56, %v13290_v0  ;;  %v13855_v3 = vadd.f32 %v13235_v28, %v12735_v62  ;;  %9403 = vrcp.f32 %v4247_v45  ;;  %v5143_v60 = vadd.f32 1.0, %v9378_v12  ;;  %v122_v22 = vld [vmem:[%s18290_s1 + $0x2f8] sm:$0xff] }
 0x289   :  { %v13829_v36 = vpop.eup %9379  ;;  %19034 = vst [vmem:[#allocation307_spill] sm:$0xff] %v13837_v9  ;;  %v8605_v39 = vadd.f32 %v2578_v5, %v12135_v59  ;;  %8453 = vmatmul.mubr.msk.bf16.gmra.mrb[184].mxu1 %vm2155_vm1, %v19035_v18  ;;  %v19039_v5 = vld [vmem:[#allocation158_spill] sm:$0xff]  ;;  %v121_v18 = vld [vmem:[%s18290_s1 + $0x2f0] sm:$0xff]  ;;  %v13870_v28 = vadd.f32 %v13242_v49, %v12735_v62  ;;  %v13874_v45 = vadd.f32 %v13296_v34, %v12735_v62  ;;  %9405 = vpow2.f32 %v8040_v47  ;;  %v2582_v49 = vpop.f32.mrb[80].mxu0 }
 0x28a   :  { %v9382_v20 = vpop.eup %9381  ;;  %19037 = vst [vmem:[#allocation308_spill] sm:$0xff] %v13851_v16  ;;  %19038 = vst [vmem:[#allocation309_spill] sm:$0xff] %v13855_v3  ;;  %8456 = vmatprep.mubr.msk.bf16.mxu1 %vm2155_vm1, %v19039_v5  ;;  %v7914_v12 = vmul.f32 -1.442695, %v8604_v15  ;;  %v10445_v3 = vld [vmem:[%s18290_s1 + $0x80] sm:$0xff]  ;;  %9407 = vpow2.f32 %v7913_v52  ;;  %v8606_v15 = vadd.f32 %v2582_v49, %v12132_v51 }
 0x28b   :  { %v13845_v21 = vpop.eup %9383  ;;  %19041 = vst [vmem:[#allocation310_spill] sm:$0xff] %v13870_v28  ;;  %19042 = vst [vmem:[#allocation311_spill] sm:$0xff] %v13874_v45  ;;  %v13883_v9 = vmul.f32 %v10445_v3, %v13312_v32  ;;  %v4248_v31 = vadd.f32 1.0, %v9382_v20  ;;  %v13885_v28 = vpop.f32.mrb[208].mxu1  ;;  %9409 = vpow2.f32 %v8041_v26  ;;  %v8042_v47 = vmul.f32 -1.442695, %v8605_v39 }
 0x28c   :  { %19036 = vst [vmem:[#allocation150_spill] sm:$0xff] %v13845_v21  ;;  %v13866_v56 = vpop.eup %9385  ;;  %v2584_v45 = vpop.f32.mrb[81].mxu0  ;;  %v13894_v3 = vadd.f32 %v13299_v23, %v12735_v62  ;;  %9411 = vrcp.f32 %v5143_v60  ;;  %v10446_v23 = vld [vmem:[%s18290_s1 + $0x88] sm:$0xff] }
 0x28d   :  { %19040 = vst [vmem:[#allocation158_spill] sm:$0xff] %v13866_v56  ;;  %v13876_v5 = vpop.eup %9387  ;;  %19044 = vst [vmem:[#allocation313_spill] sm:$0xff] %v13883_v9  ;;  %v13890_v57 = vpop.f32.mrb[209].mxu1  ;;  %v8607_v52 = vadd.f32 %v2584_v45, %v12135_v59  ;;  %9413 = vpow2.f32 %v7914_v12  ;;  %v13909_v60 = vmul.f32 %v10446_v23, %v13367_v63  ;;  %v13913_v45 = vadd.f32 %v13308_v38, %v12735_v62  ;;  %v19050_v23 = vld [vmem:[#allocation165_spill] sm:$0xff] }
 0x28e   :  { %19043 = vst [vmem:[#allocation312_spill] sm:$0xff] %v13876_v5  ;;  %v9390_v34 = vpop.eup %9389  ;;  %v13888_v5 = vpack.c.bf16 %v122_v22, %v121_v18  ;;  %19045 = vst [vmem:[#allocation314_spill] sm:$0xff] %v13894_v3  ;;  %v2586_v9 = vpop.f32.mrb[82].mxu0  ;;  %9415 = vrcp.f32 %v4248_v31  ;;  %v13929_v31 = vadd.f32 %v13369_v6, %v12735_v62  ;;  %v10447_v6 = vld [vmem:[%s18290_s1 + $0x90] sm:$0xff] }
 0x28f   :  { %v9392_v21 = vpop.eup %9391  ;;  %v5144_v20 = vadd.f32 1.0, %v9390_v34  ;;  %v13897_v32 = vpop.f32.mrb[210].mxu1  ;;  %v8608_v18 = vadd.f32 %v2586_v9, %v12132_v51  ;;  %19047 = vst [vmem:[#allocation316_spill] sm:$0xff] %v13909_v60  ;;  %19048 = vst [vmem:[#allocation317_spill] sm:$0xff] %v13913_v45  ;;  %v13917_v9 = vadd.f32 %v13319_v42, %v12735_v62  ;;  %9417 = vpow2.f32 %v8042_v47  ;;  %v19053_v47 = vld [vmem:[#allocation174_spill] sm:$0xff] }
 0x290   :  { %v9394_v26 = vpop.eup %9393  ;;  %v4249_v49 = vadd.f32 1.0, %v9392_v21  ;;  %v2588_v22 = vpop.f32.mrb[83].mxu0  ;;  %v7915_v21 = vmul.f32 -1.442695, %v8606_v15  ;;  %v8043_v34 = vmul.f32 -1.442695, %v8607_v52  ;;  %7793 = vmatmul.mubr.msk.bf16.gmra.mrb[188].mxu0 %vm2155_vm1, %v13888_v5 }
 0x291   :  { %v13901_v16 = vpop.f32.mrb[211].mxu1  ;;  %v13903_v0 = vpop.eup %9395  ;;  %19049 = vst [vmem:[#allocation318_spill] sm:$0xff] %v13917_v9  ;;  %v8609_v39 = vadd.f32 %v2588_v22, %v12135_v59  ;;  %8457 = vmatmul.mubr.msk.bf16.gmra.mrb[188].mxu1 %vm2155_vm1, %v19050_v23  ;;  %19052 = vst [vmem:[#allocation319_spill] sm:$0xff] %v13929_v31  ;;  %9419 = vrcp.f32 %v5144_v20  ;;  %v5145_v42 = vadd.f32 1.0, %v9394_v26  ;;  %2860 = vmatprep.mubr.bf16.mxu0 %v18563_v46  ;;  %v123_v15 = vld [vmem:[%s18290_s1 + $0x300] sm:$0xff]  ;;  %v124_v52 = vld [vmem:[%s18290_s1 + $0x308] sm:$0xff] }
 0x292   :  { %19046 = vst [vmem:[#allocation315_spill] sm:$0xff] %v13903_v0  ;;  %v9398_v12 = vpop.eup %9397  ;;  %8460 = vmatprep.mubr.msk.bf16.mxu1 %vm2155_vm1, %v19053_v47  ;;  %v13946_v20 = vmul.f32 %v10447_v6, %v13386_v33  ;;  %v13950_v26 = vadd.f32 %v13374_v10, %v12735_v62  ;;  %9421 = vrcp.f32 %v4249_v49  ;;  %v7916_v23 = vmul.f32 -1.442695, %v8608_v18  ;;  %v10448_v31 = vld [vmem:[%s18290_s1 + $0x98] sm:$0xff]  ;;  %v2592_v6 = vpop.f32.mrb[84].mxu0 }
 0x293   :  { %v13924_v3 = vpop.eup %9399  ;;  %v13959_v9 = vmul.f32 %v10448_v31, %v13427_v25  ;;  %v4250_v45 = vadd.f32 1.0, %v9398_v12  ;;  %9423 = vpow2.f32 %v7915_v21  ;;  %v8044_v49 = vmul.f32 -1.442695, %v8609_v39 }
 0x294   :  { %19051 = vst [vmem:[#allocation165_spill] sm:$0xff] %v13924_v3  ;;  %v13940_v22 = vpop.eup %9401  ;;  %19055 = vst [vmem:[#allocation320_spill] sm:$0xff] %v13946_v20  ;;  %v13961_v3 = vpop.f32.mrb[212].mxu1  ;;  %9425 = vpow2.f32 %v8043_v34  ;;  %v8610_v18 = vadd.f32 %v2592_v6, %v12132_v51  ;;  %v13970_v31 = vadd.f32 %v13384_v53, %v12735_v62  ;;  %v13977_v34 = vadd.f32 %v13396_v55, %v12735_v62  ;;  %v10449_v55 = vld [vmem:[%s18290_s1 + $0xa0] sm:$0xff]  ;;  %v19102_v20 = vld [vmem:[#allocation287_spill] sm:$0xff] }
 0x295   :  { %19054 = vst [vmem:[#allocation174_spill] sm:$0xff] %v13940_v22  ;;  %19056 = vst [vmem:[#allocation321_spill] sm:$0xff] %v13950_v26  ;;  %v13952_v47 = vpop.eup %9403  ;;  %v2594_v26 = vpop.f32.mrb[85].mxu0  ;;  %9427 = vrcp.f32 %v5145_v42  ;;  %v19063_v42 = vld [vmem:[#allocation180_spill] sm:$0xff] }
 0x296   :  { %19057 = vst [vmem:[#allocation322_spill] sm:$0xff] %v13952_v47  ;;  %19058 = vst [vmem:[#allocation323_spill] sm:$0xff] %v13959_v9  ;;  %v9406_v10 = vpop.eup %9405  ;;  %v13964_v47 = vpack.c.bf16 %v124_v52, %v123_v15  ;;  %v13966_v38 = vpop.f32.mrb[213].mxu1  ;;  %v8611_v12 = vadd.f32 %v2594_v26, %v12135_v59  ;;  %9429 = vpow2.f32 %v7916_v23  ;;  %v13987_v26 = vadd.f32 %v13439_v13, %v12735_v62 }
 0x297   :  { %v9408_v60 = vpop.eup %9407  ;;  %19059 = vst [vmem:[#allocation324_spill] sm:$0xff] %v13970_v31  ;;  %v5146_v21 = vadd.f32 1.0, %v9406_v10  ;;  %v2596_v63 = vpop.f32.mrb[86].mxu0  ;;  %19060 = vst [vmem:[#allocation325_spill] sm:$0xff] %v13977_v34  ;;  %9431 = vrcp.f32 %v4250_v45 }
 0x298   :  { %v13973_v9 = vpop.f32.mrb[214].mxu1  ;;  %v9410_v39 = vpop.eup %9409  ;;  %v4251_v15 = vadd.f32 1.0, %v9408_v60  ;;  %v8612_v52 = vadd.f32 %v2596_v63, %v12132_v51  ;;  %19061 = vst [vmem:[#allocation326_spill] sm:$0xff] %v13987_v26  ;;  %v13993_v63 = vmul.f32 %v10449_v55, %v13457_v17  ;;  %9433 = vpow2.f32 %v8044_v49  ;;  %7794 = vmatmul.mubr.msk.bf16.gmra.mrb[192].mxu0 %vm2155_vm1, %v13964_v47  ;;  %v19066_v49 = vld [vmem:[#allocation188_spill] sm:$0xff] }
 0x299   :  { %v2598_v6 = vpop.f32.mrb[87].mxu0  ;;  %v13980_v25 = vpop.f32.mrb[215].mxu1  ;;  %v5147_v10 = vadd.f32 1.0, %v9410_v39  ;;  %v7917_v60 = vmul.f32 -1.442695, %v8610_v18  ;;  %8461 = vmatmul.mubr.msk.bf16.gmra.mrb[192].mxu1 %vm2155_vm1, %v19063_v42  ;;  %v14005_v39 = vadd.f32 %v13446_v11, %v12735_v62  ;;  %9435 = vrcp.f32 %v5146_v21  ;;  %2870 = vmatprep.mubr.bf16.mxu0 %v18563_v46  ;;  %v125_v18 = vld [vmem:[%s18290_s1 + $0x310] sm:$0xff] }
 0x29a   :  { %v13982_v53 = vpop.eup %9411  ;;  %19062 = vst [vmem:[#allocation327_spill] sm:$0xff] %v13993_v63  ;;  %v8613_v23 = vadd.f32 %v2598_v6, %v12135_v59  ;;  %v8045_v55 = vmul.f32 -1.442695, %v8611_v12  ;;  %8464 = vmatprep.mubr.msk.bf16.mxu1 %vm2155_vm1, %v19066_v49  ;;  %v126_v6 = vld [vmem:[%s18290_s1 + $0x318] sm:$0xff]  ;;  %v10450_v11 = vld [vmem:[%s18290_s1 + $0xa8] sm:$0xff]  ;;  %v14024_v12 = vadd.f32 %v13455_v7, %v12735_v62  ;;  %9437 = vrcp.f32 %v4251_v15 }
 0x29b   :  { %v9414_v31 = vpop.eup %9413  ;;  %19065 = vst [vmem:[#allocation328_spill] sm:$0xff] %v14005_v39  ;;  %v14020_v21 = vmul.f32 %v10450_v11, %v13500_v50  ;;  %v7918_v49 = vmul.f32 -1.442695, %v8612_v52  ;;  %v14030_v39 = vadd.f32 %v13464_v40, %v12735_v62  ;;  %v14034_v26 = vadd.f32 %v13510_v1, %v12735_v62  ;;  %v2602_v11 = vpop.f32.mrb[88].mxu0 }
 0x29c   :  { %v14000_v13 = vpop.eup %9415  ;;  %19068 = vst [vmem:[#allocation329_spill] sm:$0xff] %v14024_v12  ;;  %9439 = vrcp.f32 %v5147_v10  ;;  %v4252_v34 = vadd.f32 1.0, %v9414_v31  ;;  %v8046_v7 = vmul.f32 -1.442695, %v8613_v23  ;;  %v8614_v15 = vadd.f32 %v2602_v11, %v12132_v51  ;;  %v2604_v52 = vpop.f32.mrb[89].mxu0 }
 0x29d   :  { %19064 = vst [vmem:[#allocation180_spill] sm:$0xff] %v14000_v13  ;;  %v9418_v42 = vpop.eup %9417  ;;  %19067 = vst [vmem:[#allocation188_spill] sm:$0xff] %v14020_v21  ;;  %v14036_v13 = vpop.f32.mrb[216].mxu1  ;;  %9441 = vpow2.f32 %v7917_v60  ;;  %v14041_v12 = vpack.c.bf16 %v126_v6, %v125_v18  ;;  %v14047_v1 = vadd.f32 %v13517_v43, %v12735_v62  ;;  %v8615_v10 = vadd.f32 %v2604_v52, %v12135_v59  ;;  %v10451_v43 = vld [vmem:[%s18290_s1 + $0xb0] sm:$0xff] }
 0x29e   :  { %v14026_v45 = vpop.eup %9419  ;;  %19070 = vst [vmem:[#allocation331_spill] sm:$0xff] %v14030_v39  ;;  %19071 = vst [vmem:[#allocation332_spill] sm:$0xff] %v14034_v26  ;;  %v14043_v40 = vpop.f32.mrb[217].mxu1  ;;  %v5148_v31 = vadd.f32 1.0, %v9418_v42  ;;  %9443 = vpow2.f32 %v8045_v55  ;;  %v14062_v55 = vmul.f32 %v10451_v43, %v13537_v35  ;;  %v7919_v23 = vmul.f32 -1.442695, %v8614_v15 }
 0x29f   :  { %19069 = vst [vmem:[#allocation330_spill] sm:$0xff] %v14026_v45  ;;  %v14038_v21 = vpop.eup %9421  ;;  %19073 = vst [vmem:[#allocation334_spill] sm:$0xff] %v14041_v12  ;;  %v2606_v26 = vpop.f32.mrb[90].mxu0  ;;  %9445 = vpow2.f32 %v7918_v49  ;;  %v19078_v43 = vld [vmem:[#allocation21_spill] sm:$0xff]  ;;  %v19095_v35 = vld [vmem:[#allocation291_spill] sm:$0xff] }
 0x2a0   :  { %19072 = vst [vmem:[#allocation333_spill] sm:$0xff] %v14038_v21  ;;  %v9424_v39 = vpop.eup %9423  ;;  %19074 = vst [vmem:[#allocation335_spill] sm:$0xff] %v14047_v1  ;;  %v14050_v21 = vpop.f32.mrb[218].mxu1  ;;  %v8616_v18 = vadd.f32 %v2606_v26, %v12132_v51  ;;  %9447 = vrcp.f32 %v4252_v34  ;;  %v10452_v26 = vld [vmem:[%s18290_s1 + $0xb8] sm:$0xff]  ;;  %7795 = vmatmul.mubr.msk.bf16.gmra.mrb[196].mxu0 %vm2155_vm1, %v14041_v12 }
 0x2a1   :  { %v9426_v60 = vpop.eup %9425  ;;  %v4253_v11 = vadd.f32 1.0, %v9424_v39  ;;  %v2608_v6 = vpop.f32.mrb[91].mxu0  ;;  %19076 = vst [vmem:[#allocation337_spill] sm:$0xff] %v14062_v55  ;;  %v14069_v49 = vmul.f32 %v10452_v26, %v13578_v24  ;;  %9449 = vpow2.f32 %v8046_v7  ;;  %8465 = vmatmul.mubr.msk.bf16.gmra.mrb[196].mxu1 %vm2155_vm1, %v19078_v43  ;;  %v14084_v26 = vadd.f32 %v13535_v4, %v12735_v62  ;;  %2880 = vmatprep.mubr.bf16.mxu0 %v18563_v46  ;;  %v19082_v15 = vld [vmem:[#allocation201_spill] sm:$0xff] }
 0x2a2   :  { %v14054_v50 = vpop.f32.mrb[219].mxu1  ;;  %v14056_v63 = vpop.eup %9427  ;;  %v5149_v52 = vadd.f32 1.0, %v9426_v60  ;;  %v8617_v1 = vadd.f32 %v2608_v6, %v12135_v59  ;;  %v14080_v60 = vadd.f32 %v13526_v48, %v12735_v62  ;;  %9451 = vrcp.f32 %v5148_v31  ;;  %8468 = vmatprep.mubr.msk.bf16.mxu1 %vm2155_vm1, %v19082_v15  ;;  %v127_v6 = vld [vmem:[%s18290_s1 + $0x320] sm:$0xff]  ;;  %v128_v48 = vld [vmem:[%s18290_s1 + $0x328] sm:$0xff] }
 0x2a3   :  { %19075 = vst [vmem:[#allocation336_spill] sm:$0xff] %v14056_v63  ;;  %v9430_v39 = vpop.eup %9429  ;;  %19077 = vst [vmem:[#allocation338_spill] sm:$0xff] %v14069_v49  ;;  %v8047_v7 = vmul.f32 -1.442695, %v8615_v10  ;;  %v14097_v4 = vadd.f32 %v13585_v37, %v12735_v62  ;;  %v14101_v31 = vadd.f32 %v13594_v29, %v12735_v62  ;;  %9453 = vrcp.f32 %v4253_v11 }
 0x2a4   :  { %v14076_v34 = vpop.eup %9431  ;;  %19080 = vst [vmem:[#allocation339_spill] sm:$0xff] %v14080_v60  ;;  %19081 = vst [vmem:[#allocation340_spill] sm:$0xff] %v14084_v26  ;;  %v7920_v10 = vmul.f32 -1.442695, %v8616_v18  ;;  %v10453_v26 = vld [vmem:[%s18290_s1 + $0xc0] sm:$0xff]  ;;  %9455 = vrcp.f32 %v5149_v52  ;;  %v4254_v37 = vadd.f32 1.0, %v9430_v39  ;;  %v14117_v42 = vpack.c.bf16 %v128_v48, %v127_v6 }
 0x2a5   :  { %19079 = vst [vmem:[#allocation21_spill] sm:$0xff] %v14076_v34  ;;  %v9434_v43 = vpop.eup %9433  ;;  %19083 = vst [vmem:[#allocation201_spill] sm:$0xff] %v14097_v4  ;;  %v14110_v60 = vmul.f32 %v10453_v26, %v13615_v44  ;;  %v2612_v4 = vpop.f32.mrb[92].mxu0  ;;  %9457 = vpow2.f32 %v7919_v23  ;;  %v8048_v11 = vmul.f32 -1.442695, %v8617_v1  ;;  %v10454_v52 = vld [vmem:[%s18290_s1 + $0xc8] sm:$0xff] }
 0x2a6   :  { %19084 = vst [vmem:[#allocation341_spill] sm:$0xff] %v14101_v31  ;;  %v14103_v15 = vpop.eup %9435  ;;  %v14112_v34 = vpop.f32.mrb[220].mxu1  ;;  %v8618_v18 = vadd.f32 %v2612_v4, %v12132_v51  ;;  %19088 = vst [vmem:[#allocation345_spill] sm:$0xff] %v14117_v42  ;;  %v14128_v39 = vmul.f32 %v10454_v52, %v13632_v14  ;;  %9459 = vpow2.f32 %v8047_v7  ;;  %v19091_v48 = vld [vmem:[#allocation280_spill] sm:$0xff]  ;;  %v19093_v52 = vld [vmem:[#allocation282_spill] sm:$0xff] }
 0x2a7   :  { %19085 = vst [vmem:[#allocation342_spill] sm:$0xff] %v14103_v15  ;;  %19086 = vst [vmem:[#allocation343_spill] sm:$0xff] %v14110_v60  ;;  %v14114_v29 = vpop.eup %9437  ;;  %v2614_v31 = vpop.f32.mrb[93].mxu0  ;;  %v5150_v60 = vadd.f32 1.0, %v9434_v43  ;;  %9461 = vpow2.f32 %v7920_v10  ;;  %v14141_v7 = vadd.f32 %v19093_v52, %v12735_v62  ;;  %v19096_v10 = vld [vmem:[#allocation27_spill] sm:$0xff]  ;;  %v129_v52 = vld [vmem:[%s18290_s1 + $0x330] sm:$0xff] }
 0x2a8   :  { %19087 = vst [vmem:[#allocation344_spill] sm:$0xff] %v14114_v29  ;;  %v14119_v49 = vpop.f32.mrb[221].mxu1  ;;  %v14121_v24 = vpop.eup %9439  ;;  %19090 = vst [vmem:[#allocation347_spill] sm:$0xff] %v14128_v39  ;;  %v8619_v1 = vadd.f32 %v2614_v31, %v12135_v59  ;;  %v14135_v29 = vadd.f32 %v19091_v48, %v12735_v62  ;;  %v7921_v26 = vmul.f32 -1.442695, %v8618_v18  ;;  %9463 = vrcp.f32 %v4254_v37  ;;  %7796 = vmatmul.mubr.msk.bf16.gmra.mrb[200].mxu0 %vm2155_vm1, %v14117_v42  ;;  %v10455_v37 = vld [vmem:[%s18290_s1 + $0xd0] sm:$0xff] }
 0x2a9   :  { %19089 = vst [vmem:[#allocation346_spill] sm:$0xff] %v14121_v24  ;;  %v2616_v23 = vpop.f32.mrb[94].mxu0  ;;  %v14131_v4 = vpop.f32.mrb[222].mxu1  ;;  %19094 = vst [vmem:[#allocation282_spill] sm:$0xff] %v14141_v7  ;;  %9465 = vpow2.f32 %v8048_v11  ;;  %8469 = vmatmul.mubr.msk.bf16.gmra.mrb[200].mxu1 %vm2155_vm1, %v19096_v10  ;;  %2890 = vmatprep.mubr.bf16.mxu0 %v18563_v46  ;;  %v130_v10 = vld [vmem:[%s18290_s1 + $0x338] sm:$0xff]  ;;  %v19107_v7 = vld [vmem:[#allocation102_spill] sm:$0xff] }
 0x2aa   :  { %v9442_v6 = vpop.eup %9441  ;;  %19092 = vst [vmem:[#allocation280_spill] sm:$0xff] %v14135_v29  ;;  %v2618_v44 = vpop.f32.mrb[95].mxu0  ;;  %v8620_v39 = vadd.f32 %v2616_v23, %v12132_v51  ;;  %v14156_v23 = vmul.f32 %v10455_v37, %v19095_v35  ;;  %9467 = vpow2.f32 %v7921_v26  ;;  %v19104_v26 = vld [vmem:[#allocation289_spill] sm:$0xff]  ;;  %v14193_v29 = vpack.c.bf16 %v130_v10, %v129_v52  ;;  %v10457_v52 = vld [vmem:[%s18290_s1 + $0xe0] sm:$0xff] }
 0x2ab   :  { %v14137_v17 = vpop.f32.mrb[223].mxu1  ;;  %v9444_v55 = vpop.eup %9443  ;;  %v4255_v31 = vadd.f32 1.0, %v9442_v6  ;;  %v8621_v43 = vadd.f32 %v2618_v44, %v12135_v59  ;;  %v8049_v44 = vmul.f32 -1.442695, %v8619_v1  ;;  %v19101_v6 = vld [vmem:[#allocation213_spill] sm:$0xff]  ;;  %v14177_v1 = vadd.f32 %v19104_v26, %v12735_v62 }
 0x2ac   :  { %v9446_v14 = vpop.eup %9445  ;;  %v5151_v48 = vadd.f32 1.0, %v9444_v55  ;;  %19098 = vst [vmem:[#allocation348_spill] sm:$0xff] %v14156_v23  ;;  %v19099_v55 = vld [vmem:[#allocation286_spill] sm:$0xff]  ;;  %8472 = vmatprep.mubr.msk.bf16.mxu1 %vm2155_vm1, %v19101_v6  ;;  %9469 = vrcp.f32 %v5150_v60  ;;  %v14188_v35 = vpop.f32.mrb[224].mxu1  ;;  %v14210_v10 = vmul.f32 %v10457_v52, %v13759_v8  ;;  %v19118_v52 = vld [vmem:[#allocation297_spill] sm:$0xff] }
 0x2ad   :  { %v14150_v18 = vpop.eup %9447  ;;  %v14160_v11 = vadd.f32 %v19099_v55, %v12735_v62  ;;  %v14173_v55 = vadd.f32 %v19102_v20, %v12735_v62  ;;  %19105 = vst [vmem:[#allocation287_spill] sm:$0xff] %v14177_v1  ;;  %9471 = vrcp.f32 %v4255_v31  ;;  %v4256_v20 = vadd.f32 1.0, %v9446_v14  ;;  %v14195_v33 = vpop.f32.mrb[225].mxu1  ;;  %v19112_v14 = vld [vmem:[#allocation290_spill] sm:$0xff] }
 0x2ae   :  { %19097 = vst [vmem:[#allocation27_spill] sm:$0xff] %v14150_v18  ;;  %v9450_v37 = vpop.eup %9449  ;;  %v10456_v18 = vld [vmem:[%s18290_s1 + $0xd8] sm:$0xff]  ;;  %9473 = vrcp.f32 %v5151_v48  ;;  %v8050_v60 = vmul.f32 -1.442695, %v8621_v43  ;;  %19110 = vst [vmem:[#allocation351_spill] sm:$0xff] %v14195_v33  ;;  %v14202_v31 = vadd.f32 %v19112_v14, %v12735_v62  ;;  %v14204_v48 = vpop.f32.mrb[226].mxu1 }
 0x2af   :  { %19100 = vst [vmem:[#allocation286_spill] sm:$0xff] %v14160_v11  ;;  %19103 = vst [vmem:[#allocation213_spill] sm:$0xff] %v14173_v55  ;;  %v7922_v11 = vmul.f32 -1.442695, %v8620_v39  ;;  %v14179_v6 = vpop.eup %9451  ;;  %v14186_v23 = vmul.f32 %v10456_v18, %v19107_v7  ;;  %v2622_v55 = vpop.f32.mrb[96].mxu0  ;;  %9475 = vpow2.f32 %v8049_v44  ;;  %v19116_v44 = vld [vmem:[#allocation295_spill] sm:$0xff] }
 0x2b0   :  { %19106 = vst [vmem:[#allocation289_spill] sm:$0xff] %v14179_v6  ;;  %v14190_v26 = vpop.eup %9453  ;;  %v8622_v39 = vadd.f32 %v2622_v55, %v12132_v51  ;;  %v2624_v1 = vpop.f32.mrb[97].mxu0  ;;  %19113 = vst [vmem:[#allocation290_spill] sm:$0xff] %v14202_v31  ;;  %v14217_v31 = vadd.f32 %v19116_v44, %v12735_v62  ;;  %7797 = vmatmul.mubr.msk.bf16.gmra.mrb[204].mxu0 %vm2155_vm1, %v14193_v29 }
 0x2b1   :  { %19108 = vst [vmem:[#allocation349_spill] sm:$0xff] %v14186_v23  ;;  %19109 = vst [vmem:[#allocation350_spill] sm:$0xff] %v14190_v26  ;;  %v14197_v42 = vpop.eup %9455  ;;  %v5152_v23 = vadd.f32 1.0, %v9450_v37  ;;  %v2626_v26 = vpop.f32.mrb[98].mxu0  ;;  %9477 = vpow2.f32 %v7922_v11  ;;  %v8623_v18 = vadd.f32 %v2624_v1, %v12135_v59  ;;  %2900 = vmatprep.mubr.bf16.mxu0 %v18563_v46 }
 0x2b2   :  { %19111 = vst [vmem:[#allocation352_spill] sm:$0xff] %v14197_v42  ;;  %19114 = vst [vmem:[#allocation353_spill] sm:$0xff] %v14204_v48  ;;  %v9458_v43 = vpop.eup %9457  ;;  %v7923_v55 = vmul.f32 -1.442695, %v8622_v39  ;;  %v2628_v7 = vpop.f32.mrb[99].mxu0  ;;  %9479 = vrcp.f32 %v4256_v20  ;;  %v8624_v48 = vadd.f32 %v2626_v26, %v12132_v51  ;;  %v19120_v39 = vld [vmem:[#allocation93_spill] sm:$0xff] }
 0x2b3   :  { %19115 = vst [vmem:[#allocation354_spill] sm:$0xff] %v14210_v10  ;;  %v14213_v14 = vpop.f32.mrb[227].mxu1  ;;  %v9460_v37 = vpop.eup %9459  ;;  %19117 = vst [vmem:[#allocation295_spill] sm:$0xff] %v14217_v31  ;;  %v4257_v12 = vadd.f32 1.0, %v9458_v43  ;;  %v14222_v10 = vadd.f32 %v19118_v52, %v12735_v62  ;;  %9481 = vpow2.f32 %v8050_v60  ;;  %v8625_v1 = vadd.f32 %v2628_v7, %v12135_v59  ;;  %8473 = vmatmul.mubr.msk.bf16.gmra.mrb[204].mxu1 %vm2155_vm1, %v19120_v39  ;;  %v19122_v20 = vld [vmem:[#allocation299_spill] sm:$0xff]  ;;  %v19125_v7 = vld [vmem:[#allocation220_spill] sm:$0xff] }
 0x2b4   :  { %v9462_v33 = vpop.eup %9461  ;;  %v5153_v11 = vadd.f32 1.0, %v9460_v37  ;;  %v14233_v26 = vadd.f32 %v19122_v20, %v12735_v62  ;;  %v14237_v43 = vadd.f32 %v13757_v27, %v12735_v62  ;;  %9483 = vrcp.f32 %v5152_v23  ;;  %8476 = vmatprep.mubr.msk.bf16.mxu1 %vm2155_vm1, %v19125_v7  ;;  %v131_v37 = vld [vmem:[%s18290_s1 + $0x340] sm:$0xff]  ;;  %v132_v52 = vld [vmem:[%s18290_s1 + $0x348] sm:$0xff]  ;;  %v2632_v31 = vpop.f32.mrb[100].mxu0 }
 0x2b5   :  { %19119 = vst [vmem:[#allocation297_spill] sm:$0xff] %v14222_v10  ;;  %v14229_v44 = vpop.eup %9463  ;;  %v4258_v60 = vadd.f32 1.0, %v9462_v33  ;;  %v10458_v33 = vld [vmem:[%s18290_s1 + $0xe8] sm:$0xff]  ;;  %9485 = vpow2.f32 %v7923_v55  ;;  %v8051_v23 = vmul.f32 -1.442695, %v8623_v18  ;;  %v8626_v18 = vadd.f32 %v2632_v31, %v12132_v51 }
 0x2b6   :  { %19121 = vst [vmem:[#allocation93_spill] sm:$0xff] %v14229_v44  ;;  %19123 = vst [vmem:[#allocation299_spill] sm:$0xff] %v14233_v26  ;;  %v9466_v39 = vpop.eup %9465  ;;  %v14253_v27 = vmul.f32 %v10458_v33, %v13791_v41  ;;  %v10459_v26 = vld [vmem:[%s18290_s1 + $0xf0] sm:$0xff]  ;;  %9487 = vrcp.f32 %v4257_v12  ;;  %v7924_v20 = vmul.f32 -1.442695, %v8624_v48  ;;  %v14262_v44 = vpop.f32.mrb[228].mxu1  ;;  %v14275_v12 = vadd.f32 %v13805_v54, %v12735_v62 }
 0x2b7   :  { %19124 = vst [vmem:[#allocation355_spill] sm:$0xff] %v14237_v43  ;;  %v9468_v7 = vpop.eup %9467  ;;  %v14260_v10 = vmul.f32 %v10459_v26, %v13829_v36  ;;  %9489 = vrcp.f32 %v5153_v11  ;;  %v8052_v55 = vmul.f32 -1.442695, %v8625_v1  ;;  %v2634_v33 = vpop.f32.mrb[101].mxu0  ;;  %v14267_v43 = vpack.c.bf16 %v132_v52, %v131_v37 }
 0x2b8   :  { %19126 = vst [vmem:[#allocation220_spill] sm:$0xff] %v14253_v27  ;;  %v14264_v8 = vpop.eup %9469  ;;  %v14269_v27 = vpop.f32.mrb[229].mxu1  ;;  %19130 = vst [vmem:[#allocation359_spill] sm:$0xff] %v14275_v12  ;;  %v14279_v48 = vadd.f32 %v13812_v61, %v12735_v62  ;;  %9491 = vrcp.f32 %v4258_v60  ;;  %v5154_v11 = vadd.f32 1.0, %v9466_v39  ;;  %v14285_v31 = vadd.f32 %v13818_v19, %v12735_v62 }
 0x2b9   :  { %19127 = vst [vmem:[#allocation356_spill] sm:$0xff] %v14260_v10  ;;  %19128 = vst [vmem:[#allocation357_spill] sm:$0xff] %v14264_v8  ;;  %v14271_v41 = vpop.eup %9471  ;;  %v2636_v1 = vpop.f32.mrb[102].mxu0  ;;  %v4259_v37 = vadd.f32 1.0, %v9468_v7  ;;  %9493 = vpow2.f32 %v8051_v23  ;;  %v8627_v52 = vadd.f32 %v2634_v33, %v12135_v59  ;;  %v14290_v12 = vadd.f32 %v13827_v30, %v12735_v62  ;;  %7798 = vmatmul.mubr.msk.bf16.gmra.mrb[208].mxu0 %vm2155_vm1, %v14267_v43  ;;  %v19135_v7 = vld [vmem:[#allocation227_spill] sm:$0xff] }
 0x2ba   :  { %19129 = vst [vmem:[#allocation358_spill] sm:$0xff] %v14271_v41  ;;  %19131 = vst [vmem:[#allocation360_spill] sm:$0xff] %v14279_v48  ;;  %v14281_v26 = vpop.eup %9473  ;;  %v2638_v41 = vpop.f32.mrb[103].mxu0  ;;  %9495 = vpow2.f32 %v7924_v20  ;;  %v7925_v61 = vmul.f32 -1.442695, %v8626_v18  ;;  %v8628_v60 = vadd.f32 %v2636_v1, %v12132_v51  ;;  %v10460_v18 = vld [vmem:[%s18290_s1 + $0xf8] sm:$0xff]  ;;  %2910 = vmatprep.mubr.bf16.mxu0 %v18563_v46 }
 0x2bb   :  { %19132 = vst [vmem:[#allocation361_spill] sm:$0xff] %v14281_v26  ;;  %19133 = vst [vmem:[#allocation362_spill] sm:$0xff] %v14285_v31  ;;  %v9476_v54 = vpop.eup %9475  ;;  %v14293_v39 = vpop.f32.mrb[230].mxu1  ;;  %9497 = vpow2.f32 %v8052_v55  ;;  %v8629_v23 = vadd.f32 %v2638_v41, %v12135_v59  ;;  %8477 = vmatmul.mubr.msk.bf16.gmra.mrb[208].mxu1 %vm2155_vm1, %v19135_v7  ;;  %v14309_v33 = vmul.f32 %v10460_v18, %v13866_v56  ;;  %v19138_v1 = vld [vmem:[#allocation45_spill] sm:$0xff]  ;;  %v10461_v18 = vld [vmem:[%s18290_s1 + $0x100] sm:$0xff] }
 0x2bc   :  { %19134 = vst [vmem:[#allocation363_spill] sm:$0xff] %v14290_v12  ;;  %v9478_v48 = vpop.eup %9477  ;;  %v5155_v31 = vadd.f32 1.0, %v9476_v54  ;;  %v14301_v30 = vpop.f32.mrb[231].mxu1  ;;  %9499 = vrcp.f32 %v5154_v11  ;;  %8480 = vmatprep.mubr.msk.bf16.mxu1 %vm2155_vm1, %v19138_v1  ;;  %v133_v54 = vld [vmem:[%s18290_s1 + $0x350] sm:$0xff]  ;;  %v134_v7 = vld [vmem:[%s18290_s1 + $0x358] sm:$0xff]  ;;  %v14329_v11 = vadd.f32 %v13885_v28, %v12735_v62  ;;  %v14335_v12 = vadd.f32 %v13890_v57, %v12735_v62 }
 0x2bd   :  { %v14303_v20 = vpop.eup %9479  ;;  %19137 = vst [vmem:[#allocation364_spill] sm:$0xff] %v14309_v33  ;;  %v4260_v41 = vadd.f32 1.0, %v9478_v48  ;;  %v14325_v48 = vmul.f32 %v10461_v18, %v13903_v0  ;;  %9501 = vrcp.f32 %v4259_v37  ;;  %v8053_v1 = vmul.f32 -1.442695, %v8627_v52  ;;  %v2642_v18 = vpop.f32.mrb[104].mxu0 }
 0x2be   :  { %19136 = vst [vmem:[#allocation227_spill] sm:$0xff] %v14303_v20  ;;  %v9482_v19 = vpop.eup %9481  ;;  %19140 = vst [vmem:[#allocation365_spill] sm:$0xff] %v14329_v11  ;;  %v14339_v20 = vadd.f32 %v13897_v32, %v12735_v62  ;;  %9503 = vpow2.f32 %v7925_v61  ;;  %v7926_v33 = vmul.f32 -1.442695, %v8628_v60  ;;  %v8054_v28 = vmul.f32 -1.442695, %v8629_v23 }
 0x2bf   :  { %19139 = vst [vmem:[#allocation45_spill] sm:$0xff] %v14325_v48  ;;  %v14331_v55 = vpop.eup %9483  ;;  %19142 = vst [vmem:[#allocation367_spill] sm:$0xff] %v14335_v12  ;;  %v14341_v48 = vpop.f32.mrb[232].mxu1  ;;  %9505 = vrcp.f32 %v5155_v31  ;;  %v8630_v37 = vadd.f32 %v2642_v18, %v12132_v51  ;;  %v14344_v11 = vpack.c.bf16 %v134_v7, %v133_v54  ;;  %v5156_v61 = vadd.f32 1.0, %v9482_v19  ;;  %v10462_v31 = vld [vmem:[%s18290_s1 + $0x108] sm:$0xff] }
 0x2c0   :  { %19141 = vst [vmem:[#allocation366_spill] sm:$0xff] %v14331_v55  ;;  %19143 = vst [vmem:[#allocation368_spill] sm:$0xff] %v14339_v20  ;;  %v9486_v0 = vpop.eup %9485  ;;  %v2644_v52 = vpop.f32.mrb[105].mxu0  ;;  %9507 = vrcp.f32 %v4260_v41  ;;  %v14358_v23 = vmul.f32 %v10462_v31, %v13940_v22  ;;  %v14362_v54 = vadd.f32 %v13901_v16, %v12735_v62  ;;  %v10463_v31 = vld [vmem:[%s18290_s1 + $0x110] sm:$0xff]  ;;  %v14385_v18 = vadd.f32 %v13961_v3, %v12735_v62 }
 0x2c1   :  { %v14346_v56 = vpop.f32.mrb[233].mxu1  ;;  %v14348_v57 = vpop.eup %9487  ;;  %v8631_v60 = vadd.f32 %v2644_v52, %v12135_v59  ;;  %9509 = vpow2.f32 %v8053_v1  ;;  %v7927_v7 = vmul.f32 -1.442695, %v8630_v37  ;;  %v4261_v52 = vadd.f32 1.0, %v9486_v0  ;;  %7799 = vmatmul.mubr.msk.bf16.gmra.mrb[212].mxu0 %vm2155_vm1, %v14344_v11  ;;  %v19150_v0 = vld [vmem:[#allocation241_spill] sm:$0xff] }
 0x2c2   :  { %19144 = vst [vmem:[#allocation369_spill] sm:$0xff] %v14348_v57  ;;  %v2646_v20 = vpop.f32.mrb[106].mxu0  ;;  %v14352_v12 = vpop.eup %9489  ;;  %19146 = vst [vmem:[#allocation371_spill] sm:$0xff] %v14358_v23  ;;  %9511 = vpow2.f32 %v7926_v33  ;;  %v14374_v16 = vmul.f32 %v10463_v31, %v13982_v53  ;;  %2920 = vmatprep.mubr.bf16.mxu0 %v18563_v46  ;;  %v135_v31 = vld [vmem:[%s18290_s1 + $0x360] sm:$0xff] }
 0x2c3   :  { %19145 = vst [vmem:[#allocation370_spill] sm:$0xff] %v14352_v12  ;;  %19147 = vst [vmem:[#allocation372_spill] sm:$0xff] %v14362_v54  ;;  %v2648_v41 = vpop.f32.mrb[107].mxu0  ;;  %v14364_v19 = vpop.eup %9491  ;;  %v8632_v32 = vadd.f32 %v2646_v20, %v12132_v51  ;;  %9513 = vpow2.f32 %v8054_v28  ;;  %v8055_v1 = vmul.f32 -1.442695, %v8631_v60  ;;  %8481 = vmatmul.mubr.msk.bf16.gmra.mrb[212].mxu1 %vm2155_vm1, %v19150_v0  ;;  %v14389_v28 = vadd.f32 %v13966_v38, %v12735_v62 }
 0x2c4   :  { %19148 = vst [vmem:[#allocation373_spill] sm:$0xff] %v14364_v19  ;;  %v14368_v57 = vpop.f32.mrb[234].mxu1  ;;  %v9494_v10 = vpop.eup %9493  ;;  %19149 = vst [vmem:[#allocation374_spill] sm:$0xff] %v14374_v16  ;;  %v8633_v37 = vadd.f32 %v2648_v41, %v12135_v59  ;;  %9515 = vrcp.f32 %v5156_v61  ;;  %v19153_v41 = vld [vmem:[#allocation251_spill] sm:$0xff]  ;;  %v14402_v0 = vadd.f32 %v13973_v9, %v12735_v62  ;;  %v14406_v38 = vadd.f32 %v13980_v25, %v12735_v62 }
 0x2c5   :  { %v14381_v20 = vpop.f32.mrb[235].mxu1  ;;  %v9496_v33 = vpop.eup %9495  ;;  %19151 = vst [vmem:[#allocation241_spill] sm:$0xff] %v14385_v18  ;;  %19152 = vst [vmem:[#allocation375_spill] sm:$0xff] %v14389_v28  ;;  %v5157_v60 = vadd.f32 1.0, %v9494_v10  ;;  %8484 = vmatprep.mubr.msk.bf16.mxu1 %vm2155_vm1, %v19153_v41  ;;  %v136_v61 = vld [vmem:[%s18290_s1 + $0x368] sm:$0xff]  ;;  %9517 = vpow2.f32 %v7927_v7  ;;  %v10464_v18 = vld [vmem:[%s18290_s1 + $0x118] sm:$0xff] }
 0x2c6   :  { %v9498_v3 = vpop.eup %9497  ;;  %19154 = vst [vmem:[#allocation251_spill] sm:$0xff] %v14402_v0  ;;  %19155 = vst [vmem:[#allocation376_spill] sm:$0xff] %v14406_v38  ;;  %v4262_v10 = vadd.f32 1.0, %v9496_v33  ;;  %v14415_v54 = vmul.f32 %v10464_v18, %v14026_v45  ;;  %9519 = vrcp.f32 %v4261_v52  ;;  %v7928_v9 = vmul.f32 -1.442695, %v8632_v32  ;;  %v2652_v0 = vpop.f32.mrb[108].mxu0 }
 0x2c7   :  { %v14408_v41 = vpop.eup %9499  ;;  %v14417_v19 = vpop.f32.mrb[236].mxu1  ;;  %9521 = vpow2.f32 %v8055_v1  ;;  %v8056_v7 = vmul.f32 -1.442695, %v8633_v37  ;;  %v8634_v33 = vadd.f32 %v2652_v0, %v12132_v51  ;;  %v14422_v28 = vpack.c.bf16 %v136_v61, %v135_v31  ;;  %v10465_v1 = vld [vmem:[%s18290_s1 + $0x120] sm:$0xff] }
 0x2c8   :  { %19156 = vst [vmem:[#allocation377_spill] sm:$0xff] %v14408_v41  ;;  %19157 = vst [vmem:[#allocation378_spill] sm:$0xff] %v14415_v54  ;;  %v14419_v25 = vpop.eup %9501  ;;  %v2654_v38 = vpop.f32.mrb[109].mxu0  ;;  %9523 = vrcp.f32 %v5157_v60  ;;  %v5158_v52 = vadd.f32 1.0, %v9498_v3  ;;  %v14436_v37 = vmul.f32 %v10465_v1, %v14056_v63  ;;  %v14440_v31 = vadd.f32 %v14036_v13, %v12735_v62 }
 0x2c9   :  { %19158 = vst [vmem:[#allocation379_spill] sm:$0xff] %v14419_v25  ;;  %v14424_v23 = vpop.f32.mrb[237].mxu1  ;;  %v9504_v22 = vpop.eup %9503  ;;  %v8635_v32 = vadd.f32 %v2654_v38, %v12135_v59  ;;  %9525 = vrcp.f32 %v4262_v10  ;;  %v7929_v60 = vmul.f32 -1.442695, %v8634_v33  ;;  %v14448_v38 = vadd.f32 %v14043_v40, %v12735_v62  ;;  %7800 = vmatmul.mubr.msk.bf16.gmra.mrb[216].mxu0 %vm2155_vm1, %v14422_v28 }
 0x2ca   :  { %v2656_v54 = vpop.f32.mrb[110].mxu0  ;;  %v14428_v45 = vpop.f32.mrb[238].mxu1  ;;  %19160 = vst [vmem:[#allocation381_spill] sm:$0xff] %v14436_v37  ;;  %19161 = vst [vmem:[#allocation382_spill] sm:$0xff] %v14440_v31  ;;  %v14452_v18 = vadd.f32 %v14050_v21, %v12735_v62  ;;  %9527 = vpow2.f32 %v7928_v9  ;;  %v4263_v37 = vadd.f32 1.0, %v9504_v22  ;;  %v14456_v13 = vadd.f32 %v14054_v50, %v12735_v62  ;;  %2930 = vmatprep.mubr.bf16.mxu0 %v18563_v46  ;;  %v137_v50 = vld [vmem:[%s18290_s1 + $0x370] sm:$0xff] }
 0x2cb   :  { %v14430_v25 = vpop.eup %9505  ;;  %v2658_v61 = vpop.f32.mrb[111].mxu0  ;;  %19163 = vst [vmem:[#allocation384_spill] sm:$0xff] %v14448_v38  ;;  %v8057_v10 = vmul.f32 -1.442695, %v8635_v32  ;;  %9529 = vpow2.f32 %v8056_v7  ;;  %v8636_v33 = vadd.f32 %v2656_v54, %v12132_v51  ;;  %8485 = vmatmul.mubr.msk.bf16.gmra.mrb[216].mxu1 %vm2155_vm1, %v13602_v58  ;;  %v138_v58 = vld [vmem:[%s18290_s1 + $0x378] sm:$0xff]  ;;  %v10466_v7 = vld [vmem:[%s18290_s1 + $0x128] sm:$0xff] }
 0x2cc   :  { %19159 = vst [vmem:[#allocation380_spill] sm:$0xff] %v14430_v25  ;;  %v14442_v3 = vpop.f32.mrb[239].mxu1  ;;  %v14444_v0 = vpop.eup %9507  ;;  %19164 = vst [vmem:[#allocation385_spill] sm:$0xff] %v14452_v18  ;;  %9531 = vrcp.f32 %v5158_v52  ;;  %v8637_v22 = vadd.f32 %v2658_v61, %v12135_v59  ;;  %8488 = vmatprep.mubr.msk.bf16.mxu1 %vm2155_vm1, %v13765_v2  ;;  %v14478_v52 = vmul.f32 %v10466_v7, %v14103_v15 }
 0x2cd   :  { %19162 = vst [vmem:[#allocation383_spill] sm:$0xff] %v14444_v0  ;;  %v9510_v1 = vpop.eup %9509  ;;  %19165 = vst [vmem:[#allocation386_spill] sm:$0xff] %v14456_v13  ;;  %9533 = vpow2.f32 %v7929_v60  ;;  %v14491_v18 = vadd.f32 %v14112_v34, %v12735_v62  ;;  %v2662_v7 = vpop.f32.mrb[112].mxu0  ;;  %v7930_v60 = vmul.f32 -1.442695, %v8636_v33  ;;  %v14496_v0 = vpack.c.bf16 %v138_v58, %v137_v50  ;;  %v10468_v50 = vld [vmem:[%s18290_s1 + $0x138] sm:$0xff] }
 0x2ce   :  { %v9512_v40 = vpop.eup %9511  ;;  %v5159_v9 = vadd.f32 1.0, %v9510_v1  ;;  %19166 = vst [vmem:[#allocation387_spill] sm:$0xff] %v14478_v52  ;;  %v10467_v1 = vld [vmem:[%s18290_s1 + $0x130] sm:$0xff]  ;;  %9535 = vpow2.f32 %v8057_v10  ;;  %v14493_v38 = vpop.f32.mrb[240].mxu1  ;;  %v8638_v32 = vadd.f32 %v2662_v7, %v12132_v51  ;;  %v14504_v34 = vadd.f32 %v14119_v49, %v12735_v62 }
 0x2cf   :  { %v9514_v54 = vpop.eup %9513  ;;  %v4264_v61 = vadd.f32 1.0, %v9512_v40  ;;  %v14487_v21 = vmul.f32 %v10467_v1, %v14121_v24  ;;  %19169 = vst [vmem:[#allocation390_spill] sm:$0xff] %v14491_v18  ;;  %9537 = vrcp.f32 %v4263_v37  ;;  %v2664_v31 = vpop.f32.mrb[113].mxu0  ;;  %v8058_v10 = vmul.f32 -1.442695, %v8637_v22 }
 0x2d0   :  { %v14481_v2 = vpop.eup %9515  ;;  %v5160_v13 = vadd.f32 1.0, %v9514_v54  ;;  %v14498_v52 = vpop.f32.mrb[241].mxu1  ;;  %9539 = vrcp.f32 %v5159_v9  ;;  %19171 = vst [vmem:[#allocation392_spill] sm:$0xff] %v14504_v34  ;;  %v8639_v54 = vadd.f32 %v2664_v31, %v12135_v59  ;;  %v14514_v58 = vmul.f32 %v10468_v50, %v14179_v6 }
 0x2d1   :  { %19167 = vst [vmem:[#allocation388_spill] sm:$0xff] %v14481_v2  ;;  %19168 = vst [vmem:[#allocation389_spill] sm:$0xff] %v14487_v21  ;;  %v9518_v40 = vpop.eup %9517  ;;  %v2666_v18 = vpop.f32.mrb[114].mxu0  ;;  %9541 = vrcp.f32 %v4264_v61  ;;  %v7931_v9 = vmul.f32 -1.442695, %v8638_v32  ;;  %v14526_v7 = vadd.f32 %v14137_v17, %v12735_v62  ;;  %7801 = vmatmul.mubr.msk.bf16.gmra.mrb[220].mxu0 %vm2155_vm1, %v14496_v0  ;;  %v10469_v17 = vld [vmem:[%s18290_s1 + $0x140] sm:$0xff] }
 0x2d2   :  { %v14500_v1 = vpop.eup %9519  ;;  %v14507_v37 = vpop.f32.mrb[242].mxu1  ;;  %19172 = vst [vmem:[#allocation393_spill] sm:$0xff] %v14514_v58  ;;  %9543 = vrcp.f32 %v5160_v13  ;;  %v4265_v31 = vadd.f32 1.0, %v9518_v40  ;;  %v8059_v32 = vmul.f32 -1.442695, %v8639_v54  ;;  %v8640_v50 = vadd.f32 %v2666_v18, %v12132_v51  ;;  %2940 = vmatprep.mubr.bf16.mxu0 %v18563_v46  ;;  %v140_v18 = vld [vmem:[%s18290_s1 + $0x388] sm:$0xff] }
 0x2d3   :  { %19170 = vst [vmem:[#allocation391_spill] sm:$0xff] %v14500_v1  ;;  %v9522_v33 = vpop.eup %9521  ;;  %v2668_v49 = vpop.f32.mrb[115].mxu0  ;;  %v14522_v1 = vadd.f32 %v14131_v4, %v12735_v62  ;;  %19175 = vst [vmem:[#allocation396_spill] sm:$0xff] %v14526_v7  ;;  %9545 = vpow2.f32 %v7930_v60  ;;  %8489 = vmatmul.mubr.msk.bf16.gmra.mrb[220].mxu1 %vm2155_vm1, %v13888_v5  ;;  %v14540_v13 = vmul.f32 %v10469_v17, %v14197_v42  ;;  %v139_v5 = vld [vmem:[%s18290_s1 + $0x380] sm:$0xff]  ;;  %v10470_v7 = vld [vmem:[%s18290_s1 + $0x148] sm:$0xff] }
 0x2d4   :  { %v14516_v34 = vpop.f32.mrb[243].mxu1  ;;  %v14518_v22 = vpop.eup %9523  ;;  %v5161_v40 = vadd.f32 1.0, %v9522_v33  ;;  %9547 = vpow2.f32 %v8058_v10  ;;  %v8641_v60 = vadd.f32 %v2668_v49, %v12135_v59  ;;  %8492 = vmatprep.mubr.msk.bf16.mxu1 %vm2155_vm1, %v13964_v47  ;;  %v14554_v10 = vadd.f32 %v14188_v35, %v12735_v62  ;;  %v19179_v33 = vld [vmem:[#allocation351_spill] sm:$0xff] }
 0x2d5   :  { %19173 = vst [vmem:[#allocation394_spill] sm:$0xff] %v14518_v22  ;;  %19174 = vst [vmem:[#allocation395_spill] sm:$0xff] %v14522_v1  ;;  %v14528_v15 = vpop.eup %9525  ;;  %v14558_v49 = vadd.f32 %v19179_v33, %v12735_v62  ;;  %9549 = vpow2.f32 %v7931_v9  ;;  %v14567_v1 = vmul.f32 %v10470_v7, %v14264_v8  ;;  %v2672_v35 = vpop.f32.mrb[116].mxu0  ;;  %v7932_v33 = vmul.f32 -1.442695, %v8640_v50  ;;  %v141_v7 = vld [vmem:[%s18290_s1 + $0x390] sm:$0xff] }
 0x2d6   :  { %19176 = vst [vmem:[#allocation397_spill] sm:$0xff] %v14528_v15  ;;  %v9528_v4 = vpop.eup %9527  ;;  %19177 = vst [vmem:[#allocation398_spill] sm:$0xff] %v14540_v13  ;;  %9551 = vrcp.f32 %v4265_v31  ;;  %v8642_v9 = vadd.f32 %v2672_v35, %v12132_v51  ;;  %v14572_v13 = vpack.c.bf16 %v140_v18, %v139_v5  ;;  %v142_v31 = vld [vmem:[%s18290_s1 + $0x398] sm:$0xff]  ;;  %v8060_v35 = vmul.f32 -1.442695, %v8641_v60 }
 0x2d7   :  { %v9530_v54 = vpop.eup %9529  ;;  %v4266_v17 = vadd.f32 1.0, %v9528_v4  ;;  %19178 = vst [vmem:[#allocation399_spill] sm:$0xff] %v14554_v10  ;;  %19180 = vst [vmem:[#allocation351_spill] sm:$0xff] %v14558_v49  ;;  %v14569_v10 = vpop.f32.mrb[244].mxu1  ;;  %9553 = vpow2.f32 %v8059_v32  ;;  %v19183_v32 = vld [vmem:[#allocation353_spill] sm:$0xff]  ;;  %v14593_v42 = vadd.f32 %v14213_v14, %v12735_v62 }
 0x2d8   :  { %v14560_v47 = vpop.eup %9531  ;;  %19182 = vst [vmem:[#allocation401_spill] sm:$0xff] %v14567_v1  ;;  %v5162_v4 = vadd.f32 1.0, %v9530_v54  ;;  %v2674_v49 = vpop.f32.mrb[117].mxu0  ;;  %9555 = vrcp.f32 %v5161_v40  ;;  %v14584_v50 = vadd.f32 %v19183_v32, %v12735_v62  ;;  %v14597_v40 = vadd.f32 %v14262_v44, %v12735_v62  ;;  %v10471_v44 = vld [vmem:[%s18290_s1 + $0x150] sm:$0xff] }
 0x2d9   :  { %19181 = vst [vmem:[#allocation400_spill] sm:$0xff] %v14560_v47  ;;  %v9534_v15 = vpop.eup %9533  ;;  %v14574_v61 = vpop.f32.mrb[245].mxu1  ;;  %v8643_v5 = vadd.f32 %v2674_v49, %v12135_v59  ;;  %9557 = vrcp.f32 %v4266_v17  ;;  %19186 = vst [vmem:[#allocation403_spill] sm:$0xff] %v14593_v42  ;;  %v7933_v58 = vmul.f32 -1.442695, %v8642_v9  ;;  %v14613_v9 = vmul.f32 %v10471_v44, %v14281_v26  ;;  %7802 = vmatmul.mubr.msk.bf16.gmra.mrb[224].mxu0 %vm2155_vm1, %v14572_v13 }
 0x2da   :  { %v9536_v54 = vpop.eup %9535  ;;  %19184 = vst [vmem:[#allocation353_spill] sm:$0xff] %v14584_v50  ;;  %v2676_v18 = vpop.f32.mrb[118].mxu0  ;;  %19187 = vst [vmem:[#allocation404_spill] sm:$0xff] %v14597_v40  ;;  %9559 = vrcp.f32 %v5162_v4  ;;  %v4267_v49 = vadd.f32 1.0, %v9534_v15  ;;  %v19191_v15 = vld [vmem:[#allocation334_spill] sm:$0xff]  ;;  %2950 = vmatprep.mubr.bf16.mxu0 %v18563_v46 }
 0x2db   :  { %v14587_v1 = vpop.f32.mrb[246].mxu1  ;;  %v14589_v8 = vpop.eup %9537  ;;  %v8644_v6 = vadd.f32 %v2676_v18, %v12132_v51  ;;  %19190 = vst [vmem:[#allocation407_spill] sm:$0xff] %v14613_v9  ;;  %v5163_v40 = vadd.f32 1.0, %v9536_v54  ;;  %9561 = vpow2.f32 %v7932_v33  ;;  %8493 = vmatmul.mubr.msk.bf16.gmra.mrb[224].mxu1 %vm2155_vm1, %v19191_v15  ;;  %v19194_v54 = vld [vmem:[#allocation345_spill] sm:$0xff]  ;;  %v19362_v9 = vld [vmem:[#allocation36_spill] sm:$0xff] }
 0x2dc   :  { %19185 = vst [vmem:[#allocation402_spill] sm:$0xff] %v14589_v8  ;;  %v2678_v32 = vpop.f32.mrb[119].mxu0  ;;  %v14599_v50 = vpop.f32.mrb[247].mxu1  ;;  %v14604_v8 = vpack.c.bf16 %v142_v31, %v141_v7  ;;  %v14623_v7 = vadd.f32 %v14269_v27, %v12735_v62  ;;  %9563 = vpow2.f32 %v8060_v35  ;;  %v8061_v31 = vmul.f32 -1.442695, %v8643_v5  ;;  %8496 = vmatprep.mubr.msk.bf16.mxu1 %vm2155_vm1, %v19194_v54  ;;  %v10472_v15 = vld [vmem:[%s18290_s1 + $0x158] sm:$0xff] }
 0x2dd   :  { %v14601_v60 = vpop.eup %9539  ;;  %v8645_v18 = vadd.f32 %v2678_v32, %v12135_v59  ;;  %v14634_v14 = vmul.f32 %v10472_v15, %v14331_v55  ;;  %9565 = vpow2.f32 %v7933_v58  ;;  %v7934_v27 = vmul.f32 -1.442695, %v8644_v6  ;;  %v2682_v44 = vpop.f32.mrb[120].mxu0 }
 0x2de   :  { %19188 = vst [vmem:[#allocation405_spill] sm:$0xff] %v14601_v60  ;;  %v14606_v17 = vpop.eup %9541  ;;  %19193 = vst [vmem:[#allocation408_spill] sm:$0xff] %v14623_v7  ;;  %9567 = vrcp.f32 %v4267_v49  ;;  %v14638_v32 = vadd.f32 %v14293_v39, %v12735_v62  ;;  %v14642_v54 = vadd.f32 %v14301_v30, %v12735_v62  ;;  %v14644_v7 = vpop.f32.mrb[248].mxu1  ;;  %v14648_v6 = vadd.f32 %v14341_v48, %v12735_v62  ;;  %v10473_v48 = vld [vmem:[%s18290_s1 + $0x160] sm:$0xff] }
 0x2df   :  { %19189 = vst [vmem:[#allocation406_spill] sm:$0xff] %v14606_v17  ;;  %v14619_v4 = vpop.eup %9543  ;;  %19195 = vst [vmem:[#allocation345_spill] sm:$0xff] %v14634_v14  ;;  %9569 = vrcp.f32 %v5163_v40  ;;  %v8646_v58 = vadd.f32 %v2682_v44, %v12132_v51  ;;  %v2684_v49 = vpop.f32.mrb[121].mxu0  ;;  %v14663_v44 = vmul.f32 %v10473_v48, %v14352_v12  ;;  %v14673_v14 = vadd.f32 %v14346_v56, %v12735_v62 }
 0x2e0   :  { %19192 = vst [vmem:[#allocation334_spill] sm:$0xff] %v14619_v4  ;;  %v9546_v33 = vpop.eup %9545  ;;  %19196 = vst [vmem:[#allocation409_spill] sm:$0xff] %v14638_v32  ;;  %9571 = vpow2.f32 %v8061_v31  ;;  %v8647_v32 = vadd.f32 %v2684_v49, %v12135_v59  ;;  %v2686_v17 = vpop.f32.mrb[122].mxu0  ;;  %v14695_v48 = vadd.f32 %v14381_v20, %v12735_v62 }
 0x2e1   :  { %v9548_v35 = vpop.eup %9547  ;;  %v4268_v5 = vadd.f32 1.0, %v9546_v33  ;;  %19197 = vst [vmem:[#allocation410_spill] sm:$0xff] %v14642_v54  ;;  %19198 = vst [vmem:[#allocation411_spill] sm:$0xff] %v14648_v6  ;;  %v14651_v33 = vpop.f32.mrb[249].mxu1  ;;  %v8062_v54 = vmul.f32 -1.442695, %v8645_v18  ;;  %9573 = vpow2.f32 %v7934_v27  ;;  %7803 = vmatmul.mubr.msk.bf16.gmra.mrb[228].mxu0 %vm2155_vm1, %v14604_v8 }
 0x2e2   :  { %v9550_v42 = vpop.eup %9549  ;;  %v5164_v15 = vadd.f32 1.0, %v9548_v35  ;;  %v14657_v40 = vpop.f32.mrb[250].mxu1  ;;  %19201 = vst [vmem:[#allocation414_spill] sm:$0xff] %v14663_v44  ;;  %v7935_v6 = vmul.f32 -1.442695, %v8646_v58  ;;  %19203 = vst [vmem:[#allocation416_spill] sm:$0xff] %v14673_v14  ;;  %v14685_v58 = vadd.f32 %v14368_v57, %v12735_v62  ;;  %2960 = vmatprep.mubr.bf16.mxu0 %v18563_v46 }
 0x2e3   :  { %v14653_v39 = vpop.eup %9551  ;;  %19200 = vst [vmem:[#allocation413_spill] sm:$0xff] %v14657_v40  ;;  %v2688_v30 = vpop.f32.mrb[123].mxu0  ;;  %9575 = vrcp.f32 %v4268_v5  ;;  %v4269_v40 = vadd.f32 1.0, %v9550_v42  ;;  %v10474_v27 = vld [vmem:[%s18290_s1 + $0x168] sm:$0xff]  ;;  %v8063_v5 = vmul.f32 -1.442695, %v8647_v32  ;;  %8497 = vmatmul.mubr.msk.bf16.gmra.mrb[228].mxu1 %vm2155_vm1, %v14193_v29 }
 0x2e4   :  { %19199 = vst [vmem:[#allocation412_spill] sm:$0xff] %v14653_v39  ;;  %v9554_v35 = vpop.eup %9553  ;;  %v8648_v39 = vadd.f32 %v2686_v17, %v12132_v51  ;;  %v14666_v31 = vpop.f32.mrb[251].mxu1  ;;  %v14681_v17 = vmul.f32 %v10474_v27, %v14408_v41  ;;  %9577 = vrcp.f32 %v5164_v15  ;;  %19206 = vst [vmem:[#allocation419_spill] sm:$0xff] %v14685_v58  ;;  %v14699_v15 = vadd.f32 %v14417_v19, %v12735_v62  ;;  %v143_v29 = vld [vmem:[%s18290_s1 + $0x3a0] sm:$0xff]  ;;  %v144_v57 = vld [vmem:[%s18290_s1 + $0x3a8] sm:$0xff] }
 0x2e5   :  { %v14668_v18 = vpop.eup %9555  ;;  %v5165_v42 = vadd.f32 1.0, %v9554_v35  ;;  %19208 = vst [vmem:[#allocation421_spill] sm:$0xff] %v14695_v48  ;;  %9579 = vpow2.f32 %v8062_v54  ;;  %8500 = vmatprep.mubr.msk.bf16.mxu1 %vm2155_vm1, %v14267_v43  ;;  %v8649_v19 = vadd.f32 %v2688_v30, %v12135_v59  ;;  %v10475_v43 = vld [vmem:[%s18290_s1 + $0x170] sm:$0xff]  ;;  %v2692_v48 = vpop.f32.mrb[124].mxu0 }
 0x2e6   :  { %19202 = vst [vmem:[#allocation415_spill] sm:$0xff] %v14668_v18  ;;  %v14675_v55 = vpop.eup %9557  ;;  %19205 = vst [vmem:[#allocation418_spill] sm:$0xff] %v14681_v17  ;;  %9581 = vpow2.f32 %v7935_v6  ;;  %v7936_v54 = vmul.f32 -1.442695, %v8648_v39  ;;  %v14716_v27 = vmul.f32 %v10475_v43, %v14430_v25  ;;  %v14722_v32 = vpop.f32.mrb[252].mxu1  ;;  %v8650_v30 = vadd.f32 %v2692_v48, %v12132_v51  ;;  %v146_v48 = vld [vmem:[%s18290_s1 + $0x3b8] sm:$0xff] }
 0x2e7   :  { %19204 = vst [vmem:[#allocation417_spill] sm:$0xff] %v14675_v55  ;;  %v14691_v56 = vpop.eup %9559  ;;  %19209 = vst [vmem:[#allocation422_spill] sm:$0xff] %v14699_v15  ;;  %9583 = vrcp.f32 %v4269_v40  ;;  %v14720_v15 = vadd.f32 %v14424_v23, %v12735_v62  ;;  %v2694_v58 = vpop.f32.mrb[125].mxu0  ;;  %v14727_v55 = vpack.c.bf16 %v144_v57, %v143_v29  ;;  %v14758_v17 = vadd.f32 %v14442_v3, %v12735_v62  ;;  %v19319_v44 = vld [vmem:[#allocation24_spill] sm:$0xff] }
 0x2e8   :  { %19207 = vst [vmem:[#allocation420_spill] sm:$0xff] %v14691_v56  ;;  %v9562_v20 = vpop.eup %9561  ;;  %19210 = vst [vmem:[#allocation423_spill] sm:$0xff] %v14716_v27  ;;  %9585 = vpow2.f32 %v8063_v5  ;;  %v14725_v14 = vpop.f32.mrb[253].mxu1  ;;  %v145_v5 = vld [vmem:[%s18290_s1 + $0x3b0] sm:$0xff] }
 0x2e9   :  { %v9564_v35 = vpop.eup %9563  ;;  %v4270_v49 = vadd.f32 1.0, %v9562_v20  ;;  %19211 = vst [vmem:[#allocation424_spill] sm:$0xff] %v14720_v15  ;;  %19212 = vst [vmem:[#allocation425_spill] sm:$0xff] %v14722_v32  ;;  %9587 = vrcp.f32 %v5165_v42  ;;  %v8651_v20 = vadd.f32 %v2694_v58, %v12135_v59  ;;  %v2696_v15 = vpop.f32.mrb[126].mxu0  ;;  %v10476_v42 = vld [vmem:[%s18290_s1 + $0x178] sm:$0xff]  ;;  %7804 = vmatmul.mubr.msk.bf16.gmra.mrb[232].mxu0 %vm2155_vm1, %v14727_v55 }
 0x2ea   :  { %v9566_v6 = vpop.eup %9565  ;;  %v5166_v39 = vadd.f32 1.0, %v9564_v35  ;;  %19213 = vst [vmem:[#allocation426_spill] sm:$0xff] %v14725_v14  ;;  %v14733_v32 = vpop.f32.mrb[254].mxu1  ;;  %v14747_v57 = vmul.f32 %v10476_v42, %v14481_v2  ;;  %9589 = vpow2.f32 %v7936_v54  ;;  %v8064_v58 = vmul.f32 -1.442695, %v8649_v19  ;;  %19220 = vst [vmem:[#allocation433_spill] sm:$0xff] %v14758_v17  ;;  %2970 = vmatprep.mubr.bf16.mxu0 %v18563_v46 }
 0x2eb   :  { %v14729_v43 = vpop.eup %9567  ;;  %v4271_v23 = vadd.f32 1.0, %v9566_v6  ;;  %19215 = vst [vmem:[#allocation428_spill] sm:$0xff] %v14733_v32  ;;  %v8652_v35 = vadd.f32 %v2696_v15, %v12132_v51  ;;  %v2698_v6 = vpop.f32.mrb[127].mxu0  ;;  %9591 = vrcp.f32 %v4270_v49  ;;  %v14754_v14 = vadd.f32 %v14428_v45, %v12735_v62  ;;  %8501 = vmatmul.mubr.msk.bf16.gmra.mrb[232].mxu1 %vm2155_vm1, %v14344_v11  ;;  %v14780_v19 = vld [vmem:[%s18293_s6] ss:$0 sm:$0xff]  ;;  %v19317_v2 = vld [vmem:[#allocation55_spill] sm:$0xff] }
 0x2ec   :  { %19214 = vst [vmem:[#allocation427_spill] sm:$0xff] %v14729_v43  ;;  %v14741_v29 = vpop.eup %9569  ;;  %19217 = vst [vmem:[#allocation430_spill] sm:$0xff] %v14747_v57  ;;  %v14750_v40 = vpop.f32.mrb[255].mxu1  ;;  %v7937_v43 = vmul.f32 -1.442695, %v8650_v30  ;;  %9593 = vrcp.f32 %v5166_v39  ;;  %v14762_v54 = vadd.f32 %v14493_v38, %v12735_v62  ;;  %v14768_v45 = vpack.c.bf16 %v146_v48, %v145_v5  ;;  %8504 = vmatprep.mubr.msk.bf16.mxu1 %vm2155_vm1, %v14422_v28  ;;  %v10477_v39 = vld [vmem:[%s18290_s1 + $0x180] sm:$0xff] }
 0x2ed   :  { %19216 = vst [vmem:[#allocation429_spill] sm:$0xff] %v14741_v29  ;;  %19218 = vst [vmem:[#allocation431_spill] sm:$0xff] %v14750_v40  ;;  %v9572_v32 = vpop.eup %9571  ;;  %v8065_v51 = vmul.f32 -1.442695, %v8651_v20  ;;  %9595 = vrcp.f32 %v4271_v23  ;;  %v14775_v15 = vadd.f32 %v14498_v52, %v12735_v62  ;;  %v7938_v38 = vmul.f32 -1.442695, %v8652_v35 }
 0x2ee   :  { %19219 = vst [vmem:[#allocation432_spill] sm:$0xff] %v14754_v14  ;;  %v9574_v42 = vpop.eup %9573  ;;  %19221 = vst [vmem:[#allocation434_spill] sm:$0xff] %v14762_v54  ;;  %v14791_v52 = vmul.f32 %v10477_v39, %v14518_v22  ;;  %v5167_v30 = vadd.f32 1.0, %v9572_v32  ;;  %9597 = vpow2.f32 %v8064_v58  ;;  %v8653_v23 = vadd.f32 %v2698_v6, %v12135_v59  ;;  %v10478_v28 = vld [vmem:[%s18290_s1 + $0x188] sm:$0xff]  ;;  %v2702_v3 = vpop.f32.mrb[128].mxu0  ;;  %v19227_v32 = vld [vmem:[#allocation106_spill] sm:$0xff] }
 0x2ef   :  { %v14770_v49 = vpop.eup %9575  ;;  %19223 = vst [vmem:[#allocation436_spill] sm:$0xff] %v14775_v15  ;;  %v14799_v48 = vmul.f32 %v10478_v28, %v14560_v47  ;;  %v4272_v35 = vadd.f32 1.0, %v9574_v42  ;;  %9599 = vpow2.f32 %v7937_v43  ;;  %v8398_v40 = vpop.f32.mrb[128].mxu1  ;;  %v3765_v58 = vadd.f32 %v2702_v3, %v19227_v32  ;;  %v19229_v14 = vld [vmem:[#allocation107_spill] sm:$0xff] }
 0x2f0   :  { %19222 = vst [vmem:[#allocation435_spill] sm:$0xff] %v14770_v49  ;;  %v14785_v11 = vpop.eup %9577  ;;  %19225 = vst [vmem:[#allocation438_spill] sm:$0xff] %v14791_v52  ;;  %9601 = vpow2.f32 %v8065_v51  ;;  %v3575_v59 = vadd.f32 %v8398_v40, %v14780_v19  ;;  %v2704_v6 = vpop.f32.mrb[129].mxu0  ;;  %v14809_v51 = vadd.f32 %v14507_v37, %v12735_v62  ;;  %v8066_v3 = vmul.f32 -1.442695, %v8653_v23  ;;  %v19231_v40 = vld [vmem:[#allocation175_spill] sm:$0xff] }
 0x2f1   :  { %19224 = vst [vmem:[#allocation437_spill] sm:$0xff] %v14785_v11  ;;  %v9580_v20 = vpop.eup %9579  ;;  %19226 = vst [vmem:[#allocation439_spill] sm:$0xff] %v14799_v48  ;;  %v3055_v5 = vpop.f32.mrb[129].mxu1  ;;  %9603 = vpow2.f32 %v7938_v38  ;;  %v4661_v28 = vadd.f32 %v2704_v6, %v19229_v14  ;;  %v147_v38 = vld [vmem:[%s18290_s1 + $0x3c0] sm:$0xff]  ;;  %v148_v14 = vld [vmem:[%s18290_s1 + $0x3c8] sm:$0xff]  ;;  %v14822_v37 = vadd.f32 %v14516_v34, %v12735_v62  ;;  %7805 = vmatmul.mubr.msk.bf16.gmra.mrb[236].mxu0 %vm2155_vm1, %v14768_v45 }
 0x2f2   :  { %v9582_v39 = vpop.eup %9581  ;;  %v5168_v15 = vadd.f32 1.0, %v9580_v20  ;;  %v3573_v42 = vadd.f32 %v14780_v19, %v3055_v5  ;;  %v2706_v43 = vpop.f32.mrb[130].mxu0  ;;  %9605 = vrcp.f32 %v5167_v30  ;;  %19230 = vst [vmem:[#allocation107_spill] sm:$0xff] %v14809_v51  ;;  %v5495_v20 = vmul.f32 %v19231_v40, %v3575_v59  ;;  %v19234_v23 = vld [vmem:[#allocation166_spill] sm:$0xff]  ;;  %v149_v59 = vld [vmem:[%s18290_s1 + $0x3d0] sm:$0xff]  ;;  %v150_v6 = vld [vmem:[%s18290_s1 + $0x3d8] sm:$0xff]  ;;  %2980 = vmatprep.mubr.bf16.mxu0 %v18563_v46 }
 0x2f3   :  { %v14803_v54 = vpop.eup %9583  ;;  %v4273_v17 = vadd.f32 1.0, %v9582_v39  ;;  %v8399_v48 = vpop.f32.mrb[130].mxu1  ;;  %9607 = vrcp.f32 %v4272_v35  ;;  %19233 = vst [vmem:[#allocation440_spill] sm:$0xff] %v14822_v37  ;;  %v7939_v30 = vmul.f32 -1.442695, %v3765_v58  ;;  %v19235_v51 = vld [vmem:[#allocation232_spill] sm:$0xff]  ;;  %8505 = vmatmul.mubr.msk.bf16.gmra.mrb[236].mxu1 %vm2155_vm1, %v14496_v0 }
 0x2f4   :  { %19228 = vst [vmem:[#allocation106_spill] sm:$0xff] %v14803_v54  ;;  %v9586_v47 = vpop.eup %9585  ;;  %v2708_v32 = vpop.f32.mrb[131].mxu0  ;;  %v5493_v39 = vmul.f32 %v19234_v23, %v3573_v42  ;;  %9609 = vrcp.f32 %v5168_v15  ;;  %v5623_v54 = vadd.f32 %v5495_v20, %v19235_v51  ;;  %v19236_v35 = vld [vmem:[#allocation108_spill] sm:$0xff]  ;;  %v3576_v34 = vadd.f32 %v8399_v48, %v14780_v19  ;;  %v19238_v23 = vld [vmem:[#allocation233_spill] sm:$0xff]  ;;  %8508 = vmatprep.mubr.msk.bf16.mxu1 %vm2155_vm1, %v14572_v13  ;;  %v19241_v20 = vld [vmem:[#allocation110_spill] sm:$0xff] }
 0x2f5   :  { %v3058_v49 = vpop.f32.mrb[131].mxu1  ;;  %v14818_v5 = vpop.eup %9587  ;;  %v14833_v52 = vadd.f32 %v2706_v43, %v19236_v35  ;;  %9611 = vrcp.f32 %v4273_v17  ;;  %v5169_v42 = vadd.f32 1.0, %v9586_v47  ;;  %v14846_v15 = vpack.c.bf16 %v148_v14, %v147_v38  ;;  %v19240_v43 = vld [vmem:[#allocation5_spill] sm:$0xff] }
 0x2f6   :  { %19232 = vst [vmem:[#allocation175_spill] sm:$0xff] %v14818_v5  ;;  %v9590_v40 = vpop.eup %9589  ;;  %v5621_v37 = vadd.f32 %v5493_v39, %v19238_v23  ;;  %9613 = vpow2.f32 %v8066_v3  ;;  %v5496_v51 = vmul.f32 %v19240_v43, %v3576_v34  ;;  %v14852_v0 = vadd.f32 %v2708_v32, %v19241_v20  ;;  %v2712_v38 = vpop.f32.mrb[132].mxu0  ;;  %v19246_v43 = vld [vmem:[#allocation171_spill] sm:$0xff] }
 0x2f7   :  { %v14840_v58 = vpop.eup %9591  ;;  %v14854_v35 = vpack.c.bf16 %v150_v6, %v149_v59  ;;  %v4274_v17 = vadd.f32 1.0, %v9590_v40  ;;  %v14860_v39 = vadd.f32 %v14569_v10, %v12735_v62  ;;  %9615 = vpow2.f32 %v7939_v30  ;;  %v8402_v14 = vpop.f32.mrb[132].mxu1  ;;  %v19245_v59 = vld [vmem:[#allocation234_spill] sm:$0xff]  ;;  %v10480_v40 = vld [vmem:[%s18290_s1 + $0x198] sm:$0xff] }
 0x2f8   :  { %19237 = vst [vmem:[#allocation166_spill] sm:$0xff] %v14840_v58  ;;  %v14848_v48 = vpop.eup %9593  ;;  %v3574_v13 = vadd.f32 %v14780_v19, %v3058_v49  ;;  %v14865_v34 = vadd.f32 %v14574_v61, %v12735_v62  ;;  %9617 = vtanh.f32 %v5623_v54  ;;  %v8067_v32 = vmul.f32 -1.442695, %v4661_v28  ;;  %v2714_v20 = vpop.f32.mrb[133].mxu0 }
 0x2f9   :  { %19239 = vst [vmem:[#allocation232_spill] sm:$0xff] %v14848_v48  ;;  %v14856_v47 = vpop.eup %9595  ;;  %19243 = vst [vmem:[#allocation233_spill] sm:$0xff] %v14860_v39  ;;  %v5624_v6 = vadd.f32 %v5496_v51, %v19245_v59  ;;  %9619 = vrcp.f32 %v5169_v42  ;;  %v3071_v49 = vpop.f32.mrb[133].mxu1  ;;  %v3579_v61 = vadd.f32 %v8402_v14, %v14780_v19  ;;  %v10479_v42 = vld [vmem:[%s18290_s1 + $0x190] sm:$0xff]  ;;  %v19249_v59 = vld [vmem:[#allocation238_spill] sm:$0xff]  ;;  %7806 = vmatmul.mubr.msk.bf16.gmra.mrb[240].mxu0 %vm2155_vm1, %v14846_v15 }
 0x2fa   :  { %19242 = vst [vmem:[#allocation108_spill] sm:$0xff] %v14856_v47  ;;  %v9598_v3 = vpop.eup %9597  ;;  %19244 = vst [vmem:[#allocation5_spill] sm:$0xff] %v14865_v34  ;;  %v5494_v30 = vmul.f32 %v19246_v43, %v3574_v13  ;;  %9621 = vtanh.f32 %v5621_v37  ;;  %v19247_v47 = vld [vmem:[#allocation111_spill] sm:$0xff]  ;;  %v2716_v54 = vpop.f32.mrb[134].mxu0  ;;  %v14889_v34 = vmul.f32 %v10480_v40, %v14619_v4  ;;  %v14904_v40 = vadd.f32 %v14599_v50, %v12735_v62 }
 0x2fb   :  { %v9600_v23 = vpop.eup %9599  ;;  %v5170_v10 = vadd.f32 1.0, %v9598_v3  ;;  %v14871_v22 = vadd.f32 %v2712_v38, %v19247_v47  ;;  %v8403_v28 = vpop.f32.mrb[134].mxu1  ;;  %v14878_v3 = vmul.f32 %v10479_v42, %v14601_v60  ;;  %9623 = vrcp.f32 %v4274_v17  ;;  %v19251_v38 = vld [vmem:[#allocation99_spill] sm:$0xff]  ;;  %v19253_v17 = vld [vmem:[#allocation190_spill] sm:$0xff]  ;;  %8509 = vmatmul.mubr.msk.bf16.gmra.mrb[240].mxu1 %vm2155_vm1, %v14604_v8  ;;  %2990 = vmatprep.mubr.bf16.mxu0 %v18563_v46  ;;  %v19258_v8 = vld [vmem:[#allocation100_spill] sm:$0xff] }
 0x2fc   :  { %v9602_v39 = vpop.eup %9601  ;;  %v4275_v58 = vadd.f32 1.0, %v9600_v23  ;;  %v5622_v23 = vadd.f32 %v5494_v30, %v19249_v59  ;;  %v2718_v37 = vpop.f32.mrb[135].mxu0  ;;  %vm7159_vm2 = vcmp.eq.s32.totalorder %v19251_v38, 1  ;;  %19252 = vst [vmem:[#allocation171_spill] sm:$0xff] %v14889_v34  ;;  %9625 = vpow2.f32 %v8067_v32  ;;  %19256 = vst [vmem:[#allocation99_spill] sm:$0xff] %v14904_v40  ;;  %8512 = vmatprep.mubr.msk.bf16.mxu1 %vm2155_vm1, %v14727_v55  ;;  %v19262_v55 = vld [vmem:[#allocation115_spill] sm:$0xff] }
 0x2fd   :  { %v9604_v51 = vpop.eup %9603  ;;  %19248 = vst [vmem:[#allocation110_spill] sm:$0xff] %v14878_v3  ;;  %v5171_v13 = vadd.f32 1.0, %v9602_v39  ;;  %v3074_v43 = vpop.f32.mrb[135].mxu1  ;;  %v5499_v39 = vmul.f32 %v19253_v17, %v3579_v61  ;;  %9627 = vrcp.f32 %v5170_v10  ;;  %v14900_v42 = vadd.f32 %v14587_v1, %v12735_v62  ;;  %v19259_v10 = vld [vmem:[#allocation240_spill] sm:$0xff]  ;;  %v19260_v1 = vld [vmem:[#allocation114_spill] sm:$0xff]  ;;  %v19266_v4 = vld [vmem:[#allocation243_spill] sm:$0xff] }
 0x2fe   :  { %v14881_v47 = vpop.eup %9605  ;;  %v4276_v32 = vadd.f32 1.0, %v9604_v51  ;;  %vm7157_vm3 = vcmp.eq.s32.totalorder %v19258_v8, 1  ;;  %9629 = vrcp.f32 %v4275_v58  ;;  %v4663_v17 = vadd.f32 %v2714_v20, %v19260_v1  ;;  %v14926_v58 = vpop.f32.mrb[136].mxu1  ;;  %v19267_v60 = vld [vmem:[#allocation18_spill] sm:$0xff] }
 0x2ff   :  { %19250 = vst [vmem:[#allocation234_spill] sm:$0xff] %v14881_v47  ;;  %v14896_v30 = vpop.eup %9607  ;;  %19255 = vst [vmem:[#allocation238_spill] sm:$0xff] %v14900_v42  ;;  %v14913_v59 = vadd.f32 %v5499_v39, %v19259_v10  ;;  %v3577_v14 = vadd.f32 %v14780_v19, %v3071_v49  ;;  %9631 = vrcp.f32 %v5171_v13  ;;  %v7940_v40 = vmul.f32 -1.442695, %v14833_v52  ;;  %v19263_v10 = vld [vmem:[#allocation182_spill] sm:$0xff]  ;;  %v152_v52 = vld [vmem:[%s18290_s1 + $0x3e8] sm:$0xff] }
 0x300   :  { %19254 = vst [vmem:[#allocation111_spill] sm:$0xff] %v14896_v30  ;;  %v14909_v61 = vpop.eup %9609  ;;  %v14922_v42 = vadd.f32 %v2716_v54, %v19262_v55  ;;  %v14924_v30 = vpop.f32.mrb[136].mxu0  ;;  %9633 = vtanh.f32 %v5624_v6  ;;  %v8068_v20 = vmul.f32 -1.442695, %v14852_v0  ;;  %v3580_v1 = vadd.f32 %v8403_v28, %v14780_v19  ;;  %v151_v13 = vld [vmem:[%s18290_s1 + $0x3e0] sm:$0xff] }
 0x301   :  { %19257 = vst [vmem:[#allocation190_spill] sm:$0xff] %v14909_v61  ;;  %v14917_v50 = vpop.eup %9611  ;;  %v5497_v49 = vmul.f32 %v19263_v10, %v3577_v14  ;;  %v10481_v55 = vld [vmem:[%s18290_s1 + $0x1a0] sm:$0xff]  ;;  %9635 = vrcp.f32 %v4276_v32  ;;  %v19265_v14 = vld [vmem:[#allocation116_spill] sm:$0xff]  ;;  %v14946_v10 = vpop.f32.mrb[137].mxu0  ;;  %7807 = vmatmul.mubr.msk.bf16.gmra.mrb[244].mxu0 %vm2155_vm1, %v14854_v35 }
 0x302   :  { %19261 = vst [vmem:[#allocation100_spill] sm:$0xff] %v14917_v50  ;;  %v9614_v39 = vpop.eup %9613  ;;  %v14941_v6 = vmul.f32 %v10481_v55, %v14668_v18  ;;  %v14944_v28 = vadd.f32 %v2718_v37, %v19265_v14  ;;  %v14948_v51 = vpop.f32.mrb[137].mxu1  ;;  %9637 = vtanh.f32 %v5622_v23  ;;  %v5500_v41 = vmul.f32 %v19267_v60, %v3580_v1  ;;  %v19271_v60 = vld [vmem:[#allocation103_spill] sm:$0xff]  ;;  %3000 = vmatprep.mubr.bf16.mxu0 %v18563_v46 }
 0x303   :  { %v9616_v54 = vpop.eup %9615  ;;  %v5172_v0 = vadd.f32 1.0, %v9614_v39  ;;  %v5625_v3 = vadd.f32 %v5497_v49, %v19266_v4  ;;  %v14952_v57 = vpop.f32.mrb[138].mxu0  ;;  %v19269_v39 = vld [vmem:[#allocation177_spill] sm:$0xff]  ;;  %9639 = vpow2.f32 %v7940_v40  ;;  %v14965_v23 = vpack.c.bf16 %v152_v52, %v151_v13  ;;  %8513 = vmatmul.mubr.msk.bf16.gmra.mrb[244].mxu1 %vm2155_vm1, %v14768_v45  ;;  %v19275_v13 = vld [vmem:[#allocation268_spill] sm:$0xff] }
 0x304   :  { %19264 = vst [vmem:[#allocation240_spill] sm:$0xff] %v14941_v6  ;;  %v9618_v50 = vpop.eup %9617  ;;  %v4277_v34 = vadd.f32 1.0, %v9616_v54  ;;  %v14954_v55 = vpop.f32.mrb[138].mxu1  ;;  %v19270_v37 = vsub.f32 1.0, %v19269_v39  ;;  %v3578_v6 = vadd.f32 %v14780_v19, %v3074_v43  ;;  %vm7160_vm4 = vcmp.eq.s32.totalorder %v19271_v60, 1  ;;  %v19276_v39 = vld [vmem:[#allocation169_spill] sm:$0xff]  ;;  %8516 = vmatprep.mubr.msk.bf16.mxu1 %vm2155_vm1, %v14846_v15 }
 0x305   :  { %v14956_v32 = vpop.eup %9619  ;;  %v14961_v18 = vpop.f32.mrb[139].mxu0  ;;  %v14970_v49 = vadd.f32 %v14644_v7, %v12735_v62  ;;  %9641 = vpow2.f32 %v8068_v20  ;;  %v7941_v1 = vmul.f32 -1.442695, %v14871_v22  ;;  %v19279_v22 = vld [vmem:[#allocation105_spill] sm:$0xff]  ;;  %v7942_v38 = vmul.f32 -1.442695, %v14922_v42 }
 0x306   :  { %19268 = vst [vmem:[#allocation114_spill] sm:$0xff] %v14956_v32  ;;  %v6007_v14 = vmul.f32 %v9618_v50, %v19270_v37  ;;  %v14963_v54 = vpop.f32.mrb[139].mxu1  ;;  %v9622_v4 = vpop.eup %9621  ;;  %v19273_v50 = vld [vmem:[#allocation244_spill] sm:$0xff]  ;;  %9643 = vrcp.f32 %v5172_v0  ;;  %v19277_v37 = vsub.f32 1.0, %v19276_v39  ;;  %vm7158_vm5 = vcmp.eq.s32.totalorder %v19279_v22, 1  ;;  %v19283_v15 = vld [vmem:[#allocation245_spill] sm:$0xff] }
 0x307   :  { %19272 = vst [vmem:[#allocation115_spill] sm:$0xff] %v14970_v49  ;;  %v5628_v40 = vadd.f32 %v5500_v41, %v19273_v50  ;;  %v14978_v43 = vpop.eup %9623  ;;  %v19278_v49 = vld [vmem:[#allocation12_spill] sm:$0xff]  ;;  %v14991_v0 = vadd.f32 %v14651_v33, %v12735_v62  ;;  %9645 = vrcp.f32 %v4277_v34  ;;  %v15000_v39 = vpop.f32.mrb[140].mxu0  ;;  %v10482_v33 = vld [vmem:[%s18290_s1 + $0x1a8] sm:$0xff] }
 0x308   :  { %19274 = vst [vmem:[#allocation182_spill] sm:$0xff] %v14978_v43  ;;  %v6263_v52 = vadd.f32 %v19275_v13, %v6007_v14  ;;  %v6005_v7 = vmul.f32 %v9622_v4, %v19277_v37  ;;  %v5498_v20 = vmul.f32 %v19278_v49, %v3578_v6  ;;  %v9626_v41 = vpop.eup %9625  ;;  %v8069_v14 = vmul.f32 -1.442695, %v4663_v17  ;;  %v19282_v4 = vld [vmem:[#allocation60_spill] sm:$0xff]  ;;  %v15002_v37 = vpop.f32.mrb[140].mxu1  ;;  %v154_v43 = vld [vmem:[%s18290_s1 + $0x3f8] sm:$0xff] }
 0x309   :  { %19280 = vst [vmem:[#allocation116_spill] sm:$0xff] %v14991_v0  ;;  %v14993_v50 = vpop.eup %9627  ;;  %9647 = vtanh.f32 %v14913_v59  ;;  %v15010_v34 = vmul.f32 %v10482_v33, %v14691_v56  ;;  %v19286_v59 = vld [vmem:[#allocation117_spill] sm:$0xff]  ;;  %v15027_v33 = vpop.f32.mrb[141].mxu1  ;;  %v19293_v42 = vld [vmem:[#allocation208_spill] sm:$0xff]  ;;  %7808 = vmatmul.mubr.msk.bf16.gmra.mrb[248].mxu0 %vm2155_vm1, %v14965_v23 }
 0x30a   :  { %19281 = vst [vmem:[#allocation243_spill] sm:$0xff] %v14993_v50  ;;  %v7287_v6 = vsel %vm7159_vm2, %v6263_v52, 1.0  ;;  %v6261_v49 = vadd.f32 %v19282_v4, %v6005_v7  ;;  %v5626_v13 = vadd.f32 %v5498_v20, %v19283_v15  ;;  %v15004_v45 = vpop.eup %9629  ;;  %9649 = vpow2.f32 %v7941_v1  ;;  %v15025_v15 = vpop.f32.mrb[141].mxu0  ;;  %v153_v0 = vld [vmem:[%s18290_s1 + $0x3f0] sm:$0xff]  ;;  %3010 = vmatprep.mubr.bf16.mxu0 %v18563_v46 }
 0x30b   :  { %19284 = vst [vmem:[#allocation18_spill] sm:$0xff] %v15004_v45  ;;  %19285 = vst [vmem:[#allocation177_spill] sm:$0xff] %v15010_v34  ;;  %v3769_v17 = vadd.f32 %v14924_v30, %v19286_v59  ;;  %v15019_v52 = vpop.eup %9631  ;;  %v5173_v7 = vadd.f32 1.0, %v9626_v41  ;;  %9651 = vtanh.f32 %v5625_v3  ;;  %v3583_v4 = vadd.f32 %v14926_v58, %v14780_v19  ;;  %v15039_v8 = vpop.f32.mrb[142].mxu0  ;;  %8517 = vmatmul.mubr.msk.bf16.gmra.mrb[248].mxu1 %vm2155_vm1, %v14854_v35  ;;  %v19300_v45 = vld [vmem:[#allocation246_spill] sm:$0xff]  ;;  %v10483_v35 = vld [vmem:[%s18290_s1 + $0x1b0] sm:$0xff] }
 0x30c   :  { %7415 = vst.msk [vmem:[%s18294_s7 + $0x10] sm:$0xff] %vm2155_vm1, %v7287_v6  ;;  %19287 = vst [vmem:[#allocation103_spill] sm:$0xff] %v15019_v52  ;;  %v7285_v20 = vsel %vm7157_vm3, %v6261_v49, 1.0  ;;  %v9634_v1 = vpop.eup %9633  ;;  %v15032_v30 = vadd.f32 %v14666_v31, %v12735_v62  ;;  %9653 = vpow2.f32 %v8069_v14  ;;  %v8070_v3 = vmul.f32 -1.442695, %v14944_v28  ;;  %v15041_v58 = vpop.f32.mrb[142].mxu1  ;;  %8520 = vmatprep.mubr.msk.bf16.mxu1 %vm2155_vm1, %v14965_v23 }
 0x30d   :  { %7413 = vst.msk [vmem:[%s18294_s7] sm:$0xff] %vm2155_vm1, %v7285_v20  ;;  %v15043_v41 = vpop.eup %9635  ;;  %v19290_v6 = vld [vmem:[#allocation131_spill] sm:$0xff]  ;;  %v19291_v49 = vld [vmem:[#allocation178_spill] sm:$0xff]  ;;  %9655 = vtanh.f32 %v5628_v40  ;;  %v5503_v62 = vmul.f32 %v19293_v42, %v3583_v4  ;;  %v15051_v14 = vpop.f32.mrb[143].mxu0  ;;  %v7943_v40 = vmul.f32 -1.442695, %v3769_v17  ;;  %v3581_v4 = vadd.f32 %v14780_v19, %v14948_v51 }
 0x30e   :  { %19288 = vst [vmem:[#allocation244_spill] sm:$0xff] %v15032_v30  ;;  %19289 = vst [vmem:[#allocation268_spill] sm:$0xff] %v15043_v41  ;;  %vm7163_vm6 = vcmp.eq.s32.totalorder %v19290_v6, 1  ;;  %v19292_v59 = vsub.f32 1.0, %v19291_v49  ;;  %v19294_v30 = vld [vmem:[#allocation118_spill] sm:$0xff]  ;;  %v15053_v28 = vpop.f32.mrb[143].mxu1  ;;  %v9638_v49 = vpop.eup %9637  ;;  %9657 = vpow2.f32 %v7942_v38 }
 0x30f   :  { %v4665_v20 = vadd.f32 %v14946_v10, %v19294_v30  ;;  %v9640_v42 = vpop.eup %9639  ;;  %v19296_v30 = vld [vmem:[#allocation113_spill] sm:$0xff]  ;;  %9659 = vrcp.f32 %v5173_v7  ;;  %v19298_v38 = vld [vmem:[#allocation44_spill] sm:$0xff]  ;;  %v5631_v51 = vadd.f32 %v5503_v62, %v19300_v45  ;;  %v19305_v45 = vld [vmem:[#allocation198_spill] sm:$0xff]  ;;  %v15092_v56 = vpop.f32.mrb[144].mxu1 }
 0x310   :  { %v6008_v31 = vmul.f32 %v9634_v1, %v19292_v59  ;;  %v19295_v1 = vld [vmem:[#allocation119_spill] sm:$0xff]  ;;  %vm7161_vm7 = vcmp.eq.s32.totalorder %v19296_v30, 1  ;;  %v19297_v59 = vld [vmem:[#allocation269_spill] sm:$0xff]  ;;  %v19299_v17 = vsub.f32 1.0, %v19298_v38  ;;  %9661 = vpow2.f32 %v8070_v3  ;;  %v19304_v62 = vld [vmem:[#allocation260_spill] sm:$0xff] }
 0x311   :  { %v3770_v10 = vadd.f32 %v14952_v57, %v19295_v1  ;;  %v9642_v57 = vpop.eup %9641  ;;  %v15081_v1 = vmul.f32 %v10483_v35, %v14741_v29  ;;  %v8071_v7 = vmul.f32 -1.442695, %v4665_v20  ;;  %9663 = vtanh.f32 %v5626_v13 }
 0x312   :  { %v6264_v41 = vadd.f32 %v19297_v59, %v6008_v31  ;;  %v6006_v34 = vmul.f32 %v9638_v49, %v19299_v17  ;;  %v346_v31 = vpack.c.bf16 %v154_v43, %v153_v0  ;;  %v15083_v59 = vpop.eup %9643  ;;  %v19303_v49 = vld [vmem:[#allocation130_spill] sm:$0xff]  ;;  %v5501_v38 = vmul.f32 %v19305_v45, %v3581_v4  ;;  %v15090_v17 = vpop.f32.mrb[144].mxu0  ;;  %v10484_v0 = vld [vmem:[%s18290_s1 + $0x1b8] sm:$0xff] }
 0x313   :  { %19301 = vst [vmem:[#allocation169_spill] sm:$0xff] %v15081_v1  ;;  %19302 = vst [vmem:[#allocation12_spill] sm:$0xff] %v15083_v59  ;;  %vm7164_vm8 = vcmp.eq.s32.totalorder %v19303_v49, 1  ;;  %v15094_v35 = vpop.eup %9645  ;;  %v15101_v60 = vmul.f32 %v10484_v0, %v14785_v11  ;;  %9665 = vpow2.f32 %v7943_v40  ;;  %v3584_v13 = vadd.f32 %v14954_v55, %v14780_v19  ;;  %v15112_v4 = vpop.f32.mrb[145].mxu0  ;;  %v19308_v40 = vld [vmem:[#allocation193_spill] sm:$0xff]  ;;  %v19310_v0 = vld [vmem:[#allocation247_spill] sm:$0xff] }
 0x314   :  { %v7288_v46 = vsel %vm7160_vm4, %v6264_v41, 1.0  ;;  %v6262_v23 = vadd.f32 %v19304_v62, %v6006_v34  ;;  %19306 = vst [vmem:[#allocation105_spill] sm:$0xff] %v15094_v35  ;;  %v9648_v34 = vpop.eup %9647  ;;  %v4278_v41 = vadd.f32 1.0, %v9640_v42  ;;  %9667 = vtanh.f32 %v5631_v51  ;;  %v15114_v62 = vpop.f32.mrb[145].mxu1  ;;  %v19311_v43 = vld [vmem:[#allocation30_spill] sm:$0xff]  ;;  %v19313_v1 = vld [vmem:[#allocation120_spill] sm:$0xff]  ;;  %7809 = vmatmul.mubr.msk.bf16.gmra.mrb[252].mxu0 %vm2155_vm1, %v346_v31  ;;  %8521 = vmatmul.mubr.msk.bf16.gmra.mrb[252].mxu1 %vm2155_vm1, %v346_v31 }
 0x315   :  { %19307 = vst [vmem:[#allocation60_spill] sm:$0xff] %v15101_v60  ;;  %7416 = vst.msk [vmem:[%s18294_s7 + $0x18] sm:$0xff] %vm2155_vm1, %v7288_v46  ;;  %v9650_v45 = vpop.eup %9649  ;;  %v19309_v55 = vsub.f32 1.0, %v19308_v40  ;;  %v5629_v3 = vadd.f32 %v5501_v38, %v19310_v0  ;;  %v7944_v42 = vmul.f32 -1.442695, %v3770_v10  ;;  %v5504_v22 = vmul.f32 %v19311_v43, %v3584_v13  ;;  %v15126_v51 = vpop.f32.mrb[146].mxu1 }
 0x316   :  { %v7286_v20 = vsel %vm7158_vm5, %v6262_v23, 1.0  ;;  %v15124_v23 = vpop.f32.mrb[146].mxu0  ;;  %v9652_v35 = vpop.eup %9651  ;;  %v19312_v60 = vld [vmem:[#allocation109_spill] sm:$0xff]  ;;  %v5174_v11 = vadd.f32 1.0, %v9642_v57  ;;  %9669 = vpow2.f32 %v8071_v7  ;;  %v19314_v43 = vld [vmem:[#allocation278_spill] sm:$0xff] }
 0x317   :  { %7414 = vst.msk [vmem:[%s18294_s7 + $0x8] sm:$0xff] %vm2155_vm1, %v7286_v20  ;;  %v6011_v46 = vmul.f32 %v9648_v34, %v19309_v55  ;;  %vm7162_vm9 = vcmp.eq.s32.totalorder %v19312_v60, 1  ;;  %v4666_v20 = vadd.f32 %v14961_v18, %v19313_v1  ;;  %v3582_v34 = vadd.f32 %v14780_v19, %v14963_v54  ;;  %v15133_v40 = vpop.f32.mrb[147].mxu0  ;;  %v15135_v10 = vpop.f32.mrb[147].mxu1  ;;  %v19315_v55 = vld [vmem:[#allocation185_spill] sm:$0xff]  ;;  %v19318_v1 = vld [vmem:[#allocation148_spill] sm:$0xff] }
 0x318   :  { %v9654_v38 = vpop.eup %9653  ;;  %v19316_v0 = vsub.f32 1.0, %v19315_v55  ;;  %9671 = vtanh.f32 %v5629_v3  ;;  %v5632_v57 = vadd.f32 %v5504_v22, %v19317_v2  ;;  %vm7167_vm10 = vcmp.eq.s32.totalorder %v19318_v1, 1  ;;  %v10485_v31 = vld [vmem:[%s18290_s1 + $0x1c0] sm:$0xff]  ;;  %v19346_v60 = vld [vmem:[#allocation216_spill] sm:$0xff] }
 0x319   :  { %v6267_v13 = vadd.f32 %v19314_v43, %v6011_v46  ;;  %v9656_v18 = vpop.eup %9655  ;;  %9673 = vrcp.f32 %v4278_v41  ;;  %v4279_v54 = vadd.f32 1.0, %v9650_v45  ;;  %v8072_v7 = vmul.f32 -1.442695, %v4666_v20  ;;  %v19321_v43 = vld [vmem:[#allocation196_spill] sm:$0xff]  ;;  %v15164_v45 = vpop.f32.mrb[148].mxu0 }
 0x31a   :  { %v6009_v29 = vmul.f32 %v9652_v35, %v19316_v0  ;;  %v5502_v27 = vmul.f32 %v19319_v44, %v3582_v34  ;;  %v9658_v12 = vpop.eup %9657  ;;  %v19320_v35 = vld [vmem:[#allocation274_spill] sm:$0xff]  ;;  %v19322_v2 = vsub.f32 1.0, %v19321_v43  ;;  %9675 = vpow2.f32 %v7944_v42  ;;  %v15166_v42 = vpop.f32.mrb[148].mxu1  ;;  %v19326_v34 = vld [vmem:[#allocation140_spill] sm:$0xff] }
 0x31b   :  { %v7291_v46 = vsel %vm7163_vm6, %v6267_v13, 1.0  ;;  %v15150_v55 = vpop.eup %9659  ;;  %v15156_v41 = vmul.f32 %v10485_v31, %v14818_v5  ;;  %9677 = vrcp.f32 %v5174_v11  ;;  %vm7165_vm11 = vcmp.eq.s32.totalorder %v19326_v34, 1  ;;  %v10486_v13 = vld [vmem:[%s18290_s1 + $0x1c8] sm:$0xff]  ;;  %v19335_v44 = vld [vmem:[#allocation212_spill] sm:$0xff]  ;;  %v19356_v34 = vld [vmem:[#allocation41_spill] sm:$0xff] }
 0x31c   :  { %v6265_v3 = vadd.f32 %v19320_v35, %v6009_v29  ;;  %v6012_v22 = vmul.f32 %v9656_v18, %v19322_v2  ;;  %19323 = vst [vmem:[#allocation245_spill] sm:$0xff] %v15150_v55  ;;  %7419 = vst.msk [vmem:[%s18294_s7 + $0x30] sm:$0xff] %vm2155_vm1, %v7291_v46  ;;  %v19325_v29 = vld [vmem:[#allocation248_spill] sm:$0xff]  ;;  %v9662_v20 = vpop.eup %9661  ;;  %v15173_v11 = vmul.f32 %v10486_v13, %v14848_v48  ;;  %v19328_v18 = vld [vmem:[#allocation281_spill] sm:$0xff]  ;;  %9679 = vtanh.f32 %v5632_v57  ;;  %v15186_v13 = vpop.f32.mrb[149].mxu1 }
 0x31d   :  { %19324 = vst [vmem:[#allocation117_spill] sm:$0xff] %v15156_v41  ;;  %v5630_v6 = vadd.f32 %v5502_v27, %v19325_v29  ;;  %v9664_v27 = vpop.eup %9663  ;;  %9681 = vrcp.f32 %v4279_v54  ;;  %v5175_v35 = vadd.f32 1.0, %v9654_v38  ;;  %v4280_v43 = vadd.f32 1.0, %v9658_v12  ;;  %v19329_v2 = vld [vmem:[#allocation121_spill] sm:$0xff]  ;;  %v15184_v29 = vpop.f32.mrb[149].mxu0  ;;  %v19337_v48 = vld [vmem:[#allocation226_spill] sm:$0xff] }
 0x31e   :  { %19327 = vst [vmem:[#allocation131_spill] sm:$0xff] %v15173_v11  ;;  %v7289_v0 = vsel %vm7161_vm7, %v6265_v3, 1.0  ;;  %v6268_v46 = vadd.f32 %v19328_v18, %v6012_v22  ;;  %v3771_v31 = vadd.f32 %v15000_v39, %v19329_v2  ;;  %v9666_v30 = vpop.eup %9665  ;;  %v19330_v3 = vld [vmem:[#allocation186_spill] sm:$0xff]  ;;  %9683 = vpow2.f32 %v8072_v7  ;;  %v15196_v12 = vpop.f32.mrb[150].mxu1  ;;  %v10487_v2 = vld [vmem:[%s18290_s1 + $0x1d0] sm:$0xff] }
 0x31f   :  { %7417 = vst.msk [vmem:[%s18294_s7 + $0x20] sm:$0xff] %vm2155_vm1, %v7289_v0  ;;  %v19331_v54 = vsub.f32 1.0, %v19330_v3  ;;  %v3587_v22 = vadd.f32 %v15002_v37, %v14780_v19  ;;  %v15194_v0 = vpop.f32.mrb[150].mxu0  ;;  %v9668_v39 = vpop.eup %9667  ;;  %v15203_v49 = vmul.f32 %v10487_v2, %v14881_v47  ;;  %v5176_v37 = vadd.f32 1.0, %v9662_v20  ;;  %v19334_v3 = vld [vmem:[#allocation276_spill] sm:$0xff] }
 0x320   :  { %v7292_v57 = vsel %vm7164_vm8, %v6268_v46, 1.0  ;;  %9685 = vtanh.f32 %v5630_v6  ;;  %v15209_v7 = vpop.f32.mrb[151].mxu0  ;;  %v15211_v46 = vpop.f32.mrb[151].mxu1  ;;  %v19336_v18 = vsub.f32 1.0, %v19335_v44  ;;  %v7945_v2 = vmul.f32 -1.442695, %v3771_v31 }
 0x321   :  { %v6010_v38 = vmul.f32 %v9664_v27, %v19331_v54  ;;  %19332 = vst [vmem:[#allocation178_spill] sm:$0xff] %v15203_v49  ;;  %7420 = vst.msk [vmem:[%s18294_s7 + $0x38] sm:$0xff] %vm2155_vm1, %v7292_v57  ;;  %v19333_v27 = vld [vmem:[#allocation147_spill] sm:$0xff]  ;;  %v5507_v41 = vmul.f32 %v19337_v48, %v3587_v22  ;;  %v9670_v5 = vpop.eup %9669  ;;  %9687 = vrcp.f32 %v5175_v35  ;;  %v19338_v49 = vld [vmem:[#allocation122_spill] sm:$0xff]  ;;  %v3585_v6 = vadd.f32 %v14780_v19, %v15027_v33 }
 0x322   :  { %vm7168_vm12 = vcmp.eq.s32.totalorder %v19333_v27, 1  ;;  %v6015_v11 = vmul.f32 %v9668_v39, %v19336_v18  ;;  %v4667_v20 = vadd.f32 %v15025_v15, %v19338_v49  ;;  %v19339_v57 = vld [vmem:[#allocation123_spill] sm:$0xff]  ;;  %v9672_v25 = vpop.eup %9671  ;;  %9689 = vrcp.f32 %v4280_v43  ;;  %v19340_v31 = vld [vmem:[#allocation112_spill] sm:$0xff]  ;;  %v19345_v43 = vld [vmem:[#allocation253_spill] sm:$0xff] }
 0x323   :  { %v6266_v54 = vadd.f32 %v19334_v3, %v6010_v38  ;;  %v3772_v47 = vadd.f32 %v15039_v8, %v19339_v57  ;;  %v4281_v38 = vadd.f32 1.0, %v9666_v30  ;;  %v15227_v48 = vpop.eup %9673  ;;  %v19342_v35 = vld [vmem:[#allocation139_spill] sm:$0xff]  ;;  %9691 = vrcp.f32 %v5176_v37  ;;  %v15238_v30 = vpop.f32.mrb[152].mxu0  ;;  %v10488_v37 = vld [vmem:[%s18290_s1 + $0x1d8] sm:$0xff]  ;;  %v19351_v3 = vld [vmem:[#allocation124_spill] sm:$0xff] }
 0x324   :  { %v6271_v39 = vadd.f32 %v19340_v31, %v6015_v11  ;;  %19341 = vst [vmem:[#allocation208_spill] sm:$0xff] %v15227_v48  ;;  %vm7166_vm13 = vcmp.eq.s32.totalorder %v19342_v35, 1  ;;  %v19343_v15 = vld [vmem:[#allocation203_spill] sm:$0xff]  ;;  %v5635_v22 = vadd.f32 %v5507_v41, %v19345_v43  ;;  %v5505_v18 = vmul.f32 %v19346_v60, %v3585_v6  ;;  %v15240_v11 = vpop.f32.mrb[152].mxu1  ;;  %v9676_v49 = vpop.eup %9675  ;;  %v19349_v31 = vld [vmem:[#allocation285_spill] sm:$0xff]  ;;  %v19367_v27 = vld [vmem:[#allocation258_spill] sm:$0xff] }
 0x325   :  { %v7290_v44 = vsel %vm7162_vm9, %v6266_v54, 1.0  ;;  %v19344_v33 = vsub.f32 1.0, %v19343_v15  ;;  %v15247_v54 = vmul.f32 %v10488_v37, %v14909_v61  ;;  %9693 = vpow2.f32 %v7945_v2  ;;  %v15251_v41 = vpop.f32.mrb[153].mxu0  ;;  %v15253_v6 = vpop.f32.mrb[153].mxu1  ;;  %v19373_v35 = vld [vmem:[#allocation252_spill] sm:$0xff] }
 0x326   :  { %7418 = vst.msk [vmem:[%s18294_s7 + $0x28] sm:$0xff] %vm2155_vm1, %v7290_v44  ;;  %v15255_v57 = vpop.eup %9677  ;;  %v5177_v44 = vadd.f32 1.0, %v9670_v5  ;;  %9695 = vtanh.f32 %v5635_v22  ;;  %v15263_v1 = vpop.f32.mrb[154].mxu0  ;;  %v8073_v60 = vmul.f32 -1.442695, %v4667_v20  ;;  %v3588_v37 = vadd.f32 %v15041_v58, %v14780_v19 }
 0x327   :  { %v6013_v8 = vmul.f32 %v9672_v25, %v19344_v33  ;;  %19347 = vst [vmem:[#allocation118_spill] sm:$0xff] %v15247_v54  ;;  %v7295_v25 = vsel %vm7167_vm10, %v6271_v39, 1.0  ;;  %19348 = vst [vmem:[#allocation119_spill] sm:$0xff] %v15255_v57  ;;  %v19350_v33 = vld [vmem:[#allocation255_spill] sm:$0xff]  ;;  %v15265_v2 = vpop.f32.mrb[154].mxu1  ;;  %v9680_v39 = vpop.eup %9679  ;;  %9697 = vrcp.f32 %v4281_v38  ;;  %v4668_v48 = vadd.f32 %v15051_v14, %v19351_v3  ;;  %v10489_v14 = vld [vmem:[%s18290_s1 + $0x1e0] sm:$0xff] }
 0x328   :  { %7423 = vst.msk [vmem:[%s18294_s7 + $0x50] sm:$0xff] %vm2155_vm1, %v7295_v25  ;;  %v5633_v43 = vadd.f32 %v5505_v18, %v19350_v33  ;;  %v15271_v25 = vpop.f32.mrb[155].mxu0  ;;  %v15273_v5 = vpop.f32.mrb[155].mxu1  ;;  %v4282_v18 = vadd.f32 1.0, %v9676_v49  ;;  %v3586_v20 = vadd.f32 %v14780_v19, %v15053_v28  ;;  %v15288_v3 = vmul.f32 %v10489_v14, %v14956_v32  ;;  %v19357_v28 = vld [vmem:[#allocation66_spill] sm:$0xff]  ;;  %v19361_v32 = vld [vmem:[#allocation256_spill] sm:$0xff] }
 0x329   :  { %v6269_v15 = vadd.f32 %v19349_v31, %v6013_v8  ;;  %v15275_v8 = vpop.eup %9681  ;;  %v19353_v31 = vld [vmem:[#allocation214_spill] sm:$0xff]  ;;  %v5508_v49 = vmul.f32 %v19356_v34, %v3588_v37  ;;  %vm7171_vm14 = vcmp.eq.s32.totalorder %v19357_v28, 1  ;;  %v7946_v54 = vmul.f32 -1.442695, %v3772_v47 }
 0x32a   :  { %19352 = vst [vmem:[#allocation113_spill] sm:$0xff] %v15275_v8  ;;  %v19354_v33 = vsub.f32 1.0, %v19353_v31  ;;  %v9684_v58 = vpop.eup %9683  ;;  %19355 = vst [vmem:[#allocation269_spill] sm:$0xff] %v15288_v3  ;;  %9699 = vtanh.f32 %v5633_v43  ;;  %v19358_v31 = vld [vmem:[#allocation296_spill] sm:$0xff]  ;;  %v19359_v8 = vld [vmem:[#allocation206_spill] sm:$0xff] }
 0x32b   :  { %v7293_v22 = vsel %vm7165_vm11, %v6269_v15, 1.0  ;;  %v9686_v15 = vpop.eup %9685  ;;  %9701 = vrcp.f32 %v5177_v44  ;;  %v19360_v14 = vsub.f32 1.0, %v19359_v8  ;;  %v5636_v61 = vadd.f32 %v5508_v49, %v19361_v32  ;;  %v15306_v44 = vpop.f32.mrb[156].mxu0  ;;  %v19365_v8 = vld [vmem:[#allocation163_spill] sm:$0xff] }
 0x32c   :  { %v6016_v38 = vmul.f32 %v9680_v39, %v19354_v33  ;;  %7421 = vst.msk [vmem:[%s18294_s7 + $0x40] sm:$0xff] %vm2155_vm1, %v7293_v22  ;;  %9703 = vpow2.f32 %v8073_v60  ;;  %v5506_v22 = vmul.f32 %v19362_v9, %v3586_v20  ;;  %v15302_v43 = vpop.eup %9687  ;;  %v5178_v34 = vadd.f32 1.0, %v9684_v58  ;;  %v19366_v9 = vld [vmem:[#allocation292_spill] sm:$0xff]  ;;  %v15321_v20 = vpop.f32.mrb[157].mxu0 }
 0x32d   :  { %v6014_v3 = vmul.f32 %v9686_v15, %v19360_v14  ;;  %19363 = vst [vmem:[#allocation44_spill] sm:$0xff] %v15302_v43  ;;  %9705 = vrcp.f32 %v4282_v18  ;;  %v8074_v39 = vmul.f32 -1.442695, %v4668_v48  ;;  %v15310_v47 = vpop.eup %9689  ;;  %vm7169_vm15 = vcmp.eq.s32.totalorder %v19365_v8, 1  ;;  %v19368_v18 = vld [vmem:[#allocation125_spill] sm:$0xff]  ;;  %v10490_v15 = vld [vmem:[%s18290_s1 + $0x1e8] sm:$0xff] }
 0x32e   :  { %v6272_v33 = vadd.f32 %v19358_v31, %v6016_v38  ;;  %v15308_v38 = vpop.f32.mrb[156].mxu1  ;;  %19364 = vst [vmem:[#allocation246_spill] sm:$0xff] %v15310_v47  ;;  %9707 = vtanh.f32 %v5636_v61  ;;  %v5634_v60 = vadd.f32 %v5506_v22, %v19367_v27  ;;  %v3773_v48 = vadd.f32 %v15090_v17, %v19368_v18  ;;  %v15325_v49 = vpop.eup %9691  ;;  %v10491_v22 = vld [vmem:[%s18290_s1 + $0x1f0] sm:$0xff] }
 0x32f   :  { %v6270_v32 = vadd.f32 %v19366_v9, %v6014_v3  ;;  %v15323_v58 = vpop.f32.mrb[157].mxu1  ;;  %19369 = vst [vmem:[#allocation130_spill] sm:$0xff] %v15325_v49  ;;  %v15331_v31 = vmul.f32 %v10490_v15, %v14993_v50  ;;  %9709 = vpow2.f32 %v7946_v54  ;;  %v3591_v3 = vadd.f32 %v15092_v56, %v14780_v19  ;;  %v15336_v17 = vpop.f32.mrb[158].mxu0  ;;  %v19372_v54 = vld [vmem:[#allocation126_spill] sm:$0xff] }
 0x330   :  { %v7296_v37 = vsel %vm7168_vm12, %v6272_v33, 1.0  ;;  %v15338_v33 = vpop.f32.mrb[158].mxu1  ;;  %v9694_v14 = vpop.eup %9693  ;;  %9711 = vtanh.f32 %v5634_v60  ;;  %v4669_v27 = vadd.f32 %v15112_v4, %v19372_v54  ;;  %v10492_v4 = vld [vmem:[%s18290_s1 + $0x1f8] sm:$0xff]  ;;  %v3589_v50 = vadd.f32 %v14780_v19, %v15114_v62 }
 0x331   :  { %7424 = vst.msk [vmem:[%s18294_s7 + $0x58] sm:$0xff] %vm2155_vm1, %v7296_v37  ;;  %19370 = vst [vmem:[#allocation260_spill] sm:$0xff] %v15331_v31  ;;  %v15344_v37 = vmul.f32 %v10491_v22, %v15019_v52  ;;  %v7294_v9 = vsel %vm7166_vm13, %v6270_v32, 1.0  ;;  %v15350_v56 = vpop.f32.mrb[159].mxu0  ;;  %v15352_v18 = vpop.f32.mrb[159].mxu1  ;;  %9713 = vrcp.f32 %v5178_v34  ;;  %v5511_v32 = vmul.f32 %v19373_v35, %v3591_v3  ;;  %v19376_v31 = vld [vmem:[#allocation228_spill] sm:$0xff] }
 0x332   :  { %v9696_v15 = vpop.eup %9695  ;;  %7422 = vst.msk [vmem:[%s18294_s7 + $0x48] sm:$0xff] %vm2155_vm1, %v7294_v9  ;;  %v7947_v22 = vmul.f32 -1.442695, %v3773_v48  ;;  %v15366_v54 = vmul.f32 %v10492_v4, %v15083_v59  ;;  %v19377_v61 = vsub.f32 1.0, %v19376_v31  ;;  %9715 = vpow2.f32 %v8074_v39  ;;  %v19378_v48 = vld [vmem:[#allocation261_spill] sm:$0xff]  ;;  %v19379_v3 = vld [vmem:[#allocation127_spill] sm:$0xff] }
 0x333   :  { %19371 = vst [vmem:[#allocation198_spill] sm:$0xff] %v15344_v37  ;;  %v15360_v60 = vpop.eup %9697  ;;  %v4283_v9 = vadd.f32 1.0, %v9694_v14  ;;  %v5639_v47 = vadd.f32 %v5511_v32, %v19378_v48  ;;  %v3774_v35 = vadd.f32 %v15124_v23, %v19379_v3  ;;  %v19380_v52 = vld [vmem:[#allocation54_spill] sm:$0xff]  ;;  %v19381_v4 = vld [vmem:[#allocation305_spill] sm:$0xff]  ;;  %v8075_v31 = vmul.f32 -1.442695, %v4669_v27 }
 0x334   :  { %19374 = vst [vmem:[#allocation193_spill] sm:$0xff] %v15360_v60  ;;  %19375 = vst [vmem:[#allocation247_spill] sm:$0xff] %v15366_v54  ;;  %v6019_v34 = vmul.f32 %v9696_v15, %v19377_v61  ;;  %v3592_v60 = vadd.f32 %v15126_v51, %v14780_v19  ;;  %v9700_v37 = vpop.eup %9699  ;;  %vm7172_vm0 = vcmp.eq.s32.totalorder %v19380_v52, 1  ;;  %v19382_v61 = vld [vmem:[#allocation239_spill] sm:$0xff]  ;;  %v19383_v15 = vld [vmem:[#allocation128_spill] sm:$0xff]  ;;  %9717 = vpow2.f32 %v7947_v22  ;;  %v15388_v26 = vpop.f32.mrb[160].mxu0 }
 0x335   :  { %v5509_v39 = vmul.f32 %v19382_v61, %v3589_v50  ;;  %v4670_v62 = vadd.f32 %v15133_v40, %v19383_v15  ;;  %v15382_v14 = vpop.eup %9701  ;;  %v19385_v48 = vld [vmem:[#allocation218_spill] sm:$0xff]  ;;  %v19387_v51 = vld [vmem:[#allocation257_spill] sm:$0xff]  ;;  %v15390_v63 = vpop.f32.mrb[160].mxu1  ;;  %9719 = vtanh.f32 %v5639_v47  ;;  %v7948_v61 = vmul.f32 -1.442695, %v3774_v35  ;;  %v19408_v52 = vld [vmem:[#allocation132_spill] sm:$0xff] }
 0x336   :  { %v6275_v54 = vadd.f32 %v19381_v4, %v6019_v34  ;;  %19384 = vst [vmem:[#allocation30_spill] sm:$0xff] %v15382_v14  ;;  %v19386_v23 = vsub.f32 1.0, %v19385_v48  ;;  %v5512_v59 = vmul.f32 %v19387_v51, %v3592_v60  ;;  %v9704_v27 = vpop.eup %9703  ;;  %v19388_v34 = vld [vmem:[#allocation157_spill] sm:$0xff]  ;;  %v19389_v40 = vld [vmem:[#allocation262_spill] sm:$0xff]  ;;  %v15396_v15 = vpop.f32.mrb[161].mxu0  ;;  %9721 = vrcp.f32 %v4283_v9  ;;  %v10494_v51 = vld [vmem:[%s18290_s1 + $0x208] sm:$0xff] }
 0x337   :  { %vm7170_vm2 = vcmp.eq.s32.totalorder %v19388_v34, 1  ;;  %v5637_v4 = vadd.f32 %v5509_v39, %v19389_v40  ;;  %v15400_v22 = vpop.eup %9705  ;;  %v10493_v60 = vld [vmem:[%s18290_s1 + $0x200] sm:$0xff]  ;;  %v19392_v47 = vld [vmem:[#allocation301_spill] sm:$0xff]  ;;  %v15414_v35 = vpop.f32.mrb[162].mxu0  ;;  %v15422_v40 = vmul.f32 %v10494_v51, %v15255_v57  ;;  %9723 = vpow2.f32 %v8075_v31  ;;  %v19394_v9 = vld [vmem:[#allocation264_spill] sm:$0xff] }
 0x338   :  { %v6017_v3 = vmul.f32 %v9700_v37, %v19386_v23  ;;  %v7299_v50 = vsel %vm7171_vm14, %v6275_v54, 1.0  ;;  %v15398_v37 = vpop.f32.mrb[161].mxu1  ;;  %19390 = vst [vmem:[#allocation109_spill] sm:$0xff] %v15400_v22  ;;  %v15406_v48 = vmul.f32 %v10493_v60, %v15150_v55  ;;  %v9708_v23 = vpop.eup %9707  ;;  %v5640_v60 = vadd.f32 %v5512_v59, %v19394_v9  ;;  %v19395_v22 = vld [vmem:[#allocation237_spill] sm:$0xff]  ;;  %v19402_v9 = vld [vmem:[#allocation50_spill] sm:$0xff] }
 0x339   :  { %7427 = vst.msk [vmem:[%s18294_s7 + $0x70] sm:$0xff] %vm2155_vm1, %v7299_v50  ;;  %v15416_v39 = vpop.f32.mrb[162].mxu1  ;;  %19393 = vst [vmem:[#allocation278_spill] sm:$0xff] %v15422_v40  ;;  %v8076_v28 = vmul.f32 -1.442695, %v4670_v62  ;;  %v15425_v32 = vpop.f32.mrb[163].mxu0  ;;  %9725 = vtanh.f32 %v5637_v4  ;;  %v3590_v51 = vadd.f32 %v14780_v19, %v15135_v10 }
 0x33a   :  { %19391 = vst [vmem:[#allocation120_spill] sm:$0xff] %v15406_v48  ;;  %v6273_v54 = vadd.f32 %v19392_v47, %v6017_v3  ;;  %v15427_v50 = vpop.f32.mrb[163].mxu1  ;;  %v9710_v3 = vpop.eup %9709  ;;  %v19396_v48 = vsub.f32 1.0, %v19395_v22  ;;  %v5179_v59 = vadd.f32 1.0, %v9704_v27  ;;  %9727 = vpow2.f32 %v7948_v61  ;;  %v19397_v62 = vld [vmem:[#allocation129_spill] sm:$0xff]  ;;  %v19399_v22 = vld [vmem:[#allocation308_spill] sm:$0xff] }
 0x33b   :  { %v9712_v40 = vpop.eup %9711  ;;  %v3775_v8 = vadd.f32 %v15164_v45, %v19397_v62  ;;  %9729 = vtanh.f32 %v5640_v60  ;;  %v5510_v31 = vmul.f32 %v19402_v9, %v3590_v51  ;;  %v19403_v57 = vld [vmem:[#allocation205_spill] sm:$0xff]  ;;  %v10495_v61 = vld [vmem:[%s18290_s1 + $0x210] sm:$0xff]  ;;  %v4284_v62 = vadd.f32 1.0, %v9710_v3  ;;  %v19405_v60 = vld [vmem:[#allocation302_spill] sm:$0xff]  ;;  %v15463_v9 = vpop.f32.mrb[164].mxu1 }
 0x33c   :  { %v7297_v47 = vsel %vm7169_vm15, %v6273_v54, 1.0  ;;  %v6020_v55 = vmul.f32 %v9708_v23, %v19396_v48  ;;  %v15442_v54 = vpop.eup %9713  ;;  %v19400_v48 = vld [vmem:[#allocation224_spill] sm:$0xff]  ;;  %vm7175_vm3 = vcmp.eq.s32.totalorder %v19403_v57, 1  ;;  %9731 = vpow2.f32 %v8076_v28  ;;  %v19411_v34 = vld [vmem:[#allocation70_spill] sm:$0xff] }
 0x33d   :  { %7425 = vst.msk [vmem:[%s18294_s7 + $0x60] sm:$0xff] %vm2155_vm1, %v7297_v47  ;;  %19398 = vst [vmem:[#allocation185_spill] sm:$0xff] %v15442_v54  ;;  %v19401_v23 = vsub.f32 1.0, %v19400_v48  ;;  %v9716_v27 = vpop.eup %9715  ;;  %v15453_v47 = vmul.f32 %v10495_v61, %v15302_v43  ;;  %v7949_v45 = vmul.f32 -1.442695, %v3775_v8  ;;  %9733 = vrcp.f32 %v5179_v59  ;;  %v10496_v59 = vld [vmem:[%s18290_s1 + $0x218] sm:$0xff] }
 0x33e   :  { %v6276_v4 = vadd.f32 %v19399_v22, %v6020_v55  ;;  %v3595_v55 = vadd.f32 %v15166_v42, %v14780_v19  ;;  %v19406_v22 = vld [vmem:[#allocation266_spill] sm:$0xff]  ;;  %v19407_v19 = vld [vmem:[#allocation273_spill] sm:$0xff]  ;;  %v4671_v28 = vadd.f32 %v15184_v29, %v19408_v52  ;;  %v9718_v8 = vpop.eup %9717  ;;  %v19418_v43 = vld [vmem:[#allocation263_spill] sm:$0xff] }
 0x33f   :  { %v6018_v10 = vmul.f32 %v9712_v40, %v19401_v23  ;;  %19404 = vst [vmem:[#allocation55_spill] sm:$0xff] %v15453_v47  ;;  %v5638_v48 = vadd.f32 %v5510_v31, %v19406_v22  ;;  %v15461_v23 = vpop.f32.mrb[164].mxu0  ;;  %v15475_v31 = vpop.f32.mrb[165].mxu1  ;;  %9735 = vpow2.f32 %v7949_v45  ;;  %v15489_v29 = vld [vmem:[%s18293_s6] ss:$0 sm:$0xff] }
 0x340   :  { %v7300_v40 = vsel %vm7172_vm0, %v6276_v4, 1.0  ;;  %v5515_v42 = vmul.f32 %v19407_v19, %v3595_v55  ;;  %v15473_v3 = vpop.f32.mrb[165].mxu0  ;;  %v19409_v4 = vld [vmem:[#allocation195_spill] sm:$0xff]  ;;  %v15495_v22 = vpop.f32.mrb[166].mxu1  ;;  %v8077_v47 = vmul.f32 -1.442695, %v4671_v28 }
 0x341   :  { %v6274_v51 = vadd.f32 %v19405_v60, %v6018_v10  ;;  %7428 = vst.msk [vmem:[%s18294_s7 + $0x78] sm:$0xff] %vm2155_vm1, %v7300_v40  ;;  %vm7173_vm4 = vcmp.eq.s32.totalorder %v19409_v4, 1  ;;  %v15482_v10 = vmul.f32 %v10496_v59, %v15325_v49  ;;  %v3593_v40 = vadd.f32 %v15489_v29, %v15186_v13  ;;  %v15493_v60 = vpop.f32.mrb[166].mxu0  ;;  %v9720_v19 = vpop.eup %9719  ;;  %v19416_v49 = vld [vmem:[#allocation254_spill] sm:$0xff] }
 0x342   :  { %v5180_v59 = vadd.f32 1.0, %v9716_v27  ;;  %9737 = vtanh.f32 %v5638_v48  ;;  %v5643_v45 = vadd.f32 %v5515_v42, %v19411_v34  ;;  %v15505_v61 = vpop.f32.mrb[167].mxu1  ;;  %v15507_v13 = vpop.eup %9721  ;;  %v19417_v52 = vsub.f32 1.0, %v19416_v49  ;;  %v19419_v48 = vld [vmem:[#allocation133_spill] sm:$0xff]  ;;  %v19422_v49 = vld [vmem:[#allocation3_spill] sm:$0xff] }
 0x343   :  { %19410 = vst [vmem:[#allocation148_spill] sm:$0xff] %v15482_v10  ;;  %v7298_v55 = vsel %vm7170_vm2, %v6274_v51, 1.0  ;;  %v15503_v51 = vpop.f32.mrb[167].mxu0  ;;  %19413 = vst [vmem:[#allocation274_spill] sm:$0xff] %v15505_v61  ;;  %v19415_v10 = vld [vmem:[#allocation204_spill] sm:$0xff]  ;;  %9739 = vrcp.f32 %v4284_v62  ;;  %v5513_v21 = vmul.f32 %v19418_v43, %v3593_v40  ;;  %v9724_v24 = vpop.eup %9723  ;;  %v3776_v42 = vadd.f32 %v15194_v0, %v19419_v48  ;;  %v19421_v62 = vld [vmem:[#allocation271_spill] sm:$0xff] }
 0x344   :  { %7426 = vst.msk [vmem:[%s18294_s7 + $0x68] sm:$0xff] %vm2155_vm1, %v7298_v55  ;;  %19412 = vst [vmem:[#allocation24_spill] sm:$0xff] %v15503_v51  ;;  %vm7176_vm5 = vcmp.eq.s32.totalorder %v19415_v10, 1  ;;  %v6023_v27 = vmul.f32 %v9720_v19, %v19417_v52  ;;  %v4285_v55 = vadd.f32 1.0, %v9718_v8  ;;  %9741 = vtanh.f32 %v5643_v45  ;;  %v9726_v61 = vpop.eup %9725  ;;  %v19423_v43 = vld [vmem:[#allocation242_spill] sm:$0xff]  ;;  %v19425_v45 = vld [vmem:[#allocation277_spill] sm:$0xff] }
 0x345   :  { %19414 = vst [vmem:[#allocation196_spill] sm:$0xff] %v15507_v13  ;;  %v3596_v34 = vadd.f32 %v15489_v29, %v15196_v12  ;;  %v19420_v13 = vld [vmem:[#allocation320_spill] sm:$0xff]  ;;  %9743 = vpow2.f32 %v8077_v47  ;;  %v5641_v16 = vadd.f32 %v5513_v21, %v19421_v62  ;;  %v4672_v28 = vadd.f32 %v15209_v7, %v19422_v49  ;;  %v9728_v19 = vpop.eup %9727  ;;  %v10498_v12 = vld [vmem:[%s18290_s1 + $0x220] sm:$0xff]  ;;  %v19429_v62 = vld [vmem:[#allocation259_spill] sm:$0xff] }
 0x346   :  { %v6279_v51 = vadd.f32 %v19420_v13, %v6023_v27  ;;  %9745 = vrcp.f32 %v5180_v59  ;;  %v19424_v8 = vsub.f32 1.0, %v19423_v43  ;;  %v7950_v52 = vmul.f32 -1.442695, %v3776_v42  ;;  %v9730_v48 = vpop.eup %9729  ;;  %v15532_v59 = vpop.f32.mrb[168].mxu0  ;;  %v19427_v27 = vld [vmem:[#allocation194_spill] sm:$0xff]  ;;  %v19428_v42 = vld [vmem:[#allocation313_spill] sm:$0xff] }
 0x347   :  { %v5516_v0 = vmul.f32 %v19425_v45, %v3596_v34  ;;  %v15528_v47 = vmul.f32 %v10498_v12, %v15382_v14  ;;  %v5181_v7 = vadd.f32 1.0, %v9724_v24  ;;  %9747 = vtanh.f32 %v5641_v16  ;;  %v15534_v13 = vpop.f32.mrb[168].mxu1  ;;  %v19431_v24 = vld [vmem:[#allocation272_spill] sm:$0xff]  ;;  %v19443_v14 = vld [vmem:[#allocation223_spill] sm:$0xff] }
 0x348   :  { %v6021_v40 = vmul.f32 %v9726_v61, %v19424_v8  ;;  %v7303_v21 = vsel %vm7175_vm3, %v6279_v51, 1.0  ;;  %v9732_v61 = vpop.eup %9731  ;;  %vm7174_vm6 = vcmp.eq.s32.totalorder %v19427_v27, 1  ;;  %v19430_v49 = vsub.f32 1.0, %v19429_v62  ;;  %v15545_v51 = vpop.f32.mrb[169].mxu0  ;;  %v19459_v27 = vld [vmem:[#allocation265_spill] sm:$0xff] }
 0x349   :  { %19426 = vst [vmem:[#allocation248_spill] sm:$0xff] %v15528_v47  ;;  %7431 = vst.msk [vmem:[%s18294_s7 + $0x90] sm:$0xff] %vm2155_vm1, %v7303_v21  ;;  %9749 = vpow2.f32 %v7950_v52  ;;  %v5644_v16 = vadd.f32 %v5516_v0, %v19431_v24  ;;  %v15547_v43 = vpop.f32.mrb[169].mxu1  ;;  %v4286_v8 = vadd.f32 1.0, %v9728_v19  ;;  %v8078_v45 = vmul.f32 -1.442695, %v4672_v28 }
 0x34a   :  { %v6277_v34 = vadd.f32 %v19428_v42, %v6021_v40  ;;  %v6024_v57 = vmul.f32 %v9730_v48, %v19430_v49  ;;  %9751 = vrcp.f32 %v4285_v55  ;;  %v3594_v12 = vadd.f32 %v15489_v29, %v15211_v46  ;;  %v15551_v47 = vpop.f32.mrb[170].mxu0  ;;  %v15553_v21 = vpop.f32.mrb[170].mxu1  ;;  %v19435_v48 = vld [vmem:[#allocation236_spill] sm:$0xff]  ;;  %v19436_v0 = vld [vmem:[#allocation323_spill] sm:$0xff] }
 0x34b   :  { %19432 = vst [vmem:[#allocation140_spill] sm:$0xff] %v15551_v47  ;;  %19433 = vst [vmem:[#allocation281_spill] sm:$0xff] %v15553_v21  ;;  %v15555_v40 = vpop.eup %9733  ;;  %vm7179_vm7 = vcmp.eq.s32.totalorder %v19435_v48, 1  ;;  %v5182_v62 = vadd.f32 1.0, %v9732_v61  ;;  %9753 = vtanh.f32 %v5644_v16  ;;  %v15561_v55 = vpop.f32.mrb[171].mxu0  ;;  %v19439_v49 = vld [vmem:[#allocation267_spill] sm:$0xff]  ;;  %v3599_v16 = vadd.f32 %v15489_v29, %v15240_v11 }
 0x34c   :  { %19434 = vst [vmem:[#allocation121_spill] sm:$0xff] %v15555_v40  ;;  %v7301_v52 = vsel %vm7173_vm4, %v6277_v34, 1.0  ;;  %v6280_v42 = vadd.f32 %v19436_v0, %v6024_v57  ;;  %19437 = vst [vmem:[#allocation186_spill] sm:$0xff] %v15561_v55  ;;  %v15563_v28 = vpop.f32.mrb[171].mxu1  ;;  %v9736_v46 = vpop.eup %9735  ;;  %9755 = vrcp.f32 %v5181_v7  ;;  %v5514_v4 = vmul.f32 %v19439_v49, %v3594_v12  ;;  %v19440_v34 = vld [vmem:[#allocation4_spill] sm:$0xff]  ;;  %v19441_v0 = vld [vmem:[#allocation6_spill] sm:$0xff] }
 0x34d   :  { %19438 = vst [vmem:[#allocation147_spill] sm:$0xff] %v15563_v28  ;;  %7429 = vst.msk [vmem:[%s18294_s7 + $0x80] sm:$0xff] %vm2155_vm1, %v7301_v52  ;;  %v3777_v57 = vadd.f32 %v15238_v30, %v19440_v34  ;;  %v9738_v61 = vpop.eup %9737  ;;  %9757 = vpow2.f32 %v8078_v45  ;;  %v4673_v7 = vadd.f32 %v15251_v41, %v19441_v0  ;;  %vm7177_vm8 = vcmp.eq.s32.totalorder %v19443_v14, 1  ;;  %v19444_v30 = vld [vmem:[#allocation250_spill] sm:$0xff]  ;;  %v19446_v45 = vld [vmem:[#allocation176_spill] sm:$0xff]  ;;  %v15589_v49 = vpop.permute.xlu0 %6864 }
 0x34e   :  { %v7304_v24 = vsel %vm7176_vm5, %v6280_v42, 1.0  ;;  %v15579_v19 = vpop.eup %9739  ;;  %9759 = vrcp.f32 %v4286_v8  ;;  %v19445_v10 = vsub.f32 1.0, %v19444_v30  ;;  %v5642_v52 = vadd.f32 %v5514_v4, %v19446_v45  ;;  %v19447_v34 = vld [vmem:[#allocation288_spill] sm:$0xff]  ;;  %v19449_v21 = vld [vmem:[#allocation275_spill] sm:$0xff]  ;;  %v15597_v4 = vpop.f32.mrb[172].mxu0  ;;  %v19455_v45 = vld [vmem:[#allocation337_spill] sm:$0xff] }
 0x34f   :  { %19442 = vst [vmem:[#allocation276_spill] sm:$0xff] %v15579_v19  ;;  %7432 = vst.msk [vmem:[%s18294_s7 + $0x98] sm:$0xff] %vm2155_vm1, %v7304_v24  ;;  %v7951_v42 = vmul.f32 -1.442695, %v3777_v57  ;;  %v9742_v11 = vpop.eup %9741  ;;  %9761 = vrcp.f32 %v5182_v62  ;;  %v4287_v41 = vadd.f32 1.0, %v9736_v46  ;;  %v5519_v0 = vmul.f32 %v19447_v34, %v3599_v16  ;;  %v19448_v28 = vld [vmem:[#allocation316_spill] sm:$0xff] }
 0x350   :  { %v6022_v12 = vmul.f32 %v9738_v61, %v19445_v10  ;;  %v8079_v19 = vmul.f32 -1.442695, %v4673_v7  ;;  %v9744_v8 = vpop.eup %9743  ;;  %v19450_v47 = vsub.f32 1.0, %v19449_v21  ;;  %9763 = vtanh.f32 %v5642_v52  ;;  %v15599_v57 = vpop.f32.mrb[172].mxu1  ;;  %v19452_v62 = vld [vmem:[#allocation235_spill] sm:$0xff] }
 0x351   :  { %v3597_v61 = vadd.f32 %v15489_v29, %v15253_v6  ;;  %v15601_v30 = vpop.eup %9745  ;;  %vm7180_vm9 = vcmp.eq.s32.totalorder %v19452_v62, 1  ;;  %v5183_v46 = vadd.f32 1.0, %v9744_v8  ;;  %9765 = vpow2.f32 %v7951_v42  ;;  %v19453_v16 = vld [vmem:[#allocation179_spill] sm:$0xff]  ;;  %v15609_v10 = vpop.f32.mrb[173].mxu1 }
 0x352   :  { %v6278_v55 = vadd.f32 %v19448_v28, %v6022_v12  ;;  %v6027_v24 = vmul.f32 %v9742_v11, %v19450_v47  ;;  %19451 = vst [vmem:[#allocation212_spill] sm:$0xff] %v15601_v30  ;;  %v5647_v7 = vadd.f32 %v5519_v0, %v19453_v16  ;;  %v19454_v28 = vld [vmem:[#allocation7_spill] sm:$0xff]  ;;  %v15607_v47 = vpop.f32.mrb[173].mxu0  ;;  %v9748_v6 = vpop.eup %9747  ;;  %9767 = vpow2.f32 %v8079_v19 }
 0x353   :  { %v3778_v21 = vadd.f32 %v15263_v1, %v19454_v28  ;;  %v19456_v11 = vld [vmem:[#allocation279_spill] sm:$0xff]  ;;  %v15615_v8 = vpop.f32.mrb[174].mxu0  ;;  %v15617_v42 = vpop.f32.mrb[174].mxu1  ;;  %9769 = vrcp.f32 %v4287_v41  ;;  %vm7187_vm15 = vcmp.eq.s32.totalorder %v15589_v49, 1 }
 0x354   :  { %v7302_v12 = vsel %vm7174_vm6, %v6278_v55, 1.0  ;;  %v6283_v52 = vadd.f32 %v19455_v45, %v6027_v24  ;;  %v5517_v34 = vmul.f32 %v19456_v11, %v3597_v61  ;;  %19457 = vst [vmem:[#allocation226_spill] sm:$0xff] %v15617_v42  ;;  %v9750_v0 = vpop.eup %9749  ;;  %v10499_v1 = vld [vmem:[%s18290_s1 + $0x228] sm:$0xff]  ;;  %v19460_v55 = vsub.f32 1.0, %v19459_v27  ;;  %v15633_v61 = vpop.f32.mrb[175].mxu0 }
 0x355   :  { %v15623_v16 = vmul.f32 %v10499_v1, %v15442_v54  ;;  %7430 = vst.msk [vmem:[%s18294_s7 + $0x88] sm:$0xff] %vm2155_vm1, %v7302_v12  ;;  %v3600_v24 = vadd.f32 %v15489_v29, %v15265_v2  ;;  %19461 = vst [vmem:[#allocation123_spill] sm:$0xff] %v15633_v61  ;;  %v15635_v28 = vpop.f32.mrb[175].mxu1  ;;  %v15637_v45 = vpop.eup %9751  ;;  %9771 = vtanh.f32 %v5647_v7  ;;  %v19464_v1 = vld [vmem:[#allocation80_spill] sm:$0xff]  ;;  %v7952_v12 = vmul.f32 -1.442695, %v3778_v21 }
 0x356   :  { %v6025_v19 = vmul.f32 %v9748_v6, %v19460_v55  ;;  %19462 = vst [vmem:[#allocation112_spill] sm:$0xff] %v15635_v28  ;;  %19463 = vst [vmem:[#allocation139_spill] sm:$0xff] %v15637_v45  ;;  %v7307_v11 = vsel %vm7179_vm7, %v6283_v52, 1.0  ;;  %v9754_v41 = vpop.eup %9753  ;;  %v19465_v2 = vld [vmem:[#allocation327_spill] sm:$0xff]  ;;  %v4288_v27 = vadd.f32 1.0, %v9750_v0  ;;  %v19466_v55 = vld [vmem:[#allocation293_spill] sm:$0xff]  ;;  %9773 = vrcp.f32 %v5183_v46 }
 0x357   :  { %19458 = vst [vmem:[#allocation122_spill] sm:$0xff] %v15623_v16  ;;  %v5645_v16 = vadd.f32 %v5517_v34, %v19464_v1  ;;  %7435 = vst.msk [vmem:[%s18294_s7 + $0xb0] sm:$0xff] %vm2155_vm1, %v7307_v11  ;;  %v5520_v54 = vmul.f32 %v19466_v55, %v3600_v24  ;;  %v19467_v28 = vld [vmem:[#allocation8_spill] sm:$0xff]  ;;  %v15650_v48 = vpop.eup %9755  ;;  %v19470_v21 = vld [vmem:[#allocation183_spill] sm:$0xff]  ;;  %v3598_v1 = vadd.f32 %v15489_v29, %v15273_v5  ;;  %v15661_v24 = vpop.permute.xlu0 %6870 }
 0x358   :  { %v6281_v6 = vadd.f32 %v19465_v2, %v6025_v19  ;;  %v4674_v45 = vadd.f32 %v15271_v25, %v19467_v28  ;;  %19468 = vst [vmem:[#allocation203_spill] sm:$0xff] %v15650_v48  ;;  %v19469_v7 = vld [vmem:[#allocation104_spill] sm:$0xff]  ;;  %v19471_v52 = vsub.f32 1.0, %v19470_v21  ;;  %v19472_v11 = vld [vmem:[#allocation135_spill] sm:$0xff]  ;;  %v9758_v0 = vpop.eup %9757  ;;  %v15659_v2 = vpop.permute.xlu1 %6867  ;;  %v19476_v21 = vld [vmem:[#allocation181_spill] sm:$0xff]  ;;  %vm7189_vm5 = vcmp.eq.s32.totalorder %v15661_v24, 1 }
 0x359   :  { %vm7178_vm10 = vcmp.eq.s32.totalorder %v19469_v7, 1  ;;  %v3779_v19 = vadd.f32 %v15306_v44, %v19472_v11  ;;  %v10500_v46 = vld [vmem:[%s18290_s1 + $0x230] sm:$0xff]  ;;  %9775 = vtanh.f32 %v5645_v16  ;;  %v19475_v44 = vld [vmem:[#allocation338_spill] sm:$0xff]  ;;  %v15680_v25 = vpop.f32.mrb[176].mxu0  ;;  %vm7188_vm2 = vcmp.eq.s32.totalorder %v15659_v2, 1  ;;  %v10505_v24 = vld [vmem:[%s18290_s1 + $0x258] sm:$0xff] }
 0x35a   :  { %v6028_v34 = vmul.f32 %v9754_v41, %v19471_v52  ;;  %v15668_v28 = vmul.f32 %v10500_v46, %v15555_v40  ;;  %v7305_v5 = vsel %vm7177_vm8, %v6281_v6, 1.0  ;;  %v15672_v41 = vpop.eup %9759  ;;  %9777 = vpow2.f32 %v7952_v12  ;;  %19477 = vst [vmem:[#allocation285_spill] sm:$0xff] %v15680_v25  ;;  %v15682_v46 = vpop.f32.mrb[176].mxu1  ;;  %v19480_v16 = vld [vmem:[#allocation284_spill] sm:$0xff]  ;;  %v19488_v40 = vld [vmem:[#allocation270_spill] sm:$0xff] }
 0x35b   :  { %19474 = vst [vmem:[#allocation216_spill] sm:$0xff] %v15672_v41  ;;  %7433 = vst.msk [vmem:[%s18294_s7 + $0xa0] sm:$0xff] %vm2155_vm1, %v7305_v5  ;;  %v5648_v52 = vadd.f32 %v5520_v54, %v19476_v21  ;;  %v8080_v11 = vmul.f32 -1.442695, %v4674_v45  ;;  %v15684_v14 = vpop.eup %9761  ;;  %9779 = vrcp.f32 %v4288_v27  ;;  %v5518_v6 = vmul.f32 %v19480_v16, %v3598_v1  ;;  %v15693_v12 = vpop.f32.mrb[177].mxu1  ;;  %v19484_v45 = vld [vmem:[#allocation85_spill] sm:$0xff] }
 0x35c   :  { %19473 = vst [vmem:[#allocation253_spill] sm:$0xff] %v15668_v28  ;;  %v6284_v55 = vadd.f32 %v19475_v44, %v6028_v34  ;;  %19478 = vst [vmem:[#allocation255_spill] sm:$0xff] %v15682_v46  ;;  %v3603_v41 = vadd.f32 %v15489_v29, %v15308_v38  ;;  %v19481_v28 = vld [vmem:[#allocation136_spill] sm:$0xff]  ;;  %v15691_v34 = vpop.f32.mrb[177].mxu0  ;;  %v9764_v54 = vpop.eup %9763  ;;  %vm7183_vm11 = vcmp.eq.s32.totalorder %v19484_v45, 1  ;;  %v5184_v21 = vadd.f32 1.0, %v9758_v0 }
 0x35d   :  { %19479 = vst [vmem:[#allocation124_spill] sm:$0xff] %v15684_v14  ;;  %v4675_v5 = vadd.f32 %v15321_v20, %v19481_v28  ;;  %19482 = vst [vmem:[#allocation214_spill] sm:$0xff] %v15691_v34  ;;  %v3601_v27 = vadd.f32 %v15489_v29, %v15323_v58  ;;  %v19485_v1 = vld [vmem:[#allocation10_spill] sm:$0xff]  ;;  %v15702_v16 = vpop.f32.mrb[178].mxu0  ;;  %v15704_v20 = vpop.f32.mrb[178].mxu1  ;;  %v19489_v62 = vsub.f32 1.0, %v19488_v40  ;;  %9781 = vtanh.f32 %v5648_v52 }
 0x35e   :  { %19483 = vst [vmem:[#allocation41_spill] sm:$0xff] %v15693_v12  ;;  %v7308_v44 = vsel %vm7180_vm9, %v6284_v55, 1.0  ;;  %v3780_v38 = vadd.f32 %v15336_v17, %v19485_v1  ;;  %19486 = vst [vmem:[#allocation66_spill] sm:$0xff] %v15702_v16  ;;  %v9766_v28 = vpop.eup %9765  ;;  %v19490_v0 = vld [vmem:[#allocation184_spill] sm:$0xff]  ;;  %v15714_v46 = vpop.f32.mrb[179].mxu0  ;;  %9783 = vpow2.f32 %v8080_v11  ;;  %v19492_v25 = vld [vmem:[#allocation298_spill] sm:$0xff]  ;;  %v3607_v45 = vadd.f32 %v15489_v29, %v15390_v63 }
 0x35f   :  { %19487 = vst [vmem:[#allocation296_spill] sm:$0xff] %v15704_v20  ;;  %7436 = vst.msk [vmem:[%s18294_s7 + $0xb8] sm:$0xff] %vm2155_vm1, %v7308_v44  ;;  %v6026_v55 = vmul.f32 %v9764_v54, %v19489_v62  ;;  %v5646_v12 = vadd.f32 %v5518_v6, %v19490_v0  ;;  %v19491_v58 = vld [vmem:[#allocation304_spill] sm:$0xff]  ;;  %v15716_v17 = vpop.f32.mrb[179].mxu1  ;;  %v9768_v1 = vpop.eup %9767  ;;  %v4289_v20 = vadd.f32 1.0, %v9766_v28  ;;  %v5521_v61 = vmul.f32 %v19492_v25, %v3601_v27  ;;  %v19494_v44 = vld [vmem:[#allocation65_spill] sm:$0xff] }
 0x360   :  { %v5523_v34 = vmul.f32 %v19491_v58, %v3603_v41  ;;  %v7953_v16 = vmul.f32 -1.442695, %v3779_v19  ;;  %v15719_v42 = vpop.eup %9769  ;;  %vm7181_vm12 = vcmp.eq.s32.totalorder %v19494_v44, 1  ;;  %v19495_v52 = vld [vmem:[#allocation188_spill] sm:$0xff]  ;;  %v19496_v41 = vld [vmem:[#allocation187_spill] sm:$0xff]  ;;  %v10501_v28 = vld [vmem:[%s18290_s1 + $0x238] sm:$0xff]  ;;  %v15732_v0 = vpop.permute.xlu1 %6873  ;;  %v3609_v2 = vadd.f32 %v15489_v29, %v15475_v31 }
 0x361   :  { %19493 = vst [vmem:[#allocation206_spill] sm:$0xff] %v15719_v42  ;;  %v6282_v6 = vadd.f32 %v19495_v52, %v6026_v55  ;;  %9785 = vtanh.f32 %v5646_v12  ;;  %v9772_v62 = vpop.eup %9771  ;;  %v15729_v19 = vmul.f32 %v10501_v28, %v15601_v30  ;;  %v5185_v25 = vadd.f32 1.0, %v9768_v1  ;;  %v19498_v11 = vld [vmem:[#allocation189_spill] sm:$0xff]  ;;  %v15734_v58 = vpop.permute.xlu0 %6876  ;;  %v19502_v1 = vld [vmem:[#allocation11_spill] sm:$0xff]  ;;  %v19504_v28 = vld [vmem:[#allocation348_spill] sm:$0xff] }
 0x362   :  { %v5651_v54 = vadd.f32 %v5523_v34, %v19496_v41  ;;  %9787 = vrcp.f32 %v5184_v21  ;;  %v5649_v27 = vadd.f32 %v5521_v61, %v19498_v11  ;;  %v19499_v34 = vld [vmem:[#allocation291_spill] sm:$0xff]  ;;  %v8081_v41 = vmul.f32 -1.442695, %v4675_v5  ;;  %v15740_v40 = vpop.eup %9773  ;;  %v19510_v42 = vld [vmem:[#allocation150_spill] sm:$0xff]  ;;  %v19567_v31 = vld [vmem:[#allocation333_spill] sm:$0xff] }
 0x363   :  { %19497 = vst [vmem:[#allocation256_spill] sm:$0xff] %v15729_v19  ;;  %v7306_v12 = vsel %vm7178_vm10, %v6282_v6, 1.0  ;;  %9789 = vrcp.f32 %v4289_v20  ;;  %v19500_v55 = vsub.f32 1.0, %v19499_v34  ;;  %19501 = vst [vmem:[#allocation36_spill] sm:$0xff] %v15740_v40  ;;  %v7954_v61 = vmul.f32 -1.442695, %v3780_v38  ;;  %v9776_v5 = vpop.eup %9775 }
 0x364   :  { %7434 = vst.msk [vmem:[%s18294_s7 + $0xa8] sm:$0xff] %vm2155_vm1, %v7306_v12  ;;  %9791 = vpow2.f32 %v7953_v16  ;;  %v3604_v21 = vadd.f32 %v15489_v29, %v15338_v33  ;;  %v4676_v7 = vadd.f32 %v15350_v56, %v19502_v1  ;;  %v15750_v20 = vpop.f32.mrb[180].mxu0  ;;  %v15752_v6 = vpop.f32.mrb[180].mxu1  ;;  %v3602_v16 = vadd.f32 %v15489_v29, %v15352_v18  ;;  %v19505_v38 = vld [vmem:[#allocation137_spill] sm:$0xff]  ;;  %v19508_v1 = vld [vmem:[#allocation283_spill] sm:$0xff] }
 0x365   :  { %v6031_v52 = vmul.f32 %v9772_v62, %v19500_v55  ;;  %v19503_v62 = vld [vmem:[#allocation75_spill] sm:$0xff]  ;;  %9793 = vtanh.f32 %v5651_v54  ;;  %v3781_v12 = vadd.f32 %v15388_v26, %v19505_v38  ;;  %v15760_v33 = vpop.f32.mrb[181].mxu0  ;;  %v15762_v34 = vpop.f32.mrb[181].mxu1  ;;  %v19509_v19 = vsub.f32 1.0, %v19508_v1  ;;  %v19513_v26 = vld [vmem:[#allocation249_spill] sm:$0xff]  ;;  %v19514_v55 = vld [vmem:[#allocation134_spill] sm:$0xff] }
 0x366   :  { %vm7184_vm13 = vcmp.eq.s32.totalorder %v19503_v62, 1  ;;  %19506 = vst [vmem:[#allocation163_spill] sm:$0xff] %v15760_v33  ;;  %19507 = vst [vmem:[#allocation292_spill] sm:$0xff] %v15762_v34  ;;  %v9778_v56 = vpop.eup %9777  ;;  %9795 = vrcp.f32 %v5185_v25  ;;  %v15768_v54 = vpop.f32.mrb[182].mxu0  ;;  %vm7182_vm14 = vcmp.eq.s32.totalorder %v19513_v26, 1  ;;  %v5522_v25 = vmul.f32 %v19514_v55, %v3602_v16 }
 0x367   :  { %v6287_v11 = vadd.f32 %v19504_v28, %v6031_v52  ;;  %v6029_v30 = vmul.f32 %v9776_v5, %v19509_v19  ;;  %v5524_v52 = vmul.f32 %v19510_v42, %v3604_v21  ;;  %v15770_v28 = vpop.f32.mrb[182].mxu1  ;;  %v15772_v18 = vpop.eup %9779  ;;  %9797 = vpow2.f32 %v8081_v41  ;;  %v19517_v42 = vld [vmem:[#allocation343_spill] sm:$0xff] }
 0x368   :  { %19511 = vst [vmem:[#allocation258_spill] sm:$0xff] %v15770_v28  ;;  %19512 = vst [vmem:[#allocation125_spill] sm:$0xff] %v15772_v18  ;;  %v8082_v34 = vmul.f32 -1.442695, %v4676_v7  ;;  %v15778_v33 = vpop.f32.mrb[183].mxu0  ;;  %v15780_v19 = vpop.f32.mrb[183].mxu1  ;;  %9799 = vtanh.f32 %v5649_v27  ;;  %v3606_v26 = vadd.f32 %v15489_v29, %v15427_v50 }
 0x369   :  { %v7311_v38 = vsel %vm7183_vm11, %v6287_v11, 1.0  ;;  %19515 = vst [vmem:[#allocation126_spill] sm:$0xff] %v15778_v33  ;;  %19516 = vst [vmem:[#allocation252_spill] sm:$0xff] %v15780_v19  ;;  %v6285_v21 = vadd.f32 %v19517_v42, %v6029_v30  ;;  %v19518_v5 = vld [vmem:[#allocation191_spill] sm:$0xff]  ;;  %v9782_v41 = vpop.eup %9781  ;;  %v4290_v7 = vadd.f32 1.0, %v9778_v56  ;;  %9801 = vpow2.f32 %v7954_v61  ;;  %v19520_v33 = vld [vmem:[#allocation102_spill] sm:$0xff]  ;;  %v15797_v63 = vpop.permute.xlu1 %6879 }
 0x36a   :  { %7439 = vst.msk [vmem:[%s18294_s7 + $0xd0] sm:$0xff] %vm2155_vm1, %v7311_v38  ;;  %v5652_v1 = vadd.f32 %v5524_v52, %v19518_v5  ;;  %v19519_v11 = vld [vmem:[#allocation95_spill] sm:$0xff]  ;;  %v7955_v55 = vmul.f32 -1.442695, %v3781_v12  ;;  %v9784_v18 = vpop.eup %9783  ;;  %v19521_v38 = vsub.f32 1.0, %v19520_v33  ;;  %v19522_v30 = vld [vmem:[#allocation322_spill] sm:$0xff]  ;;  %v15799_v56 = vpop.permute.xlu0 %6882  ;;  %v3605_v33 = vadd.f32 %v15489_v29, %v15398_v37 }
 0x36b   :  { %v5650_v16 = vadd.f32 %v5522_v25, %v19519_v11  ;;  %v7309_v19 = vsel %vm7181_vm12, %v6285_v21, 1.0  ;;  %v5527_v27 = vmul.f32 %v19522_v30, %v3607_v45  ;;  %v9786_v52 = vpop.eup %9785  ;;  %v5186_v44 = vadd.f32 1.0, %v9784_v18  ;;  %v19523_v61 = vld [vmem:[#allocation138_spill] sm:$0xff]  ;;  %v19525_v42 = vld [vmem:[#allocation349_spill] sm:$0xff]  ;;  %v15817_v18 = vpop.f32.mrb[184].mxu1 }
 0x36c   :  { %v6032_v28 = vmul.f32 %v9782_v41, %v19521_v38  ;;  %9803 = vtanh.f32 %v5652_v1  ;;  %7437 = vst.msk [vmem:[%s18294_s7 + $0xc0] sm:$0xff] %vm2155_vm1, %v7309_v19  ;;  %v4677_v12 = vadd.f32 %v15396_v15, %v19523_v61  ;;  %v15809_v25 = vpop.eup %9787  ;;  %v19526_v5 = vld [vmem:[#allocation90_spill] sm:$0xff]  ;;  %v19528_v41 = vld [vmem:[#allocation197_spill] sm:$0xff]  ;;  %v15815_v38 = vpop.f32.mrb[184].mxu0  ;;  %vm7191_vm4 = vcmp.eq.s32.totalorder %v15734_v58, 1  ;;  %v19584_v58 = vld [vmem:[#allocation27_spill] sm:$0xff] }
 0x36d   :  { %9805 = vpow2.f32 %v8082_v34  ;;  %19524 = vst [vmem:[#allocation228_spill] sm:$0xff] %v15809_v25  ;;  %v19527_v1 = vsub.f32 1.0, %v19526_v5  ;;  %v5655_v11 = vadd.f32 %v5527_v27, %v19528_v41  ;;  %v15819_v34 = vpop.eup %9789  ;;  %v10502_v15 = vld [vmem:[%s18290_s1 + $0x240] sm:$0xff]  ;;  %v19532_v30 = vld [vmem:[#allocation13_spill] sm:$0xff]  ;;  %v15830_v27 = vpop.f32.mrb[185].mxu0  ;;  %vm7192_vm6 = vcmp.eq.s32.totalorder %v15797_v63, 1 }
 0x36e   :  { %v6288_v21 = vadd.f32 %v19525_v42, %v6032_v28  ;;  %9807 = vtanh.f32 %v5650_v16  ;;  %19529 = vst [vmem:[#allocation261_spill] sm:$0xff] %v15819_v34  ;;  %v15825_v37 = vmul.f32 %v10502_v15, %v15650_v48  ;;  %v19531_v28 = vld [vmem:[#allocation312_spill] sm:$0xff]  ;;  %v3782_v16 = vadd.f32 %v15414_v35, %v19532_v30  ;;  %v9792_v61 = vpop.eup %9791  ;;  %v19533_v42 = vld [vmem:[#allocation294_spill] sm:$0xff]  ;;  %v19537_v30 = vld [vmem:[#allocation199_spill] sm:$0xff] }
 0x36f   :  { %v6030_v45 = vmul.f32 %v9786_v52, %v19527_v1  ;;  %9809 = vrcp.f32 %v4290_v7  ;;  %v5525_v19 = vmul.f32 %v19531_v28, %v3605_v33  ;;  %v15832_v52 = vpop.f32.mrb[185].mxu1  ;;  %vm7185_vm0 = vcmp.eq.s32.totalorder %v19533_v42, 1  ;;  %v19534_v1 = vld [vmem:[#allocation347_spill] sm:$0xff]  ;;  %v15838_v7 = vpop.f32.mrb[186].mxu0  ;;  %v19605_v63 = vld [vmem:[#allocation358_spill] sm:$0xff] }
 0x370   :  { %19530 = vst [vmem:[#allocation127_spill] sm:$0xff] %v15825_v37  ;;  %v7312_v5 = vsel %vm7184_vm13, %v6288_v21, 1.0  ;;  %9811 = vrcp.f32 %v5186_v44  ;;  %v8083_v15 = vmul.f32 -1.442695, %v4677_v12  ;;  %19535 = vst [vmem:[#allocation54_spill] sm:$0xff] %v15838_v7  ;;  %v15840_v33 = vpop.f32.mrb[186].mxu1  ;;  %v9794_v28 = vpop.eup %9793 }
 0x371   :  { %v6286_v41 = vadd.f32 %v19534_v1, %v6030_v45  ;;  %19536 = vst [vmem:[#allocation305_spill] sm:$0xff] %v15840_v33  ;;  %7440 = vst.msk [vmem:[%s18294_s7 + $0xd8] sm:$0xff] %vm2155_vm1, %v7312_v5  ;;  %v4291_v35 = vadd.f32 1.0, %v9792_v61  ;;  %9813 = vpow2.f32 %v7955_v55  ;;  %v5653_v37 = vadd.f32 %v5525_v19, %v19537_v30  ;;  %v15847_v21 = vpop.f32.mrb[187].mxu0  ;;  %v15849_v44 = vpop.f32.mrb[187].mxu1  ;;  %v19543_v5 = vld [vmem:[#allocation141_spill] sm:$0xff] }
 0x372   :  { %v7956_v62 = vmul.f32 -1.442695, %v3782_v16  ;;  %19538 = vst [vmem:[#allocation239_spill] sm:$0xff] %v15847_v21  ;;  %19539 = vst [vmem:[#allocation128_spill] sm:$0xff] %v15849_v44  ;;  %v15851_v12 = vpop.eup %9795  ;;  %v19541_v1 = vsub.f32 1.0, %v13829_v36  ;;  %9815 = vtanh.f32 %v5655_v11  ;;  %v3608_v55 = vadd.f32 %v15489_v29, %v15416_v39  ;;  %v19542_v16 = vld [vmem:[#allocation14_spill] sm:$0xff]  ;;  %v15875_v44 = vpop.permute.xlu0 %6888 }
 0x373   :  { %19540 = vst [vmem:[#allocation218_spill] sm:$0xff] %v15851_v12  ;;  %v7310_v45 = vsel %vm7182_vm14, %v6286_v41, 1.0  ;;  %v9798_v19 = vpop.eup %9797  ;;  %9817 = vrcp.f32 %v4291_v35  ;;  %v4678_v61 = vadd.f32 %v15425_v32, %v19542_v16  ;;  %v3783_v36 = vadd.f32 %v15461_v23, %v19543_v5  ;;  %v19544_v41 = vld [vmem:[#allocation192_spill] sm:$0xff]  ;;  %v15873_v35 = vpop.permute.xlu1 %6885  ;;  %v19549_v23 = vld [vmem:[#allocation165_spill] sm:$0xff] }
 0x374   :  { %v6035_v48 = vmul.f32 %v9794_v28, %v19541_v1  ;;  %7438 = vst.msk [vmem:[%s18294_s7 + $0xc8] sm:$0xff] %vm2155_vm1, %v7310_v45  ;;  %v9800_v11 = vpop.eup %9799  ;;  %vm7186_vm3 = vcmp.eq.s32.totalorder %v19544_v41, 1  ;;  %v19545_v39 = vld [vmem:[#allocation356_spill] sm:$0xff]  ;;  %v5187_v30 = vadd.f32 1.0, %v9798_v19  ;;  %9819 = vpow2.f32 %v8083_v15 }
 0x375   :  { %v19546_v1 = vld [vmem:[#allocation180_spill] sm:$0xff]  ;;  %v9802_v45 = vpop.eup %9801  ;;  %9821 = vtanh.f32 %v5653_v37  ;;  %v8084_v21 = vmul.f32 -1.442695, %v4678_v61  ;;  %v5526_v5 = vmul.f32 %v19549_v23, %v3606_v26  ;;  %v19551_v37 = vld [vmem:[#allocation354_spill] sm:$0xff]  ;;  %v7957_v23 = vmul.f32 -1.442695, %v3783_v36 }
 0x376   :  { %v6291_v28 = vadd.f32 %v19545_v39, %v6035_v48  ;;  %v5528_v34 = vmul.f32 %v19546_v1, %v3608_v55  ;;  %v19547_v32 = vld [vmem:[#allocation300_spill] sm:$0xff]  ;;  %v9804_v33 = vpop.eup %9803  ;;  %9823 = vrcp.f32 %v5187_v30  ;;  %v4292_v15 = vadd.f32 1.0, %v9802_v45  ;;  %v15883_v39 = vpop.f32.mrb[188].mxu0  ;;  %v19552_v26 = vld [vmem:[#allocation158_spill] sm:$0xff] }
 0x377   :  { %v19548_v16 = vsub.f32 1.0, %v19547_v32  ;;  %v19550_v19 = vld [vmem:[#allocation200_spill] sm:$0xff]  ;;  %v15885_v1 = vpop.f32.mrb[188].mxu1  ;;  %v9806_v7 = vpop.eup %9805  ;;  %9825 = vpow2.f32 %v7956_v62  ;;  %v3612_v41 = vadd.f32 %v15489_v29, %v15495_v22  ;;  %v19575_v22 = vld [vmem:[#allocation315_spill] sm:$0xff]  ;;  %vm7190_vm7 = vcmp.eq.s32.totalorder %v15732_v0, 1  ;;  %v19614_v0 = vld [vmem:[#allocation389_spill] sm:$0xff] }
 0x378   :  { %v7315_v48 = vsel %vm7187_vm15, %v6291_v28, 1.0  ;;  %v5656_v55 = vadd.f32 %v5528_v34, %v19550_v19  ;;  %v19554_v28 = vld [vmem:[#allocation202_spill] sm:$0xff]  ;;  %v15895_v45 = vpop.f32.mrb[189].mxu0  ;;  %v15897_v34 = vpop.f32.mrb[189].mxu1  ;;  %9827 = vrcp.f32 %v4292_v15  ;;  %vm7195_vm8 = vcmp.eq.s32.totalorder %v15875_v44, 1 }
 0x379   :  { %v6033_v50 = vmul.f32 %v9800_v11, %v19548_v16  ;;  %7443 = vst.msk [vmem:[%s18294_s7 + $0xf0] sm:$0xff] %vm2155_vm1, %v7315_v48  ;;  %v19553_v11 = vsub.f32 1.0, %v19552_v26  ;;  %v5654_v30 = vadd.f32 %v5526_v5, %v19554_v28  ;;  %v9808_v32 = vpop.eup %9807  ;;  %v5188_v16 = vadd.f32 1.0, %v9806_v7  ;;  %v15904_v19 = vpop.f32.mrb[190].mxu1  ;;  %v19556_v5 = vld [vmem:[#allocation364_spill] sm:$0xff]  ;;  %v19557_v26 = vld [vmem:[#allocation142_spill] sm:$0xff] }
 0x37a   :  { %v3611_v48 = vadd.f32 %v15489_v29, %v15463_v9  ;;  %9829 = vtanh.f32 %v5656_v55  ;;  %v15915_v36 = vpop.f32.mrb[191].mxu1  ;;  %v19561_v55 = vld [vmem:[#allocation344_spill] sm:$0xff]  ;;  %vm7193_vm9 = vcmp.eq.s32.totalorder %v15799_v56, 1  ;;  %vm7194_vm11 = vcmp.eq.s32.totalorder %v15873_v35, 1 }
 0x37b   :  { %v6289_v61 = vadd.f32 %v19551_v37, %v6033_v50  ;;  %v6036_v49 = vmul.f32 %v9804_v33, %v19553_v11  ;;  %v15902_v50 = vpop.f32.mrb[190].mxu0  ;;  %v15906_v33 = vpop.eup %9809  ;;  %v19558_v11 = vsub.f32 1.0, %v19557_v26  ;;  %9831 = vrcp.f32 %v5188_v16 }
 0x37c   :  { %19555 = vst [vmem:[#allocation257_spill] sm:$0xff] %v15906_v33  ;;  %v15913_v7 = vpop.f32.mrb[191].mxu0  ;;  %v15917_v9 = vpop.eup %9811  ;;  %v10503_v33 = vld [vmem:[%s18290_s1 + $0x248] sm:$0xff]  ;;  %9833 = vpow2.f32 %v8084_v21 }
 0x37d   :  { %v7313_v62 = vsel %vm7185_vm0, %v6289_v61, 1.0  ;;  %v6292_v37 = vadd.f32 %v19556_v5, %v6036_v49  ;;  %v6034_v28 = vmul.f32 %v9808_v32, %v19558_v11  ;;  %19559 = vst [vmem:[#allocation157_spill] sm:$0xff] %v15917_v9  ;;  %v15924_v42 = vmul.f32 %v10503_v33, %v15684_v14  ;;  %v9814_v49 = vpop.eup %9813  ;;  %v19562_v5 = vld [vmem:[#allocation220_spill] sm:$0xff]  ;;  %v19563_v11 = vld [vmem:[#allocation143_spill] sm:$0xff]  ;;  %v15948_v21 = vpop.permute.xlu0 %6894  ;;  %v19577_v14 = vld [vmem:[#allocation209_spill] sm:$0xff] }
 0x37e   :  { %7441 = vst.msk [vmem:[%s18294_s7 + $0xe0] sm:$0xff] %vm2155_vm1, %v7313_v62  ;;  %v5531_v61 = vmul.f32 %v19561_v55, %v3611_v48  ;;  %v4679_v33 = vadd.f32 %v15473_v3, %v19563_v11  ;;  %v9816_v15 = vpop.eup %9815  ;;  %v4293_v16 = vadd.f32 1.0, %v9814_v49  ;;  %9835 = vtanh.f32 %v5654_v30  ;;  %v19564_v48 = vld [vmem:[#allocation207_spill] sm:$0xff] }
 0x37f   :  { %19560 = vst [vmem:[#allocation262_spill] sm:$0xff] %v15924_v42  ;;  %v7316_v32 = vsel %vm7188_vm2, %v6292_v37, 1.0  ;;  %v6290_v26 = vadd.f32 %v19562_v5, %v6034_v28  ;;  %v15944_v37 = vpop.eup %9817  ;;  %v15946_v28 = vpop.permute.xlu1 %6891  ;;  %v19566_v55 = vsub.f32 1.0, %v13982_v53  ;;  %9837 = vpow2.f32 %v7957_v23 }
 0x380   :  { %7444 = vst.msk [vmem:[%s18294_s7 + $0xf8] sm:$0xff] %vm2155_vm1, %v7316_v32  ;;  %v5659_v62 = vadd.f32 %v5531_v61, %v19564_v48  ;;  %19565 = vst [vmem:[#allocation301_spill] sm:$0xff] %v15944_v37  ;;  %v8085_v49 = vmul.f32 -1.442695, %v4679_v33  ;;  %v9820_v30 = vpop.eup %9819  ;;  %9839 = vrcp.f32 %v4293_v16  ;;  %v5529_v61 = vmul.f32 %v19567_v31, %v3609_v2  ;;  %v19568_v32 = vld [vmem:[#allocation16_spill] sm:$0xff]  ;;  %v15965_v53 = vpop.f32.mrb[192].mxu1 }
 0x381   :  { %v7314_v3 = vsel %vm7186_vm3, %v6290_v26, 1.0  ;;  %v6039_v5 = vmul.f32 %v9816_v15, %v19566_v55  ;;  %v3784_v11 = vadd.f32 %v15493_v60, %v19568_v32  ;;  %v15963_v26 = vpop.f32.mrb[192].mxu0  ;;  %19570 = vst [vmem:[#allocation237_spill] sm:$0xff] %v15965_v53  ;;  %v9822_v23 = vpop.eup %9821  ;;  %v19571_v15 = vld [vmem:[#allocation374_spill] sm:$0xff]  ;;  %v5189_v48 = vadd.f32 1.0, %v9820_v30  ;;  %v19572_v16 = vld [vmem:[#allocation17_spill] sm:$0xff] }
 0x382   :  { %7442 = vst.msk [vmem:[%s18294_s7 + $0xe8] sm:$0xff] %vm2155_vm1, %v7314_v3  ;;  %19569 = vst [vmem:[#allocation264_spill] sm:$0xff] %v15963_v26  ;;  %9841 = vtanh.f32 %v5659_v62  ;;  %v19573_v3 = vld [vmem:[#allocation24_spill] sm:$0xff]  ;;  %v15971_v55 = vpop.f32.mrb[193].mxu0  ;;  %v15973_v60 = vpop.f32.mrb[193].mxu1  ;;  %v19576_v32 = vsub.f32 1.0, %v19575_v22  ;;  %v5657_v37 = vadd.f32 %v5529_v61, %v19577_v14 }
 0x383   :  { %v6295_v33 = vadd.f32 %v19571_v15, %v6039_v5  ;;  %v4680_v2 = vadd.f32 %v19573_v3, %v19572_v16  ;;  %v15975_v31 = vpop.eup %9823  ;;  %9843 = vpow2.f32 %v8085_v49  ;;  %v7958_v53 = vmul.f32 -1.442695, %v3784_v11  ;;  %v15980_v26 = vpop.f32.mrb[194].mxu0  ;;  %v10504_v15 = vld [vmem:[%s18290_s1 + $0x250] sm:$0xff] }
 0x384   :  { %19574 = vst [vmem:[#allocation129_spill] sm:$0xff] %v15975_v31  ;;  %v6037_v42 = vmul.f32 %v9822_v23, %v19576_v32  ;;  %v15982_v5 = vpop.f32.mrb[194].mxu1  ;;  %v9826_v62 = vpop.eup %9825  ;;  %v15989_v16 = vmul.f32 %v10504_v15, %v15740_v40  ;;  %9845 = vrcp.f32 %v5189_v48  ;;  %v19583_v23 = vld [vmem:[#allocation45_spill] sm:$0xff]  ;;  %v19585_v15 = vld [vmem:[#allocation274_spill] sm:$0xff]  ;;  %vm7196_vm10 = vcmp.eq.s32.totalorder %v15946_v28, 1 }
 0x385   :  { %19578 = vst [vmem:[#allocation308_spill] sm:$0xff] %v15982_v5  ;;  %v7319_v49 = vsel %vm7191_vm4, %v6295_v33, 1.0  ;;  %v15993_v14 = vpop.f32.mrb[195].mxu0  ;;  %v15995_v61 = vpop.f32.mrb[195].mxu1  ;;  %v4294_v22 = vadd.f32 1.0, %v9826_v62  ;;  %9847 = vtanh.f32 %v5657_v37  ;;  %v5532_v33 = vmul.f32 %v19584_v58, %v3612_v41 }
 0x386   :  { %19579 = vst [vmem:[#allocation224_spill] sm:$0xff] %v15989_v16  ;;  %19580 = vst [vmem:[#allocation50_spill] sm:$0xff] %v15993_v14  ;;  %v15997_v11 = vpop.eup %9827  ;;  %v6293_v3 = vadd.f32 %v19583_v23, %v6037_v42  ;;  %9849 = vpow2.f32 %v7958_v53  ;;  %v8086_v32 = vmul.f32 -1.442695, %v4680_v2  ;;  %v3610_v30 = vadd.f32 %v15489_v29, %v19585_v15  ;;  %v19588_v42 = vld [vmem:[#allocation330_spill] sm:$0xff]  ;;  %v16018_v53 = vpop.permute.xlu1 %6897  ;;  %v19597_v14 = vld [vmem:[#allocation211_spill] sm:$0xff] }
 0x387   :  { %19581 = vst [vmem:[#allocation205_spill] sm:$0xff] %v15995_v61  ;;  %19582 = vst [vmem:[#allocation302_spill] sm:$0xff] %v15997_v11  ;;  %v9830_v48 = vpop.eup %9829  ;;  %v19586_v11 = vld [vmem:[#allocation144_spill] sm:$0xff]  ;;  %9851 = vrcp.f32 %v4294_v22  ;;  %v19589_v62 = vsub.f32 1.0, %v19588_v42  ;;  %v19590_v23 = vld [vmem:[#allocation210_spill] sm:$0xff]  ;;  %v16020_v2 = vpop.permute.xlu0 %6900  ;;  %vm7197_vm13 = vcmp.eq.s32.totalorder %v15948_v21, 1 }
 0x388   :  { %7447 = vst.msk [vmem:[%s18294_s7 + $0x110] sm:$0xff] %vm2155_vm1, %v7319_v49  ;;  %v3785_v16 = vadd.f32 %v15532_v59, %v19586_v11  ;;  %v16010_v40 = vpop.eup %9831  ;;  %v7317_v49 = vsel %vm7189_vm5, %v6293_v3, 1.0  ;;  %v5660_v41 = vadd.f32 %v5532_v33, %v19590_v23  ;;  %v16027_v11 = vmul.f32 %v10505_v24, %v15809_v25  ;;  %v19592_v3 = vld [vmem:[#allocation21_spill] sm:$0xff]  ;;  %v16035_v23 = vpop.f32.mrb[196].mxu0 }
 0x389   :  { %19587 = vst [vmem:[#allocation266_spill] sm:$0xff] %v16010_v40  ;;  %v6040_v37 = vmul.f32 %v9830_v48, %v19589_v62  ;;  %v9834_v58 = vpop.eup %9833  ;;  %7445 = vst.msk [vmem:[%s18294_s7 + $0x100] sm:$0xff] %vm2155_vm1, %v7317_v49  ;;  %9853 = vpow2.f32 %v8086_v32  ;;  %v5530_v22 = vmul.f32 %v19592_v3, %v3610_v30  ;;  %v19593_v48 = vld [vmem:[#allocation378_spill] sm:$0xff]  ;;  %v16037_v59 = vpop.f32.mrb[196].mxu1  ;;  %v3615_v32 = vadd.f32 %v15489_v29, %v15534_v13  ;;  %v19598_v30 = vld [vmem:[#allocation145_spill] sm:$0xff] }
 0x38a   :  { %19591 = vst [vmem:[#allocation273_spill] sm:$0xff] %v16027_v11  ;;  %v9836_v33 = vpop.eup %9835  ;;  %v5190_v42 = vadd.f32 1.0, %v9834_v58  ;;  %9855 = vtanh.f32 %v5660_v41  ;;  %v7959_v62 = vmul.f32 -1.442695, %v3785_v16  ;;  %19594 = vst [vmem:[#allocation132_spill] sm:$0xff] %v16037_v59  ;;  %v19595_v11 = vld [vmem:[#allocation174_spill] sm:$0xff]  ;;  %v4681_v49 = vadd.f32 %v15545_v51, %v19598_v30 }
 0x38b   :  { %v6296_v15 = vadd.f32 %v19593_v48, %v6040_v37  ;;  %v9838_v24 = vpop.eup %9837  ;;  %v19596_v25 = vsub.f32 1.0, %v19595_v11  ;;  %v5658_v5 = vadd.f32 %v5530_v22, %v19597_v14  ;;  %v16046_v37 = vpop.f32.mrb[197].mxu0  ;;  %v3613_v14 = vadd.f32 %v15489_v29, %v15547_v43  ;;  %v19604_v3 = vld [vmem:[#allocation371_spill] sm:$0xff]  ;;  %v19673_v21 = vld [vmem:[#allocation373_spill] sm:$0xff] }
 0x38c   :  { %19599 = vst [vmem:[#allocation195_spill] sm:$0xff] %v16046_v37  ;;  %v16048_v41 = vpop.f32.mrb[197].mxu1  ;;  %v16050_v16 = vpop.eup %9839  ;;  %9857 = vrcp.f32 %v5190_v42  ;;  %v8087_v48 = vmul.f32 -1.442695, %v4681_v49  ;;  %v19610_v37 = vld [vmem:[#allocation140_spill] sm:$0xff]  ;;  %vm7199_vm12 = vcmp.eq.s32.totalorder %v16020_v2, 1 }
 0x38d   :  { %v6038_v61 = vmul.f32 %v9836_v33, %v19596_v25  ;;  %19600 = vst [vmem:[#allocation70_spill] sm:$0xff] %v16048_v41  ;;  %19601 = vst [vmem:[#allocation204_spill] sm:$0xff] %v16050_v16  ;;  %v7320_v58 = vsel %vm7192_vm6, %v6296_v15, 1.0  ;;  %v4295_v25 = vadd.f32 1.0, %v9838_v24  ;;  %v16057_v13 = vpop.f32.mrb[198].mxu0  ;;  %v16059_v11 = vpop.f32.mrb[198].mxu1  ;;  %9859 = vtanh.f32 %v5658_v5 }
 0x38e   :  { %19602 = vst [vmem:[#allocation254_spill] sm:$0xff] %v16057_v13  ;;  %19603 = vst [vmem:[#allocation263_spill] sm:$0xff] %v16059_v11  ;;  %v9842_v51 = vpop.eup %9841  ;;  %v5535_v33 = vmul.f32 %v19605_v63, %v3615_v32  ;;  %v16067_v15 = vpop.f32.mrb[199].mxu0  ;;  %v19606_v24 = vld [vmem:[#allocation346_spill] sm:$0xff]  ;;  %v19609_v41 = vld [vmem:[#allocation19_spill] sm:$0xff]  ;;  %vm7198_vm15 = vcmp.eq.s32.totalorder %v16018_v53, 1 }
 0x38f   :  { %7448 = vst.msk [vmem:[%s18294_s7 + $0x118] sm:$0xff] %vm2155_vm1, %v7320_v58  ;;  %v6294_v22 = vadd.f32 %v19604_v3, %v6038_v61  ;;  %v16069_v42 = vpop.f32.mrb[199].mxu1  ;;  %v9844_v43 = vpop.eup %9843  ;;  %9861 = vrcp.f32 %v4295_v25  ;;  %v19607_v30 = vsub.f32 1.0, %v19606_v24  ;;  %v19608_v11 = vld [vmem:[#allocation350_spill] sm:$0xff]  ;;  %v3786_v58 = vadd.f32 %v19610_v37, %v19609_v41  ;;  %v19612_v32 = vld [vmem:[#allocation215_spill] sm:$0xff] }
 0x390   :  { %v5533_v13 = vmul.f32 %v19608_v11, %v3613_v14  ;;  %v16076_v59 = vpop.eup %9845  ;;  %v5191_v61 = vadd.f32 1.0, %v9844_v43  ;;  %9863 = vpow2.f32 %v7959_v62  ;;  %v5663_v49 = vadd.f32 %v5535_v33, %v19612_v32  ;;  %v10506_v14 = vld [vmem:[%s18290_s1 + $0x260] sm:$0xff]  ;;  %v16094_v11 = vpop.permute.xlu1 %6903  ;;  %v19617_v43 = vld [vmem:[#allocation217_spill] sm:$0xff] }
 0x391   :  { %v6043_v16 = vmul.f32 %v9842_v51, %v19607_v30  ;;  %19611 = vst [vmem:[#allocation133_spill] sm:$0xff] %v16076_v59  ;;  %v7318_v5 = vsel %vm7190_vm7, %v6294_v22, 1.0  ;;  %v9848_v3 = vpop.eup %9847  ;;  %v16087_v37 = vmul.f32 %v10506_v14, %v15851_v12  ;;  %9865 = vpow2.f32 %v8087_v48  ;;  %v16096_v51 = vpop.permute.xlu0 %6906  ;;  %v19615_v22 = vld [vmem:[#allocation336_spill] sm:$0xff]  ;;  %v19626_v12 = vld [vmem:[#allocation146_spill] sm:$0xff] }
 0x392   :  { %7446 = vst.msk [vmem:[%s18294_s7 + $0x108] sm:$0xff] %vm2155_vm1, %v7318_v5  ;;  %v9850_v41 = vpop.eup %9849  ;;  %9867 = vrcp.f32 %v5191_v61  ;;  %v19616_v63 = vsub.f32 1.0, %v19615_v22  ;;  %v5661_v24 = vadd.f32 %v5533_v13, %v19617_v43  ;;  %v7960_v30 = vmul.f32 -1.442695, %v3786_v58  ;;  %v16109_v25 = vpop.f32.mrb[200].mxu1  ;;  %v19620_v13 = vld [vmem:[#allocation381_spill] sm:$0xff] }
 0x393   :  { %19613 = vst [vmem:[#allocation320_spill] sm:$0xff] %v16087_v37  ;;  %v6299_v62 = vadd.f32 %v19614_v0, %v6043_v16  ;;  %v16101_v32 = vpop.eup %9851  ;;  %v4296_v14 = vadd.f32 1.0, %v9850_v41  ;;  %9869 = vtanh.f32 %v5663_v49  ;;  %v19619_v16 = vld [vmem:[#allocation281_spill] sm:$0xff]  ;;  %v16107_v0 = vpop.f32.mrb[200].mxu0  ;;  %v19621_v58 = vld [vmem:[#allocation20_spill] sm:$0xff]  ;;  %v19622_v49 = vld [vmem:[#allocation186_spill] sm:$0xff] }
 0x394   :  { %v6041_v33 = vmul.f32 %v9848_v3, %v19616_v63  ;;  %19618 = vst [vmem:[#allocation271_spill] sm:$0xff] %v16101_v32  ;;  %v3616_v48 = vadd.f32 %v15489_v29, %v19619_v16  ;;  %v9854_v61 = vpop.eup %9853  ;;  %9871 = vtanh.f32 %v5661_v24  ;;  %v4682_v3 = vadd.f32 %v19622_v49, %v19621_v58  ;;  %v16121_v22 = vpop.f32.mrb[201].mxu0  ;;  %v19625_v32 = vld [vmem:[#allocation227_spill] sm:$0xff] }
 0x395   :  { %v7323_v5 = vsel %vm7195_vm8, %v6299_v62, 1.0  ;;  %v19623_v62 = vld [vmem:[#allocation147_spill] sm:$0xff]  ;;  %v16123_v63 = vpop.f32.mrb[201].mxu1  ;;  %v9856_v43 = vpop.eup %9855  ;;  %9873 = vrcp.f32 %v4296_v14  ;;  %v5192_v16 = vadd.f32 1.0, %v9854_v61  ;;  %vm7200_vm14 = vcmp.eq.s32.totalorder %v16094_v11, 1 }
 0x396   :  { %7451 = vst.msk [vmem:[%s18294_s7 + $0x130] sm:$0xff] %vm2155_vm1, %v7323_v5  ;;  %v6297_v44 = vadd.f32 %v19620_v13, %v6041_v33  ;;  %v3614_v41 = vadd.f32 %v15489_v29, %v19623_v62  ;;  %19624 = vst [vmem:[#allocation3_spill] sm:$0xff] %v16123_v63  ;;  %v5536_v37 = vmul.f32 %v19625_v32, %v3616_v48  ;;  %v16128_v33 = vpop.f32.mrb[202].mxu0  ;;  %v16130_v24 = vpop.f32.mrb[202].mxu1  ;;  %v19627_v29 = vld [vmem:[#allocation289_spill] sm:$0xff]  ;;  %9875 = vpow2.f32 %v7960_v30  ;;  %v19694_v11 = vld [vmem:[#allocation311_spill] sm:$0xff] }
 0x397   :  { %v3787_v5 = vadd.f32 %v15597_v4, %v19626_v12  ;;  %v19628_v58 = vsub.f32 1.0, %v19627_v29  ;;  %v8088_v62 = vmul.f32 -1.442695, %v4682_v3  ;;  %v16136_v63 = vpop.f32.mrb[203].mxu0  ;;  %v16138_v14 = vpop.f32.mrb[203].mxu1  ;;  %9877 = vrcp.f32 %v5192_v16  ;;  %v19632_v4 = vld [vmem:[#allocation219_spill] sm:$0xff] }
 0x398   :  { %v7321_v13 = vsel %vm7193_vm9, %v6297_v44, 1.0  ;;  %19629 = vst [vmem:[#allocation242_spill] sm:$0xff] %v16136_v63  ;;  %19630 = vst [vmem:[#allocation277_spill] sm:$0xff] %v16138_v14  ;;  %v16140_v32 = vpop.eup %9857  ;;  %v5664_v56 = vadd.f32 %v5536_v37, %v19632_v4  ;;  %v19633_v12 = vld [vmem:[#allocation93_spill] sm:$0xff]  ;;  %v10507_v3 = vld [vmem:[%s18290_s1 + $0x268] sm:$0xff]  ;;  %vm7201_vm2 = vcmp.eq.s32.totalorder %v16096_v51, 1 }
 0x399   :  { %v6044_v49 = vmul.f32 %v9856_v43, %v19628_v58  ;;  %19631 = vst [vmem:[#allocation194_spill] sm:$0xff] %v16140_v32  ;;  %7449 = vst.msk [vmem:[%s18294_s7 + $0x120] sm:$0xff] %vm2155_vm1, %v7321_v13  ;;  %v5534_v48 = vmul.f32 %v19633_v12, %v3614_v41  ;;  %v7961_v61 = vmul.f32 -1.442695, %v3787_v5  ;;  %v9860_v44 = vpop.eup %9859  ;;  %v16153_v43 = vmul.f32 %v10507_v3, %v15917_v9  ;;  %v19635_v29 = vld [vmem:[#allocation393_spill] sm:$0xff]  ;;  %v19637_v37 = vld [vmem:[#allocation342_spill] sm:$0xff] }
 0x39a   :  { %9879 = vpow2.f32 %v8088_v62  ;;  %v16156_v13 = vpop.eup %9861  ;;  %v19638_v41 = vsub.f32 1.0, %v19637_v37  ;;  %v19639_v5 = vld [vmem:[#allocation303_spill] sm:$0xff]  ;;  %v16165_v12 = vld [vmem:[%s18293_s6] ss:$0 sm:$0xff]  ;;  %v16170_v62 = vpop.permute.xlu1 %6909  ;;  %v19644_v9 = vld [vmem:[#allocation369_spill] sm:$0xff] }
 0x39b   :  { %19634 = vst [vmem:[#allocation313_spill] sm:$0xff] %v16153_v43  ;;  %v6300_v58 = vadd.f32 %v19635_v29, %v6044_v49  ;;  %19636 = vst [vmem:[#allocation259_spill] sm:$0xff] %v16156_v13  ;;  %9881 = vtanh.f32 %v5664_v56  ;;  %v5662_v4 = vadd.f32 %v5534_v48, %v19639_v5  ;;  %v3619_v3 = vadd.f32 %v16165_v12, %v15599_v57  ;;  %v9864_v49 = vpop.eup %9863  ;;  %v16172_v29 = vpop.permute.xlu0 %6912  ;;  %v19640_v48 = vld [vmem:[#allocation149_spill] sm:$0xff]  ;;  %v19641_v57 = vld [vmem:[#allocation387_spill] sm:$0xff] }
 0x39c   :  { %v6042_v16 = vmul.f32 %v9860_v44, %v19638_v41  ;;  %9883 = vpow2.f32 %v7961_v61  ;;  %v4683_v44 = vadd.f32 %v15607_v47, %v19640_v48  ;;  %v3617_v37 = vadd.f32 %v16165_v12, %v15609_v10  ;;  %v9866_v41 = vpop.eup %9865  ;;  %v19642_v43 = vld [vmem:[#allocation379_spill] sm:$0xff]  ;;  %v16188_v61 = vpop.f32.mrb[204].mxu1  ;;  %v19645_v14 = vld [vmem:[#allocation22_spill] sm:$0xff] }
 0x39d   :  { %v7324_v56 = vsel %vm7196_vm10, %v6300_v58, 1.0  ;;  %v4297_v30 = vadd.f32 1.0, %v9864_v49  ;;  %9885 = vtanh.f32 %v5662_v4  ;;  %v5539_v28 = vmul.f32 %v19642_v43, %v3619_v3  ;;  %v16186_v58 = vpop.f32.mrb[204].mxu0  ;;  %19643 = vst [vmem:[#allocation272_spill] sm:$0xff] %v16188_v61  ;;  %v16190_v47 = vpop.eup %9867  ;;  %v10509_v3 = vld [vmem:[%s18290_s1 + $0x270] sm:$0xff]  ;;  %v19680_v61 = vld [vmem:[#allocation214_spill] sm:$0xff] }
 0x39e   :  { %7452 = vst.msk [vmem:[%s18294_s7 + $0x138] sm:$0xff] %vm2155_vm1, %v7324_v56  ;;  %v6298_v5 = vadd.f32 %v19641_v57, %v6042_v16  ;;  %v5193_v48 = vadd.f32 1.0, %v9866_v41  ;;  %v8089_v10 = vmul.f32 -1.442695, %v4683_v44  ;;  %v5537_v13 = vmul.f32 %v19644_v9, %v3617_v37  ;;  %v16195_v56 = vpop.f32.mrb[205].mxu0  ;;  %v16197_v16 = vpop.f32.mrb[205].mxu1 }
 0x39f   :  { %v3788_v63 = vadd.f32 %v15615_v8, %v19645_v14  ;;  %19646 = vst [vmem:[#allocation236_spill] sm:$0xff] %v16195_v56  ;;  %19647 = vst [vmem:[#allocation323_spill] sm:$0xff] %v16197_v16  ;;  %v9870_v4 = vpop.eup %9869  ;;  %v16204_v49 = vmul.f32 %v10509_v3, %v15975_v31  ;;  %9887 = vrcp.f32 %v4297_v30  ;;  %v16208_v44 = vpop.f32.mrb[206].mxu0  ;;  %v19651_v37 = vld [vmem:[#allocation361_spill] sm:$0xff]  ;;  %v19653_v3 = vld [vmem:[#allocation306_spill] sm:$0xff]  ;;  %vm7203_vm0 = vcmp.eq.s32.totalorder %v16172_v29, 1 }
 0x3a0   :  { %v7322_v9 = vsel %vm7194_vm11, %v6298_v5, 1.0  ;;  %19649 = vst [vmem:[#allocation4_spill] sm:$0xff] %v16208_v44  ;;  %v16210_v8 = vpop.f32.mrb[206].mxu1  ;;  %v9872_v14 = vpop.eup %9871  ;;  %v19652_v41 = vsub.f32 1.0, %v19651_v37  ;;  %9889 = vrcp.f32 %v5193_v48  ;;  %v5667_v43 = vadd.f32 %v5539_v28, %v19653_v3  ;;  %v19660_v37 = vld [vmem:[#allocation226_spill] sm:$0xff]  ;;  %v19661_v28 = vld [vmem:[#allocation407_spill] sm:$0xff] }
 0x3a1   :  { %19648 = vst [vmem:[#allocation267_spill] sm:$0xff] %v16204_v49  ;;  %19650 = vst [vmem:[#allocation6_spill] sm:$0xff] %v16210_v8  ;;  %v19654_v49 = vld [vmem:[#allocation307_spill] sm:$0xff]  ;;  %v16220_v5 = vpop.f32.mrb[207].mxu0  ;;  %v16222_v30 = vpop.f32.mrb[207].mxu1  ;;  %v19658_v8 = vld [vmem:[#allocation352_spill] sm:$0xff]  ;;  %9891 = vpow2.f32 %v8089_v10  ;;  %v3620_v48 = vadd.f32 %v16165_v12, %v19660_v37 }
 0x3a2   :  { %7450 = vst.msk [vmem:[%s18294_s7 + $0x128] sm:$0xff] %vm2155_vm1, %v7322_v9  ;;  %v6047_v57 = vmul.f32 %v9870_v4, %v19652_v41  ;;  %v5665_v35 = vadd.f32 %v5537_v13, %v19654_v49  ;;  %19655 = vst [vmem:[#allocation223_spill] sm:$0xff] %v16220_v5  ;;  %v16224_v31 = vpop.eup %9873  ;;  %v19659_v44 = vsub.f32 1.0, %v19658_v8  ;;  %v7962_v9 = vmul.f32 -1.442695, %v3788_v63  ;;  %v19662_v13 = vld [vmem:[#allocation23_spill] sm:$0xff]  ;;  %v16241_v56 = vpop.permute.xlu1 %6915 }
 0x3a3   :  { %19656 = vst [vmem:[#allocation250_spill] sm:$0xff] %v16222_v30  ;;  %19657 = vst [vmem:[#allocation176_spill] sm:$0xff] %v16224_v31  ;;  %v9876_v4 = vpop.eup %9875  ;;  %9893 = vtanh.f32 %v5667_v43  ;;  %v19663_v49 = vld [vmem:[#allocation123_spill] sm:$0xff]  ;;  %v19664_v30 = vld [vmem:[#allocation112_spill] sm:$0xff]  ;;  %v16243_v43 = vpop.permute.xlu0 %6918  ;;  %vm7204_vm3 = vcmp.eq.s32.totalorder %v16241_v56, 1  ;;  %vm7202_vm4 = vcmp.eq.s32.totalorder %v16170_v62, 1 }
 0x3a4   :  { %v6045_v16 = vmul.f32 %v9872_v14, %v19659_v44  ;;  %v6303_v41 = vadd.f32 %v19661_v28, %v6047_v57  ;;  %v4684_v3 = vadd.f32 %v19663_v49, %v19662_v13  ;;  %v3618_v31 = vadd.f32 %v16165_v12, %v19664_v30  ;;  %v16236_v5 = vpop.eup %9877  ;;  %v19665_v44 = vld [vmem:[#allocation398_spill] sm:$0xff]  ;;  %v19666_v8 = vld [vmem:[#allocation383_spill] sm:$0xff]  ;;  %v10510_v30 = vld [vmem:[%s18290_s1 + $0x278] sm:$0xff] }
 0x3a5   :  { %v4298_v63 = vadd.f32 1.0, %v9876_v4  ;;  %9895 = vtanh.f32 %v5665_v35  ;;  %v5540_v14 = vmul.f32 %v19666_v8, %v3620_v48  ;;  %v9880_v37 = vpop.eup %9879  ;;  %v16250_v28 = vmul.f32 %v10510_v30, %v16010_v40  ;;  %v19668_v13 = vld [vmem:[#allocation309_spill] sm:$0xff]  ;;  %v16263_v8 = vpop.f32.mrb[208].mxu1  ;;  %v19718_v29 = vld [vmem:[#allocation388_spill] sm:$0xff] }
 0x3a6   :  { %v6301_v10 = vadd.f32 %v19665_v44, %v6045_v16  ;;  %v7327_v16 = vsel %vm7199_vm12, %v6303_v41, 1.0  ;;  %9897 = vpow2.f32 %v7962_v9  ;;  %v9882_v35 = vpop.eup %9881  ;;  %v5194_v4 = vadd.f32 1.0, %v9880_v37  ;;  %v16261_v44 = vpop.f32.mrb[208].mxu0  ;;  %19670 = vst [vmem:[#allocation275_spill] sm:$0xff] %v16263_v8  ;;  %v19671_v9 = vld [vmem:[#allocation366_spill] sm:$0xff]  ;;  %v19675_v37 = vld [vmem:[#allocation285_spill] sm:$0xff] }
 0x3a7   :  { %19667 = vst [vmem:[#allocation288_spill] sm:$0xff] %v16250_v28  ;;  %7455 = vst.msk [vmem:[%s18294_s7 + $0x150] sm:$0xff] %vm2155_vm1, %v7327_v16  ;;  %9899 = vrcp.f32 %v4298_v63  ;;  %v5668_v49 = vadd.f32 %v5540_v14, %v19668_v13  ;;  %v9884_v2 = vpop.eup %9883  ;;  %v19672_v41 = vsub.f32 1.0, %v19671_v9  ;;  %v8090_v16 = vmul.f32 -1.442695, %v4684_v3  ;;  %v19674_v63 = vld [vmem:[#allocation151_spill] sm:$0xff] }
 0x3a8   :  { %v7325_v48 = vsel %vm7197_vm13, %v6301_v10, 1.0  ;;  %19669 = vst [vmem:[#allocation316_spill] sm:$0xff] %v16261_v44  ;;  %v5538_v10 = vmul.f32 %v19673_v21, %v3618_v31  ;;  %v3789_v57 = vadd.f32 %v19675_v37, %v19674_v63  ;;  %v16274_v14 = vpop.f32.mrb[209].mxu0  ;;  %v16276_v13 = vpop.f32.mrb[209].mxu1  ;;  %9901 = vrcp.f32 %v5194_v4  ;;  %v19678_v8 = vld [vmem:[#allocation255_spill] sm:$0xff]  ;;  %v19682_v31 = vld [vmem:[#allocation345_spill] sm:$0xff] }
 0x3a9   :  { %7453 = vst.msk [vmem:[%s18294_s7 + $0x140] sm:$0xff] %vm2155_vm1, %v7325_v48  ;;  %v6048_v30 = vmul.f32 %v9882_v35, %v19672_v41  ;;  %19676 = vst [vmem:[#allocation235_spill] sm:$0xff] %v16274_v14  ;;  %v9886_v28 = vpop.eup %9885  ;;  %v4299_v40 = vadd.f32 1.0, %v9884_v2  ;;  %v3623_v44 = vadd.f32 %v16165_v12, %v19678_v8  ;;  %v19679_v48 = vld [vmem:[#allocation152_spill] sm:$0xff]  ;;  %v16282_v35 = vpop.f32.mrb[210].mxu0  ;;  %v19683_v21 = vld [vmem:[#allocation357_spill] sm:$0xff]  ;;  %9903 = vtanh.f32 %v5668_v49 }
 0x3aa   :  { %19677 = vst [vmem:[#allocation179_spill] sm:$0xff] %v16276_v13  ;;  %v4685_v9 = vadd.f32 %v19680_v61, %v19679_v48  ;;  %v16284_v3 = vpop.f32.mrb[210].mxu1  ;;  %v19684_v63 = vsub.f32 1.0, %v19683_v21  ;;  %v19685_v4 = vld [vmem:[#allocation310_spill] sm:$0xff]  ;;  %v16291_v13 = vpop.f32.mrb[211].mxu0  ;;  %v19691_v49 = vld [vmem:[#allocation401_spill] sm:$0xff] }
 0x3ab   :  { %19681 = vst [vmem:[#allocation7_spill] sm:$0xff] %v16284_v3  ;;  %v6304_v41 = vadd.f32 %v19682_v31, %v6048_v30  ;;  %v5666_v2 = vadd.f32 %v5538_v10, %v19685_v4  ;;  %19686 = vst [vmem:[#allocation337_spill] sm:$0xff] %v16291_v13  ;;  %v16293_v8 = vpop.f32.mrb[211].mxu1  ;;  %v16295_v14 = vpop.eup %9887  ;;  %9905 = vrcp.f32 %v4299_v40  ;;  %v7963_v48 = vmul.f32 -1.442695, %v3789_v57  ;;  %v19689_v3 = vld [vmem:[#allocation402_spill] sm:$0xff] }
 0x3ac   :  { %v6046_v37 = vmul.f32 %v9886_v28, %v19684_v63  ;;  %19687 = vst [vmem:[#allocation279_spill] sm:$0xff] %v16293_v8  ;;  %19688 = vst [vmem:[#allocation265_spill] sm:$0xff] %v16295_v14  ;;  %v5543_v30 = vmul.f32 %v19689_v3, %v3623_v44  ;;  %v16300_v31 = vpop.eup %9889  ;;  %9907 = vpow2.f32 %v8090_v16  ;;  %v19692_v21 = vld [vmem:[#allocation41_spill] sm:$0xff]  ;;  %v10511_v61 = vld [vmem:[%s18290_s1 + $0x280] sm:$0xff]  ;;  %v8091_v44 = vmul.f32 -1.442695, %v4685_v9  ;;  %v16318_v3 = vpop.permute.xlu1 %6921 }
 0x3ad   :  { %19690 = vst [vmem:[#allocation80_spill] sm:$0xff] %v16300_v31  ;;  %v7328_v28 = vsel %vm7200_vm14, %v6304_v41, 1.0  ;;  %v3621_v63 = vadd.f32 %v16165_v12, %v19692_v21  ;;  %v9892_v4 = vpop.eup %9891  ;;  %v16311_v40 = vmul.f32 %v10511_v61, %v16076_v59  ;;  %9909 = vtanh.f32 %v5666_v2  ;;  %v16320_v41 = vpop.permute.xlu0 %6924  ;;  %v19695_v61 = vld [vmem:[#allocation391_spill] sm:$0xff]  ;;  %v19696_v2 = vld [vmem:[#allocation380_spill] sm:$0xff] }
 0x3ae   :  { %v6302_v10 = vadd.f32 %v19691_v49, %v6046_v37  ;;  %7456 = vst.msk [vmem:[%s18294_s7 + $0x158] sm:$0xff] %vm2155_vm1, %v7328_v28  ;;  %v5671_v57 = vadd.f32 %v5543_v30, %v19694_v11  ;;  %v9894_v16 = vpop.eup %9893  ;;  %v5195_v49 = vadd.f32 1.0, %v9892_v4  ;;  %9911 = vpow2.f32 %v7963_v48  ;;  %v19698_v28 = vld [vmem:[#allocation25_spill] sm:$0xff]  ;;  %v19699_v11 = vld [vmem:[#allocation66_spill] sm:$0xff]  ;;  %v19700_v14 = vld [vmem:[#allocation296_spill] sm:$0xff]  ;;  %v16337_v48 = vpop.f32.mrb[212].mxu1 }
 0x3af   :  { %19693 = vst [vmem:[#allocation327_spill] sm:$0xff] %v16311_v40  ;;  %v5541_v21 = vmul.f32 %v19695_v61, %v3621_v63  ;;  %v9896_v40 = vpop.eup %9895  ;;  %v19697_v9 = vsub.f32 1.0, %v19696_v2  ;;  %v3790_v59 = vadd.f32 %v19699_v11, %v19698_v28  ;;  %v3624_v53 = vadd.f32 %v16165_v12, %v19700_v14  ;;  %19702 = vst [vmem:[#allocation8_spill] sm:$0xff] %v16337_v48  ;;  %v19703_v4 = vld [vmem:[#allocation370_spill] sm:$0xff]  ;;  %v16347_v11 = vpop.f32.mrb[213].mxu1 }
 0x3b0   :  { %v7326_v37 = vsel %vm7198_vm15, %v6302_v10, 1.0  ;;  %9913 = vtanh.f32 %v5671_v57  ;;  %v16335_v10 = vpop.f32.mrb[212].mxu0  ;;  %v9898_v63 = vpop.eup %9897  ;;  %v19705_v2 = vld [vmem:[#allocation314_spill] sm:$0xff]  ;;  %19707 = vst [vmem:[#allocation104_spill] sm:$0xff] %v16347_v11  ;;  %vm7207_vm5 = vcmp.eq.s32.totalorder %v16320_v41, 1  ;;  %vm7205_vm6 = vcmp.eq.s32.totalorder %v16243_v43, 1 }
 0x3b1   :  { %7454 = vst.msk [vmem:[%s18294_s7 + $0x148] sm:$0xff] %vm2155_vm1, %v7326_v37  ;;  %v6051_v30 = vmul.f32 %v9894_v16, %v19697_v9  ;;  %19701 = vst [vmem:[#allocation293_spill] sm:$0xff] %v16335_v10  ;;  %9915 = vrcp.f32 %v5195_v49  ;;  %v19704_v37 = vsub.f32 1.0, %v19703_v4  ;;  %v5669_v16 = vadd.f32 %v5541_v21, %v19705_v2  ;;  %v19706_v57 = vld [vmem:[#allocation26_spill] sm:$0xff]  ;;  %v16345_v28 = vpop.f32.mrb[213].mxu0  ;;  %v16349_v14 = vpop.eup %9899  ;;  %v19709_v10 = vld [vmem:[#allocation423_spill] sm:$0xff] }
 0x3b2   :  { %v4686_v9 = vadd.f32 %v15714_v46, %v19706_v57  ;;  %19708 = vst [vmem:[#allocation183_spill] sm:$0xff] %v16349_v14  ;;  %v4300_v8 = vadd.f32 1.0, %v9898_v63  ;;  %9917 = vpow2.f32 %v8091_v44  ;;  %v7964_v13 = vmul.f32 -1.442695, %v3790_v59  ;;  %v16352_v49 = vpop.f32.mrb[214].mxu0  ;;  %v16354_v4 = vpop.f32.mrb[214].mxu1 }
 0x3b3   :  { %v6049_v61 = vmul.f32 %v9896_v40, %v19704_v37  ;;  %v6307_v48 = vadd.f32 %v19709_v10, %v6051_v30  ;;  %19710 = vst [vmem:[#allocation135_spill] sm:$0xff] %v16352_v49  ;;  %19711 = vst [vmem:[#allocation338_spill] sm:$0xff] %v16354_v4  ;;  %v19712_v40 = vld [vmem:[#allocation414_spill] sm:$0xff]  ;;  %9919 = vtanh.f32 %v5669_v16  ;;  %v16358_v57 = vpop.f32.mrb[215].mxu0  ;;  %v16360_v11 = vpop.f32.mrb[215].mxu1  ;;  %v3622_v44 = vadd.f32 %v16165_v12, %v15716_v17  ;;  %v19716_v30 = vld [vmem:[#allocation153_spill] sm:$0xff] }
 0x3b4   :  { %v19713_v37 = vld [vmem:[#allocation406_spill] sm:$0xff]  ;;  %v8092_v2 = vmul.f32 -1.442695, %v4686_v9  ;;  %19714 = vst [vmem:[#allocation181_spill] sm:$0xff] %v16358_v57  ;;  %19715 = vst [vmem:[#allocation284_spill] sm:$0xff] %v16360_v11  ;;  %v16362_v14 = vpop.eup %9901  ;;  %9921 = vrcp.f32 %v4300_v8  ;;  %v3791_v10 = vadd.f32 %v15750_v20, %v19716_v30  ;;  %v19719_v8 = vsub.f32 1.0, %v19718_v29 }
 0x3b5   :  { %v6305_v21 = vadd.f32 %v19712_v40, %v6049_v61  ;;  %v5544_v46 = vmul.f32 %v19713_v37, %v3624_v53  ;;  %v7331_v59 = vsel %vm7203_vm0, %v6307_v48, 1.0  ;;  %v9904_v53 = vpop.eup %9903  ;;  %v10512_v61 = vld [vmem:[%s18290_s1 + $0x288] sm:$0xff]  ;;  %9923 = vpow2.f32 %v7964_v13  ;;  %v19720_v9 = vld [vmem:[#allocation317_spill] sm:$0xff]  ;;  %v16397_v13 = vpop.permute.xlu0 %6930  ;;  %v19722_v63 = vld [vmem:[#allocation154_spill] sm:$0xff] }
 0x3b6   :  { %v16376_v16 = vmul.f32 %v10512_v61, %v16140_v32  ;;  %7459 = vst.msk [vmem:[%s18294_s7 + $0x170] sm:$0xff] %vm2155_vm1, %v7331_v59  ;;  %v16384_v20 = vpop.eup %9905  ;;  %v6052_v48 = vmul.f32 %v9904_v53, %v19719_v8  ;;  %9925 = vpow2.f32 %v8092_v2  ;;  %v19721_v37 = vld [vmem:[#allocation397_spill] sm:$0xff]  ;;  %v7965_v30 = vmul.f32 -1.442695, %v3791_v10  ;;  %v19724_v32 = vld [vmem:[#allocation292_spill] sm:$0xff]  ;;  %v16409_v11 = vpop.f32.mrb[216].mxu1 }
 0x3b7   :  { %v7329_v17 = vsel %vm7201_vm2, %v6305_v21, 1.0  ;;  %v5672_v40 = vadd.f32 %v5544_v46, %v19720_v9  ;;  %v5542_v59 = vmul.f32 %v19721_v37, %v3622_v44  ;;  %v9908_v51 = vpop.eup %9907  ;;  %v16395_v21 = vpop.permute.xlu1 %6927  ;;  %v3627_v61 = vadd.f32 %v16165_v12, %v15752_v6  ;;  %v19725_v46 = vld [vmem:[#allocation430_spill] sm:$0xff]  ;;  %19727 = vst [vmem:[#allocation85_spill] sm:$0xff] %v16409_v11  ;;  %v19728_v6 = vld [vmem:[#allocation377_spill] sm:$0xff] }
 0x3b8   :  { %19717 = vst [vmem:[#allocation136_spill] sm:$0xff] %v16376_v16  ;;  %7457 = vst.msk [vmem:[%s18294_s7 + $0x160] sm:$0xff] %vm2155_vm1, %v7329_v17  ;;  %v19723_v16 = vld [vmem:[#allocation163_spill] sm:$0xff]  ;;  %v3625_v53 = vadd.f32 %v16165_v12, %v19724_v32  ;;  %v9910_v29 = vpop.eup %9909  ;;  %v6308_v2 = vadd.f32 %v19725_v46, %v6052_v48  ;;  %v5196_v8 = vadd.f32 1.0, %v9908_v51  ;;  %v19726_v44 = vld [vmem:[#allocation318_spill] sm:$0xff]  ;;  %v16407_v37 = vpop.f32.mrb[216].mxu0 }
 0x3b9   :  { %v4687_v17 = vadd.f32 %v19723_v16, %v19722_v63  ;;  %9927 = vtanh.f32 %v5672_v40  ;;  %v5670_v9 = vadd.f32 %v5542_v59, %v19726_v44  ;;  %v9912_v10 = vpop.eup %9911  ;;  %v19729_v57 = vsub.f32 1.0, %v19728_v6  ;;  %v19730_v16 = vld [vmem:[#allocation427_spill] sm:$0xff]  ;;  %v16415_v49 = vpop.f32.mrb[217].mxu0  ;;  %v19733_v46 = vld [vmem:[#allocation412_spill] sm:$0xff]  ;;  %v19761_v43 = vld [vmem:[#allocation334_spill] sm:$0xff] }
 0x3ba   :  { %9929 = vpow2.f32 %v7965_v30  ;;  %v5547_v32 = vmul.f32 %v19730_v16, %v3627_v61  ;;  %19731 = vst [vmem:[#allocation10_spill] sm:$0xff] %v16415_v49  ;;  %v16417_v48 = vpop.f32.mrb[217].mxu1  ;;  %v9914_v40 = vpop.eup %9913  ;;  %v7332_v59 = vsel %vm7204_vm3, %v6308_v2, 1.0  ;;  %v4301_v51 = vadd.f32 1.0, %v9912_v10  ;;  %v19736_v30 = vld [vmem:[#allocation418_spill] sm:$0xff]  ;;  %v19739_v2 = vld [vmem:[#allocation319_spill] sm:$0xff] }
 0x3bb   :  { %v6050_v63 = vmul.f32 %v9910_v29, %v19729_v57  ;;  %v8093_v4 = vmul.f32 -1.442695, %v4687_v17  ;;  %19732 = vst [vmem:[#allocation270_spill] sm:$0xff] %v16417_v48  ;;  %9931 = vrcp.f32 %v5196_v8  ;;  %v5545_v44 = vmul.f32 %v19733_v46, %v3625_v53  ;;  %v16422_v11 = vpop.f32.mrb[218].mxu0  ;;  %v16424_v6 = vpop.f32.mrb[218].mxu1  ;;  %7460 = vst.msk [vmem:[%s18294_s7 + $0x178] sm:$0xff] %vm2155_vm1, %v7332_v59 }
 0x3bc   :  { %19734 = vst [vmem:[#allocation184_spill] sm:$0xff] %v16422_v11  ;;  %19735 = vst [vmem:[#allocation304_spill] sm:$0xff] %v16424_v6  ;;  %v16426_v57 = vpop.eup %9915  ;;  %v19737_v17 = vld [vmem:[#allocation405_spill] sm:$0xff]  ;;  %9933 = vtanh.f32 %v5670_v9  ;;  %v5675_v8 = vadd.f32 %v5547_v32, %v19739_v2  ;;  %v16436_v53 = vpop.f32.mrb[219].mxu0  ;;  %v10513_v6 = vld [vmem:[%s18290_s1 + $0x290] sm:$0xff]  ;;  %vm7208_vm7 = vcmp.eq.s32.totalorder %v16395_v21, 1 }
 0x3bd   :  { %v6306_v61 = vadd.f32 %v19736_v30, %v6050_v63  ;;  %v19738_v56 = vsub.f32 1.0, %v19737_v17  ;;  %19740 = vst [vmem:[#allocation298_spill] sm:$0xff] %v16436_v53  ;;  %v16438_v10 = vpop.f32.mrb[219].mxu1  ;;  %v9918_v16 = vpop.eup %9917  ;;  %v16445_v59 = vmul.f32 %v10513_v6, %v16190_v47  ;;  %9935 = vrcp.f32 %v4301_v51  ;;  %v19742_v63 = vld [vmem:[#allocation321_spill] sm:$0xff]  ;;  %v19743_v30 = vld [vmem:[#allocation110_spill] sm:$0xff]  ;;  %v19776_v21 = vld [vmem:[#allocation439_spill] sm:$0xff] }
 0x3be   :  { %19741 = vst [vmem:[#allocation65_spill] sm:$0xff] %v16438_v10  ;;  %v9920_v9 = vpop.eup %9919  ;;  %9937 = vtanh.f32 %v5675_v8  ;;  %v19744_v51 = vld [vmem:[#allocation394_spill] sm:$0xff]  ;;  %v16479_v41 = vpop.f32.mrb[220].mxu0  ;;  %vm7206_vm8 = vcmp.eq.s32.totalorder %v16318_v3, 1  ;;  %v19755_v11 = vld [vmem:[#allocation417_spill] sm:$0xff]  ;;  %vm7209_vm10 = vcmp.eq.s32.totalorder %v16397_v13, 1 }
 0x3bf   :  { %v6055_v29 = vmul.f32 %v9914_v40, %v19738_v56  ;;  %v5673_v40 = vadd.f32 %v5545_v44, %v19742_v63  ;;  %v7330_v32 = vsel %vm7202_vm4, %v6306_v61, 1.0  ;;  %v5197_v56 = vadd.f32 1.0, %v9918_v16  ;;  %v16451_v2 = vpop.eup %9921  ;;  %v19746_v63 = vld [vmem:[#allocation28_spill] sm:$0xff]  ;;  %v19747_v61 = vld [vmem:[#allocation258_spill] sm:$0xff]  ;;  %v16464_v16 = vpop.permute.xlu1 %6933  ;;  %19752 = vst [vmem:[#allocation188_spill] sm:$0xff] %v16479_v41 }
 0x3c0   :  { %7458 = vst.msk [vmem:[%s18294_s7 + $0x168] sm:$0xff] %vm2155_vm1, %v7330_v32  ;;  %v19745_v6 = vsub.f32 1.0, %v19744_v51  ;;  %9939 = vpow2.f32 %v8093_v4  ;;  %v3792_v62 = vadd.f32 %v15768_v54, %v19746_v63  ;;  %v9924_v8 = vpop.eup %9923  ;;  %v19748_v32 = vld [vmem:[#allocation29_spill] sm:$0xff]  ;;  %v19749_v10 = vld [vmem:[#allocation126_spill] sm:$0xff]  ;;  %v16486_v49 = vpop.f32.mrb[221].mxu0  ;;  %vm7210_vm12 = vcmp.eq.s32.totalorder %v16464_v16, 1 }
 0x3c1   :  { %v6311_v17 = vadd.f32 %v19743_v30, %v6055_v29  ;;  %v3628_v29 = vadd.f32 %v16165_v12, %v19747_v61  ;;  %v16466_v30 = vpop.permute.xlu0 %6936  ;;  %9941 = vrcp.f32 %v5197_v56  ;;  %v4688_v51 = vadd.f32 %v19749_v10, %v19748_v32  ;;  %v19751_v54 = vld [vmem:[#allocation438_spill] sm:$0xff]  ;;  %v19754_v56 = vld [vmem:[#allocation435_spill] sm:$0xff]  ;;  %19756 = vst [vmem:[#allocation189_spill] sm:$0xff] %v16486_v49 }
 0x3c2   :  { %v6053_v44 = vmul.f32 %v9920_v9, %v19745_v6  ;;  %v19750_v9 = vld [vmem:[#allocation252_spill] sm:$0xff]  ;;  %v9926_v6 = vpop.eup %9925  ;;  %v4302_v61 = vadd.f32 1.0, %v9924_v8  ;;  %9943 = vtanh.f32 %v5673_v40  ;;  %v7966_v53 = vmul.f32 -1.442695, %v3792_v62  ;;  %v19758_v62 = vld [vmem:[#allocation155_spill] sm:$0xff] }
 0x3c3   :  { %v7335_v46 = vsel %vm7207_vm5, %v6311_v17, 1.0  ;;  %v3626_v4 = vadd.f32 %v16165_v12, %v19750_v9  ;;  %v16481_v17 = vpop.f32.mrb[220].mxu1  ;;  %v5198_v10 = vadd.f32 1.0, %v9926_v6  ;;  %v5548_v32 = vmul.f32 %v19754_v56, %v3628_v29  ;;  %v16533_v41 = vpop.permute.xlu1 %6939 }
 0x3c4   :  { %7463 = vst.msk [vmem:[%s18294_s7 + $0x190] sm:$0xff] %vm2155_vm1, %v7335_v46  ;;  %v6309_v63 = vadd.f32 %v19751_v54, %v6053_v44  ;;  %19753 = vst [vmem:[#allocation187_spill] sm:$0xff] %v16481_v17  ;;  %v8094_v9 = vmul.f32 -1.442695, %v4688_v51  ;;  %v16488_v46 = vpop.f32.mrb[221].mxu1  ;;  %v9928_v44 = vpop.eup %9927  ;;  %9945 = vrcp.f32 %v4302_v61  ;;  %v3793_v8 = vadd.f32 %v15815_v38, %v19758_v62  ;;  %v19763_v38 = vld [vmem:[#allocation324_spill] sm:$0xff] }
 0x3c5   :  { %v5546_v48 = vmul.f32 %v19755_v11, %v3626_v4  ;;  %19757 = vst [vmem:[#allocation291_spill] sm:$0xff] %v16488_v46  ;;  %v3631_v6 = vadd.f32 %v16165_v12, %v15817_v18  ;;  %v16496_v54 = vpop.f32.mrb[222].mxu0  ;;  %v16498_v29 = vpop.f32.mrb[222].mxu1  ;;  %vm7211_vm9 = vcmp.eq.s32.totalorder %v16466_v30, 1  ;;  %v19762_v51 = vsub.f32 1.0, %v19761_v43  ;;  %v19764_v61 = vld [vmem:[#allocation325_spill] sm:$0xff] }
 0x3c6   :  { %v7333_v40 = vsel %vm7205_vm6, %v6309_v63, 1.0  ;;  %19759 = vst [vmem:[#allocation11_spill] sm:$0xff] %v16496_v54  ;;  %19760 = vst [vmem:[#allocation75_spill] sm:$0xff] %v16498_v29  ;;  %v9930_v11 = vpop.eup %9929  ;;  %9947 = vrcp.f32 %v5198_v10  ;;  %v5676_v63 = vadd.f32 %v5548_v32, %v19763_v38  ;;  %v16509_v56 = vpop.f32.mrb[223].mxu0  ;;  %v19767_v10 = vld [vmem:[#allocation108_spill] sm:$0xff]  ;;  %vm7212_vm11 = vcmp.eq.s32.totalorder %v16533_v41, 1 }
 0x3c7   :  { %7461 = vst.msk [vmem:[%s18294_s7 + $0x180] sm:$0xff] %vm2155_vm1, %v7333_v40  ;;  %v6056_v4 = vmul.f32 %v9928_v44, %v19762_v51  ;;  %v5674_v18 = vadd.f32 %v5546_v48, %v19764_v61  ;;  %19765 = vst [vmem:[#allocation348_spill] sm:$0xff] %v16509_v56  ;;  %v16511_v62 = vpop.f32.mrb[223].mxu1  ;;  %v16513_v29 = vpop.eup %9931  ;;  %v10514_v40 = vld [vmem:[%s18290_s1 + $0x298] sm:$0xff]  ;;  %9949 = vpow2.f32 %v7966_v53  ;;  %v5551_v32 = vmul.f32 %v19767_v10, %v3631_v6  ;;  %v19768_v51 = vld [vmem:[#allocation171_spill] sm:$0xff] }
 0x3c8   :  { %19766 = vst [vmem:[#allocation137_spill] sm:$0xff] %v16511_v62  ;;  %v16520_v43 = vmul.f32 %v10514_v40, %v16236_v5  ;;  %v9934_v44 = vpop.eup %9933  ;;  %9951 = vtanh.f32 %v5676_v63  ;;  %v7967_v61 = vmul.f32 -1.442695, %v3793_v8  ;;  %v19769_v54 = vld [vmem:[#allocation400_spill] sm:$0xff]  ;;  %v4303_v49 = vadd.f32 1.0, %v9930_v11  ;;  %v19771_v40 = vld [vmem:[#allocation326_spill] sm:$0xff]  ;;  %v16535_v48 = vpop.permute.xlu0 %6942 }
 0x3c9   :  { %v6312_v38 = vadd.f32 %v19768_v51, %v6056_v4  ;;  %v16525_v62 = vpop.eup %9935  ;;  %v19770_v56 = vsub.f32 1.0, %v19769_v54  ;;  %v5679_v17 = vadd.f32 %v5551_v32, %v19771_v40  ;;  %v19772_v53 = vld [vmem:[#allocation156_spill] sm:$0xff]  ;;  %9953 = vpow2.f32 %v8094_v9  ;;  %v19773_v54 = vld [vmem:[#allocation31_spill] sm:$0xff]  ;;  %v19774_v63 = vld [vmem:[#allocation54_spill] sm:$0xff]  ;;  %v16558_v40 = vpop.f32.mrb[224].mxu1 }
 0x3ca   :  { %v4689_v6 = vadd.f32 %v15830_v27, %v19772_v53  ;;  %v9938_v10 = vpop.eup %9937  ;;  %v3629_v4 = vadd.f32 %v16165_v12, %v15832_v52  ;;  %v3794_v11 = vadd.f32 %v19774_v63, %v19773_v54  ;;  %v10515_v27 = vld [vmem:[%s18290_s1 + $0x2a0] sm:$0xff]  ;;  %9955 = vtanh.f32 %v5674_v18  ;;  %19780 = vst [vmem:[#allocation249_spill] sm:$0xff] %v16558_v40  ;;  %v19785_v18 = vld [vmem:[#allocation169_spill] sm:$0xff]  ;;  %v19797_v30 = vld [vmem:[#allocation111_spill] sm:$0xff] }
 0x3cb   :  { %v6054_v46 = vmul.f32 %v9934_v44, %v19770_v56  ;;  %v7336_v8 = vsel %vm7208_vm7, %v6312_v38, 1.0  ;;  %v9940_v56 = vpop.eup %9939  ;;  %v16547_v32 = vmul.f32 %v10515_v27, %v16300_v31  ;;  %v19777_v44 = vld [vmem:[#allocation429_spill] sm:$0xff]  ;;  %v16556_v38 = vpop.f32.mrb[224].mxu0  ;;  %9957 = vpow2.f32 %v7967_v61  ;;  %v19782_v27 = vld [vmem:[#allocation106_spill] sm:$0xff]  ;;  %v19787_v61 = vld [vmem:[#allocation415_spill] sm:$0xff] }
 0x3cc   :  { %7464 = vst.msk [vmem:[%s18294_s7 + $0x198] sm:$0xff] %vm2155_vm1, %v7336_v8  ;;  %v19778_v52 = vsub.f32 1.0, %v19777_v44  ;;  %19779 = vst [vmem:[#allocation150_spill] sm:$0xff] %v16556_v38  ;;  %v16560_v53 = vpop.eup %9941  ;;  %v5199_v54 = vadd.f32 1.0, %v9940_v56  ;;  %v8095_v63 = vmul.f32 -1.442695, %v4689_v6  ;;  %9959 = vrcp.f32 %v4303_v49 }
 0x3cd   :  { %19775 = vst [vmem:[#allocation283_spill] sm:$0xff] %v16547_v32  ;;  %v6310_v9 = vadd.f32 %v19776_v21, %v6054_v46  ;;  %19781 = vst [vmem:[#allocation134_spill] sm:$0xff] %v16560_v53  ;;  %v5549_v32 = vmul.f32 %v19782_v27, %v3629_v4  ;;  %v16563_v31 = vpop.f32.mrb[225].mxu0  ;;  %v16565_v8 = vpop.f32.mrb[225].mxu1  ;;  %v7968_v44 = vmul.f32 -1.442695, %v3794_v11  ;;  %v3636_v16 = vadd.f32 %v16165_v12, %v15904_v19 }
 0x3ce   :  { %v6059_v51 = vmul.f32 %v9938_v10, %v19778_v52  ;;  %19783 = vst [vmem:[#allocation343_spill] sm:$0xff] %v16563_v31  ;;  %19784 = vst [vmem:[#allocation191_spill] sm:$0xff] %v16565_v8  ;;  %v9944_v46 = vpop.eup %9943  ;;  %v16570_v52 = vpop.f32.mrb[226].mxu0  ;;  %9961 = vrcp.f32 %v5199_v54  ;;  %v19788_v6 = vsub.f32 1.0, %v19787_v61  ;;  %v19789_v56 = vld [vmem:[#allocation328_spill] sm:$0xff]  ;;  %vm7213_vm14 = vcmp.eq.s32.totalorder %v16535_v48, 1 }
 0x3cf   :  { %v7334_v10 = vsel %vm7206_vm8, %v6310_v9, 1.0  ;;  %19786 = vst [vmem:[#allocation95_spill] sm:$0xff] %v16570_v52  ;;  %v5677_v3 = vadd.f32 %v5549_v32, %v19789_v56  ;;  %v19790_v9 = vld [vmem:[#allocation305_spill] sm:$0xff]  ;;  %9963 = vtanh.f32 %v5679_v17  ;;  %v19791_v27 = vld [vmem:[#allocation32_spill] sm:$0xff]  ;;  %v16602_v56 = vpop.f32.mrb[227].mxu0 }
 0x3d0   :  { %v6315_v21 = vadd.f32 %v19785_v18, %v6059_v51  ;;  %7462 = vst.msk [vmem:[%s18294_s7 + $0x188] sm:$0xff] %vm2155_vm1, %v7334_v10  ;;  %v6057_v4 = vmul.f32 %v9944_v46, %v19788_v6  ;;  %v3632_v49 = vadd.f32 %v16165_v12, %v19790_v9  ;;  %v16582_v51 = vpop.eup %9945  ;;  %v19792_v18 = vld [vmem:[#allocation239_spill] sm:$0xff]  ;;  %v19793_v8 = vld [vmem:[#allocation128_spill] sm:$0xff]  ;;  %v16590_v10 = vpop.f32.mrb[226].mxu1  ;;  %9965 = vpow2.f32 %v8095_v63  ;;  %19799 = vst [vmem:[#allocation138_spill] sm:$0xff] %v16602_v56 }
 0x3d1   :  { %v4690_v52 = vadd.f32 %v19792_v18, %v19791_v27  ;;  %v3630_v54 = vadd.f32 %v16165_v12, %v19793_v8  ;;  %19794 = vst [vmem:[#allocation102_spill] sm:$0xff] %v16590_v10  ;;  %v16592_v46 = vpop.eup %9947  ;;  %v19796_v32 = vld [vmem:[#allocation240_spill] sm:$0xff]  ;;  %v16605_v9 = vpop.permute.xlu1 %6945  ;;  %v10516_v63 = vld [vmem:[%s18290_s1 + $0x2a8] sm:$0xff]  ;;  %9967 = vtanh.f32 %v5677_v3  ;;  %v19802_v18 = vld [vmem:[#allocation437_spill] sm:$0xff] }
 0x3d2   :  { %v7339_v11 = vsel %vm7211_vm9, %v6315_v21, 1.0  ;;  %19795 = vst [vmem:[#allocation322_spill] sm:$0xff] %v16592_v46  ;;  %v6313_v61 = vadd.f32 %v19796_v32, %v6057_v4  ;;  %v5552_v17 = vmul.f32 %v19797_v30, %v3632_v49  ;;  %v19798_v21 = vld [vmem:[#allocation159_spill] sm:$0xff]  ;;  %v9950_v8 = vpop.eup %9949  ;;  %v16607_v27 = vpop.permute.xlu0 %6948  ;;  %v16614_v4 = vmul.f32 %v10516_v63, %v16362_v14  ;;  %v19800_v30 = vld [vmem:[#allocation329_spill] sm:$0xff]  ;;  %v19835_v19 = vld [vmem:[#allocation264_spill] sm:$0xff] }
 0x3d3   :  { %7467 = vst.msk [vmem:[%s18294_s7 + $0x1b0] sm:$0xff] %vm2155_vm1, %v7339_v11  ;;  %v3795_v6 = vadd.f32 %v15883_v39, %v19798_v21  ;;  %v8096_v39 = vmul.f32 -1.442695, %v4690_v52  ;;  %v9952_v49 = vpop.eup %9951  ;;  %v4304_v32 = vadd.f32 1.0, %v9950_v8  ;;  %9969 = vpow2.f32 %v7968_v44  ;;  %v16619_v56 = vpop.f32.mrb[227].mxu1  ;;  %v19804_v52 = vld [vmem:[#allocation166_spill] sm:$0xff] }
 0x3d4   :  { %v7337_v11 = vsel %vm7209_vm10, %v6313_v61, 1.0  ;;  %v5680_v21 = vadd.f32 %v5552_v17, %v19800_v30  ;;  %19801 = vst [vmem:[#allocation349_spill] sm:$0xff] %v16619_v56  ;;  %v19803_v63 = vsub.f32 1.0, %v19802_v18  ;;  %v5550_v3 = vmul.f32 %v19804_v52, %v3630_v54  ;;  %v9954_v13 = vpop.eup %9953  ;;  %v19805_v61 = vld [vmem:[#allocation160_spill] sm:$0xff]  ;;  %v19807_v54 = vld [vmem:[#allocation331_spill] sm:$0xff] }
 0x3d5   :  { %7465 = vst.msk [vmem:[%s18294_s7 + $0x1a0] sm:$0xff] %vm2155_vm1, %v7337_v11  ;;  %9971 = vpow2.f32 %v8096_v39  ;;  %v7969_v31 = vmul.f32 -1.442695, %v3795_v6  ;;  %v3635_v44 = vadd.f32 %v16165_v12, %v15885_v1  ;;  %v4691_v17 = vadd.f32 %v15895_v45, %v19805_v61  ;;  %v9956_v30 = vpop.eup %9955  ;;  %v19806_v18 = vld [vmem:[#allocation60_spill] sm:$0xff]  ;;  %v19810_v1 = vld [vmem:[#allocation18_spill] sm:$0xff] }
 0x3d6   :  { %v6060_v10 = vmul.f32 %v9952_v49, %v19803_v63  ;;  %9973 = vrcp.f32 %v4304_v32  ;;  %v3633_v8 = vadd.f32 %v16165_v12, %v15897_v34  ;;  %vm7215_vm13 = vcmp.eq.s32.totalorder %v16607_v27, 1  ;;  %v9958_v11 = vpop.eup %9957  ;;  %v19808_v32 = vld [vmem:[#allocation420_spill] sm:$0xff]  ;;  %v16643_v34 = vpop.permute.xlu1 %6951 }
 0x3d7   :  { %v5200_v39 = vadd.f32 1.0, %v9954_v13  ;;  %9975 = vtanh.f32 %v5680_v21  ;;  %v5678_v6 = vadd.f32 %v5550_v3, %v19807_v54  ;;  %v19809_v63 = vsub.f32 1.0, %v19808_v32  ;;  %v16640_v61 = vpop.eup %9959  ;;  %v16645_v40 = vpop.permute.xlu0 %6954  ;;  %v19811_v3 = vld [vmem:[#allocation100_spill] sm:$0xff]  ;;  %v19814_v54 = vld [vmem:[#allocation34_spill] sm:$0xff] }
 0x3d8   :  { %v6316_v49 = vadd.f32 %v19806_v18, %v6060_v10  ;;  %9977 = vpow2.f32 %v7969_v31  ;;  %v5555_v56 = vmul.f32 %v19810_v1, %v3635_v44  ;;  %v8097_v45 = vmul.f32 -1.442695, %v4691_v17  ;;  %v19812_v31 = vld [vmem:[#allocation177_spill] sm:$0xff]  ;;  %v19813_v17 = vld [vmem:[#allocation332_spill] sm:$0xff] }
 0x3d9   :  { %v6058_v52 = vmul.f32 %v9956_v30, %v19809_v63  ;;  %9979 = vrcp.f32 %v5200_v39  ;;  %v4305_v21 = vadd.f32 1.0, %v9958_v11  ;;  %v5553_v13 = vmul.f32 %v19811_v3, %v3633_v8  ;;  %v16650_v30 = vpop.eup %9961  ;;  %v16662_v39 = vpop.f32.mrb[228].mxu1  ;;  %v10517_v32 = vld [vmem:[%s18290_s1 + $0x2b0] sm:$0xff]  ;;  %v19820_v3 = vld [vmem:[#allocation234_spill] sm:$0xff] }
 0x3da   :  { %v7340_v10 = vsel %vm7212_vm11, %v6316_v49, 1.0  ;;  %9981 = vtanh.f32 %v5678_v6  ;;  %v5683_v18 = vadd.f32 %v5555_v56, %v19813_v17  ;;  %v3796_v41 = vadd.f32 %v15902_v50, %v19814_v54  ;;  %v16660_v49 = vpop.f32.mrb[228].mxu0  ;;  %19816 = vst [vmem:[#allocation197_spill] sm:$0xff] %v16662_v39  ;;  %v9964_v8 = vpop.eup %9963  ;;  %v19817_v6 = vld [vmem:[#allocation335_spill] sm:$0xff]  ;;  %v19838_v39 = vld [vmem:[#allocation237_spill] sm:$0xff]  ;;  %v19839_v48 = vld [vmem:[#allocation340_spill] sm:$0xff] }
 0x3db   :  { %7468 = vst.msk [vmem:[%s18294_s7 + $0x1b8] sm:$0xff] %vm2155_vm1, %v7340_v10  ;;  %v6314_v44 = vadd.f32 %v19812_v31, %v6058_v52  ;;  %19815 = vst [vmem:[#allocation90_spill] sm:$0xff] %v16660_v49  ;;  %v16669_v63 = vmul.f32 %v10517_v32, %v16426_v57  ;;  %9983 = vrcp.f32 %v4305_v21  ;;  %v5681_v56 = vadd.f32 %v5553_v13, %v19817_v6  ;;  %v16672_v52 = vpop.f32.mrb[229].mxu0  ;;  %v16674_v50 = vpop.f32.mrb[229].mxu1  ;;  %v19823_v13 = vld [vmem:[#allocation35_spill] sm:$0xff] }
 0x3dc   :  { %19818 = vst [vmem:[#allocation312_spill] sm:$0xff] %v16672_v52  ;;  %19819 = vst [vmem:[#allocation13_spill] sm:$0xff] %v16674_v50  ;;  %v9966_v1 = vpop.eup %9965  ;;  %v19821_v31 = vsub.f32 1.0, %v19820_v3  ;;  %9985 = vtanh.f32 %v5683_v18  ;;  %v7970_v54 = vmul.f32 -1.442695, %v3796_v41  ;;  %v16680_v11 = vpop.f32.mrb[230].mxu0 }
 0x3dd   :  { %v7338_v10 = vsel %vm7210_vm12, %v6314_v44, 1.0  ;;  %19822 = vst [vmem:[#allocation294_spill] sm:$0xff] %v16680_v11  ;;  %v9968_v32 = vpop.eup %9967  ;;  %vm7216_vm15 = vcmp.eq.s32.totalorder %v16643_v34, 1  ;;  %v5201_v21 = vadd.f32 1.0, %v9966_v1  ;;  %9987 = vpow2.f32 %v8097_v45  ;;  %v16691_v18 = vpop.f32.mrb[230].mxu1  ;;  %v19826_v3 = vld [vmem:[#allocation175_spill] sm:$0xff] }
 0x3de   :  { %v6063_v17 = vmul.f32 %v9964_v8, %v19821_v31  ;;  %7466 = vst.msk [vmem:[%s18294_s7 + $0x1a8] sm:$0xff] %vm2155_vm1, %v7338_v10  ;;  %v4692_v44 = vadd.f32 %v15913_v7, %v19823_v13  ;;  %19824 = vst [vmem:[#allocation347_spill] sm:$0xff] %v16691_v18  ;;  %v9970_v41 = vpop.eup %9969  ;;  %v19825_v8 = vld [vmem:[#allocation178_spill] sm:$0xff]  ;;  %v19827_v31 = vsub.f32 1.0, %v19826_v3  ;;  %9989 = vtanh.f32 %v5681_v56  ;;  %v16698_v1 = vpop.f32.mrb[231].mxu0  ;;  %v19829_v13 = vld [vmem:[#allocation268_spill] sm:$0xff] }
 0x3df   :  { %v3634_v10 = vadd.f32 %v16165_v12, %v15915_v36  ;;  %19828 = vst [vmem:[#allocation199_spill] sm:$0xff] %v16698_v1  ;;  %v9972_v45 = vpop.eup %9971  ;;  %v16700_v50 = vpop.permute.xlu1 %6957  ;;  %9991 = vrcp.f32 %v5201_v21  ;;  %v4306_v7 = vadd.f32 1.0, %v9970_v41  ;;  %v5556_v18 = vmul.f32 %v19829_v13, %v3636_v16  ;;  %v19832_v16 = vld [vmem:[#allocation339_spill] sm:$0xff]  ;;  %v19833_v13 = vld [vmem:[#allocation182_spill] sm:$0xff] }
 0x3e0   :  { %v6319_v6 = vadd.f32 %v19825_v8, %v6063_v17  ;;  %v6061_v11 = vmul.f32 %v9968_v32, %v19827_v31  ;;  %v16704_v52 = vpop.eup %9973  ;;  %vm7214_vm0 = vcmp.eq.s32.totalorder %v16605_v9, 1  ;;  %v19830_v17 = vld [vmem:[#allocation117_spill] sm:$0xff]  ;;  %9993 = vpow2.f32 %v7970_v54  ;;  %v16710_v8 = vpop.f32.mrb[231].mxu1 }
 0x3e1   :  { %v8098_v32 = vmul.f32 -1.442695, %v4692_v44  ;;  %19831 = vst [vmem:[#allocation14_spill] sm:$0xff] %v16710_v8  ;;  %v9976_v3 = vpop.eup %9975  ;;  %v16712_v31 = vpop.permute.xlu0 %6960  ;;  %v5202_v21 = vadd.f32 1.0, %v9972_v45  ;;  %v5684_v41 = vadd.f32 %v5556_v18, %v19832_v16  ;;  %v5554_v27 = vmul.f32 %v19833_v13, %v3634_v10  ;;  %v10518_v18 = vld [vmem:[%s18290_s1 + $0x2b8] sm:$0xff] }
 0x3e2   :  { %v7343_v56 = vsel %vm7215_vm13, %v6319_v6, 1.0  ;;  %v6317_v36 = vadd.f32 %v19830_v17, %v6061_v11  ;;  %v19834_v6 = vld [vmem:[#allocation161_spill] sm:$0xff]  ;;  %v9978_v54 = vpop.eup %9977  ;;  %vm7219_vm2 = vcmp.eq.s32.totalorder %v16712_v31, 1  ;;  %9995 = vrcp.f32 %v4306_v7  ;;  %v19836_v17 = vld [vmem:[#allocation190_spill] sm:$0xff] }
 0x3e3   :  { %7471 = vst.msk [vmem:[%s18294_s7 + $0x1d0] sm:$0xff] %vm2155_vm1, %v7343_v56  ;;  %v3797_v11 = vadd.f32 %v19835_v19, %v19834_v6  ;;  %v19837_v8 = vsub.f32 1.0, %v19836_v17  ;;  %v3639_v45 = vadd.f32 %v16165_v12, %v19838_v39  ;;  %v16729_v56 = vpop.eup %9979  ;;  %v16735_v10 = vmul.f32 %v10518_v18, %v16513_v29  ;;  %v16747_v6 = vpop.permute.xlu1 %6963  ;;  %v19841_v17 = vld [vmem:[#allocation232_spill] sm:$0xff]  ;;  %v19843_v18 = vld [vmem:[#allocation113_spill] sm:$0xff] }
 0x3e4   :  { %v7341_v44 = vsel %vm7213_vm14, %v6317_v36, 1.0  ;;  %9997 = vtanh.f32 %v5684_v41  ;;  %v5682_v19 = vadd.f32 %v5554_v27, %v19839_v48  ;;  %v9982_v36 = vpop.eup %9981  ;;  %vm7217_vm3 = vcmp.eq.s32.totalorder %v16645_v40, 1  ;;  %v19860_v9 = vld [vmem:[#allocation341_spill] sm:$0xff] }
 0x3e5   :  { %v6064_v1 = vmul.f32 %v9976_v3, %v19837_v8  ;;  %7469 = vst.msk [vmem:[%s18294_s7 + $0x1c0] sm:$0xff] %vm2155_vm1, %v7341_v44  ;;  %v7971_v7 = vmul.f32 -1.442695, %v3797_v11  ;;  %v19840_v8 = vld [vmem:[#allocation118_spill] sm:$0xff]  ;;  %v4307_v16 = vadd.f32 1.0, %v9978_v54  ;;  %9999 = vpow2.f32 %v8098_v32  ;;  %v16745_v13 = vpop.eup %9983  ;;  %v19845_v32 = vld [vmem:[#allocation37_spill] sm:$0xff] }
 0x3e6   :  { %10001 = vrcp.f32 %v5202_v21  ;;  %v19842_v44 = vsub.f32 1.0, %v19841_v17  ;;  %v5559_v27 = vmul.f32 %v19843_v18, %v3639_v45  ;;  %v19844_v11 = vld [vmem:[#allocation162_spill] sm:$0xff]  ;;  %v9986_v49 = vpop.eup %9985  ;;  %v3798_v54 = vadd.f32 %v15980_v26, %v19845_v32  ;;  %v16760_v21 = vpop.f32.mrb[232].mxu0  ;;  %v19849_v45 = vld [vmem:[#allocation103_spill] sm:$0xff] }
 0x3e7   :  { %v6320_v3 = vadd.f32 %v19840_v8, %v6064_v1  ;;  %v4693_v48 = vadd.f32 %v15971_v55, %v19844_v11  ;;  %10003 = vtanh.f32 %v5682_v19  ;;  %v3637_v1 = vadd.f32 %v16165_v12, %v15973_v60  ;;  %19846 = vst [vmem:[#allocation141_spill] sm:$0xff] %v16760_v21  ;;  %v16762_v8 = vpop.f32.mrb[232].mxu1  ;;  %v19848_v55 = vld [vmem:[#allocation131_spill] sm:$0xff]  ;;  %v19851_v60 = vld [vmem:[#allocation201_spill] sm:$0xff]  ;;  %v16776_v11 = vpop.permute.xlu0 %6966 }
 0x3e8   :  { %v6062_v41 = vmul.f32 %v9982_v36, %v19842_v44  ;;  %19847 = vst [vmem:[#allocation192_spill] sm:$0xff] %v16762_v8  ;;  %v9988_v36 = vpop.eup %9987  ;;  %v19850_v19 = vsub.f32 1.0, %v19849_v45  ;;  %10005 = vpow2.f32 %v7971_v7  ;;  %v5687_v17 = vadd.f32 %v5559_v27, %v19851_v60  ;;  %v16772_v44 = vpop.f32.mrb[233].mxu0  ;;  %v19854_v21 = vld [vmem:[#allocation105_spill] sm:$0xff]  ;;  %v19856_v7 = vld [vmem:[#allocation198_spill] sm:$0xff] }
 0x3e9   :  { %v7344_v39 = vsel %vm7216_vm15, %v6320_v3, 1.0  ;;  %19852 = vst [vmem:[#allocation356_spill] sm:$0xff] %v16772_v44  ;;  %v16774_v26 = vpop.f32.mrb[233].mxu1  ;;  %v9990_v18 = vpop.eup %9989  ;;  %10007 = vrcp.f32 %v4307_v16  ;;  %v5203_v32 = vadd.f32 1.0, %v9988_v36  ;;  %v8099_v8 = vmul.f32 -1.442695, %v4693_v48 }
 0x3ea   :  { %7472 = vst.msk [vmem:[%s18294_s7 + $0x1d8] sm:$0xff] %vm2155_vm1, %v7344_v39  ;;  %v6318_v34 = vadd.f32 %v19848_v55, %v6062_v41  ;;  %v6067_v3 = vmul.f32 %v9986_v49, %v19850_v19  ;;  %19853 = vst [vmem:[#allocation180_spill] sm:$0xff] %v16774_v26  ;;  %v5557_v39 = vmul.f32 %v19854_v21, %v3637_v1  ;;  %v16779_v38 = vpop.f32.mrb[234].mxu0  ;;  %v16781_v41 = vpop.eup %9991  ;;  %vm7220_vm4 = vcmp.eq.s32.totalorder %v16747_v6, 1  ;;  %v19857_v55 = vld [vmem:[#allocation114_spill] sm:$0xff]  ;;  %v19876_v26 = vld [vmem:[#allocation132_spill] sm:$0xff] }
 0x3eb   :  { %19855 = vst [vmem:[#allocation300_spill] sm:$0xff] %v16779_v38  ;;  %v19858_v45 = vsub.f32 1.0, %v19857_v55  ;;  %10009 = vtanh.f32 %v5687_v17  ;;  %v9994_v16 = vpop.eup %9993  ;;  %v10519_v48 = vld [vmem:[%s18290_s1 + $0x2c0] sm:$0xff]  ;;  %v7972_v36 = vmul.f32 -1.442695, %v3798_v54  ;;  %vm7218_vm5 = vcmp.eq.s32.totalorder %v16700_v50, 1 }
 0x3ec   :  { %v7342_v49 = vsel %vm7214_vm0, %v6318_v34, 1.0  ;;  %v6323_v27 = vadd.f32 %v19856_v7, %v6067_v3  ;;  %v16793_v1 = vmul.f32 %v10519_v48, %v16560_v53  ;;  %10011 = vrcp.f32 %v5203_v32  ;;  %v19861_v3 = vld [vmem:[#allocation269_spill] sm:$0xff]  ;;  %v16805_v7 = vpop.eup %9995  ;;  %v19864_v54 = vld [vmem:[#allocation308_spill] sm:$0xff]  ;;  %v19865_v32 = vld [vmem:[#allocation38_spill] sm:$0xff] }
 0x3ed   :  { %v6065_v19 = vmul.f32 %v9990_v18, %v19858_v45  ;;  %7470 = vst.msk [vmem:[%s18294_s7 + $0x1c8] sm:$0xff] %vm2155_vm1, %v7342_v49  ;;  %v5685_v21 = vadd.f32 %v5557_v39, %v19860_v9  ;;  %v4308_v17 = vadd.f32 1.0, %v9994_v16  ;;  %10013 = vpow2.f32 %v8099_v8  ;;  %v16803_v18 = vpop.f32.mrb[234].mxu1  ;;  %19863 = vst [vmem:[#allocation354_spill] sm:$0xff] %v16805_v7  ;;  %v19866_v39 = vld [vmem:[#allocation50_spill] sm:$0xff]  ;;  %v16827_v9 = vpop.f32.mrb[235].mxu0 }
 0x3ee   :  { %19859 = vst [vmem:[#allocation165_spill] sm:$0xff] %v16793_v1  ;;  %v7347_v34 = vsel %vm7219_vm2, %v6323_v27, 1.0  ;;  %19862 = vst [vmem:[#allocation200_spill] sm:$0xff] %v16803_v18  ;;  %v3640_v31 = vadd.f32 %v16165_v12, %v19864_v54  ;;  %v4694_v49 = vadd.f32 %v19866_v39, %v19865_v32  ;;  %v19867_v27 = vld [vmem:[#allocation205_spill] sm:$0xff]  ;;  %v9998_v55 = vpop.eup %9997  ;;  %v19870_v54 = vld [vmem:[#allocation12_spill] sm:$0xff]  ;;  %vm7221_vm7 = vcmp.eq.s32.totalorder %v16776_v11, 1 }
 0x3ef   :  { %v6321_v60 = vadd.f32 %v19861_v3, %v6065_v19  ;;  %7475 = vst.msk [vmem:[%s18294_s7 + $0x1f0] sm:$0xff] %vm2155_vm1, %v7347_v34  ;;  %10015 = vtanh.f32 %v5685_v21  ;;  %v3638_v8 = vadd.f32 %v16165_v12, %v19867_v27  ;;  %v10520_v19 = vld [vmem:[%s18290_s1 + $0x2c8] sm:$0xff]  ;;  %19869 = vst [vmem:[#allocation202_spill] sm:$0xff] %v16827_v9  ;;  %v10000_v21 = vpop.eup %9999  ;;  %v16829_v34 = vpop.permute.xlu1 %6969  ;;  %v19871_v32 = vsub.f32 1.0, %v19870_v54  ;;  %v19872_v27 = vld [vmem:[#allocation246_spill] sm:$0xff] }
 0x3f0   :  { %v16823_v16 = vmul.f32 %v10520_v19, %v16592_v46  ;;  %10017 = vrcp.f32 %v4308_v17  ;;  %v16831_v3 = vpop.permute.xlu0 %6972  ;;  %v5560_v40 = vmul.f32 %v19872_v27, %v3640_v31  ;;  %v16840_v17 = vpop.eup %10001  ;;  %v5204_v19 = vadd.f32 1.0, %v10000_v21  ;;  %v19874_v45 = vld [vmem:[#allocation208_spill] sm:$0xff]  ;;  %v19877_v54 = vld [vmem:[#allocation247_spill] sm:$0xff]  ;;  %v19887_v6 = vld [vmem:[#allocation70_spill] sm:$0xff] }
 0x3f1   :  { %v7345_v48 = vsel %vm7217_vm3, %v6321_v60, 1.0  ;;  %v6068_v39 = vmul.f32 %v9998_v55, %v19871_v32  ;;  %10019 = vpow2.f32 %v7972_v36  ;;  %v8100_v60 = vmul.f32 -1.442695, %v4694_v49  ;;  %19873 = vst [vmem:[#allocation364_spill] sm:$0xff] %v16840_v17  ;;  %v19875_v18 = vld [vmem:[#allocation164_spill] sm:$0xff]  ;;  %v10004_v44 = vpop.eup %10003  ;;  %v19879_v31 = vld [vmem:[#allocation167_spill] sm:$0xff] }
 0x3f2   :  { %19868 = vst [vmem:[#allocation158_spill] sm:$0xff] %v16823_v16  ;;  %7473 = vst.msk [vmem:[%s18294_s7 + $0x1e0] sm:$0xff] %vm2155_vm1, %v7345_v48  ;;  %vm7223_vm6 = vcmp.eq.s32.totalorder %v16831_v3, 1  ;;  %v5558_v9 = vmul.f32 %v19874_v45, %v3638_v8  ;;  %v3799_v38 = vadd.f32 %v16035_v23, %v19875_v18  ;;  %v3643_v48 = vadd.f32 %v16165_v12, %v19876_v26  ;;  %v19878_v36 = vld [vmem:[#allocation280_spill] sm:$0xff]  ;;  %v19880_v49 = vld [vmem:[#allocation195_spill] sm:$0xff]  ;;  %v16852_v16 = vpop.f32.mrb[235].mxu1  ;;  %v10006_v21 = vpop.eup %10005 }
 0x3f3   :  { %v6324_v55 = vadd.f32 %v19877_v54, %v6068_v39  ;;  %v5688_v32 = vadd.f32 %v5560_v40, %v19878_v36  ;;  %10021 = vpow2.f32 %v8100_v60  ;;  %v4695_v27 = vadd.f32 %v19880_v49, %v19879_v31  ;;  %19881 = vst [vmem:[#allocation142_spill] sm:$0xff] %v16852_v16  ;;  %v19882_v8 = vld [vmem:[#allocation243_spill] sm:$0xff]  ;;  %v19884_v23 = vld [vmem:[#allocation282_spill] sm:$0xff]  ;;  %v16857_v12 = vpop.eup %10007  ;;  %v19885_v40 = vld [vmem:[#allocation196_spill] sm:$0xff] }
 0x3f4   :  { %10023 = vrcp.f32 %v5204_v19  ;;  %v19883_v45 = vsub.f32 1.0, %v19882_v8  ;;  %v5686_v18 = vadd.f32 %v5558_v9, %v19884_v23  ;;  %v7973_v7 = vmul.f32 -1.442695, %v3799_v38  ;;  %v16872_v19 = vld [vmem:[%s18293_s6] ss:$0 sm:$0xff]  ;;  %v19888_v49 = vld [vmem:[#allocation44_spill] sm:$0xff] }
 0x3f5   :  { %v7348_v39 = vsel %vm7220_vm4, %v6324_v55, 1.0  ;;  %10025 = vtanh.f32 %v5688_v32  ;;  %v5563_v60 = vmul.f32 %v19885_v40, %v3643_v48  ;;  %v10010_v54 = vpop.eup %10009  ;;  %v8101_v9 = vmul.f32 -1.442695, %v4695_v27  ;;  %v16878_v48 = vpop.permute.xlu1 %6975  ;;  %v19891_v23 = vld [vmem:[#allocation168_spill] sm:$0xff]  ;;  %v19901_v1 = vld [vmem:[#allocation263_spill] sm:$0xff]  ;;  %v19914_v11 = vld [vmem:[#allocation130_spill] sm:$0xff] }
 0x3f6   :  { %v6066_v46 = vmul.f32 %v10004_v44, %v19883_v45  ;;  %7476 = vst.msk [vmem:[%s18294_s7 + $0x1f8] sm:$0xff] %vm2155_vm1, %v7348_v39  ;;  %v19886_v44 = vld [vmem:[#allocation260_spill] sm:$0xff]  ;;  %10027 = vtanh.f32 %v5686_v18  ;;  %v3641_v55 = vadd.f32 %v16872_v19, %v19887_v6  ;;  %v16876_v36 = vpop.eup %10011  ;;  %v16880_v32 = vpop.permute.xlu0 %6978  ;;  %v4309_v31 = vadd.f32 1.0, %v10006_v21  ;;  %v19890_v45 = vld [vmem:[#allocation286_spill] sm:$0xff] }
 0x3f7   :  { %v19889_v8 = vsub.f32 1.0, %v19888_v49  ;;  %v5691_v27 = vadd.f32 %v5563_v60, %v19890_v45  ;;  %v19892_v18 = vld [vmem:[#allocation254_spill] sm:$0xff]  ;;  %v10014_v40 = vpop.eup %10013  ;;  %10029 = vpow2.f32 %v7973_v7  ;;  %v16898_v60 = vpop.f32.mrb[236].mxu1  ;;  %vm7224_vm8 = vcmp.eq.s32.totalorder %v16878_v48, 1 }
 0x3f8   :  { %v6322_v38 = vadd.f32 %v19886_v44, %v6066_v46  ;;  %v3800_v39 = vadd.f32 %v19892_v18, %v19891_v23  ;;  %v10522_v44 = vld [vmem:[%s18290_s1 + $0x2d0] sm:$0xff]  ;;  %19894 = vst [vmem:[#allocation220_spill] sm:$0xff] %v16898_v60  ;;  %v5205_v23 = vadd.f32 1.0, %v10014_v40  ;;  %v19896_v18 = vld [vmem:[#allocation193_spill] sm:$0xff]  ;;  %v16908_v50 = vpop.f32.mrb[237].mxu1  ;;  %vm7222_vm9 = vcmp.eq.s32.totalorder %v16829_v34, 1 }
 0x3f9   :  { %v6071_v46 = vmul.f32 %v10010_v54, %v19889_v8  ;;  %v16891_v6 = vmul.f32 %v10522_v44, %v16650_v30  ;;  %v16896_v54 = vpop.f32.mrb[236].mxu0  ;;  %v10016_v49 = vpop.eup %10015  ;;  %v19895_v8 = vld [vmem:[#allocation55_spill] sm:$0xff]  ;;  %10031 = vtanh.f32 %v5691_v27  ;;  %v5561_v44 = vmul.f32 %v19896_v18, %v3641_v55  ;;  %19898 = vst [vmem:[#allocation207_spill] sm:$0xff] %v16908_v50  ;;  %v19904_v40 = vld [vmem:[#allocation213_spill] sm:$0xff]  ;;  %v19905_v18 = vld [vmem:[#allocation170_spill] sm:$0xff] }
 0x3fa   :  { %v7346_v21 = vsel %vm7218_vm5, %v6322_v38, 1.0  ;;  %19893 = vst [vmem:[#allocation344_spill] sm:$0xff] %v16896_v54  ;;  %v16906_v26 = vpop.f32.mrb[237].mxu0  ;;  %v16910_v7 = vpop.eup %10017  ;;  %v19899_v38 = vld [vmem:[#allocation245_spill] sm:$0xff]  ;;  %10033 = vpow2.f32 %v8101_v9  ;;  %v7974_v16 = vmul.f32 -1.442695, %v3800_v39  ;;  %v4696_v9 = vadd.f32 %v16067_v15, %v19905_v18 }
 0x3fb   :  { %7474 = vst.msk [vmem:[%s18294_s7 + $0x1e8] sm:$0xff] %vm2155_vm1, %v7346_v21  ;;  %v6327_v45 = vadd.f32 %v19895_v8, %v6071_v46  ;;  %19897 = vst [vmem:[#allocation143_spill] sm:$0xff] %v16906_v26  ;;  %v19900_v60 = vsub.f32 1.0, %v19899_v38  ;;  %v3644_v21 = vadd.f32 %v16872_v19, %v19901_v1  ;;  %v16916_v53 = vpop.f32.mrb[238].mxu0  ;;  %v16918_v46 = vpop.f32.mrb[238].mxu1  ;;  %10035 = vrcp.f32 %v4309_v31  ;;  %v19906_v1 = vld [vmem:[#allocation120_spill] sm:$0xff] }
 0x3fc   :  { %19902 = vst [vmem:[#allocation333_spill] sm:$0xff] %v16916_v53  ;;  %19903 = vst [vmem:[#allocation16_spill] sm:$0xff] %v16918_v46  ;;  %v10020_v27 = vpop.eup %10019  ;;  %v5689_v8 = vadd.f32 %v5561_v44, %v19904_v40  ;;  %10037 = vpow2.f32 %v7974_v16  ;;  %v19907_v31 = vld [vmem:[#allocation276_spill] sm:$0xff]  ;;  %v3642_v44 = vadd.f32 %v16872_v19, %v16069_v42  ;;  %v16937_v40 = vpop.f32.mrb[239].mxu0  ;;  %v10523_v16 = vld [vmem:[%s18290_s1 + $0x2d8] sm:$0xff]  ;;  %vm7225_vm11 = vcmp.eq.s32.totalorder %v16880_v32, 1 }
 0x3fd   :  { %v6069_v54 = vmul.f32 %v10016_v49, %v19900_v60  ;;  %v7351_v55 = vsel %vm7223_vm6, %v6327_v45, 1.0  ;;  %v4310_v60 = vadd.f32 1.0, %v10020_v27  ;;  %v5564_v49 = vmul.f32 %v19907_v31, %v3644_v21  ;;  %v10022_v3 = vpop.eup %10021  ;;  %v19908_v15 = vld [vmem:[#allocation40_spill] sm:$0xff]  ;;  %19909 = vst [vmem:[#allocation374_spill] sm:$0xff] %v16937_v40  ;;  %v16939_v18 = vpop.f32.mrb[239].mxu1  ;;  %v19913_v31 = vld [vmem:[#allocation109_spill] sm:$0xff] }
 0x3fe   :  { %7479 = vst.msk [vmem:[%s18294_s7 + $0x210] sm:$0xff] %vm2155_vm1, %v7351_v55  ;;  %10039 = vtanh.f32 %v5689_v8  ;;  %v8102_v45 = vmul.f32 -1.442695, %v4696_v9  ;;  %v3801_v38 = vadd.f32 %v16107_v0, %v19908_v15  ;;  %19910 = vst [vmem:[#allocation17_spill] sm:$0xff] %v16939_v18  ;;  %v16941_v55 = vpop.eup %10023  ;;  %v16949_v21 = vmul.f32 %v10523_v16, %v16729_v56  ;;  %v19912_v0 = vld [vmem:[#allocation287_spill] sm:$0xff]  ;;  %v16961_v16 = vpop.permute.xlu1 %6981  ;;  %v19920_v53 = vld [vmem:[#allocation148_spill] sm:$0xff] }
 0x3ff   :  { %v6325_v39 = vadd.f32 %v19906_v1, %v6069_v54  ;;  %19911 = vst [vmem:[#allocation24_spill] sm:$0xff] %v16941_v55  ;;  %v16943_v54 = vpop.permute.xlu0 %6984  ;;  %10041 = vrcp.f32 %v5205_v23  ;;  %v5692_v27 = vadd.f32 %v5564_v49, %v19912_v0  ;;  %v10026_v8 = vpop.eup %10025  ;;  %v5206_v1 = vadd.f32 1.0, %v10022_v3  ;;  %v19916_v18 = vld [vmem:[#allocation119_spill] sm:$0xff]  ;;  %v19919_v3 = vld [vmem:[#allocation172_spill] sm:$0xff] }
 0x400   :  { %vm7227_vm10 = vcmp.eq.s32.totalorder %v16943_v54, 1  ;;  %10043 = vrcp.f32 %v4310_v60  ;;  %v5562_v15 = vmul.f32 %v19913_v31, %v3642_v44  ;;  %v10028_v23 = vpop.eup %10027  ;;  %v7975_v0 = vmul.f32 -1.442695, %v3801_v38  ;;  %v19942_v54 = vld [vmem:[#allocation2_spill] sm:$0xff] }
 0x401   :  { %v7349_v42 = vsel %vm7221_vm7, %v6325_v39, 1.0  ;;  %v19915_v39 = vsub.f32 1.0, %v19914_v11  ;;  %10045 = vpow2.f32 %v8102_v45  ;;  %v3647_v9 = vadd.f32 %v16872_v19, %v16109_v25  ;;  %v10030_v31 = vpop.eup %10029  ;;  %v19921_v11 = vld [vmem:[#allocation206_spill] sm:$0xff]  ;;  %v19922_v45 = vld [vmem:[#allocation3_spill] sm:$0xff]  ;;  %v16978_v25 = vpop.f32.mrb[240].mxu1 }
 0x402   :  { %7477 = vst.msk [vmem:[%s18294_s7 + $0x200] sm:$0xff] %vm2155_vm1, %v7349_v42  ;;  %v19917_v40 = vsub.f32 1.0, %v19916_v18  ;;  %10047 = vtanh.f32 %v5692_v27  ;;  %v19918_v42 = vld [vmem:[#allocation290_spill] sm:$0xff]  ;;  %v4697_v44 = vadd.f32 %v16121_v22, %v19919_v3  ;;  %v3645_v38 = vadd.f32 %v16872_v19, %v19922_v45  ;;  %19924 = vst [vmem:[#allocation209_spill] sm:$0xff] %v16978_v25  ;;  %v19931_v25 = vld [vmem:[#allocation139_spill] sm:$0xff] }
 0x403   :  { %v6072_v49 = vmul.f32 %v10026_v8, %v19915_v39  ;;  %v5690_v60 = vadd.f32 %v5562_v15, %v19918_v42  ;;  %10049 = vpow2.f32 %v7975_v0  ;;  %v5567_v8 = vmul.f32 %v19921_v11, %v3647_v9  ;;  %v16976_v39 = vpop.f32.mrb[240].mxu0  ;;  %v19925_v18 = vld [vmem:[#allocation278_spill] sm:$0xff]  ;;  %v19928_v0 = vld [vmem:[#allocation121_spill] sm:$0xff]  ;;  %v19930_v11 = vld [vmem:[#allocation295_spill] sm:$0xff] }
 0x404   :  { %v6070_v46 = vmul.f32 %v10028_v23, %v19917_v40  ;;  %19923 = vst [vmem:[#allocation315_spill] sm:$0xff] %v16976_v39  ;;  %v10032_v40 = vpop.eup %10031  ;;  %v4311_v15 = vadd.f32 1.0, %v10030_v31  ;;  %v8103_v22 = vmul.f32 -1.442695, %v4697_v44  ;;  %v16982_v23 = vpop.f32.mrb[241].mxu0  ;;  %v19929_v42 = vsub.f32 1.0, %v19928_v0 }
 0x405   :  { %v6328_v50 = vadd.f32 %v19920_v53, %v6072_v49  ;;  %10051 = vtanh.f32 %v5690_v60  ;;  %19926 = vst [vmem:[#allocation45_spill] sm:$0xff] %v16982_v23  ;;  %v16984_v53 = vpop.f32.mrb[241].mxu1  ;;  %v10034_v9 = vpop.eup %10033  ;;  %v5695_v45 = vadd.f32 %v5567_v8, %v19930_v11  ;;  %v5565_v39 = vmul.f32 %v19931_v25, %v3645_v38  ;;  %v19932_v60 = vld [vmem:[#allocation42_spill] sm:$0xff]  ;;  %v19955_v23 = vld [vmem:[#allocation256_spill] sm:$0xff] }
 0x406   :  { %v6326_v27 = vadd.f32 %v19925_v18, %v6070_v46  ;;  %19927 = vst [vmem:[#allocation27_spill] sm:$0xff] %v16984_v53  ;;  %v6075_v3 = vmul.f32 %v10032_v40, %v19929_v42  ;;  %v16992_v26 = vpop.eup %10035  ;;  %v16994_v46 = vpop.permute.xlu0 %6990  ;;  %10053 = vrcp.f32 %v5206_v1  ;;  %v3802_v44 = vadd.f32 %v16128_v33, %v19932_v60  ;;  %v10524_v25 = vld [vmem:[%s18290_s1 + $0x2e0] sm:$0xff]  ;;  %v19935_v33 = vld [vmem:[#allocation253_spill] sm:$0xff] }
 0x407   :  { %v7352_v49 = vsel %vm7224_vm8, %v6328_v50, 1.0  ;;  %v5207_v50 = vadd.f32 1.0, %v10034_v9  ;;  %v17004_v31 = vpop.f32.mrb[242].mxu0  ;;  %v10038_v8 = vpop.eup %10037  ;;  %v17012_v40 = vmul.f32 %v10524_v25, %v16781_v41  ;;  %10055 = vtanh.f32 %v5695_v45  ;;  %v19936_v9 = vld [vmem:[#allocation297_spill] sm:$0xff]  ;;  %v19938_v60 = vld [vmem:[#allocation30_spill] sm:$0xff] }
 0x408   :  { %7480 = vst.msk [vmem:[%s18294_s7 + $0x218] sm:$0xff] %vm2155_vm1, %v7352_v49  ;;  %v7350_v48 = vsel %vm7222_vm9, %v6326_v27, 1.0  ;;  %19933 = vst [vmem:[#allocation274_spill] sm:$0xff] %v17004_v31  ;;  %v17006_v38 = vpop.permute.xlu1 %6987  ;;  %v6331_v34 = vadd.f32 %v19935_v33, %v6075_v3  ;;  %v10040_v18 = vpop.eup %10039  ;;  %10057 = vrcp.f32 %v4311_v15  ;;  %v4312_v27 = vadd.f32 1.0, %v10038_v8  ;;  %v19945_v8 = vld [vmem:[#allocation43_spill] sm:$0xff] }
 0x409   :  { %19934 = vst [vmem:[#allocation144_spill] sm:$0xff] %v17012_v40  ;;  %7478 = vst.msk [vmem:[%s18294_s7 + $0x208] sm:$0xff] %vm2155_vm1, %v7350_v48  ;;  %vm7228_vm12 = vcmp.eq.s32.totalorder %v17006_v38, 1  ;;  %v5693_v49 = vadd.f32 %v5565_v39, %v19936_v9  ;;  %v7976_v0 = vmul.f32 -1.442695, %v3802_v44  ;;  %v17022_v42 = vpop.eup %10041  ;;  %v19939_v25 = vsub.f32 1.0, %v19938_v60 }
 0x40a   :  { %19937 = vst [vmem:[#allocation330_spill] sm:$0xff] %v17022_v42  ;;  %v7355_v11 = vsel %vm7227_vm10, %v6331_v34, 1.0  ;;  %10059 = vpow2.f32 %v8103_v22  ;;  %v3648_v3 = vadd.f32 %v16872_v19, %v16130_v24  ;;  %v17030_v45 = vpop.f32.mrb[242].mxu1  ;;  %v17032_v48 = vpop.eup %10043  ;;  %vm7226_vm13 = vcmp.eq.s32.totalorder %v16961_v16, 1  ;;  %v19943_v39 = vld [vmem:[#allocation242_spill] sm:$0xff]  ;;  %v19944_v44 = vld [vmem:[#allocation277_spill] sm:$0xff] }
 0x40b   :  { %v6073_v1 = vmul.f32 %v10040_v18, %v19939_v25  ;;  %19940 = vst [vmem:[#allocation210_spill] sm:$0xff] %v17030_v45  ;;  %19941 = vst [vmem:[#allocation21_spill] sm:$0xff] %v17032_v48  ;;  %10061 = vrcp.f32 %v5207_v50  ;;  %v4698_v15 = vadd.f32 %v19943_v39, %v19942_v54  ;;  %v3646_v22 = vadd.f32 %v16872_v19, %v19944_v44  ;;  %v17045_v33 = vpop.f32.mrb[243].mxu0  ;;  %v10046_v34 = vpop.eup %10045  ;;  %v10525_v18 = vld [vmem:[%s18290_s1 + $0x2e8] sm:$0xff]  ;;  %v19948_v50 = vld [vmem:[#allocation248_spill] sm:$0xff] }
 0x40c   :  { %7483 = vst.msk [vmem:[%s18294_s7 + $0x230] sm:$0xff] %vm2155_vm1, %v7355_v11  ;;  %v3803_v24 = vadd.f32 %v16186_v58, %v19945_v8  ;;  %19946 = vst [vmem:[#allocation378_spill] sm:$0xff] %v17045_v33  ;;  %v17051_v9 = vmul.f32 %v10525_v18, %v16840_v17  ;;  %10063 = vtanh.f32 %v5693_v49  ;;  %v19949_v60 = vld [vmem:[#allocation125_spill] sm:$0xff]  ;;  %v17055_v54 = vpop.f32.mrb[243].mxu1  ;;  %v10048_v39 = vpop.eup %10047  ;;  %v10526_v8 = vld [vmem:[%s18290_s1 + $0x2f0] sm:$0xff]  ;;  %vm7229_vm15 = vcmp.eq.s32.totalorder %v16994_v46, 1 }
 0x40d   :  { %v6329_v11 = vadd.f32 %v19948_v50, %v6073_v1  ;;  %v5568_v25 = vmul.f32 %v19949_v60, %v3648_v3  ;;  %19950 = vst [vmem:[#allocation211_spill] sm:$0xff] %v17055_v54  ;;  %v17057_v44 = vpop.permute.xlu0 %6996  ;;  %v17064_v33 = vmul.f32 %v10526_v8, %v16876_v36  ;;  %10065 = vpow2.f32 %v7976_v0  ;;  %v10050_v1 = vpop.eup %10049  ;;  %v19951_v50 = vld [vmem:[#allocation212_spill] sm:$0xff]  ;;  %v19953_v54 = vld [vmem:[#allocation299_spill] sm:$0xff] }
 0x40e   :  { %19947 = vst [vmem:[#allocation174_spill] sm:$0xff] %v17051_v9  ;;  %v8104_v18 = vmul.f32 -1.442695, %v4698_v15  ;;  %v17066_v49 = vpop.permute.xlu1 %6993  ;;  %vm7231_vm14 = vcmp.eq.s32.totalorder %v17057_v44, 1  ;;  %10067 = vrcp.f32 %v4312_v27  ;;  %v19952_v60 = vsub.f32 1.0, %v19951_v50  ;;  %v19954_v15 = vld [vmem:[#allocation216_spill] sm:$0xff] }
 0x40f   :  { %v7353_v3 = vsel %vm7225_vm11, %v6329_v11, 1.0  ;;  %v5696_v45 = vadd.f32 %v5568_v25, %v19953_v54  ;;  %v10052_v31 = vpop.eup %10051  ;;  %v5208_v0 = vadd.f32 1.0, %v10046_v34  ;;  %v5566_v8 = vmul.f32 %v19954_v15, %v3646_v22  ;;  %v19956_v11 = vld [vmem:[#allocation185_spill] sm:$0xff]  ;;  %v19961_v34 = vld [vmem:[#allocation236_spill] sm:$0xff]  ;;  %v19962_v40 = vld [vmem:[#allocation323_spill] sm:$0xff] }
 0x410   :  { %v6076_v58 = vmul.f32 %v10048_v39, %v19952_v60  ;;  %7481 = vst.msk [vmem:[%s18294_s7 + $0x220] sm:$0xff] %vm2155_vm1, %v7353_v3  ;;  %10069 = vpow2.f32 %v8104_v18  ;;  %v7977_v53 = vmul.f32 -1.442695, %v3803_v24  ;;  %v19957_v27 = vsub.f32 1.0, %v19956_v11  ;;  %v19958_v39 = vld [vmem:[#allocation272_spill] sm:$0xff]  ;;  %v17084_v54 = vpop.eup %10053  ;;  %v19959_v60 = vld [vmem:[#allocation355_spill] sm:$0xff] }
 0x411   :  { %10071 = vtanh.f32 %v5696_v45  ;;  %v3651_v25 = vadd.f32 %v16872_v19, %v19958_v39  ;;  %v4313_v50 = vadd.f32 1.0, %v10050_v1  ;;  %v5694_v17 = vadd.f32 %v5566_v8, %v19959_v60  ;;  %v19960_v3 = vld [vmem:[#allocation46_spill] sm:$0xff]  ;;  %v17091_v24 = vpop.f32.mrb[244].mxu0  ;;  %v19965_v1 = vld [vmem:[#allocation301_spill] sm:$0xff]  ;;  %v17100_v11 = vpop.f32.mrb[244].mxu1  ;;  %v19997_v46 = vld [vmem:[#allocation275_spill] sm:$0xff] }
 0x412   :  { %v6332_v32 = vadd.f32 %v19955_v23, %v6076_v58  ;;  %v6074_v9 = vmul.f32 %v10052_v31, %v19957_v27  ;;  %v4699_v18 = vadd.f32 %v19961_v34, %v19960_v3  ;;  %v3649_v22 = vadd.f32 %v16872_v19, %v19962_v40  ;;  %19963 = vst [vmem:[#allocation145_spill] sm:$0xff] %v17091_v24  ;;  %v10056_v23 = vpop.eup %10055  ;;  %v19964_v45 = vld [vmem:[#allocation122_spill] sm:$0xff]  ;;  %v17098_v8 = vpop.f32.mrb[245].mxu0  ;;  %v19968_v40 = vld [vmem:[#allocation36_spill] sm:$0xff] }
 0x413   :  { %10073 = vpow2.f32 %v7977_v53  ;;  %v5571_v15 = vmul.f32 %v19965_v1, %v3651_v25  ;;  %19966 = vst [vmem:[#allocation371_spill] sm:$0xff] %v17098_v8  ;;  %19967 = vst [vmem:[#allocation358_spill] sm:$0xff] %v17100_v11  ;;  %v17102_v27 = vpop.eup %10057  ;;  %v19969_v39 = vsub.f32 1.0, %v19968_v40  ;;  %v17111_v60 = vpop.f32.mrb[246].mxu0  ;;  %v19973_v1 = vld [vmem:[#allocation359_spill] sm:$0xff]  ;;  %v19980_v11 = vld [vmem:[#allocation48_spill] sm:$0xff] }
 0x414   :  { %v7356_v31 = vsel %vm7228_vm12, %v6332_v32, 1.0  ;;  %v6330_v58 = vadd.f32 %v19964_v45, %v6074_v9  ;;  %10075 = vtanh.f32 %v5694_v17  ;;  %v8105_v32 = vmul.f32 -1.442695, %v4699_v18  ;;  %v19970_v9 = vld [vmem:[#allocation261_spill] sm:$0xff]  ;;  %19971 = vst [vmem:[#allocation346_spill] sm:$0xff] %v17111_v60  ;;  %v17113_v25 = vpop.f32.mrb[245].mxu1  ;;  %v10060_v3 = vpop.eup %10059 }
 0x415   :  { %7484 = vst.msk [vmem:[%s18294_s7 + $0x238] sm:$0xff] %vm2155_vm1, %v7356_v31  ;;  %v6079_v38 = vmul.f32 %v10056_v23, %v19969_v39  ;;  %v5569_v53 = vmul.f32 %v19970_v9, %v3649_v22  ;;  %19972 = vst [vmem:[#allocation350_spill] sm:$0xff] %v17113_v25  ;;  %v17115_v34 = vpop.permute.xlu1 %6999  ;;  %10077 = vrcp.f32 %v5208_v0  ;;  %v5699_v40 = vadd.f32 %v5571_v15, %v19973_v1  ;;  %v17121_v23 = vpop.eup %10061  ;;  %v19974_v18 = vld [vmem:[#allocation224_spill] sm:$0xff]  ;;  %v19979_v25 = vld [vmem:[#allocation6_spill] sm:$0xff] }
 0x416   :  { %v7354_v31 = vsel %vm7226_vm13, %v6330_v58, 1.0  ;;  %v17123_v17 = vpop.permute.xlu0 %7002  ;;  %v5209_v39 = vadd.f32 1.0, %v10060_v3  ;;  %10079 = vpow2.f32 %v8105_v32  ;;  %v19975_v9 = vld [vmem:[#allocation360_spill] sm:$0xff]  ;;  %v17131_v45 = vpop.f32.mrb[247].mxu0  ;;  %vm7232_vm0 = vcmp.eq.s32.totalorder %v17115_v34, 1  ;;  %v19977_v58 = vld [vmem:[#allocation47_spill] sm:$0xff] }
 0x417   :  { %7482 = vst.msk [vmem:[%s18294_s7 + $0x228] sm:$0xff] %vm2155_vm1, %v7354_v31  ;;  %v6335_v22 = vadd.f32 %v19974_v18, %v6079_v38  ;;  %v5697_v0 = vadd.f32 %v5569_v53, %v19975_v9  ;;  %19976 = vst [vmem:[#allocation19_spill] sm:$0xff] %v17131_v45  ;;  %v10064_v16 = vpop.eup %10063  ;;  %10081 = vtanh.f32 %v5699_v40  ;;  %v19978_v15 = vld [vmem:[#allocation4_spill] sm:$0xff]  ;;  %v3652_v60 = vadd.f32 %v16872_v19, %v19979_v25  ;;  %v19981_v31 = vld [vmem:[#allocation223_spill] sm:$0xff]  ;;  %v17153_v44 = vpop.f32.mrb[246].mxu1 }
 0x418   :  { %v3804_v1 = vadd.f32 %v19978_v15, %v19977_v58  ;;  %v4700_v8 = vadd.f32 %v19981_v31, %v19980_v11  ;;  %v10066_v38 = vpop.eup %10065  ;;  %10083 = vrcp.f32 %v4313_v50  ;;  %v19982_v53 = vld [vmem:[#allocation203_spill] sm:$0xff]  ;;  %v19984_v9 = vld [vmem:[#allocation250_spill] sm:$0xff]  ;;  %19986 = vst [vmem:[#allocation140_spill] sm:$0xff] %v17153_v44  ;;  %vm7230_vm2 = vcmp.eq.s32.totalorder %v17066_v49, 1  ;;  %v19992_v31 = vld [vmem:[#allocation228_spill] sm:$0xff] }
 0x419   :  { %v7359_v32 = vsel %vm7231_vm14, %v6335_v22, 1.0  ;;  %v19983_v3 = vsub.f32 1.0, %v19982_v53  ;;  %v3650_v40 = vadd.f32 %v16872_v19, %v19984_v9  ;;  %v17146_v45 = vpop.eup %10067  ;;  %v4314_v25 = vadd.f32 1.0, %v10066_v38  ;;  %v19985_v50 = vld [vmem:[#allocation302_spill] sm:$0xff]  ;;  %v19988_v38 = vld [vmem:[#allocation127_spill] sm:$0xff]  ;;  %v17168_v24 = vpop.permute.xlu1 %7005  ;;  %v20009_v34 = vld [vmem:[#allocation365_spill] sm:$0xff] }
 0x41a   :  { %7487 = vst.msk [vmem:[%s18294_s7 + $0x250] sm:$0xff] %vm2155_vm1, %v7359_v32  ;;  %10085 = vtanh.f32 %v5697_v0  ;;  %v7978_v11 = vmul.f32 -1.442695, %v3804_v1  ;;  %v5572_v58 = vmul.f32 %v19985_v50, %v3652_v60  ;;  %v10070_v22 = vpop.eup %10069  ;;  %v17164_v1 = vpop.f32.mrb[247].mxu1  ;;  %v19990_v53 = vld [vmem:[#allocation362_spill] sm:$0xff]  ;;  %v19991_v50 = vld [vmem:[#allocation257_spill] sm:$0xff] }
 0x41b   :  { %v6077_v18 = vmul.f32 %v10064_v16, %v19983_v3  ;;  %v10527_v16 = vld [vmem:[%s18290_s1 + $0x2f8] sm:$0xff]  ;;  %10087 = vrcp.f32 %v5209_v39  ;;  %19989 = vst [vmem:[#allocation389_spill] sm:$0xff] %v17164_v1  ;;  %v10072_v60 = vpop.eup %10071  ;;  %v5210_v32 = vadd.f32 1.0, %v10070_v22  ;;  %v8106_v9 = vmul.f32 -1.442695, %v4700_v8  ;;  %v17170_v48 = vpop.permute.xlu0 %7008  ;;  %v19996_v8 = vld [vmem:[#allocation363_spill] sm:$0xff] }
 0x41c   :  { %v17160_v15 = vmul.f32 %v10527_v16, %v16941_v55  ;;  %v5700_v3 = vadd.f32 %v5572_v58, %v19990_v53  ;;  %v5570_v44 = vmul.f32 %v19991_v50, %v3650_v40  ;;  %v19993_v39 = vsub.f32 1.0, %v19992_v31  ;;  %v19998_v31 = vld [vmem:[#allocation51_spill] sm:$0xff]  ;;  %v10528_v53 = vld [vmem:[%s18290_s1 + $0x300] sm:$0xff] }
 0x41d   :  { %v6333_v0 = vadd.f32 %v19988_v38, %v6077_v18  ;;  %10089 = vpow2.f32 %v7978_v11  ;;  %v19994_v18 = vld [vmem:[#allocation49_spill] sm:$0xff]  ;;  %v19995_v38 = vld [vmem:[#allocation316_spill] sm:$0xff]  ;;  %v10074_v22 = vpop.eup %10073  ;;  %vm7235_vm3 = vcmp.eq.s32.totalorder %v17170_v48, 1  ;;  %v3655_v58 = vadd.f32 %v16872_v19, %v19997_v46 }
 0x41e   :  { %19987 = vst [vmem:[#allocation215_spill] sm:$0xff] %v17160_v15  ;;  %v6080_v15 = vmul.f32 %v10072_v60, %v19993_v39  ;;  %v3805_v1 = vadd.f32 %v19995_v38, %v19994_v18  ;;  %10091 = vrcp.f32 %v4314_v25  ;;  %v5698_v40 = vadd.f32 %v5570_v44, %v19996_v8  ;;  %v10076_v60 = vpop.eup %10075  ;;  %v20001_v39 = vld [vmem:[#allocation273_spill] sm:$0xff]  ;;  %v20002_v44 = vld [vmem:[#allocation124_spill] sm:$0xff] }
 0x41f   :  { %v7357_v16 = vsel %vm7229_vm15, %v6333_v0, 1.0  ;;  %v19999_v0 = vld [vmem:[#allocation235_spill] sm:$0xff]  ;;  %v17192_v50 = vmul.f32 %v10528_v53, %v17022_v42  ;;  %10093 = vtanh.f32 %v5700_v3  ;;  %vm7233_vm4 = vcmp.eq.s32.totalorder %v17123_v17, 1 }
 0x420   :  { %7485 = vst.msk [vmem:[%s18294_s7 + $0x240] sm:$0xff] %vm2155_vm1, %v7357_v16  ;;  %v4701_v11 = vadd.f32 %v19999_v0, %v19998_v31  ;;  %v6336_v18 = vadd.f32 %v20001_v39, %v6080_v15  ;;  %v7979_v25 = vmul.f32 -1.442695, %v3805_v1  ;;  %v17195_v16 = vpop.eup %10077  ;;  %v20003_v38 = vsub.f32 1.0, %v20002_v44  ;;  %v20004_v31 = vld [vmem:[#allocation259_spill] sm:$0xff]  ;;  %v20006_v1 = vld [vmem:[#allocation52_spill] sm:$0xff] }
 0x421   :  { %20000 = vst [vmem:[#allocation336_spill] sm:$0xff] %v17192_v50  ;;  %v4315_v46 = vadd.f32 1.0, %v10074_v22  ;;  %10095 = vpow2.f32 %v8106_v9  ;;  %v5575_v0 = vmul.f32 %v20004_v31, %v3655_v58  ;;  %v10080_v55 = vpop.eup %10079  ;;  %v20005_v50 = vld [vmem:[#allocation179_spill] sm:$0xff]  ;;  %v3806_v3 = vadd.f32 %v16282_v35, %v20006_v1  ;;  %v17207_v39 = vpop.f32.mrb[248].mxu0  ;;  %v20008_v9 = vld [vmem:[#allocation262_spill] sm:$0xff]  ;;  %v20012_v44 = vld [vmem:[#allocation129_spill] sm:$0xff] }
 0x422   :  { %v6078_v8 = vmul.f32 %v10076_v60, %v20003_v38  ;;  %v7360_v53 = vsel %vm7232_vm0, %v6336_v18, 1.0  ;;  %10097 = vrcp.f32 %v5210_v32  ;;  %v3653_v15 = vadd.f32 %v16872_v19, %v20005_v50  ;;  %20007 = vst [vmem:[#allocation217_spill] sm:$0xff] %v17207_v39  ;;  %v10082_v42 = vpop.eup %10081  ;;  %v17215_v60 = vpop.f32.mrb[249].mxu0  ;;  %v20014_v1 = vld [vmem:[#allocation204_spill] sm:$0xff]  ;;  %v20023_v35 = vld [vmem:[#allocation337_spill] sm:$0xff] }
 0x423   :  { %7488 = vst.msk [vmem:[%s18294_s7 + $0x258] sm:$0xff] %vm2155_vm1, %v7360_v53  ;;  %10099 = vtanh.f32 %v5698_v40  ;;  %v5703_v58 = vadd.f32 %v5575_v0, %v20009_v34  ;;  %v8107_v32 = vmul.f32 -1.442695, %v4701_v11  ;;  %20010 = vst [vmem:[#allocation281_spill] sm:$0xff] %v17215_v60  ;;  %v17217_v50 = vpop.eup %10083  ;;  %v17219_v18 = vpop.permute.xlu1 %7011  ;;  %v20013_v38 = vsub.f32 1.0, %v20012_v44  ;;  %v20024_v60 = vld [vmem:[#allocation279_spill] sm:$0xff] }
 0x424   :  { %v6334_v22 = vadd.f32 %v20008_v9, %v6078_v8  ;;  %20011 = vst [vmem:[#allocation381_spill] sm:$0xff] %v17217_v50  ;;  %10101 = vpow2.f32 %v7979_v25  ;;  %v5573_v53 = vmul.f32 %v20014_v1, %v3653_v15  ;;  %v10086_v39 = vpop.eup %10085  ;;  %v17225_v8 = vpop.permute.xlu0 %7014  ;;  %v5211_v11 = vadd.f32 1.0, %v10080_v55  ;;  %v20017_v15 = vld [vmem:[#allocation218_spill] sm:$0xff]  ;;  %v20022_v1 = vld [vmem:[#allocation9_spill] sm:$0xff] }
 0x425   :  { %v6083_v31 = vmul.f32 %v10082_v42, %v20013_v38  ;;  %10103 = vrcp.f32 %v4315_v46  ;;  %v7980_v0 = vmul.f32 -1.442695, %v3806_v3  ;;  %v17229_v9 = vpop.f32.mrb[250].mxu0  ;;  %v17231_v34 = vpop.eup %10087  ;;  %vm7236_vm5 = vcmp.eq.s32.totalorder %v17219_v18, 1  ;;  %v20016_v42 = vld [vmem:[#allocation267_spill] sm:$0xff]  ;;  %v20051_v18 = vld [vmem:[#allocation313_spill] sm:$0xff] }
 0x426   :  { %v7358_v40 = vsel %vm7230_vm2, %v6334_v22, 1.0  ;;  %20015 = vst [vmem:[#allocation20_spill] sm:$0xff] %v17229_v9  ;;  %v20018_v44 = vsub.f32 1.0, %v20017_v15  ;;  %10105 = vtanh.f32 %v5703_v58  ;;  %v20019_v46 = vld [vmem:[#allocation367_spill] sm:$0xff]  ;;  %v17242_v3 = vpop.f32.mrb[251].mxu0  ;;  %v4702_v9 = vadd.f32 %v20023_v35, %v20022_v1  ;;  %v20028_v35 = vld [vmem:[#allocation176_spill] sm:$0xff] }
 0x427   :  { %7486 = vst.msk [vmem:[%s18294_s7 + $0x248] sm:$0xff] %vm2155_vm1, %v7358_v40  ;;  %v6339_v25 = vadd.f32 %v20016_v42, %v6083_v31  ;;  %v5701_v55 = vadd.f32 %v5573_v53, %v20019_v46  ;;  %20020 = vst [vmem:[#allocation186_spill] sm:$0xff] %v17242_v3  ;;  %10107 = vpow2.f32 %v8107_v32  ;;  %v20021_v22 = vld [vmem:[#allocation7_spill] sm:$0xff]  ;;  %v3654_v40 = vadd.f32 %v16872_v19, %v20024_v60  ;;  %v10090_v50 = vpop.eup %10089  ;;  %v20026_v53 = vld [vmem:[#allocation53_spill] sm:$0xff] }
 0x428   :  { %v6081_v49 = vmul.f32 %v10086_v39, %v20018_v44  ;;  %v3656_v38 = vadd.f32 %v16872_v19, %v20021_v22  ;;  %v20025_v39 = vld [vmem:[#allocation320_spill] sm:$0xff]  ;;  %v20027_v42 = vld [vmem:[#allocation293_spill] sm:$0xff]  ;;  %v17255_v32 = vpop.eup %10091  ;;  %vm7234_vm6 = vcmp.eq.s32.totalorder %v17168_v24, 1  ;;  %v4316_v60 = vadd.f32 1.0, %v10090_v50  ;;  %v10529_v46 = vld [vmem:[%s18290_s1 + $0x308] sm:$0xff] }
 0x429   :  { %v7363_v31 = vsel %vm7235_vm3, %v6339_v25, 1.0  ;;  %10109 = vtanh.f32 %v5701_v55  ;;  %v3807_v15 = vadd.f32 %v20027_v42, %v20026_v53  ;;  %v8108_v25 = vmul.f32 -1.442695, %v4702_v9  ;;  %v10094_v44 = vpop.eup %10093  ;;  %v20030_v1 = vld [vmem:[#allocation271_spill] sm:$0xff]  ;;  %v20031_v9 = vld [vmem:[#allocation266_spill] sm:$0xff]  ;;  %v20033_v53 = vld [vmem:[#allocation368_spill] sm:$0xff] }
 0x42a   :  { %v6337_v58 = vadd.f32 %v20025_v39, %v6081_v49  ;;  %7491 = vst.msk [vmem:[%s18294_s7 + $0x270] sm:$0xff] %vm2155_vm1, %v7363_v31  ;;  %10111 = vpow2.f32 %v7980_v0  ;;  %v5576_v48 = vmul.f32 %v20028_v35, %v3656_v38  ;;  %v17263_v49 = vpop.permute.xlu1 %7017  ;;  %v17269_v55 = vmul.f32 %v10529_v46, %v17084_v54  ;;  %v17274_v31 = vpop.permute.xlu0 %7020 }
 0x42b   :  { %10113 = vrcp.f32 %v5211_v11  ;;  %v5574_v50 = vmul.f32 %v20030_v1, %v3654_v40  ;;  %v10096_v0 = vpop.eup %10095  ;;  %v20032_v38 = vsub.f32 1.0, %v20031_v9  ;;  %v7981_v11 = vmul.f32 -1.442695, %v3807_v15  ;;  %v17283_v35 = vpop.f32.mrb[252].mxu0  ;;  %v20036_v1 = vld [vmem:[#allocation8_spill] sm:$0xff] }
 0x42c   :  { %20029 = vst [vmem:[#allocation147_spill] sm:$0xff] %v17269_v55  ;;  %v7361_v22 = vsel %vm7233_vm4, %v6337_v58, 1.0  ;;  %10115 = vrcp.f32 %v4316_v60  ;;  %v5704_v42 = vadd.f32 %v5576_v48, %v20033_v53  ;;  %20034 = vst [vmem:[#allocation227_spill] sm:$0xff] %v17283_v35  ;;  %v17285_v17 = vpop.eup %10097  ;;  %vm7239_vm7 = vcmp.eq.s32.totalorder %v17274_v31, 1  ;;  %v20035_v58 = vld [vmem:[#allocation372_spill] sm:$0xff]  ;;  %v17291_v60 = vpop.f32.mrb[253].mxu0 }
 0x42d   :  { %7489 = vst.msk [vmem:[%s18294_s7 + $0x260] sm:$0xff] %vm2155_vm1, %v7361_v22  ;;  %v6084_v39 = vmul.f32 %v10094_v44, %v20032_v38  ;;  %v5212_v40 = vadd.f32 1.0, %v10096_v0  ;;  %10117 = vpow2.f32 %v8108_v25  ;;  %v5702_v46 = vadd.f32 %v5574_v50, %v20035_v58  ;;  %20037 = vst [vmem:[#allocation146_spill] sm:$0xff] %v17291_v60  ;;  %v17293_v9 = vpop.f32.mrb[248].mxu1  ;;  %v10100_v44 = vpop.eup %10099  ;;  %v20039_v48 = vld [vmem:[#allocation288_spill] sm:$0xff] }
 0x42e   :  { %v3659_v22 = vadd.f32 %v16872_v19, %v20036_v1  ;;  %20038 = vst [vmem:[#allocation289_spill] sm:$0xff] %v17293_v9  ;;  %10119 = vtanh.f32 %v5704_v42  ;;  %v20040_v38 = vld [vmem:[#allocation56_spill] sm:$0xff]  ;;  %v17300_v25 = vpop.f32.mrb[254].mxu0  ;;  %v17302_v50 = vpop.f32.mrb[249].mxu1  ;;  %vm7237_vm8 = vcmp.eq.s32.totalorder %v17225_v8, 1  ;;  %v20044_v1 = vld [vmem:[#allocation157_spill] sm:$0xff] }
 0x42f   :  { %v6340_v15 = vadd.f32 %v20039_v48, %v6084_v39  ;;  %v4703_v53 = vadd.f32 %v16345_v28, %v20040_v38  ;;  %v20041_v35 = vld [vmem:[#allocation104_spill] sm:$0xff]  ;;  %20042 = vst [vmem:[#allocation219_spill] sm:$0xff] %v17300_v25  ;;  %20043 = vst [vmem:[#allocation93_spill] sm:$0xff] %v17302_v50  ;;  %v10102_v58 = vpop.eup %10101  ;;  %10121 = vrcp.f32 %v5212_v40  ;;  %v20045_v9 = vsub.f32 1.0, %v20044_v1  ;;  %v20046_v42 = vld [vmem:[#allocation57_spill] sm:$0xff]  ;;  %v17310_v28 = vpop.f32.mrb[255].mxu0 }
 0x430   :  { %v3657_v0 = vadd.f32 %v16872_v19, %v20041_v35  ;;  %v5579_v39 = vmul.f32 %v16384_v20, %v3659_v22  ;;  %v20047_v48 = vld [vmem:[#allocation135_spill] sm:$0xff]  ;;  %20048 = vst [vmem:[#allocation393_spill] sm:$0xff] %v17310_v28  ;;  %v17312_v38 = vpop.f32.mrb[250].mxu1  ;;  %v17314_v35 = vpop.eup %10103  ;;  %v4317_v25 = vadd.f32 1.0, %v10102_v58  ;;  %10123 = vtanh.f32 %v5702_v46  ;;  %v10530_v22 = vld [vmem:[%s18290_s1 + $0x310] sm:$0xff]  ;;  %v20053_v1 = vld [vmem:[#allocation241_spill] sm:$0xff] }
 0x431   :  { %v6082_v60 = vmul.f32 %v10100_v44, %v20045_v9  ;;  %v3808_v3 = vadd.f32 %v20047_v48, %v20046_v42  ;;  %20049 = vst [vmem:[#allocation342_spill] sm:$0xff] %v17312_v38  ;;  %v7364_v50 = vsel %vm7236_vm5, %v6340_v15, 1.0  ;;  %v8109_v40 = vmul.f32 -1.442695, %v4703_v53  ;;  %v17318_v55 = vpop.f32.mrb[251].mxu1  ;;  %v10106_v9 = vpop.eup %10105  ;;  %v20054_v48 = vld [vmem:[#allocation265_spill] sm:$0xff] }
 0x432   :  { %20050 = vst [vmem:[#allocation303_spill] sm:$0xff] %v17318_v55  ;;  %v17325_v44 = vmul.f32 %v10530_v22, %v17121_v23  ;;  %7492 = vst.msk [vmem:[%s18294_s7 + $0x278] sm:$0xff] %vm2155_vm1, %v7364_v50  ;;  %10125 = vpow2.f32 %v7981_v11  ;;  %v10108_v15 = vpop.eup %10107  ;;  %v20052_v53 = vsub.f32 1.0, %v16190_v47  ;;  %v5707_v42 = vadd.f32 %v5579_v39, %v20053_v1  ;;  %v17336_v22 = vpop.permute.xlu1 %7023  ;;  %v20066_v8 = vld [vmem:[#allocation251_spill] sm:$0xff] }
 0x433   :  { %v6338_v46 = vadd.f32 %v20051_v18, %v6082_v60  ;;  %10127 = vrcp.f32 %v4317_v25  ;;  %v5577_v20 = vmul.f32 %v20054_v48, %v3657_v0  ;;  %v10110_v38 = vpop.eup %10109  ;;  %v17338_v55 = vpop.permute.xlu0 %7026  ;;  %v5213_v28 = vadd.f32 1.0, %v10108_v15  ;;  %v20055_v0 = vld [vmem:[#allocation133_spill] sm:$0xff]  ;;  %v20059_v15 = vld [vmem:[#allocation58_spill] sm:$0xff] }
 0x434   :  { %v6087_v58 = vmul.f32 %v10106_v9, %v20052_v53  ;;  %10129 = vpow2.f32 %v8109_v40  ;;  %v7982_v11 = vmul.f32 -1.442695, %v3808_v3  ;;  %v10112_v60 = vpop.eup %10111  ;;  %vm7240_vm9 = vcmp.eq.s32.totalorder %v17336_v22, 1  ;;  %v20057_v9 = vld [vmem:[#allocation375_spill] sm:$0xff]  ;;  %v20058_v40 = vld [vmem:[#allocation338_spill] sm:$0xff]  ;;  %v20060_v53 = vld [vmem:[#allocation181_spill] sm:$0xff] }
 0x435   :  { %v7362_v50 = vsel %vm7234_vm6, %v6338_v46, 1.0  ;;  %v20056_v25 = vsub.f32 1.0, %v20055_v0  ;;  %10131 = vtanh.f32 %v5707_v42  ;;  %v5705_v24 = vadd.f32 %v5577_v20, %v20057_v9  ;;  %v17351_v18 = vpop.eup %10113  ;;  %v20062_v20 = vld [vmem:[#allocation284_spill] sm:$0xff]  ;;  %v20063_v0 = vld [vmem:[#allocation59_spill] sm:$0xff] }
 0x436   :  { %7490 = vst.msk [vmem:[%s18294_s7 + $0x268] sm:$0xff] %vm2155_vm1, %v7362_v50  ;;  %v6343_v47 = vadd.f32 %v16445_v59, %v6087_v58  ;;  %10133 = vrcp.f32 %v5213_v28  ;;  %v4318_v3 = vadd.f32 1.0, %v10112_v60  ;;  %v3660_v46 = vadd.f32 %v16872_v19, %v20058_v40  ;;  %v17357_v48 = vpop.eup %10115  ;;  %v20064_v9 = vld [vmem:[#allocation183_spill] sm:$0xff] }
 0x437   :  { %v6085_v39 = vmul.f32 %v10110_v38, %v20056_v25  ;;  %v4704_v1 = vadd.f32 %v20060_v53, %v20059_v15  ;;  %vm7238_vm10 = vcmp.eq.s32.totalorder %v17263_v49, 1  ;;  %v20061_v38 = vld [vmem:[#allocation327_spill] sm:$0xff]  ;;  %10135 = vtanh.f32 %v5705_v24  ;;  %v10118_v42 = vpop.eup %10117  ;;  %v17377_v15 = vpop.permute.xlu1 %7029  ;;  %v10532_v49 = vld [vmem:[%s18290_s1 + $0x320] sm:$0xff] }
 0x438   :  { %v7367_v59 = vsel %vm7239_vm7, %v6343_v47, 1.0  ;;  %v3658_v28 = vadd.f32 %v16872_v19, %v20062_v20  ;;  %10137 = vrcp.f32 %v4318_v3  ;;  %v5580_v50 = vmul.f32 %v16451_v2, %v3660_v46  ;;  %v10120_v47 = vpop.eup %10119  ;;  %v17379_v53 = vpop.permute.xlu0 %7032 }
 0x439   :  { %v6341_v58 = vadd.f32 %v20061_v38, %v6085_v39  ;;  %7495 = vst.msk [vmem:[%s18294_s7 + $0x290] sm:$0xff] %vm2155_vm1, %v7367_v59  ;;  %v8110_v60 = vmul.f32 -1.442695, %v4704_v1  ;;  %v3809_v31 = vadd.f32 %v16407_v37, %v20063_v0  ;;  %v5214_v39 = vadd.f32 1.0, %v10118_v42  ;;  %v17375_v40 = vpop.eup %10121  ;;  %v10531_v59 = vld [vmem:[%s18290_s1 + $0x318] sm:$0xff]  ;;  %v20068_v42 = vld [vmem:[#allocation194_spill] sm:$0xff] }
 0x43a   :  { %10139 = vpow2.f32 %v7982_v11  ;;  %v5578_v24 = vmul.f32 %v20064_v9, %v3658_v28  ;;  %v20065_v37 = vsub.f32 1.0, %v16236_v5  ;;  %v5708_v3 = vadd.f32 %v5580_v50, %v20066_v8  ;;  %v10124_v46 = vpop.eup %10123  ;;  %v20070_v0 = vld [vmem:[#allocation85_spill] sm:$0xff] }
 0x43b   :  { %v7365_v25 = vsel %vm7237_vm8, %v6341_v58, 1.0  ;;  %10141 = vpow2.f32 %v8110_v60  ;;  %v7983_v11 = vmul.f32 -1.442695, %v3809_v31  ;;  %vm7243_vm11 = vcmp.eq.s32.totalorder %v17379_v53, 1  ;;  %v20067_v58 = vld [vmem:[#allocation376_spill] sm:$0xff]  ;;  %v20071_v9 = vld [vmem:[#allocation61_spill] sm:$0xff] }
 0x43c   :  { %7493 = vst.msk [vmem:[%s18294_s7 + $0x280] sm:$0xff] %vm2155_vm1, %v7365_v25  ;;  %v6088_v2 = vmul.f32 %v10120_v47, %v20065_v37  ;;  %v17394_v38 = vmul.f32 %v10531_v59, %v17195_v16  ;;  %10143 = vrcp.f32 %v5214_v39  ;;  %v5706_v5 = vadd.f32 %v5578_v24, %v20067_v58  ;;  %v10126_v20 = vpop.eup %10125  ;;  %v20072_v39 = vld [vmem:[#allocation10_spill] sm:$0xff]  ;;  %v17413_v58 = vpop.f32.mrb[252].mxu1  ;;  %v20087_v1 = vld [vmem:[#allocation65_spill] sm:$0xff] }
 0x43d   :  { %v20069_v50 = vsub.f32 1.0, %v20068_v42  ;;  %10145 = vtanh.f32 %v5708_v3  ;;  %v3663_v31 = vadd.f32 %v16872_v19, %v20070_v0  ;;  %v17402_v47 = vpop.eup %10127  ;;  %vm7241_vm12 = vcmp.eq.s32.totalorder %v17338_v55, 1  ;;  %v20073_v24 = vld [vmem:[#allocation270_spill] sm:$0xff]  ;;  %v20074_v3 = vld [vmem:[#allocation136_spill] sm:$0xff]  ;;  %20075 = vst [vmem:[#allocation149_spill] sm:$0xff] %v17413_v58  ;;  %v17420_v22 = vpop.f32.mrb[253].mxu1 }
 0x43e   :  { %v6344_v28 = vadd.f32 %v16520_v43, %v6088_v2  ;;  %v4319_v25 = vadd.f32 1.0, %v10126_v20  ;;  %10147 = vtanh.f32 %v5706_v5  ;;  %v4705_v37 = vadd.f32 %v20072_v39, %v20071_v9  ;;  %v10130_v43 = vpop.eup %10129  ;;  %v20078_v39 = vld [vmem:[#allocation62_spill] sm:$0xff] }
 0x43f   :  { %v6086_v60 = vmul.f32 %v10124_v46, %v20069_v50  ;;  %v3661_v8 = vadd.f32 %v16872_v19, %v20073_v24  ;;  %10149 = vpow2.f32 %v7983_v11  ;;  %v5583_v59 = vmul.f32 %v16640_v61, %v3663_v31  ;;  %v10132_v42 = vpop.eup %10131  ;;  %v17424_v11 = vpop.permute.xlu1 %7035  ;;  %v20077_v31 = vld [vmem:[#allocation382_spill] sm:$0xff] }
 0x440   :  { %v7368_v2 = vsel %vm7240_vm9, %v6344_v28, 1.0  ;;  %10151 = vrcp.f32 %v4319_v25  ;;  %v5215_v5 = vadd.f32 1.0, %v10130_v43  ;;  %v8111_v20 = vmul.f32 -1.442695, %v4705_v37  ;;  %v17422_v28 = vpop.eup %10133  ;;  %v20079_v25 = vld [vmem:[#allocation184_spill] sm:$0xff]  ;;  %v17433_v37 = vpop.f32.mrb[254].mxu1 }
 0x441   :  { %v6342_v46 = vadd.f32 %v20074_v3, %v6086_v60  ;;  %7496 = vst.msk [vmem:[%s18294_s7 + $0x298] sm:$0xff] %vm2155_vm1, %v7368_v2  ;;  %v5581_v50 = vmul.f32 %v16525_v62, %v3661_v8  ;;  %v20076_v60 = vsub.f32 1.0, %v16426_v57  ;;  %v5711_v9 = vadd.f32 %v5583_v59, %v20077_v31  ;;  %20080 = vst [vmem:[#allocation387_spill] sm:$0xff] %v17433_v37  ;;  %v10136_v62 = vpop.eup %10135  ;;  %v17435_v8 = vpop.permute.xlu0 %7038  ;;  %v20081_v57 = vld [vmem:[#allocation384_spill] sm:$0xff] }
 0x442   :  { %v3810_v24 = vadd.f32 %v20079_v25, %v20078_v39  ;;  %v17442_v2 = vmul.f32 %v10532_v49, %v17231_v34  ;;  %10153 = vrcp.f32 %v5215_v5  ;;  %v17451_v59 = vpop.eup %10137  ;;  %vm7244_vm13 = vcmp.eq.s32.totalorder %v17424_v11, 1  ;;  %v20084_v5 = vld [vmem:[#allocation304_spill] sm:$0xff] }
 0x443   :  { %v7366_v61 = vsel %vm7238_vm10, %v6342_v46, 1.0  ;;  %v6091_v0 = vmul.f32 %v10132_v42, %v20076_v60  ;;  %v5709_v3 = vadd.f32 %v5581_v50, %v20081_v57  ;;  %v17449_v46 = vpop.f32.mrb[255].mxu1  ;;  %v20082_v60 = vld [vmem:[#allocation80_spill] sm:$0xff]  ;;  %10155 = vtanh.f32 %v5711_v9  ;;  %v20086_v57 = vld [vmem:[#allocation298_spill] sm:$0xff]  ;;  %v17493_v55 = vpop.permute.xlu1 %7041 }
 0x444   :  { %7494 = vst.msk [vmem:[%s18294_s7 + $0x288] sm:$0xff] %vm2155_vm1, %v7366_v61  ;;  %v20083_v31 = vsub.f32 1.0, %v20082_v60  ;;  %v7984_v25 = vmul.f32 -1.442695, %v3810_v24  ;;  %v10140_v49 = vpop.eup %10139  ;;  %vm7242_vm14 = vcmp.eq.s32.totalorder %v17377_v15, 1  ;;  %10157 = vpow2.f32 %v8111_v20  ;;  %v20085_v61 = vld [vmem:[#allocation63_spill] sm:$0xff] }
 0x445   :  { %v6347_v42 = vadd.f32 %v16669_v63, %v6091_v0  ;;  %v3664_v50 = vadd.f32 %v16872_v19, %v20084_v5  ;;  %v4706_v43 = vadd.f32 %v20086_v57, %v20085_v61  ;;  %v3662_v37 = vadd.f32 %v16872_v19, %v20087_v1  ;;  %v10142_v58 = vpop.eup %10141  ;;  %v20088_v0 = vld [vmem:[#allocation283_spill] sm:$0xff] }
 0x446   :  { %v6089_v39 = vmul.f32 %v10136_v62, %v20083_v31  ;;  %v4320_v24 = vadd.f32 1.0, %v10140_v49  ;;  %10159 = vtanh.f32 %v5709_v3  ;;  %v17467_v62 = vpop.eup %10143  ;;  %v5216_v20 = vadd.f32 1.0, %v10142_v58  ;;  %v17483_v58 = vpop.permute.xlu0 %7044 }
 0x447   :  { %v7371_v63 = vsel %vm7243_vm11, %v6347_v42, 1.0  ;;  %10161 = vpow2.f32 %v7984_v25  ;;  %v5584_v60 = vmul.f32 %v16704_v52, %v3664_v50  ;;  %v8112_v1 = vmul.f32 -1.442695, %v4706_v43  ;;  %v10146_v31 = vpop.eup %10145  ;;  %v10533_v42 = vld [vmem:[%s18290_s1 + $0x328] sm:$0xff]  ;;  %v20090_v25 = vld [vmem:[#allocation385_spill] sm:$0xff] }
 0x448   :  { %v6345_v9 = vadd.f32 %v20088_v0, %v6089_v39  ;;  %7499 = vst.msk [vmem:[%s18294_s7 + $0x2b0] sm:$0xff] %vm2155_vm1, %v7371_v63  ;;  %v17479_v3 = vmul.f32 %v10533_v42, %v17285_v17  ;;  %10163 = vrcp.f32 %v4320_v24  ;;  %v10148_v49 = vpop.eup %10147  ;;  %v20089_v52 = vsub.f32 1.0, %v16513_v29  ;;  %v20092_v0 = vld [vmem:[#allocation15_spill] sm:$0xff] }
 0x449   :  { %10165 = vrcp.f32 %v5216_v20  ;;  %v5712_v5 = vadd.f32 %v5584_v60, %v20090_v25  ;;  %v5582_v50 = vmul.f32 %v16582_v51, %v3662_v37  ;;  %v10150_v61 = vpop.eup %10149  ;;  %vm7247_vm15 = vcmp.eq.s32.totalorder %v17483_v58, 1  ;;  %v20094_v42 = vld [vmem:[#allocation187_spill] sm:$0xff]  ;;  %v20095_v37 = vld [vmem:[#allocation386_spill] sm:$0xff] }
 0x44a   :  { %v7369_v39 = vsel %vm7241_vm12, %v6345_v9, 1.0  ;;  %v6092_v43 = vmul.f32 %v10146_v31, %v20089_v52  ;;  %v20091_v57 = vsub.f32 1.0, %v16362_v14  ;;  %10167 = vpow2.f32 %v8112_v1  ;;  %v20093_v9 = vld [vmem:[#allocation188_spill] sm:$0xff]  ;;  %v17502_v20 = vpop.eup %10151  ;;  %v20097_v52 = vld [vmem:[#allocation189_spill] sm:$0xff] }
 0x44b   :  { %7497 = vst.msk [vmem:[%s18294_s7 + $0x2a0] sm:$0xff] %vm2155_vm1, %v7369_v39  ;;  %v3811_v24 = vadd.f32 %v20093_v9, %v20092_v0  ;;  %v3667_v29 = vadd.f32 %v16872_v19, %v20094_v42  ;;  %v4321_v51 = vadd.f32 1.0, %v10150_v61  ;;  %10169 = vtanh.f32 %v5712_v5  ;;  %v20099_v5 = vld [vmem:[#allocation67_spill] sm:$0xff] }
 0x44c   :  { %v6090_v63 = vmul.f32 %v10148_v49, %v20091_v57  ;;  %v6348_v60 = vadd.f32 %v16735_v10, %v6092_v43  ;;  %v5710_v31 = vadd.f32 %v5582_v50, %v20095_v37  ;;  %vm7245_vm0 = vcmp.eq.s32.totalorder %v17435_v8, 1  ;;  %v20096_v49 = vld [vmem:[#allocation64_spill] sm:$0xff]  ;;  %v17511_v57 = vpop.eup %10153  ;;  %v20098_v10 = vld [vmem:[#allocation291_spill] sm:$0xff]  ;;  %v20115_v8 = vld [vmem:[#allocation249_spill] sm:$0xff] }
 0x44d   :  { %v7985_v39 = vmul.f32 -1.442695, %v3811_v24  ;;  %v5587_v1 = vmul.f32 %v16857_v12, %v3667_v29  ;;  %v4707_v25 = vadd.f32 %v20097_v52, %v20096_v49  ;;  %10171 = vrcp.f32 %v4321_v51  ;;  %v20100_v50 = vld [vmem:[#allocation11_spill] sm:$0xff]  ;;  %v10156_v9 = vpop.eup %10155  ;;  %v10534_v12 = vld [vmem:[%s18290_s1 + $0x330] sm:$0xff]  ;;  %v20102_v29 = vld [vmem:[#allocation390_spill] sm:$0xff]  ;;  %v7048_v49 = vpop.permute.xlu1 %7047 }
 0x44e   :  { %v6346_v14 = vadd.f32 %v16614_v4, %v6090_v63  ;;  %v7372_v0 = vsel %vm7244_vm13, %v6348_v60, 1.0  ;;  %v3665_v43 = vadd.f32 %v16872_v19, %v20098_v10  ;;  %v3812_v61 = vadd.f32 %v20100_v50, %v20099_v5  ;;  %v10158_v11 = vpop.eup %10157  ;;  %v17539_v52 = vpop.permute.xlu0 %7050  ;;  %v20103_v10 = vld [vmem:[#allocation75_spill] sm:$0xff] }
 0x44f   :  { %v17524_v63 = vmul.f32 %v10534_v12, %v17351_v18  ;;  %7500 = vst.msk [vmem:[%s18294_s7 + $0x2b8] sm:$0xff] %vm2155_vm1, %v7372_v0  ;;  %10173 = vtanh.f32 %v5710_v31  ;;  %v20101_v24 = vsub.f32 1.0, %v16650_v30  ;;  %v5715_v60 = vadd.f32 %v5587_v1, %v20102_v29  ;;  %v17545_v0 = vld [vmem:[%s18293_s6] ss:$0 sm:$0xff]  ;;  %v20107_v12 = vld [vmem:[#allocation348_spill] sm:$0xff] }
 0x450   :  { %v7370_v19 = vsel %vm7242_vm14, %v6346_v14, 1.0  ;;  %10175 = vpow2.f32 %v7985_v39  ;;  %v8113_v51 = vmul.f32 -1.442695, %v4707_v25  ;;  %v10160_v37 = vpop.eup %10159  ;;  %v5217_v15 = vadd.f32 1.0, %v10158_v11  ;;  %v20104_v25 = vld [vmem:[#allocation134_spill] sm:$0xff] }
 0x451   :  { %7498 = vst.msk [vmem:[%s18294_s7 + $0x2a8] sm:$0xff] %vm2155_vm1, %v7370_v19  ;;  %v6095_v42 = vmul.f32 %v10156_v9, %v20101_v24  ;;  %v5585_v31 = vmul.f32 %v16745_v13, %v3665_v43  ;;  %v7986_v14 = vmul.f32 -1.442695, %v3812_v61  ;;  %v3668_v30 = vadd.f32 %v17545_v0, %v20103_v10  ;;  %v10162_v39 = vpop.eup %10161  ;;  %v20106_v9 = vld [vmem:[#allocation68_spill] sm:$0xff] }
 0x452   :  { %vm7248_vm2 = vcmp.eq.s32.totalorder %v7048_v49, 1  ;;  %v20105_v5 = vsub.f32 1.0, %v20104_v25  ;;  %10177 = vtanh.f32 %v5715_v60  ;;  %v4708_v13 = vadd.f32 %v20107_v12, %v20106_v9  ;;  %v17554_v43 = vpop.eup %10163  ;;  %v20108_v19 = vld [vmem:[#allocation392_spill] sm:$0xff]  ;;  %v20111_v25 = vld [vmem:[#allocation137_spill] sm:$0xff]  ;;  %v20126_v49 = vld [vmem:[#allocation95_spill] sm:$0xff] }
 0x453   :  { %v6351_v1 = vadd.f32 %v16891_v6, %v6095_v42  ;;  %10179 = vrcp.f32 %v5217_v15  ;;  %v4322_v61 = vadd.f32 1.0, %v10162_v39  ;;  %v5713_v11 = vadd.f32 %v5585_v31, %v20108_v19  ;;  %v17558_v29 = vpop.eup %10165  ;;  %v20109_v42 = vld [vmem:[#allocation165_spill] sm:$0xff] }
 0x454   :  { %v6093_v50 = vmul.f32 %v10160_v37, %v20105_v5  ;;  %v5588_v24 = vmul.f32 %v16910_v7, %v3668_v30  ;;  %10181 = vpow2.f32 %v8113_v51  ;;  %v10168_v37 = vpop.eup %10167  ;;  %vm7246_vm3 = vcmp.eq.s32.totalorder %v17493_v55, 1  ;;  %v10536_v15 = vld [vmem:[%s18290_s1 + $0x338] sm:$0xff]  ;;  %v20110_v7 = vld [vmem:[#allocation395_spill] sm:$0xff] }
 0x455   :  { %v7375_v6 = vsel %vm7247_vm15, %v6351_v1, 1.0  ;;  %v17569_v31 = vmul.f32 %v10536_v15, %v17375_v40  ;;  %10183 = vrcp.f32 %v4322_v61  ;;  %v8114_v30 = vmul.f32 -1.442695, %v4708_v13  ;;  %v10170_v51 = vpop.eup %10169  ;;  %v20113_v13 = vld [vmem:[#allocation69_spill] sm:$0xff]  ;;  %v20114_v61 = vld [vmem:[#allocation150_spill] sm:$0xff]  ;;  %v20118_v15 = vld [vmem:[#allocation343_spill] sm:$0xff] }
 0x456   :  { %v6349_v60 = vadd.f32 %v20109_v42, %v6093_v50  ;;  %7503 = vst.msk [vmem:[%s18294_s7 + $0x2d0] sm:$0xff] %vm2155_vm1, %v7375_v6  ;;  %v5716_v58 = vadd.f32 %v5588_v24, %v20110_v7  ;;  %v5218_v1 = vadd.f32 1.0, %v10168_v37  ;;  %10185 = vtanh.f32 %v5713_v11  ;;  %v7057_v50 = vpop.permute.xlu0 %7056  ;;  %v17592_v6 = vpop.permute.xlu1 %7053  ;;  %v20116_v42 = vld [vmem:[#allocation354_spill] sm:$0xff]  ;;  %v20117_v37 = vld [vmem:[#allocation71_spill] sm:$0xff] }
 0x457   :  { %v3666_v5 = vadd.f32 %v17545_v0, %v20111_v25  ;;  %v20112_v9 = vsub.f32 1.0, %v16729_v56  ;;  %10187 = vpow2.f32 %v7986_v14  ;;  %v3813_v19 = vadd.f32 %v20114_v61, %v20113_v13  ;;  %v17590_v11 = vpop.eup %10171  ;;  %v20119_v56 = vld [vmem:[#allocation191_spill] sm:$0xff]  ;;  %v20120_v61 = vld [vmem:[#allocation322_spill] sm:$0xff] }
 0x458   :  { %v7373_v39 = vsel %vm7245_vm0, %v6349_v60, 1.0  ;;  %v3671_v24 = vadd.f32 %v17545_v0, %v20115_v8  ;;  %vm7251_vm4 = vcmp.eq.s32.totalorder %v7057_v50, 1  ;;  %10189 = vrcp.f32 %v5218_v1  ;;  %v20122_v1 = vld [vmem:[#allocation396_spill] sm:$0xff]  ;;  %v20136_v50 = vld [vmem:[#allocation353_spill] sm:$0xff] }
 0x459   :  { %7501 = vst.msk [vmem:[%s18294_s7 + $0x2c0] sm:$0xff] %vm2155_vm1, %v7373_v39  ;;  %v6096_v12 = vmul.f32 %v10170_v51, %v20112_v9  ;;  %v5586_v60 = vmul.f32 %v20116_v42, %v3666_v5  ;;  %v4709_v7 = vadd.f32 %v20118_v15, %v20117_v37  ;;  %v3669_v14 = vadd.f32 %v17545_v0, %v20119_v56  ;;  %v10174_v51 = vpop.eup %10173  ;;  %v20123_v56 = vld [vmem:[#allocation399_spill] sm:$0xff] }
 0x45a   :  { %10191 = vtanh.f32 %v5716_v58  ;;  %v7987_v25 = vmul.f32 -1.442695, %v3813_v19  ;;  %v5591_v9 = vmul.f32 %v17102_v27, %v3671_v24  ;;  %v10176_v13 = vpop.eup %10175  ;;  %v20121_v8 = vsub.f32 1.0, %v20120_v61  ;;  %v17617_v24 = vpop.permute.xlu0 %7062 }
 0x45b   :  { %v6352_v39 = vadd.f32 %v16949_v21, %v6096_v12  ;;  %10193 = vpow2.f32 %v8114_v30  ;;  %v5714_v5 = vadd.f32 %v5586_v60, %v20122_v1  ;;  %v8115_v42 = vmul.f32 -1.442695, %v4709_v7  ;;  %v20124_v21 = vld [vmem:[#allocation158_spill] sm:$0xff]  ;;  %v20125_v30 = vld [vmem:[#allocation72_spill] sm:$0xff]  ;;  %v17625_v61 = vpop.permute.xlu1 %7059 }
 0x45c   :  { %v6094_v53 = vmul.f32 %v10174_v51, %v20121_v8  ;;  %v4323_v15 = vadd.f32 1.0, %v10176_v13  ;;  %10195 = vpow2.f32 %v7987_v25  ;;  %v5719_v10 = vadd.f32 %v5591_v9, %v20123_v56  ;;  %v10178_v4 = vpop.eup %10177  ;;  %v20128_v51 = vld [vmem:[#allocation102_spill] sm:$0xff]  ;;  %v20129_v25 = vld [vmem:[#allocation73_spill] sm:$0xff] }
 0x45d   :  { %v7376_v37 = vsel %vm7248_vm2, %v6352_v39, 1.0  ;;  %vm7249_vm5 = vcmp.eq.s32.totalorder %v17539_v52, 1  ;;  %10197 = vtanh.f32 %v5714_v5  ;;  %v5589_v58 = vmul.f32 %v16992_v26, %v3669_v14  ;;  %v17615_v19 = vpop.eup %10179  ;;  %v20130_v9 = vld [vmem:[#allocation138_spill] sm:$0xff] }
 0x45e   :  { %7504 = vst.msk [vmem:[%s18294_s7 + $0x2d8] sm:$0xff] %vm2155_vm1, %v7376_v37  ;;  %v6350_v27 = vadd.f32 %v20124_v21, %v6094_v53  ;;  %v3814_v12 = vadd.f32 %v20126_v49, %v20125_v30  ;;  %10199 = vrcp.f32 %v4323_v15  ;;  %v20127_v60 = vsub.f32 1.0, %v16876_v36  ;;  %v10182_v13 = vpop.eup %10181  ;;  %v10537_v14 = vld [vmem:[%s18290_s1 + $0x340] sm:$0xff]  ;;  %v20131_v37 = vld [vmem:[#allocation351_spill] sm:$0xff] }
 0x45f   :  { %v3672_v39 = vadd.f32 %v17545_v0, %v20128_v51  ;;  %v4710_v53 = vadd.f32 %v20130_v9, %v20129_v25  ;;  %v5981_v26 = vsub.f32 1.0, %v17422_v28  ;;  %v17632_v8 = vmul.f32 %v10537_v14, %v17422_v28  ;;  %v10538_v14 = vld [vmem:[%s18290_s1 + $0x348] sm:$0xff] }
 0x460   :  { %v6099_v7 = vmul.f32 %v10178_v4, %v20127_v60  ;;  %v7374_v36 = vsel %vm7246_vm3, %v6350_v27, 1.0  ;;  %10201 = vtanh.f32 %v5719_v10  ;;  %v17636_v4 = vpop.eup %10183  ;;  %vm7252_vm6 = vcmp.eq.s32.totalorder %v17625_v61, 1  ;;  %v20132_v27 = vld [vmem:[#allocation349_spill] sm:$0xff] }
 0x461   :  { %7502 = vst.msk [vmem:[%s18294_s7 + $0x2c8] sm:$0xff] %vm2155_vm1, %v7374_v36  ;;  %v5219_v5 = vadd.f32 1.0, %v10182_v13  ;;  %10203 = vpow2.f32 %v8115_v42  ;;  %v5717_v15 = vadd.f32 %v5589_v58, %v20131_v37  ;;  %v10186_v56 = vpop.eup %10185  ;;  %v7988_v21 = vmul.f32 -1.442695, %v3814_v12  ;;  %v20137_v12 = vld [vmem:[#allocation21_spill] sm:$0xff] }
 0x462   :  { %v6355_v1 = vadd.f32 %v17064_v33, %v6099_v7  ;;  %v5592_v55 = vmul.f32 %v17146_v45, %v3672_v39  ;;  %v8116_v10 = vmul.f32 -1.442695, %v4710_v53  ;;  %v3670_v30 = vadd.f32 %v17545_v0, %v20132_v27  ;;  %v10188_v49 = vpop.eup %10187  ;;  %v20134_v33 = vld [vmem:[#allocation74_spill] sm:$0xff]  ;;  %v7069_v53 = vpop.permute.xlu0 %7068 }
 0x463   :  { %10205 = vrcp.f32 %v5219_v5  ;;  %v20133_v51 = vsub.f32 1.0, %v16781_v41  ;;  %v20135_v7 = vld [vmem:[#allocation90_spill] sm:$0xff]  ;;  %v17653_v9 = vpop.eup %10189  ;;  %vm7250_vm7 = vcmp.eq.s32.totalorder %v17592_v6, 1  ;;  %v4324_v45 = vadd.f32 1.0, %v10188_v49 }
 0x464   :  { %v7379_v60 = vsel %vm7251_vm4, %v6355_v1, 1.0  ;;  %v3815_v42 = vadd.f32 %v20135_v7, %v20134_v33  ;;  %10207 = vtanh.f32 %v5717_v15  ;;  %v5720_v58 = vadd.f32 %v5592_v55, %v20136_v50  ;;  %v10192_v41 = vpop.eup %10191  ;;  %v20138_v1 = vld [vmem:[#allocation144_spill] sm:$0xff]  ;;  %v17670_v15 = vpop.permute.xlu1 %7065  ;;  %v20142_v50 = vld [vmem:[#allocation197_spill] sm:$0xff] }
 0x465   :  { %v6097_v25 = vmul.f32 %v10186_v56, %v20133_v51  ;;  %7507 = vst.msk [vmem:[%s18294_s7 + $0x2f0] sm:$0xff] %vm2155_vm1, %v7379_v60  ;;  %v5590_v39 = vmul.f32 %v20137_v12, %v3670_v30  ;;  %v5982_v13 = vsub.f32 1.0, %v17467_v62  ;;  %v17667_v36 = vmul.f32 %v10538_v14, %v17467_v62  ;;  %v10194_v37 = vpop.eup %10193  ;;  %v20139_v56 = vld [vmem:[#allocation24_spill] sm:$0xff]  ;;  %v20141_v30 = vld [vmem:[#allocation403_spill] sm:$0xff]  ;;  %v10545_v62 = vld [vmem:[%s18290_s1 + $0x380] sm:$0xff] }
 0x466   :  { %10209 = vpow2.f32 %v7988_v21  ;;  %vm7255_vm8 = vcmp.eq.s32.totalorder %v7069_v53, 1  ;;  %v20140_v55 = vsub.f32 1.0, %v20139_v56  ;;  %v7989_v60 = vmul.f32 -1.442695, %v3815_v42  ;;  %v10196_v51 = vpop.eup %10195  ;;  %v20144_v42 = vld [vmem:[#allocation76_spill] sm:$0xff]  ;;  %v20148_v56 = vld [vmem:[#allocation13_spill] sm:$0xff] }
 0x467   :  { %v6353_v5 = vadd.f32 %v20138_v1, %v6097_v25  ;;  %10211 = vrcp.f32 %v4324_v45  ;;  %v5718_v49 = vadd.f32 %v5590_v39, %v20141_v30  ;;  %v5220_v7 = vadd.f32 1.0, %v10194_v37  ;;  %v10198_v25 = vpop.eup %10197  ;;  %v20143_v45 = vld [vmem:[#allocation215_spill] sm:$0xff]  ;;  %v20145_v39 = vld [vmem:[#allocation312_spill] sm:$0xff]  ;;  %v20161_v53 = vld [vmem:[#allocation14_spill] sm:$0xff] }
 0x468   :  { %v6100_v27 = vmul.f32 %v10192_v41, %v20140_v55  ;;  %10213 = vtanh.f32 %v5720_v58  ;;  %v3675_v21 = vadd.f32 %v17545_v0, %v20142_v50  ;;  %v4325_v41 = vadd.f32 1.0, %v10196_v51  ;;  %v17686_v52 = vpop.eup %10199  ;;  %v20146_v58 = vld [vmem:[#allocation364_spill] sm:$0xff]  ;;  %v20149_v51 = vld [vmem:[#allocation77_spill] sm:$0xff] }
 0x469   :  { %v7377_v33 = vsel %vm7249_vm5, %v6353_v5, 1.0  ;;  %10215 = vpow2.f32 %v8116_v10  ;;  %v4711_v14 = vadd.f32 %v20145_v39, %v20144_v42  ;;  %v20147_v1 = vsub.f32 1.0, %v20146_v58  ;;  %v20153_v42 = vld [vmem:[#allocation404_spill] sm:$0xff] }
 0x46a   :  { %7505 = vst.msk [vmem:[%s18294_s7 + $0x2e0] sm:$0xff] %vm2155_vm1, %v7377_v33  ;;  %v6356_v12 = vadd.f32 %v20143_v45, %v6100_v27  ;;  %10217 = vrcp.f32 %v5220_v7  ;;  %v5595_v37 = vmul.f32 %v17314_v35, %v3675_v21  ;;  %v3673_v55 = vadd.f32 %v17545_v0, %v20148_v56  ;;  %v10202_v30 = vpop.eup %10201  ;;  %v20150_v33 = vld [vmem:[#allocation294_spill] sm:$0xff] }
 0x46b   :  { %v6098_v5 = vmul.f32 %v10198_v25, %v20147_v1  ;;  %vm7253_vm9 = vcmp.eq.s32.totalorder %v17617_v24, 1  ;;  %10219 = vrcp.f32 %v4325_v41  ;;  %v8117_v27 = vmul.f32 -1.442695, %v4711_v14  ;;  %v10204_v7 = vpop.eup %10203  ;;  %v20151_v35 = vld [vmem:[#allocation174_spill] sm:$0xff]  ;;  %v17708_v41 = vpop.permute.xlu0 %7074  ;;  %v20154_v14 = vld [vmem:[#allocation381_spill] sm:$0xff] }
 0x46c   :  { %v7380_v10 = vsel %vm7252_vm6, %v6356_v12, 1.0  ;;  %v3816_v50 = vadd.f32 %v20150_v33, %v20149_v51  ;;  %v20152_v25 = vsub.f32 1.0, %v17121_v23  ;;  %10221 = vtanh.f32 %v5718_v49  ;;  %v17706_v12 = vpop.permute.xlu1 %7071 }
 0x46d   :  { %7508 = vst.msk [vmem:[%s18294_s7 + $0x2f8] sm:$0xff] %vm2155_vm1, %v7380_v10  ;;  %v6354_v21 = vadd.f32 %v20151_v35, %v6098_v5  ;;  %v5723_v61 = vadd.f32 %v5595_v37, %v20153_v42  ;;  %v5221_v39 = vadd.f32 1.0, %v10204_v7  ;;  %10223 = vpow2.f32 %v7989_v60  ;;  %v17711_v56 = vpop.eup %10205  ;;  %v20155_v5 = vld [vmem:[#allocation347_spill] sm:$0xff]  ;;  %v10539_v60 = vld [vmem:[%s18290_s1 + $0x350] sm:$0xff]  ;;  %v20159_v42 = vld [vmem:[#allocation78_spill] sm:$0xff] }
 0x46e   :  { %v6103_v45 = vmul.f32 %v10202_v30, %v20152_v25  ;;  %v5593_v58 = vmul.f32 %v20154_v14, %v3673_v55  ;;  %v7990_v1 = vmul.f32 -1.442695, %v3816_v50  ;;  %vm7256_vm10 = vcmp.eq.s32.totalorder %v17706_v12, 1  ;;  %v10208_v30 = vpop.eup %10207  ;;  %v20157_v50 = vld [vmem:[#allocation330_spill] sm:$0xff] }
 0x46f   :  { %v7378_v23 = vsel %vm7250_vm7, %v6354_v21, 1.0  ;;  %10225 = vtanh.f32 %v5723_v61  ;;  %v3676_v37 = vadd.f32 %v17545_v0, %v20155_v5  ;;  %v5983_v10 = vsub.f32 1.0, %v17511_v57  ;;  %v20160_v61 = vld [vmem:[#allocation199_spill] sm:$0xff] }
 0x470   :  { %v6359_v49 = vadd.f32 %v17325_v44, %v6103_v45  ;;  %v17724_v55 = vmul.f32 %v10539_v60, %v17511_v57  ;;  %7506 = vst.msk [vmem:[%s18294_s7 + $0x2e8] sm:$0xff] %vm2155_vm1, %v7378_v23  ;;  %10227 = vrcp.f32 %v5221_v39  ;;  %v20156_v44 = vld [vmem:[#allocation408_spill] sm:$0xff]  ;;  %v10210_v51 = vpop.eup %10209  ;;  %v20158_v7 = vsub.f32 1.0, %v20157_v50  ;;  %v20163_v23 = vld [vmem:[#allocation409_spill] sm:$0xff]  ;;  %v20164_v5 = vld [vmem:[#allocation79_spill] sm:$0xff] }
 0x471   :  { %v5721_v6 = vadd.f32 %v5593_v58, %v20156_v44  ;;  %10229 = vpow2.f32 %v8117_v27  ;;  %v5596_v21 = vmul.f32 %v17357_v48, %v3676_v37  ;;  %v17735_v25 = vpop.eup %10211  ;;  %v4326_v45 = vadd.f32 1.0, %v10210_v51  ;;  %v20162_v27 = vld [vmem:[#allocation336_spill] sm:$0xff]  ;;  %v20165_v37 = vld [vmem:[#allocation141_spill] sm:$0xff]  ;;  %v17750_v44 = vpop.permute.xlu1 %7077 }
 0x472   :  { %v7383_v33 = vsel %vm7255_vm8, %v6359_v49, 1.0  ;;  %v6101_v35 = vmul.f32 %v10208_v30, %v20158_v7  ;;  %v4712_v39 = vadd.f32 %v20160_v61, %v20159_v42  ;;  %v3674_v14 = vadd.f32 %v17545_v0, %v20161_v53  ;;  %v10214_v58 = vpop.eup %10213  ;;  %v20197_v57 = vld [vmem:[#allocation424_spill] sm:$0xff] }
 0x473   :  { %7511 = vst.msk [vmem:[%s18294_s7 + $0x310] sm:$0xff] %vm2155_vm1, %v7383_v33  ;;  %10231 = vtanh.f32 %v5721_v6  ;;  %vm7254_vm11 = vcmp.eq.s32.totalorder %v17670_v15, 1  ;;  %v5724_v49 = vadd.f32 %v5596_v21, %v20163_v23  ;;  %v3817_v30 = vadd.f32 %v20165_v37, %v20164_v5  ;;  %v10216_v60 = vpop.eup %10215  ;;  %v17752_v6 = vpop.permute.xlu0 %7080  ;;  %v20169_v23 = vld [vmem:[#allocation81_spill] sm:$0xff] }
 0x474   :  { %v6357_v48 = vadd.f32 %v20162_v27, %v6101_v35  ;;  %10233 = vpow2.f32 %v7990_v1  ;;  %v20166_v51 = vsub.f32 1.0, %v17195_v16  ;;  %v8118_v50 = vmul.f32 -1.442695, %v4712_v39  ;;  %v17757_v42 = vpop.eup %10217  ;;  %v10540_v16 = vld [vmem:[%s18290_s1 + $0x358] sm:$0xff]  ;;  %v20168_v27 = vld [vmem:[#allocation192_spill] sm:$0xff] }
 0x475   :  { %10235 = vrcp.f32 %v4326_v45  ;;  %v5594_v7 = vmul.f32 %v17255_v32, %v3674_v14  ;;  %vm7259_vm12 = vcmp.eq.s32.totalorder %v17752_v6, 1  ;;  %v5984_v1 = vsub.f32 1.0, %v17558_v29  ;;  %v17763_v61 = vpop.eup %10219  ;;  %v20167_v14 = vld [vmem:[#allocation410_spill] sm:$0xff] }
 0x476   :  { %v6104_v33 = vmul.f32 %v10214_v58, %v20166_v51  ;;  %v7381_v35 = vsel %vm7253_vm9, %v6357_v48, 1.0  ;;  %10237 = vtanh.f32 %v5724_v49  ;;  %v7991_v21 = vmul.f32 -1.442695, %v3817_v30  ;;  %v10222_v39 = vpop.eup %10221  ;;  %v20170_v49 = vld [vmem:[#allocation356_spill] sm:$0xff]  ;;  %v20183_v6 = vld [vmem:[#allocation142_spill] sm:$0xff] }
 0x477   :  { %v17769_v45 = vmul.f32 %v10540_v16, %v17558_v29  ;;  %v5985_v32 = vsub.f32 1.0, %v17615_v19  ;;  %7509 = vst.msk [vmem:[%s18294_s7 + $0x300] sm:$0xff] %vm2155_vm1, %v7381_v35  ;;  %10239 = vpow2.f32 %v8118_v50  ;;  %v5222_v53 = vadd.f32 1.0, %v10216_v60  ;;  %v10224_v37 = vpop.eup %10223 }
 0x478   :  { %v6360_v24 = vadd.f32 %v17394_v38, %v6104_v33  ;;  %v5722_v58 = vadd.f32 %v5594_v7, %v20167_v14  ;;  %v3679_v48 = vadd.f32 %v17545_v0, %v20168_v27  ;;  %v4713_v5 = vadd.f32 %v20170_v49, %v20169_v23  ;;  %v20172_v33 = vld [vmem:[#allocation180_spill] sm:$0xff]  ;;  %v20175_v23 = vld [vmem:[#allocation82_spill] sm:$0xff] }
 0x479   :  { %vm7257_vm13 = vcmp.eq.s32.totalorder %v17708_v41, 1  ;;  %v20171_v51 = vsub.f32 1.0, %v17084_v54  ;;  %10241 = vpow2.f32 %v7991_v21  ;;  %v3677_v60 = vadd.f32 %v17545_v0, %v20172_v33  ;;  %v10226_v50 = vpop.eup %10225  ;;  %v20173_v54 = vld [vmem:[#allocation147_spill] sm:$0xff]  ;;  %v20176_v49 = vld [vmem:[#allocation300_spill] sm:$0xff] }
 0x47a   :  { %v7384_v30 = vsel %vm7256_vm10, %v6360_v24, 1.0  ;;  %v4327_v7 = vadd.f32 1.0, %v10224_v37  ;;  %10243 = vtanh.f32 %v5722_v58  ;;  %v5599_v35 = vmul.f32 %v17502_v20, %v3679_v48  ;;  %v17794_v12 = vpop.eup %10227  ;;  %v7084_v24 = vpop.permute.xlu1 %7083  ;;  %v10541_v20 = vld [vmem:[%s18290_s1 + $0x360] sm:$0xff] }
 0x47b   :  { %v6102_v38 = vmul.f32 %v10222_v39, %v20171_v51  ;;  %7512 = vst.msk [vmem:[%s18294_s7 + $0x318] sm:$0xff] %vm2155_vm1, %v7384_v30  ;;  %v8119_v16 = vmul.f32 -1.442695, %v4713_v5  ;;  %v20174_v21 = vsub.f32 1.0, %v17351_v18  ;;  %v5597_v27 = vmul.f32 %v17402_v47, %v3677_v60  ;;  %v10230_v33 = vpop.eup %10229  ;;  %v20177_v5 = vld [vmem:[#allocation411_spill] sm:$0xff]  ;;  %v17810_v30 = vpop.permute.xlu0 %7086 }
 0x47c   :  { %v3818_v51 = vadd.f32 %v20176_v49, %v20175_v23  ;;  %vm7260_vm14 = vcmp.eq.s32.totalorder %v7084_v24, 1  ;;  %v17806_v58 = vmul.f32 %v10541_v20, %v17615_v19  ;;  %v5986_v48 = vsub.f32 1.0, %v17653_v9 }
 0x47d   :  { %v6358_v39 = vadd.f32 %v20173_v54, %v6102_v38  ;;  %v6107_v14 = vmul.f32 %v10226_v50, %v20174_v21  ;;  %10245 = vrcp.f32 %v5222_v53  ;;  %v5727_v18 = vadd.f32 %v5599_v35, %v20177_v5  ;;  %v10232_v37 = vpop.eup %10231  ;;  %v20179_v35 = vld [vmem:[#allocation416_spill] sm:$0xff] }
 0x47e   :  { %v5223_v60 = vadd.f32 1.0, %v10230_v33  ;;  %10247 = vpow2.f32 %v8119_v16  ;;  %v10234_v50 = vpop.eup %10233  ;;  %v20178_v53 = vsub.f32 1.0, %v17231_v34  ;;  %v5725_v21 = vadd.f32 %v5597_v27, %v20179_v35  ;;  %v20180_v16 = vld [vmem:[#allocation200_spill] sm:$0xff]  ;;  %v20181_v27 = vld [vmem:[#allocation83_spill] sm:$0xff] }
 0x47f   :  { %v7382_v47 = vsel %vm7254_vm11, %v6358_v39, 1.0  ;;  %v6363_v38 = vadd.f32 %v17524_v63, %v6107_v14  ;;  %10249 = vtanh.f32 %v5727_v18  ;;  %v7992_v23 = vmul.f32 -1.442695, %v3818_v51  ;;  %v17822_v49 = vpop.eup %10235 }
 0x480   :  { %7510 = vst.msk [vmem:[%s18294_s7 + $0x308] sm:$0xff] %vm2155_vm1, %v7382_v47  ;;  %v6105_v54 = vmul.f32 %v10232_v37, %v20178_v53  ;;  %10251 = vrcp.f32 %v4327_v7  ;;  %v4328_v15 = vadd.f32 1.0, %v10234_v50  ;;  %v3680_v39 = vadd.f32 %v17545_v0, %v20180_v16  ;;  %v10238_v14 = vpop.eup %10237  ;;  %v20182_v7 = vld [vmem:[#allocation202_spill] sm:$0xff]  ;;  %v20185_v47 = vld [vmem:[#allocation84_spill] sm:$0xff] }
 0x481   :  { %v7387_v63 = vsel %vm7259_vm12, %v6363_v38, 1.0  ;;  %vm7258_vm15 = vcmp.eq.s32.totalorder %v17750_v44, 1  ;;  %10253 = vtanh.f32 %v5725_v21  ;;  %v4714_v51 = vadd.f32 %v20182_v7, %v20181_v27  ;;  %v10240_v20 = vpop.eup %10239  ;;  %v20186_v38 = vld [vmem:[#allocation344_spill] sm:$0xff]  ;;  %v20187_v21 = vld [vmem:[#allocation419_spill] sm:$0xff] }
 0x482   :  { %7515 = vst.msk [vmem:[%s18294_s7 + $0x330] sm:$0xff] %vm2155_vm1, %v7387_v63  ;;  %v6361_v34 = vadd.f32 %v17442_v2, %v6105_v54  ;;  %v3678_v33 = vadd.f32 %v17545_v0, %v20183_v6  ;;  %10255 = vrcp.f32 %v5223_v60  ;;  %v20184_v5 = vsub.f32 1.0, %v17375_v40  ;;  %v10542_v2 = vld [vmem:[%s18290_s1 + $0x368] sm:$0xff]  ;;  %v7093_v40 = vpop.permute.xlu0 %7092 }
 0x483   :  { %v5600_v37 = vmul.f32 %v17554_v43, %v3680_v39  ;;  %v3819_v50 = vadd.f32 %v20186_v38, %v20185_v47  ;;  %v17847_v53 = vmul.f32 %v10542_v2, %v17653_v9  ;;  %v5224_v35 = vadd.f32 1.0, %v10240_v20  ;;  %v10242_v60 = vpop.eup %10241  ;;  %v20195_v2 = vld [vmem:[#allocation333_spill] sm:$0xff] }
 0x484   :  { %v6108_v18 = vmul.f32 %v10238_v14, %v20184_v5  ;;  %v7385_v54 = vsel %vm7257_vm13, %v6361_v34, 1.0  ;;  %10257 = vpow2.f32 %v7992_v23  ;;  %v8120_v16 = vmul.f32 -1.442695, %v4714_v51  ;;  %v10244_v39 = vpop.eup %10243  ;;  %v17857_v14 = vpop.permute.xlu1 %7089  ;;  %v20191_v51 = vld [vmem:[#allocation86_spill] sm:$0xff]  ;;  %v20193_v5 = vld [vmem:[#allocation207_spill] sm:$0xff] }
 0x485   :  { %7513 = vst.msk [vmem:[%s18294_s7 + $0x320] sm:$0xff] %vm2155_vm1, %v7385_v54  ;;  %10259 = vrcp.f32 %v4328_v15  ;;  %v5728_v63 = vadd.f32 %v5600_v37, %v20187_v21  ;;  %vm7263_vm0 = vcmp.eq.s32.totalorder %v7093_v40, 1  ;;  %v4329_v41 = vadd.f32 1.0, %v10242_v60  ;;  %v20189_v15 = vld [vmem:[#allocation220_spill] sm:$0xff] }
 0x486   :  { %v6364_v43 = vadd.f32 %v17569_v31, %v6108_v18  ;;  %10261 = vrcp.f32 %v5224_v35  ;;  %v5598_v23 = vmul.f32 %v17451_v59, %v3678_v33  ;;  %v7993_v34 = vmul.f32 -1.442695, %v3819_v50  ;;  %v20190_v59 = vld [vmem:[#allocation421_spill] sm:$0xff]  ;;  %v20192_v33 = vld [vmem:[#allocation143_spill] sm:$0xff] }
 0x487   :  { %v20188_v7 = vsub.f32 1.0, %v17285_v17  ;;  %10263 = vtanh.f32 %v5728_v63  ;;  %v3683_v31 = vadd.f32 %v17545_v0, %v20189_v15  ;;  %v17865_v20 = vpop.eup %10245  ;;  %vm7261_vm2 = vcmp.eq.s32.totalorder %v17810_v30, 1  ;;  %v20194_v50 = vld [vmem:[#allocation87_spill] sm:$0xff] }
 0x488   :  { %v7388_v27 = vsel %vm7260_vm14, %v6364_v43, 1.0  ;;  %10265 = vrcp.f32 %v4329_v41  ;;  %v5726_v24 = vadd.f32 %v5598_v23, %v20190_v59  ;;  %v4715_v17 = vadd.f32 %v20192_v33, %v20191_v51  ;;  %v10248_v37 = vpop.eup %10247  ;;  %v17889_v23 = vpop.permute.xlu1 %7095  ;;  %v20199_v33 = vld [vmem:[#allocation88_spill] sm:$0xff] }
 0x489   :  { %v6106_v6 = vmul.f32 %v10244_v39, %v20188_v7  ;;  %7516 = vst.msk [vmem:[%s18294_s7 + $0x338] sm:$0xff] %vm2155_vm1, %v7388_v27  ;;  %v3681_v18 = vadd.f32 %v17545_v0, %v20193_v5  ;;  %10267 = vpow2.f32 %v8120_v16  ;;  %v5603_v38 = vmul.f32 %v17686_v52, %v3683_v31  ;;  %v10250_v35 = vpop.eup %10249  ;;  %v20196_v16 = vld [vmem:[#allocation422_spill] sm:$0xff]  ;;  %v17891_v27 = vpop.permute.xlu0 %7098 }
 0x48a   :  { %v3820_v54 = vadd.f32 %v20195_v2, %v20194_v50  ;;  %v5225_v60 = vadd.f32 1.0, %v10248_v37  ;;  %10269 = vtanh.f32 %v5726_v24  ;;  %v8121_v43 = vmul.f32 -1.442695, %v4715_v17  ;;  %v17882_v63 = vpop.eup %10251  ;;  %v20198_v24 = vld [vmem:[#allocation16_spill] sm:$0xff]  ;;  %v20200_v17 = vld [vmem:[#allocation374_spill] sm:$0xff] }
 0x48b   :  { %v6362_v47 = vadd.f32 %v17479_v3, %v6106_v6  ;;  %v5601_v21 = vmul.f32 %v17590_v11, %v3681_v18  ;;  %v6111_v3 = vmul.f32 %v10250_v35, %v5983_v10  ;;  %10271 = vpow2.f32 %v7993_v34  ;;  %v10254_v41 = vpop.eup %10253  ;;  %v10543_v11 = vld [vmem:[%s18290_s1 + $0x370] sm:$0xff]  ;;  %v20201_v18 = vld [vmem:[#allocation17_spill] sm:$0xff] }
 0x48c   :  { %v5731_v52 = vadd.f32 %v5603_v38, %v20196_v16  ;;  %v5987_v7 = vsub.f32 1.0, %v17711_v56  ;;  %v17898_v44 = vmul.f32 %v10543_v11, %v17711_v56  ;;  %10273 = vrcp.f32 %v5225_v60  ;;  %v17905_v34 = vpop.eup %10255  ;;  %v10544_v35 = vld [vmem:[%s18290_s1 + $0x378] sm:$0xff] }
 0x48d   :  { %v7386_v39 = vsel %vm7258_vm15, %v6362_v47, 1.0  ;;  %v5729_v10 = vadd.f32 %v5601_v21, %v20197_v57  ;;  %vm7264_vm3 = vcmp.eq.s32.totalorder %v17889_v23, 1  ;;  %v6367_v6 = vadd.f32 %v17724_v55, %v6111_v3  ;;  %v20203_v16 = vld [vmem:[#allocation433_spill] sm:$0xff]  ;;  %v20205_v57 = vld [vmem:[#allocation315_spill] sm:$0xff] }
 0x48e   :  { %7514 = vst.msk [vmem:[%s18294_s7 + $0x328] sm:$0xff] %vm2155_vm1, %v7386_v39  ;;  %v6109_v15 = vmul.f32 %v10254_v41, %v5981_v26  ;;  %10275 = vtanh.f32 %v5731_v52  ;;  %v7994_v31 = vmul.f32 -1.442695, %v3820_v54  ;;  %v10258_v59 = vpop.eup %10257  ;;  %v3684_v51 = vadd.f32 %v17545_v0, %v20198_v24  ;;  %v20202_v39 = vld [vmem:[#allocation432_spill] sm:$0xff]  ;;  %v17951_v41 = vpop.permute.xlu1 %7101  ;;  %v20204_v11 = vld [vmem:[#allocation89_spill] sm:$0xff] }
 0x48f   :  { %10277 = vpow2.f32 %v8121_v43  ;;  %v4716_v5 = vadd.f32 %v20200_v17, %v20199_v33  ;;  %v3682_v37 = vadd.f32 %v17545_v0, %v20201_v18  ;;  %v17917_v47 = vpop.eup %10259  ;;  %v7391_v55 = vsel %vm7263_vm0, %v6367_v6, 1.0  ;;  %v20206_v6 = vld [vmem:[#allocation209_spill] sm:$0xff]  ;;  %v20211_v18 = vld [vmem:[#allocation274_spill] sm:$0xff] }
 0x490   :  { %v6365_v28 = vadd.f32 %v17632_v8, %v6109_v15  ;;  %v4330_v26 = vadd.f32 1.0, %v10258_v59  ;;  %10279 = vtanh.f32 %v5729_v10  ;;  %v17921_v38 = vpop.eup %10261  ;;  %vm7262_vm4 = vcmp.eq.s32.totalorder %v17857_v14, 1  ;;  %7519 = vst.msk [vmem:[%s18294_s7 + $0x350] sm:$0xff] %vm2155_vm1, %v7391_v55  ;;  %v20208_v59 = vld [vmem:[#allocation45_spill] sm:$0xff] }
 0x491   :  { %10281 = vpow2.f32 %v7994_v31  ;;  %v5604_v50 = vmul.f32 %v17735_v25, %v3684_v51  ;;  %v8122_v2 = vmul.f32 -1.442695, %v4716_v5  ;;  %v5602_v40 = vmul.f32 %v17636_v4, %v3682_v37  ;;  %v10264_v54 = vpop.eup %10263  ;;  %v17941_v25 = vpop.permute.xlu0 %7104  ;;  %v20207_v31 = vld [vmem:[#allocation91_spill] sm:$0xff]  ;;  %v20210_v5 = vld [vmem:[#allocation92_spill] sm:$0xff] }
 0x492   :  { %v5988_v8 = vsub.f32 1.0, %v17757_v42  ;;  %v17935_v60 = vmul.f32 %v10544_v35, %v17757_v42  ;;  %v7389_v43 = vsel %vm7261_vm2, %v6365_v28, 1.0  ;;  %10283 = vrcp.f32 %v4330_v26  ;;  %v17939_v21 = vpop.eup %10265 }
 0x493   :  { %7517 = vst.msk [vmem:[%s18294_s7 + $0x340] sm:$0xff] %vm2155_vm1, %v7389_v43  ;;  %v6112_v4 = vmul.f32 %v10264_v54, %v5984_v1  ;;  %v5732_v3 = vadd.f32 %v5604_v50, %v20202_v39  ;;  %10285 = vpow2.f32 %v8122_v2  ;;  %v5730_v52 = vadd.f32 %v5602_v40, %v20203_v16  ;;  %v10268_v30 = vpop.eup %10267  ;;  %v20209_v1 = vld [vmem:[#allocation27_spill] sm:$0xff]  ;;  %v20212_v39 = vld [vmem:[#allocation434_spill] sm:$0xff] }
 0x494   :  { %vm7267_vm5 = vcmp.eq.s32.totalorder %v17941_v25, 1  ;;  %v3821_v10 = vadd.f32 %v20205_v57, %v20204_v11  ;;  %v3687_v15 = vadd.f32 %v17545_v0, %v20206_v6  ;;  %v4717_v29 = vadd.f32 %v20208_v59, %v20207_v31  ;;  %v10270_v51 = vpop.eup %10269  ;;  %v20214_v59 = vld [vmem:[#allocation210_spill] sm:$0xff] }
 0x495   :  { %v3685_v24 = vadd.f32 %v17545_v0, %v20209_v1  ;;  %v6368_v33 = vadd.f32 %v17769_v45, %v6112_v4  ;;  %v5226_v17 = vadd.f32 1.0, %v10268_v30  ;;  %10287 = vtanh.f32 %v5732_v3  ;;  %v10272_v55 = vpop.eup %10271  ;;  %v7108_v30 = vpop.permute.xlu1 %7107  ;;  %v20215_v1 = vld [vmem:[#allocation33_spill] sm:$0xff] }
 0x496   :  { %v3822_v37 = vadd.f32 %v20211_v18, %v20210_v5  ;;  %vm7265_vm6 = vcmp.eq.s32.totalorder %v17891_v27, 1  ;;  %v6110_v28 = vmul.f32 %v10270_v51, %v5982_v13  ;;  %10289 = vtanh.f32 %v5730_v52  ;;  %v17969_v2 = vpop.eup %10273  ;;  %v17989_v11 = vpop.permute.xlu0 %7110  ;;  %v20220_v27 = vld [vmem:[#allocation107_spill] sm:$0xff] }
 0x497   :  { %v7995_v26 = vmul.f32 -1.442695, %v3821_v10  ;;  %v5607_v50 = vmul.f32 %v17882_v63, %v3687_v15  ;;  %v7392_v45 = vsel %vm7264_vm3, %v6368_v33, 1.0  ;;  %10291 = vrcp.f32 %v5226_v17 }
 0x498   :  { %v4331_v40 = vadd.f32 1.0, %v10272_v55  ;;  %v8123_v54 = vmul.f32 -1.442695, %v4717_v29  ;;  %v10276_v35 = vpop.eup %10275  ;;  %v5989_v43 = vsub.f32 1.0, %v17794_v12  ;;  %v17978_v13 = vmul.f32 %v10545_v62, %v17794_v12  ;;  %7520 = vst.msk [vmem:[%s18294_s7 + $0x358] sm:$0xff] %vm2155_vm1, %v7392_v45  ;;  %v20221_v62 = vld [vmem:[#allocation96_spill] sm:$0xff] }
 0x499   :  { %v6366_v63 = vadd.f32 %v17667_v36, %v6110_v28  ;;  %10293 = vpow2.f32 %v7995_v26  ;;  %v10278_v23 = vpop.eup %10277  ;;  %v6115_v4 = vmul.f32 %v10276_v35, %v5987_v7  ;;  %v5735_v3 = vadd.f32 %v5607_v50, %v20212_v39  ;;  %v20213_v7 = vld [vmem:[#allocation436_spill] sm:$0xff]  ;;  %v20218_v28 = vld [vmem:[#allocation94_spill] sm:$0xff]  ;;  %v20219_v26 = vld [vmem:[#allocation145_spill] sm:$0xff] }
 0x49a   :  { %10295 = vrcp.f32 %v4331_v40  ;;  %v5605_v16 = vmul.f32 %v17763_v61, %v3685_v24  ;;  %v10280_v52 = vpop.eup %10279  ;;  %v5227_v10 = vadd.f32 1.0, %v10278_v23  ;;  %v7996_v36 = vmul.f32 -1.442695, %v3822_v37  ;;  %v20216_v24 = vld [vmem:[#allocation378_spill] sm:$0xff]  ;;  %v18024_v40 = vpop.permute.xlu0 %7116 }
 0x49b   :  { %v7390_v57 = vsel %vm7262_vm4, %v6366_v63, 1.0  ;;  %10297 = vpow2.f32 %v8123_v54  ;;  %v10282_v6 = vpop.eup %10281  ;;  %vm7268_vm7 = vcmp.eq.s32.totalorder %v7108_v30, 1  ;;  %v6371_v56 = vadd.f32 %v17898_v44, %v6115_v4  ;;  %v20217_v44 = vld [vmem:[#allocation211_spill] sm:$0xff]  ;;  %v18037_v4 = vpop.permute.xlu1 %7113 }
 0x49c   :  { %7518 = vst.msk [vmem:[%s18294_s7 + $0x348] sm:$0xff] %vm2155_vm1, %v7390_v57  ;;  %v6113_v61 = vmul.f32 %v10280_v52, %v5985_v32  ;;  %10299 = vtanh.f32 %v5735_v3  ;;  %v5733_v15 = vadd.f32 %v5605_v16, %v20213_v7  ;;  %v18001_v14 = vpop.eup %10283  ;;  %vm7266_vm8 = vcmp.eq.s32.totalorder %v17951_v41, 1  ;;  %v20222_v63 = vld [vmem:[#allocation371_spill] sm:$0xff]  ;;  %v20223_v3 = vld [vmem:[#allocation440_spill] sm:$0xff] }
 0x49d   :  { %10301 = vrcp.f32 %v5227_v10  ;;  %v4332_v31 = vadd.f32 1.0, %v10282_v6  ;;  %v3688_v29 = vadd.f32 %v17545_v0, %v20214_v59  ;;  %v4718_v51 = vadd.f32 %v20216_v24, %v20215_v1  ;;  %v10286_v33 = vpop.eup %10285  ;;  %v10546_v52 = vld [vmem:[%s18290_s1 + $0x388] sm:$0xff]  ;;  %v20225_v59 = vld [vmem:[#allocation97_spill] sm:$0xff]  ;;  %v10547_v24 = vld [vmem:[%s18290_s1 + $0x390] sm:$0xff] }
 0x49e   :  { %v7395_v19 = vsel %vm7267_vm5, %v6371_v56, 1.0  ;;  %v6369_v32 = vadd.f32 %v17806_v58, %v6113_v61  ;;  %10303 = vtanh.f32 %v5733_v15  ;;  %v3686_v17 = vadd.f32 %v17545_v0, %v20217_v44  ;;  %v20224_v15 = vld [vmem:[#allocation358_spill] sm:$0xff] }
 0x49f   :  { %v5990_v5 = vsub.f32 1.0, %v17865_v20  ;;  %7523 = vst.msk [vmem:[%s18294_s7 + $0x370] sm:$0xff] %vm2155_vm1, %v7395_v19  ;;  %10305 = vrcp.f32 %v4332_v31  ;;  %v5608_v18 = vmul.f32 %v17917_v47, %v3688_v29  ;;  %v8124_v37 = vmul.f32 -1.442695, %v4718_v51  ;;  %v10288_v55 = vpop.eup %10287  ;;  %v20226_v29 = vld [vmem:[#allocation346_spill] sm:$0xff] }
 0x4a0   :  { %v7393_v25 = vsel %vm7265_vm6, %v6369_v32, 1.0  ;;  %10307 = vpow2.f32 %v7996_v36  ;;  %v5606_v58 = vmul.f32 %v17822_v49, %v3686_v17  ;;  %v3823_v50 = vadd.f32 %v20219_v26, %v20218_v28  ;;  %v10290_v45 = vpop.eup %10289  ;;  %v20227_v51 = vld [vmem:[#allocation350_spill] sm:$0xff]  ;;  %v20228_v26 = vld [vmem:[#allocation233_spill] sm:$0xff] }
 0x4a1   :  { %7521 = vst.msk [vmem:[%s18294_s7 + $0x360] sm:$0xff] %vm2155_vm1, %v7393_v25  ;;  %v6116_v47 = vmul.f32 %v10288_v55, %v5988_v8  ;;  %v5228_v54 = vadd.f32 1.0, %v10286_v33  ;;  %v5736_v35 = vadd.f32 %v5608_v18, %v20220_v27  ;;  %v4719_v49 = vadd.f32 %v20222_v63, %v20221_v62  ;;  %v18035_v23 = vpop.eup %10291  ;;  %v7120_v18 = vpop.permute.xlu1 %7119  ;;  %v20231_v62 = vld [vmem:[#allocation19_spill] sm:$0xff] }
 0x4a2   :  { %vm7271_vm9 = vcmp.eq.s32.totalorder %v18024_v40, 1  ;;  %v6114_v39 = vmul.f32 %v10290_v45, %v5986_v48  ;;  %10309 = vpow2.f32 %v8124_v37  ;;  %v5734_v16 = vadd.f32 %v5606_v58, %v20223_v3 }
 0x4a3   :  { %v7997_v42 = vmul.f32 -1.442695, %v3823_v50  ;;  %v10294_v8 = vpop.eup %10293  ;;  %v18047_v57 = vmul.f32 %v10546_v52, %v17865_v20  ;;  %v5991_v10 = vsub.f32 1.0, %v17905_v34  ;;  %v6372_v36 = vadd.f32 %v17935_v60, %v6116_v47  ;;  %v18082_v47 = vpop.permute.xlu0 %7122 }
 0x4a4   :  { %10311 = vtanh.f32 %v5736_v35  ;;  %v10296_v6 = vpop.eup %10295  ;;  %vm7269_vm10 = vcmp.eq.s32.totalorder %v17989_v11, 1  ;;  %v6370_v9 = vadd.f32 %v17847_v53, %v6114_v39  ;;  %v4333_v48 = vadd.f32 1.0, %v10294_v8  ;;  %v20230_v35 = vld [vmem:[#allocation98_spill] sm:$0xff]  ;;  %v20233_v39 = vld [vmem:[#allocation389_spill] sm:$0xff] }
 0x4a5   :  { %10313 = vtanh.f32 %v5734_v16  ;;  %v8125_v56 = vmul.f32 -1.442695, %v4719_v49  ;;  %v10298_v61 = vpop.eup %10297  ;;  %v7396_v7 = vsel %vm7268_vm7, %v6372_v36, 1.0  ;;  %v3691_v31 = vadd.f32 %v17545_v0, %v20224_v15  ;;  %v10548_v8 = vld [vmem:[%s18290_s1 + $0x398] sm:$0xff] }
 0x4a6   :  { %10315 = vpow2.f32 %v7997_v42  ;;  %v3824_v1 = vadd.f32 %v20226_v29, %v20225_v59  ;;  %v10300_v60 = vpop.eup %10299  ;;  %v6247_v53 = vmul.f32 %v10547_v24, %v17905_v34  ;;  %7524 = vst.msk [vmem:[%s18294_s7 + $0x378] sm:$0xff] %vm2155_vm1, %v7396_v7  ;;  %v7394_v30 = vsel %vm7266_vm8, %v6370_v9, 1.0  ;;  %v20237_v29 = vld [vmem:[#allocation221_spill] sm:$0xff] }
 0x4a7   :  { %10317 = vrcp.f32 %v5228_v54  ;;  %v3689_v33 = vadd.f32 %v17545_v0, %v20227_v51  ;;  %v18070_v19 = vpop.eup %10301  ;;  %7522 = vst.msk [vmem:[%s18294_s7 + $0x368] sm:$0xff] %vm2155_vm1, %v7394_v30  ;;  %v6119_v34 = vmul.f32 %v10300_v60, %v5991_v10  ;;  %v5611_v32 = vmul.f32 %v10296_v6, %v3691_v31  ;;  %v20229_v54 = vld [vmem:[#allocation5_spill] sm:$0xff]  ;;  %v20236_v31 = vld [vmem:[#allocation238_spill] sm:$0xff] }
 0x4a8   :  { %10319 = vpow2.f32 %v8125_v56  ;;  %v7998_v44 = vmul.f32 -1.442695, %v3824_v1  ;;  %v10304_v17 = vpop.eup %10303  ;;  %v5992_v37 = vsub.f32 1.0, %v17921_v38  ;;  %v5229_v41 = vadd.f32 1.0, %v10298_v61  ;;  %v20234_v56 = vld [vmem:[#allocation101_spill] sm:$0xff] }
 0x4a9   :  { %10321 = vrcp.f32 %v4333_v48  ;;  %v5609_v55 = vmul.f32 %v17939_v21, %v3689_v33  ;;  %v10306_v25 = vpop.eup %10305  ;;  %vm7272_vm11 = vcmp.eq.s32.totalorder %v7120_v18, 1  ;;  %v6375_v58 = vadd.f32 %v6247_v53, %v6119_v34  ;;  %v20232_v21 = vld [vmem:[#allocation140_spill] sm:$0xff]  ;;  %v20235_v61 = vld [vmem:[#allocation217_spill] sm:$0xff]  ;;  %v7129_v53 = vpop.permute.xlu0 %7128 }
 0x4aa   :  { %v6117_v28 = vmul.f32 %v10304_v17, %v5989_v43  ;;  %v5739_v50 = vadd.f32 %v5611_v32, %v20228_v26  ;;  %10323 = vpow2.f32 %v7998_v44  ;;  %v10308_v45 = vpop.eup %10307  ;;  %vm7270_vm12 = vcmp.eq.s32.totalorder %v18037_v4, 1  ;;  %v20238_v1 = vld [vmem:[#allocation281_spill] sm:$0xff]  ;;  %v20241_v44 = vld [vmem:[#allocation20_spill] sm:$0xff] }
 0x4ab   :  { %v5737_v27 = vadd.f32 %v5609_v55, %v20229_v54  ;;  %v4720_v63 = vadd.f32 %v20231_v62, %v20230_v35  ;;  %v3692_v49 = vadd.f32 %v17545_v0, %v20232_v21  ;;  %v3690_v12 = vadd.f32 %v17545_v0, %v20233_v39  ;;  %v20244_v21 = vld [vmem:[#allocation225_spill] sm:$0xff] }
 0x4ac   :  { %v7399_v43 = vsel %vm7271_vm9, %v6375_v58, 1.0  ;;  %v6373_v3 = vadd.f32 %v17978_v13, %v6117_v28  ;;  %v4334_v16 = vadd.f32 1.0, %v10308_v45  ;;  %10325 = vtanh.f32 %v5739_v50  ;;  %v10310_v42 = vpop.eup %10309  ;;  %v20243_v58 = vld [vmem:[#allocation186_spill] sm:$0xff] }
 0x4ad   :  { %v6248_v52 = vmul.f32 %v10548_v8, %v17921_v38  ;;  %v5993_v10 = vsub.f32 1.0, %v17969_v2  ;;  %7527 = vst.msk [vmem:[%s18294_s7 + $0x390] sm:$0xff] %vm2155_vm1, %v7399_v43  ;;  %10327 = vtanh.f32 %v5737_v27  ;;  %v8126_v0 = vmul.f32 -1.442695, %v4720_v63  ;;  %v10550_v63 = vld [vmem:[%s18290_s1 + $0x3b0] sm:$0xff]  ;;  %v20247_v43 = vld [vmem:[#allocation146_spill] sm:$0xff] }
 0x4ae   :  { %v10312_v40 = vpop.eup %10311  ;;  %10329 = vrcp.f32 %v5229_v41  ;;  %v7397_v13 = vsel %vm7269_vm10, %v6373_v3, 1.0  ;;  %v5230_v36 = vadd.f32 1.0, %v10310_v42  ;;  %v5612_v6 = vmul.f32 %v10306_v25, %v3692_v49  ;;  %v20242_v25 = vld [vmem:[#allocation39_spill] sm:$0xff]  ;;  %v20248_v8 = vld [vmem:[#allocation230_spill] sm:$0xff] }
 0x4af   :  { %v10314_v9 = vpop.eup %10313  ;;  %7525 = vst.msk [vmem:[%s18294_s7 + $0x380] sm:$0xff] %vm2155_vm1, %v7397_v13  ;;  %v6120_v38 = vmul.f32 %v10312_v40, %v5992_v37  ;;  %10331 = vpow2.f32 %v8126_v0  ;;  %v5610_v48 = vmul.f32 %v18001_v14, %v3690_v12  ;;  %v3825_v7 = vadd.f32 %v20235_v61, %v20234_v56  ;;  %v20239_v14 = vld [vmem:[#allocation99_spill] sm:$0xff]  ;;  %v20246_v12 = vld [vmem:[#allocation229_spill] sm:$0xff]  ;;  %v18155_v40 = vld [vmem:[%s18293_s6] ss:$0 sm:$0xff]  ;;  %v7126_v56 = vpop.permute.xlu1 %7125 }
 0x4b0   :  { %v10316_v15 = vpop.eup %10315  ;;  %10333 = vrcp.f32 %v4334_v16  ;;  %v6118_v11 = vmul.f32 %v10314_v9, %v5990_v5  ;;  %v5740_v59 = vadd.f32 %v5612_v6, %v20236_v31  ;;  %v4721_v60 = vadd.f32 %v20238_v1, %v20237_v29  ;;  %v20240_v5 = vld [vmem:[#allocation222_spill] sm:$0xff]  ;;  %v20245_v49 = vld [vmem:[#allocation227_spill] sm:$0xff]  ;;  %v20250_v13 = vld [vmem:[#allocation93_spill] sm:$0xff] }
 0x4b1   :  { %v18117_v24 = vpop.eup %10317  ;;  %v6376_v30 = vadd.f32 %v6248_v52, %v6120_v38  ;;  %10335 = vrcp.f32 %v5230_v36  ;;  %v4335_v51 = vadd.f32 1.0, %v10316_v15  ;;  %v5738_v33 = vadd.f32 %v5610_v48, %v20239_v14  ;;  %v20249_v52 = vld [vmem:[#allocation219_spill] sm:$0xff] }
 0x4b2   :  { %v10320_v34 = vpop.eup %10319  ;;  %vm7275_vm13 = vcmp.eq.s32.totalorder %v7129_v53, 1  ;;  %v6374_v32 = vadd.f32 %v18047_v57, %v6118_v11  ;;  %10337 = vtanh.f32 %v5740_v59  ;;  %v7999_v20 = vmul.f32 -1.442695, %v3825_v7  ;;  %v10549_v57 = vld [vmem:[%s18290_s1 + $0x3a0] sm:$0xff]  ;;  %v20251_v7 = vld [vmem:[#allocation289_spill] sm:$0xff] }
 0x4b3   :  { %v3826_v17 = vadd.f32 %v20241_v44, %v20240_v5  ;;  %v10322_v37 = vpop.eup %10321  ;;  %vm7273_vm14 = vcmp.eq.s32.totalorder %v18082_v47, 1  ;;  %v7400_v41 = vsel %vm7272_vm11, %v6376_v30, 1.0  ;;  %10339 = vrcp.f32 %v4335_v51  ;;  %v20253_v30 = vld [vmem:[#allocation393_spill] sm:$0xff]  ;;  %v20254_v5 = vld [vmem:[#allocation116_spill] sm:$0xff]  ;;  %v20255_v47 = vld [vmem:[#allocation303_spill] sm:$0xff] }
 0x4b4   :  { %v5231_v55 = vadd.f32 1.0, %v10320_v34  ;;  %v4722_v28 = vadd.f32 %v20243_v58, %v20242_v25  ;;  %v10324_v26 = vpop.eup %10323  ;;  %v6249_v50 = vmul.f32 %v10549_v57, %v17969_v2  ;;  %7528 = vst.msk [vmem:[%s18294_s7 + $0x398] sm:$0xff] %vm2155_vm1, %v7400_v41  ;;  %v7398_v18 = vsel %vm7270_vm12, %v6374_v32, 1.0  ;;  %v10552_v53 = vld [vmem:[%s18290_s1 + $0x3b8] sm:$0xff]  ;;  %v10553_v58 = vld [vmem:[%s18290_s1 + $0x3a8] sm:$0xff] }
 0x4b5   :  { %10341 = vtanh.f32 %v5738_v33  ;;  %v8127_v45 = vmul.f32 -1.442695, %v4721_v60  ;;  %v5995_v54 = vsub.f32 1.0, %v18070_v19  ;;  %7526 = vst.msk [vmem:[%s18294_s7 + $0x388] sm:$0xff] %vm2155_vm1, %v7398_v18  ;;  %v4336_v27 = vadd.f32 1.0, %v10324_v26  ;;  %v20252_v60 = vld [vmem:[#allocation231_spill] sm:$0xff]  ;;  %v7132_v18 = vpop.permute.xlu1 %7131 }
 0x4b6   :  { %10343 = vrcp.f32 %v5231_v55  ;;  %v8000_v35 = vmul.f32 -1.442695, %v3826_v17  ;;  %v10326_v62 = vpop.eup %10325  ;;  %v6251_v4 = vmul.f32 %v10550_v63, %v18070_v19  ;;  %v3827_v39 = vadd.f32 %v20245_v49, %v20244_v21 }
 0x4b7   :  { %10345 = vpow2.f32 %v7999_v20  ;;  %v4723_v3 = vadd.f32 %v20247_v43, %v20246_v12  ;;  %v10328_v16 = vpop.eup %10327  ;;  %v6123_v42 = vmul.f32 %v10326_v62, %v5995_v54  ;;  %v3828_v0 = vadd.f32 %v20249_v52, %v20248_v8  ;;  %v20257_v62 = vld [vmem:[#allocation115_spill] sm:$0xff]  ;;  %v20258_v12 = vld [vmem:[#allocation244_spill] sm:$0xff] }
 0x4b8   :  { %10347 = vrcp.f32 %v4336_v27  ;;  %v3693_v19 = vadd.f32 %v18155_v40, %v20250_v13  ;;  %v18159_v36 = vpop.eup %10329  ;;  %v6121_v6 = vmul.f32 %v10328_v16, %v5993_v10  ;;  %v8128_v9 = vmul.f32 -1.442695, %v4722_v28  ;;  %v20259_v16 = vld [vmem:[#allocation173_spill] sm:$0xff] }
 0x4b9   :  { %10349 = vpow2.f32 %v8127_v45  ;;  %v8001_v38 = vmul.f32 -1.442695, %v3827_v39  ;;  %v10332_v48 = vpop.eup %10331  ;;  %v6379_v61 = vadd.f32 %v6251_v4, %v6123_v42  ;;  %v3695_v15 = vadd.f32 %v18155_v40, %v20251_v7  ;;  %v20260_v42 = vld [vmem:[#allocation413_spill] sm:$0xff] }
 0x4ba   :  { %10351 = vpow2.f32 %v8000_v35  ;;  %v5613_v11 = vmul.f32 %v10322_v37, %v3693_v19  ;;  %v10334_v31 = vpop.eup %10333  ;;  %v6377_v59 = vadd.f32 %v6249_v50, %v6121_v6  ;;  %v5232_v29 = vadd.f32 1.0, %v10332_v48 }
 0x4bb   :  { %v8002_v1 = vmul.f32 -1.442695, %v3828_v0  ;;  %v4724_v51 = vadd.f32 %v20253_v30, %v20252_v60  ;;  %v18167_v2 = vpop.eup %10335  ;;  %v5994_v10 = vsub.f32 1.0, %v18035_v23  ;;  %v5996_v14 = vsub.f32 1.0, %v18117_v24 }
 0x4bc   :  { %v7403_v33 = vsel %vm7275_vm13, %v6379_v61, 1.0  ;;  %10353 = vpow2.f32 %v8001_v38  ;;  %v10338_v34 = vpop.eup %10337  ;;  %v7401_v32 = vsel %vm7273_vm14, %v6377_v59, 1.0  ;;  %v8129_v20 = vmul.f32 -1.442695, %v4723_v3 }
 0x4bd   :  { %7531 = vst.msk [vmem:[%s18294_s7 + $0x3b0] sm:$0xff] %vm2155_vm1, %v7403_v33  ;;  %10355 = vpow2.f32 %v8128_v9  ;;  %v5741_v44 = vadd.f32 %v5613_v11, %v20254_v5  ;;  %v10340_v17 = vpop.eup %10339  ;;  %v6252_v37 = vmul.f32 %v10552_v53, %v18117_v24  ;;  %7529 = vst.msk [vmem:[%s18294_s7 + $0x3a0] sm:$0xff] %vm2155_vm1, %v7401_v32  ;;  %v6124_v41 = vmul.f32 %v10338_v34, %v5996_v14  ;;  %v20256_v24 = vld [vmem:[#allocation342_spill] sm:$0xff]  ;;  %v7135_v11 = vpop.permute.xlu0 %7134 }
 0x4be   :  { %10357 = vrcp.f32 %v5232_v29  ;;  %v3694_v55 = vadd.f32 %v18155_v40, %v20255_v47  ;;  %v6250_v28 = vmul.f32 %v10553_v58, %v18035_v23  ;;  %v5615_v26 = vmul.f32 %v10340_v17, %v3695_v15  ;;  %v10554_v29 = vld [vmem:[%s18290_s1 + $0x3c0] sm:$0xff] }
 0x4bf   :  { %v10342_v25 = vpop.eup %10341  ;;  %10359 = vpow2.f32 %v8002_v1  ;;  %v3696_v57 = vadd.f32 %v18155_v40, %v20256_v24  ;;  %v6380_v45 = vadd.f32 %v6252_v37, %v6124_v41  ;;  %vm7276_vm15 = vcmp.eq.s32.totalorder %v7132_v18, 1  ;;  %v20261_v33 = vld [vmem:[#allocation426_spill] sm:$0xff]  ;;  %v10556_v41 = vld [vmem:[%s18290_s1 + $0x3c8] sm:$0xff] }
 0x4c0   :  { %v10344_v50 = vpop.eup %10343  ;;  %v6122_v54 = vmul.f32 %v10342_v25, %v5994_v10  ;;  %10361 = vtanh.f32 %v5741_v44  ;;  %v5614_v27 = vmul.f32 %v10334_v31, %v3694_v55  ;;  %v5743_v63 = vadd.f32 %v5615_v26, %v20257_v62 }
 0x4c1   :  { %v10346_v35 = vpop.eup %10345  ;;  %10363 = vpow2.f32 %v8129_v20  ;;  %v8130_v4 = vmul.f32 -1.442695, %v4724_v51  ;;  %v7404_v49 = vsel %vm7276_vm15, %v6380_v45, 1.0  ;;  %v2096_v8 = vadd.f32 %v20260_v42, %v20259_v16  ;;  %v20263_v45 = vld [vmem:[#allocation425_spill] sm:$0xff] }
 0x4c2   :  { %v10348_v21 = vpop.eup %10347  ;;  %v6378_v23 = vadd.f32 %v6250_v28, %v6122_v54  ;;  %v4337_v39 = vadd.f32 1.0, %v10346_v35  ;;  %v5742_v43 = vadd.f32 %v5614_v27, %v20258_v12  ;;  %vm7274_vm0 = vcmp.eq.s32.totalorder %v7126_v56, 1  ;;  %7532 = vst.msk [vmem:[%s18294_s7 + $0x3b8] sm:$0xff] %vm2155_vm1, %v7404_v49  ;;  %v7141_v28 = vpop.permute.xlu0 %7140  ;;  %v20264_v54 = vld [vmem:[#allocation431_spill] sm:$0xff] }
 0x4c3   :  { %v10350_v3 = vpop.eup %10349  ;;  %10365 = vtanh.f32 %v5743_v63  ;;  %v5616_v52 = vmul.f32 %v10348_v21, %v3696_v57  ;;  %v5997_v7 = vsub.f32 1.0, %v18159_v36  ;;  %v6253_v1 = vmul.f32 %v10554_v29, %v18159_v36  ;;  %v10555_v36 = vld [vmem:[%s18290_s1 + $0x3d0] sm:$0xff]  ;;  %v20262_v57 = vld [vmem:[#allocation149_spill] sm:$0xff]  ;;  %v7138_v35 = vpop.permute.xlu1 %7137 }
 0x4c4   :  { %v10352_v0 = vpop.eup %10351  ;;  %v7402_v13 = vsel %vm7274_vm0, %v6378_v23, 1.0  ;;  %10367 = vrcp.f32 %v4337_v39  ;;  %v5233_v60 = vadd.f32 1.0, %v10350_v3  ;;  %v3697_v51 = vadd.f32 %v18155_v40, %v17420_v22 }
 0x4c5   :  { %7530 = vst.msk [vmem:[%s18294_s7 + $0x3a8] sm:$0xff] %vm2155_vm1, %v7402_v13  ;;  %v4338_v19 = vadd.f32 1.0, %v10352_v0  ;;  %v5744_v6 = vadd.f32 %v5616_v52, %v2096_v8  ;;  %10369 = vtanh.f32 %v5742_v43  ;;  %v5999_v10 = vsub.f32 1.0, %v10344_v50  ;;  %v10557_v8 = vld [vmem:[%s18290_s1 + $0x3d8] sm:$0xff]  ;;  %v20265_v13 = vld [vmem:[#allocation387_spill] sm:$0xff] }
 0x4c6   :  { %v10354_v9 = vpop.eup %10353  ;;  %10371 = vpow2.f32 %v8130_v4  ;;  %v2101_v34 = vadd.f32 %v20261_v33, %v20259_v16  ;;  %vm7277_vm2 = vcmp.eq.s32.totalorder %v7135_v11, 1  ;;  %v5998_v32 = vsub.f32 1.0, %v18167_v2 }
 0x4c7   :  { %v10356_v38 = vpop.eup %10355  ;;  %10373 = vrcp.f32 %v4338_v19  ;;  %v4339_v48 = vadd.f32 1.0, %v10354_v9  ;;  %v6255_v44 = vmul.f32 %v10555_v36, %v10344_v50  ;;  %v3698_v22 = vadd.f32 %v18155_v40, %v17449_v46 }
 0x4c8   :  { %v18207_v56 = vpop.eup %10357  ;;  %v5234_v17 = vadd.f32 1.0, %v10356_v38  ;;  %v6254_v47 = vmul.f32 %v10556_v41, %v18167_v2  ;;  %v3699_v50 = vadd.f32 %v18155_v40, %v20262_v57  ;;  %v2109_v2 = vadd.f32 %v20263_v45, %v20259_v16  ;;  %v20266_v38 = vld [vmem:[#allocation428_spill] sm:$0xff] }
 0x4c9   :  { %v10360_v61 = vpop.eup %10359  ;;  %10375 = vrcp.f32 %v4339_v48  ;;  %v2104_v27 = vadd.f32 %v20264_v54, %v20259_v16  ;;  %vm7279_vm3 = vcmp.eq.s32.totalorder %v7141_v28, 1  ;;  %vm7278_vm4 = vcmp.eq.s32.totalorder %v7138_v35, 1 }
 0x4ca   :  { %v10362_v15 = vpop.eup %10361  ;;  %v4340_v31 = vadd.f32 1.0, %v10360_v61  ;;  %10377 = vtanh.f32 %v5744_v6  ;;  %v6000_v23 = vsub.f32 1.0, %v18207_v56  ;;  %v6256_v52 = vmul.f32 %v10557_v8, %v18207_v56  ;;  %v7144_v61 = vpop.permute.xlu1 %7143 }
 0x4cb   :  { %v10364_v59 = vpop.eup %10363  ;;  %v6125_v30 = vmul.f32 %v10362_v15, %v5997_v7  ;;  %v3700_v19 = vadd.f32 %v18155_v40, %v20265_v13  ;;  %v2112_v48 = vadd.f32 %v20266_v38, %v20259_v16  ;;  %vm7280_vm5 = vcmp.eq.s32.totalorder %v7144_v61, 1 }
 0x4cc   :  { %10379 = vrcp.f32 %v4340_v31  ;;  %v5235_v26 = vadd.f32 1.0, %v10364_v59 }
 0x4cd   :  { %v10366_v14 = vpop.eup %10365  ;;  %v6381_v20 = vadd.f32 %v6253_v1, %v6125_v30  ;;  %10381 = vrcp.f32 %v5233_v60  ;;  %v7147_v1 = vpop.permute.xlu0 %7146  ;;  %v10558_v60 = vld [vmem:[%s18290_s1 + $0x3e0] sm:$0xff] }
 0x4ce   :  { %v10368_v5 = vpop.eup %10367  ;;  %v6127_v53 = vmul.f32 %v10366_v14, %v5999_v10  ;;  %10383 = vrcp.f32 %v5234_v17  ;;  %v7150_v33 = vpop.permute.xlu1 %7149  ;;  %vm7281_vm6 = vcmp.eq.s32.totalorder %v7147_v1, 1 }
 0x4cf   :  { %v10370_v37 = vpop.eup %10369  ;;  %v7405_v55 = vsel %vm7277_vm2, %v6381_v20, 1.0  ;;  %v5617_v25 = vmul.f32 %v10368_v5, %v3697_v51  ;;  %v10559_v20 = vld [vmem:[%s18290_s1 + $0x3e8] sm:$0xff]  ;;  %vm7282_vm7 = vcmp.eq.s32.totalorder %v7150_v33, 1 }
 0x4d0   :  { %v10372_v58 = vpop.eup %10371  ;;  %v6383_v24 = vadd.f32 %v6255_v44, %v6127_v53  ;;  %7533 = vst.msk [vmem:[%s18294_s7 + $0x3c0] sm:$0xff] %vm2155_vm1, %v7405_v55  ;;  %v6126_v46 = vmul.f32 %v10370_v37, %v5998_v32  ;;  %v10560_v37 = vld [vmem:[%s18290_s1 + $0x3f0] sm:$0xff] }
 0x4d1   :  { %v10374_v18 = vpop.eup %10373  ;;  %v5745_v62 = vadd.f32 %v5617_v25, %v2101_v34  ;;  %v5236_v39 = vadd.f32 1.0, %v10372_v58 }
 0x4d2   :  { %v7407_v63 = vsel %vm7279_vm3, %v6383_v24, 1.0  ;;  %v6382_v4 = vadd.f32 %v6254_v47, %v6126_v46  ;;  %v5618_v21 = vmul.f32 %v10374_v18, %v3698_v22  ;;  %v7153_v22 = vpop.permute.xlu0 %7152  ;;  %v7156_v24 = vpop.permute.xlu1 %7155  ;;  %v10561_v46 = vld [vmem:[%s18290_s1 + $0x3f8] sm:$0xff] }
 0x4d3   :  { %v10376_v49 = vpop.eup %10375  ;;  %7535 = vst.msk [vmem:[%s18294_s7 + $0x3d0] sm:$0xff] %vm2155_vm1, %v7407_v63  ;;  %10385 = vtanh.f32 %v5745_v62  ;;  %vm7283_vm8 = vcmp.eq.s32.totalorder %v7153_v22, 1  ;;  %vm7284_vm9 = vcmp.eq.s32.totalorder %v7156_v24, 1 }
 0x4d4   :  { %v10378_v12 = vpop.eup %10377  ;;  %10387 = vrcp.f32 %v5235_v26  ;;  %v7406_v43 = vsel %vm7278_vm4, %v6382_v4, 1.0  ;;  %v5619_v3 = vmul.f32 %v10376_v49, %v3699_v50  ;;  %v5746_v42 = vadd.f32 %v5618_v21, %v2104_v27 }
 0x4d5   :  { %v6128_v0 = vmul.f32 %v10378_v12, %v6000_v23  ;;  %7534 = vst.msk [vmem:[%s18294_s7 + $0x3c8] sm:$0xff] %vm2155_vm1, %v7406_v43 }
 0x4d6   :  { %v10380_v6 = vpop.eup %10379  ;;  %v5747_v9 = vadd.f32 %v5619_v3, %v2109_v2  ;;  %10389 = vtanh.f32 %v5746_v42 }
 0x4d7   :  { %10391 = vrcp.f32 %v5236_v39  ;;  %v6384_v7 = vadd.f32 %v6256_v52, %v6128_v0  ;;  %v5620_v15 = vmul.f32 %v10380_v6, %v3700_v19  ;;  %v10382_v56 = vpop.eup %10381 }
 0x4d8   :  { %10393 = vtanh.f32 %v5747_v9  ;;  %v10384_v40 = vpop.eup %10383  ;;  %v6001_v59 = vsub.f32 1.0, %v10382_v56  ;;  %v6257_v30 = vmul.f32 %v10558_v60, %v10382_v56 }
 0x4d9   :  { %v7408_v11 = vsel %vm7280_vm5, %v6384_v7, 1.0  ;;  %v5748_v31 = vadd.f32 %v5620_v15, %v2112_v48  ;;  %v6002_v10 = vsub.f32 1.0, %v10384_v40  ;;  %v6258_v5 = vmul.f32 %v10559_v20, %v10384_v40 }
 0x4da   :  { %7536 = vst.msk [vmem:[%s18294_s7 + $0x3d8] sm:$0xff] %vm2155_vm1, %v7408_v11 }
 0x4db   :  { %10395 = vtanh.f32 %v5748_v31 }
 0x4dd   :  { %v10386_v29 = vpop.eup %10385 }
 0x4de   :  { %v10388_v16 = vpop.eup %10387  ;;  %v6129_v51 = vmul.f32 %v10386_v29, %v6001_v59 }
 0x4df   :  { %v6003_v36 = vsub.f32 1.0, %v10388_v16  ;;  %v6259_v41 = vmul.f32 %v10560_v37, %v10388_v16 }
 0x4e0   :  { %v10390_v14 = vpop.eup %10389  ;;  %v6385_v34 = vadd.f32 %v6257_v30, %v6129_v51 }
 0x4e1   :  { %v10392_v32 = vpop.eup %10391  ;;  %v6130_v44 = vmul.f32 %v10390_v14, %v6002_v10 }
 0x4e2   :  { %v10394_v17 = vpop.eup %10393  ;;  %v7409_v53 = vsel %vm7281_vm6, %v6385_v34, 1.0  ;;  %v6004_v25 = vsub.f32 1.0, %v10392_v32  ;;  %v6260_v57 = vmul.f32 %v10561_v46, %v10392_v32 }
 0x4e3   :  { %v6131_v47 = vmul.f32 %v10394_v17, %v6003_v36  ;;  %7537 = vst.msk [vmem:[%s18294_s7 + $0x3e0] sm:$0xff] %vm2155_vm1, %v7409_v53  ;;  %v6386_v55 = vadd.f32 %v6258_v5, %v6130_v44 }
 0x4e5   :  { %v10396_v58 = vpop.eup %10395  ;;  %v6387_v28 = vadd.f32 %v6259_v41, %v6131_v47  ;;  %v7410_v26 = vsel %vm7282_vm7, %v6386_v55, 1.0 }
 0x4e6   :  { %v6132_v50 = vmul.f32 %v10396_v58, %v6004_v25  ;;  %7538 = vst.msk [vmem:[%s18294_s7 + $0x3e8] sm:$0xff] %vm2155_vm1, %v7410_v26 }
 0x4e7   :  { %v7411_v18 = vsel %vm7283_vm8, %v6387_v28, 1.0 }
 0x4e8   :  { %7539 = vst.msk [vmem:[%s18294_s7 + $0x3f0] sm:$0xff] %vm2155_vm1, %v7411_v18  ;;  %v6388_v45 = vadd.f32 %v6260_v57, %v6132_v50 }
 0x4ea   :  { %v7412_v2 = vsel %vm7284_vm9, %v6388_v45, 1.0 }
 0x4eb   :  { %7540 = vst.msk [vmem:[%s18294_s7 + $0x3f8] sm:$0xff] %vm2155_vm1, %v7412_v2 }

</bundles_post_ra>
